<compile_context>
chip_gen: v5e
topology: v5e:2x2
jax: 0.10.0
libtpu: 0.0.40
codegen_flags: <defaults>
</compile_context>

<pallas_src>
import jax
import jax.numpy as jnp
from jax.experimental import pallas as pl
from jax.experimental.pallas import tpu as pltpu

IN_DIM = 128
HID_DIM = 1024
OUT_DIM = 784
OUT_PAD = 896  # next multiple of 128 -> unmasked, lane-dense output stores


def _round_up(x, m):
    return (x + m - 1) // m * m


def _generator_kernel(x_ref, w1_ref, b1_ref, w2_ref, b2_ref, w3_ref, b3_ref,
                      out_ref):
    # Matmul operands are bf16 (MXU peak dtype on v5e/v6e/v7x); accumulate in
    # f32.  Bias add / ReLU / tanh stay f32 (v5e has no bf16 VPU/EUP path).
    h1 = jnp.dot(x_ref[...], w1_ref[...], preferred_element_type=jnp.float32)
    h1 = jnp.maximum(h1 + b1_ref[...], 0.0)

    h2 = jnp.dot(h1.astype(jnp.bfloat16), w2_ref[...],
                 preferred_element_type=jnp.float32)
    h2 = jnp.maximum(h2 + b2_ref[...], 0.0)

    h3 = jnp.dot(h2.astype(jnp.bfloat16), w3_ref[...],
                 preferred_element_type=jnp.float32)
    out_ref[...] = jnp.tanh(h3 + b3_ref[...]).astype(out_ref.dtype)


def generator_forward(x, params, *, batch_tile=256):
    """x: (B, 128) float32.  params: dict of PyTorch-layout (out, in) weights."""
    B = x.shape[0]

    # Adaptive batch tile: 256 rows for real batches (feeds a 256x256 MXU and
    # amortizes the ~0.35us/step pipeline overhead), but never larger than the
    # 8-aligned batch itself.  Pad the batch to a multiple of the tile.
    tile = min(batch_tile, _round_up(B, 8))
    b_pad = _round_up(B, tile)
    if b_pad != B:
        x = jnp.pad(x, ((0, b_pad - B), (0, 0)))

    # Glue (one-time layout work, fused away under jit):
    # PyTorch (out, in) -> (in, out); cast matmul operands to bf16; pad the
    # last layer from 784 to 896 output features with zeros.
    w1 = params["w1"].T.astype(jnp.bfloat16)                             # (128, 1024)
    w2 = params["w2"].T.astype(jnp.bfloat16)                             # (1024, 1024)
    w3 = jnp.pad(params["w3"].T,
                 ((0, 0), (0, OUT_PAD - OUT_DIM))).astype(jnp.bfloat16)  # (1024, 896)
    b1 = params["b1"].reshape(1, HID_DIM).astype(jnp.float32)
    b2 = params["b2"].reshape(1, HID_DIM).astype(jnp.float32)
    b3 = jnp.pad(params["b3"], (0, OUT_PAD - OUT_DIM)).reshape(1, OUT_PAD)
    b3 = b3.astype(jnp.float32)
    x_bf16 = x.astype(jnp.bfloat16)

    grid = (b_pad // tile,)
    full = lambda i: (0, 0)                    # grid-invariant blocks
    single = pl.Buffered(buffer_count=1)       # weights never change -> 1 buffer

    out = pl.pallas_call(
        _generator_kernel,
        out_shape=jax.ShapeDtypeStruct((b_pad, OUT_PAD), jnp.float32),
        grid_spec=pltpu.PrefetchScalarGridSpec(
            num_scalar_prefetch=0,
            grid=grid,
            in_specs=[
                pl.BlockSpec((tile, IN_DIM), lambda i: (i, 0)),                # x tile
                pl.BlockSpec((IN_DIM, HID_DIM), full, pipeline_mode=single),   # w1
                pl.BlockSpec((1, HID_DIM), full, pipeline_mode=single),        # b1
                pl.BlockSpec((HID_DIM, HID_DIM), full, pipeline_mode=single),  # w2
                pl.BlockSpec((1, HID_DIM), full, pipeline_mode=single),        # b2
                pl.BlockSpec((HID_DIM, OUT_PAD), full, pipeline_mode=single),  # w3
                pl.BlockSpec((1, OUT_PAD), full, pipeline_mode=single),        # b3
            ],
            out_specs=pl.BlockSpec((tile, OUT_PAD), lambda i: (i, 0)),
        ),
        compiler_params=pltpu.CompilerParams(
            dimension_semantics=("parallel",),
            # Actual footprint ~10 MiB with bf16 weights + double-buffered
            # activation tiles; 32 MiB leaves compiler headroom and still fits
            # inside v7x's 64 MiB physical VMEM.
            vmem_limit_bytes=32 << 20,
        ),
    )(x_bf16, w1, b1, w2, b2, w3, b3)

    # Strip batch padding and the 784 -> 896 lane padding.
    return out[:B, :OUT_DIM]


def init_params(key):
    """Deterministic synthetic parameters in PyTorch Linear layout (out, in)."""
    ks = jax.random.split(key, 6)

    def lin(kw, kb, fan_in, fan_out):
        bound = 1.0 / jnp.sqrt(fan_in)
        w = jax.random.uniform(kw, (fan_out, fan_in), jnp.float32, -bound, bound)
        b = jax.random.uniform(kb, (fan_out,), jnp.float32, -bound, bound)
        return w, b

    w1, b1 = lin(ks[0], ks[1], IN_DIM, HID_DIM)
    w2, b2 = lin(ks[2], ks[3], HID_DIM, HID_DIM)
    w3, b3 = lin(ks[4], ks[5], HID_DIM, OUT_DIM)
    return {"w1": w1, "b1": b1, "w2": w2, "b2": b2, "w3": w3, "b3": b3}


def _reference_forward(x, params):
    h1 = jnp.maximum(x @ params["w1"].T + params["b1"], 0.0)
    h2 = jnp.maximum(h1 @ params["w2"].T + params["b2"], 0.0)
    return jnp.tanh(h2 @ params["w3"].T + params["b3"])


if __name__ == "__main__":
    key = jax.random.PRNGKey(0)
    k_params, k_x = jax.random.split(key)

    params = init_params(k_params)

    # Small test that still exercises the general paths: batch=100 with
    # batch_tile=64 -> batch padded to 128, a 2-step grid (feeds both v7x
    # TensorCores), and the 784->896 output padding + final slice.
    batch = 100
    x = jax.random.normal(k_x, (batch, IN_DIM), dtype=jnp.float32)

    out = generator_forward(x, params, batch_tile=64)
    out = jax.block_until_ready(out)

    ref = _reference_forward(x, params)
    assert out.shape == (batch, OUT_DIM)
    # bf16 matmul operands vs f32 reference -> loosened tolerance.
    assert jnp.allclose(out, ref, atol=3e-2, rtol=3e-2), "mismatch vs reference"

    print("KERNEL_OK")
</pallas_src>

<mosaic_0001>
module attributes {stable_mosaic.version = 11 : i64} {
  func.func @_generator_kernel(%arg0: i32, %arg1: memref<64x128xbf16, #tpu.memory_space<vmem>>, %arg2: memref<128x1024xbf16, #tpu.memory_space<vmem>>, %arg3: memref<1x1024xf32, #tpu.memory_space<vmem>>, %arg4: memref<1024x1024xbf16, #tpu.memory_space<vmem>>, %arg5: memref<1x1024xf32, #tpu.memory_space<vmem>>, %arg6: memref<1024x896xbf16, #tpu.memory_space<vmem>>, %arg7: memref<1x896xf32, #tpu.memory_space<vmem>>, %arg8: memref<64x896xf32, #tpu.memory_space<vmem>>) attributes {dimension_semantics = [#tpu.dimension_semantics<parallel>], iteration_bounds = array<i64: 2>, scalar_prefetch = 0 : i64, scratch_operands = 0 : i64, tpu.core_type = #tpu.core_type<tc>, window_params = [{transform_indices = @transform_0, window_bounds = array<i64: 64, 128>}, {pipeline_mode = #tpu.pipeline_mode<synchronous>, transform_indices = @transform_1, window_bounds = array<i64: 128, 1024>}, {pipeline_mode = #tpu.pipeline_mode<synchronous>, transform_indices = @transform_2, window_bounds = array<i64: 1, 1024>}, {pipeline_mode = #tpu.pipeline_mode<synchronous>, transform_indices = @transform_3, window_bounds = array<i64: 1024, 1024>}, {pipeline_mode = #tpu.pipeline_mode<synchronous>, transform_indices = @transform_4, window_bounds = array<i64: 1, 1024>}, {pipeline_mode = #tpu.pipeline_mode<synchronous>, transform_indices = @transform_5, window_bounds = array<i64: 1024, 896>}, {pipeline_mode = #tpu.pipeline_mode<synchronous>, transform_indices = @transform_6, window_bounds = array<i64: 1, 896>}, {transform_indices = @transform_7, window_bounds = array<i64: 64, 896>}]} {
    %c0 = arith.constant 0 : index
    %c0_0 = arith.constant 0 : index
    %0 = vector.load %arg1[%c0, %c0_0] : memref<64x128xbf16, #tpu.memory_space<vmem>>, vector<64x128xbf16>
    %c0_1 = arith.constant 0 : index
    %c0_2 = arith.constant 0 : index
    %1 = vector.load %arg2[%c0_1, %c0_2] : memref<128x1024xbf16, #tpu.memory_space<vmem>>, vector<128x1024xbf16>
    %cst = arith.constant dense<0.000000e+00> : vector<64x1024xf32>
    %2 = tpu.matmul %0, %1, %cst {dimension_numbers = #tpu.dot_dimension_numbers<[1], [0], [0], [1], [0, 0, 1, 1], [], []>} : vector<64x128xbf16>, vector<128x1024xbf16>, vector<64x1024xf32> -> vector<64x1024xf32>
    %c0_3 = arith.constant 0 : index
    %c0_4 = arith.constant 0 : index
    %3 = vector.load %arg3[%c0_3, %c0_4] : memref<1x1024xf32, #tpu.memory_space<vmem>>, vector<1x1024xf32>
    %4 = vector.broadcast %3 : vector<1x1024xf32> to vector<64x1024xf32>
    %5 = arith.addf %2, %4 : vector<64x1024xf32>
    %cst_5 = arith.constant 0.000000e+00 : f32
    %6 = vector.broadcast %cst_5 : f32 to vector<64x1024xf32>
    %7 = arith.maximumf %5, %6 : vector<64x1024xf32>
    %8 = arith.truncf %7 : vector<64x1024xf32> to vector<64x1024xbf16>
    %c0_6 = arith.constant 0 : index
    %c0_7 = arith.constant 0 : index
    %9 = vector.load %arg4[%c0_6, %c0_7] : memref<1024x1024xbf16, #tpu.memory_space<vmem>>, vector<1024x1024xbf16>
    %cst_8 = arith.constant dense<0.000000e+00> : vector<64x1024xf32>
    %10 = tpu.matmul %8, %9, %cst_8 {dimension_numbers = #tpu.dot_dimension_numbers<[1], [0], [0], [1], [0, 0, 1, 1], [], []>} : vector<64x1024xbf16>, vector<1024x1024xbf16>, vector<64x1024xf32> -> vector<64x1024xf32>
    %c0_9 = arith.constant 0 : index
    %c0_10 = arith.constant 0 : index
    %11 = vector.load %arg5[%c0_9, %c0_10] : memref<1x1024xf32, #tpu.memory_space<vmem>>, vector<1x1024xf32>
    %12 = vector.broadcast %11 : vector<1x1024xf32> to vector<64x1024xf32>
    %13 = arith.addf %10, %12 : vector<64x1024xf32>
    %cst_11 = arith.constant 0.000000e+00 : f32
    %14 = vector.broadcast %cst_11 : f32 to vector<64x1024xf32>
    %15 = arith.maximumf %13, %14 : vector<64x1024xf32>
    %16 = arith.truncf %15 : vector<64x1024xf32> to vector<64x1024xbf16>
    %c0_12 = arith.constant 0 : index
    %c0_13 = arith.constant 0 : index
    %17 = vector.load %arg6[%c0_12, %c0_13] : memref<1024x896xbf16, #tpu.memory_space<vmem>>, vector<1024x896xbf16>
    %cst_14 = arith.constant dense<0.000000e+00> : vector<64x896xf32>
    %18 = tpu.matmul %16, %17, %cst_14 {dimension_numbers = #tpu.dot_dimension_numbers<[1], [0], [0], [1], [0, 0, 1, 1], [], []>} : vector<64x1024xbf16>, vector<1024x896xbf16>, vector<64x896xf32> -> vector<64x896xf32>
    %c0_15 = arith.constant 0 : index
    %c0_16 = arith.constant 0 : index
    %19 = vector.load %arg7[%c0_15, %c0_16] : memref<1x896xf32, #tpu.memory_space<vmem>>, vector<1x896xf32>
    %20 = vector.broadcast %19 : vector<1x896xf32> to vector<64x896xf32>
    %21 = arith.addf %18, %20 : vector<64x896xf32>
    %22 = math.tanh %21 : vector<64x896xf32>
    %c0_17 = arith.constant 0 : index
    %c0_18 = arith.constant 0 : index
    %23 = vector.load %arg8[%c0_17, %c0_18] : memref<64x896xf32, #tpu.memory_space<vmem>>, vector<64x896xf32>
    tpu.vector_store %arg8[%c0_17, %c0_18], %22 {strides = array<i32>} : memref<64x896xf32, #tpu.memory_space<vmem>>, vector<64x896xf32>,
    return
  }
  func.func @transform_0(%arg0: i32) -> (i32, i32) {
    %c0_i32 = arith.constant 0 : i32
    %c0_i32_0 = arith.constant 0 : i32
    return %arg0, %c0_i32 : i32, i32
  }
  func.func @transform_1(%arg0: i32) -> (i32, i32) {
    %c0_i32 = arith.constant 0 : i32
    %c0_i32_0 = arith.constant 0 : i32
    %c0_i32_1 = arith.constant 0 : i32
    return %c0_i32, %c0_i32_0 : i32, i32
  }
  func.func @transform_2(%arg0: i32) -> (i32, i32) {
    %c0_i32 = arith.constant 0 : i32
    %c0_i32_0 = arith.constant 0 : i32
    %c0_i32_1 = arith.constant 0 : i32
    return %c0_i32, %c0_i32_0 : i32, i32
  }
  func.func @transform_3(%arg0: i32) -> (i32, i32) {
    %c0_i32 = arith.constant 0 : i32
    %c0_i32_0 = arith.constant 0 : i32
    %c0_i32_1 = arith.constant 0 : i32
    return %c0_i32, %c0_i32_0 : i32, i32
  }
  func.func @transform_4(%arg0: i32) -> (i32, i32) {
    %c0_i32 = arith.constant 0 : i32
    %c0_i32_0 = arith.constant 0 : i32
    %c0_i32_1 = arith.constant 0 : i32
    return %c0_i32, %c0_i32_0 : i32, i32
  }
  func.func @transform_5(%arg0: i32) -> (i32, i32) {
    %c0_i32 = arith.constant 0 : i32
    %c0_i32_0 = arith.constant 0 : i32
    %c0_i32_1 = arith.constant 0 : i32
    return %c0_i32, %c0_i32_0 : i32, i32
  }
  func.func @transform_6(%arg0: i32) -> (i32, i32) {
    %c0_i32 = arith.constant 0 : i32
    %c0_i32_0 = arith.constant 0 : i32
    %c0_i32_1 = arith.constant 0 : i32
    return %c0_i32, %c0_i32_0 : i32, i32
  }
  func.func @transform_7(%arg0: i32) -> (i32, i32) {
    %c0_i32 = arith.constant 0 : i32
    %c0_i32_0 = arith.constant 0 : i32
    return %arg0, %c0_i32 : i32, i32
  }
}

</mosaic_0001>

<bundles_post_ra>
// kernel: tpu_custom_call.1
= control target key start
LH: loop header
LB: loop body
LE: loop exit
PB: predicated region body
PF: predicated region fallthrough
CT: control target
= control target key end

     0   :  { %s19024_s0 = inlined_call_operand.hbm [shape: bf16[128,128], index: 0, kind: input, shape index: {}]   ;;  %s19025_s1 = inlined_call_operand.hbm [shape: bf16[128,1024], index: 1, kind: input, shape index: {}]   ;;  %s19026_s2 = inlined_call_operand.hbm [shape: f32[1,1024], index: 2, kind: input, shape index: {}]   ;;  %s19027_s3 = inlined_call_operand.hbm [shape: bf16[1024,1024], index: 3, kind: input, shape index: {}]   ;;  %s19028_s4 = inlined_call_operand.hbm [shape: f32[1,1024], index: 4, kind: input, shape index: {}]   ;;  %s19029_s5 = inlined_call_operand.hbm [shape: bf16[1024,896], index: 5, kind: input, shape index: {}]   ;;  %s19030_s6 = inlined_call_operand.hbm [shape: f32[1,896], index: 6, kind: input, shape index: {}]   ;;  %s19031_s7 = inlined_call_operand.hbm [shape: f32[128,896], index: 7, kind: output, shape index: {}]  }
   0x1   :  { %19079 = sst [smem:[#allocation49_spill]] %s19025_s1 }
   0x2   :  { %19080 = sst [smem:[#allocation50_spill]] %s19026_s2 }
   0x3   :  { %12 = vsyncpa [#allocation3], 0 }
   0x4   :  { %14 = vsyncpa [#allocation3 + $0x1], 0 }
   0x5   :  { %15 = vsyncpa [#allocation6], 0 }
   0x6   :  { %16 = vsyncpa [#allocation9], 0 }
   0x7   :  { %17 = vsyncpa [#allocation12], 0 }
   0x8   :  { %18 = vsyncpa [#allocation4], 0 }
   0x9   :  { %20 = vsyncpa [#allocation4 + $0x1], 0  ;;  %s16658_s24 = smov 0   ;;  %s16660_s25 = smov 0  }
   0xa   :  { %s16662_s26 = smov 0   ;;  %s16664_s27 = smov 0  }
   0xb LB: > { %s19081_s1 = sld [smem:[#allocation49_spill]]  ;;  %s16682_s8 = sadd.s32 4294967295, %s16602_s27   ;;  %s16602_s27 = sphi %s16664_s27, %s19305_s27   ;;  %s16598_s26 = sphi %s16662_s26, %s19304_s26   ;;  %s16594_s25 = sphi %s16660_s25, %s19303_s25   ;;  %s16590_s24 = sphi %s16658_s24, %s19302_s24  }
   0xc   : > { %p10914_p0 = scmp.ge.s32.totalorder %s16602_s27, 1  ;;  %p47_p1 = scmp.eq.s32.totalorder %s16682_s8, 0 }
   0xd   : > { %p209_p2 = scmp.lt.s32.totalorder %s16602_s27, 3  ;;  %s16604_s10 = smov [#allocation5]  }
   0xe   : > { %s222_s11 = sshll.u32 %s16604_s10, 4  ;;  %s246_s14 = sshll.u32 %s19027_s3, 4  ;;  %s223_s11 = int_to_ptr.vmem [resolvable:$true] %s222_s11  ;;  %s247_s14 = int_to_ptr.hbm [resolvable:$true] %s246_s14 }
   0xf   : > { %p16687_p3 = pnand %p10914_p0, %p209_p2  ;;  %s272_s18 = sshll.u32 %s19029_s5, 4  ;;  %s273_s18 = int_to_ptr.hbm [resolvable:$true] %s272_s18 }
  0x10   : > { %s16605_s19 = smov [#allocation8]   ;;  %s16606_s21 = smov 512  }
  0x11   : > { %s220_s30 = sshll.u32 %s19081_s1, 4  ;;  %p16109_p4 = pneg %p16687_p3  ;;  %s221_s30 = int_to_ptr.hbm [resolvable:$true] %s220_s30 }
  0x12   : > { %s248_s20 = sshll.u32 %s16605_s19, 4  ;;  %s16607_s22 = smov 32   ;;  %s249_s20 = int_to_ptr.vmem [resolvable:$true] %s248_s20 }
  0x13   : > { %p16699_p6 = pnand %p16109_p4, %p47_p1  ;;  %s16608_s23 = smov [#allocation11]  }
  0x14   : > { %s274_s28 = sshll.u32 %s16608_s23, 4  ;;  %s19084_s2 = sld [smem:[#allocation50_spill]]  ;;  %s275_s28 = int_to_ptr.vmem [resolvable:$true] %s274_s28 }
  0x15   : > { %16112 = dma.hbm_to_vmem [thread:$0]  (!%p16699_p6), %s221_s30, 8192, %s223_s11, [#allocation6], %s16606_s21, %s16606_s21, %s16607_s22  }
  0x16   : > { %16118 = dma.hbm_to_vmem [thread:$0]  (!%p16699_p6), %s247_s14, 65536, %s249_s20, [#allocation9], %s16606_s21, %s16606_s21, %s16607_s22  }
  0x17   : > { %s16609_s13 = smov 448   ;;  %s16610_s16 = smov 28  }
  0x18   : > { %16124 = dma.hbm_to_vmem [thread:$0]  (!%p16699_p6), %s273_s18, 57344, %s275_s28, [#allocation12], %s16609_s13, %s16609_s13, %s16610_s16  }
  0x19   : > { %s16611_s30 = smov [#allocation7]   ;;  %s261_s14 = sshll.u32 %s19028_s4, 4  ;;  %s262_s14 = int_to_ptr.hbm [resolvable:$true] %s261_s14 }
  0x1a   : > { %s235_s12 = sshll.u32 %s19084_s2, 4  ;;  %s237_s11 = sshll.u32 %s16611_s30, 4  ;;  %s236_s12 = int_to_ptr.hbm [resolvable:$true] %s235_s12  ;;  %s238_s11 = int_to_ptr.vmem [resolvable:$true] %s237_s11 }
  0x1b   : > { %16115 = dma.hbm_to_vmem [thread:$0]  (!%p16699_p6), %s236_s12, 128, %s238_s11, [#allocation6]  }
  0x1c   : > { %s287_s18 = sshll.u32 %s19030_s6, 4  ;;  %s16612_s22 = smov [#allocation10]   ;;  %s288_s18 = int_to_ptr.hbm [resolvable:$true] %s287_s18 }
  0x1d   : > { %s263_s23 = sshll.u32 %s16612_s22, 4  ;;  %s16613_s28 = smov [#allocation13]   ;;  %s264_s23 = int_to_ptr.vmem [resolvable:$true] %s263_s23 }
  0x1e   : > { %16121 = dma.hbm_to_vmem [thread:$0]  (!%p16699_p6), %s262_s14, 128, %s264_s23, [#allocation9]  }
  0x1f   : > { %s289_s29 = sshll.u32 %s16613_s28, 4  ;;  %s10913_s10 = sadd.s32 4294967294, %s16602_s27   ;;  %s290_s29 = int_to_ptr.vmem [resolvable:$true] %s289_s29 }
  0x20   : > { %16127 = dma.hbm_to_vmem [thread:$0]  (!%p16699_p6), %s288_s18, 112, %s290_s29, [#allocation12]  }
  0x21   : > { %s16729_s12 = sadd.s32 1, %s16602_s27   ;;  %s33_s16 = sadd.s32 1, %s16598_s26 }
  0x22   : > { %s30_s13 = ssub.s32 %s16602_s27, %s16729_s12  ;;  %p40_p8 = scmp.ne.s32.totalorder %s16598_s26, %s16594_s25 }
  0x23   : > { %p31_p7 = scmp.eq.s32.totalorder %s30_s13, 0  ;;  %p41_p9 = scmp.eq.s32.totalorder %s16602_s27, 0 }
  0x24   : > { %p46_p10 = scmp.ne.s32.totalorder %s16594_s25, %s16590_s24  ;;  %p196_p13 = scmp.eq.s32.totalorder %s16682_s8, 1 }
  0x25   : > { %s16740_s30 = scalar_select %p31_p7, %s16598_s26, %s33_s16  }
  0x26   : > { %p16742_p11 = por %p41_p9, %p40_p8  ;;  %p16748_p12 = por %p47_p1, %p46_p10 }
  0x27   : > { %p202_p0 = scmp.eq.s32.totalorder %s10913_s10, 1  ;;  %p16142_p2 = scmp.lt.s32.totalorder %s16602_s27, 2 }
  0x28   : > { %s300_s17 = sand.u32 1, %s16598_s26   ;;  %p16755_p4 = por %p196_p13, %p40_p8 }
  0x29   : > { %p16759_p6 = por %p202_p0, %p46_p10  ;;  %s10922_s20 = sshll.u32 %s300_s17, 5 }
  0x2a   : > { %s15050_s21 = sshll.u32 %s16602_s27, 5  ;;  %s304_s28 = scalar_lea.vmem [#allocation2], %s10922_s20 }
  0x2b   : > { %s309_s23 = scalar_lea.hbm %s19024_s0, %s15050_s21  ;;  %s312_s29 = sshll.u32 %s304_s28, 4  ;;  %s313_s29 = int_to_ptr.vmem [resolvable:$true] %s312_s29 }
  0x2c   : > { %s310_s13 = sshll.u32 %s309_s23, 4  ;;  %p16769_p7 = pnand %p16142_p2, %p16742_p11  ;;  %s311_s13 = int_to_ptr.hbm [resolvable:$true] %s310_s13 }
  0x2d   : > { %s301_s16 = scalar_lea.sflag [#allocation3], %s300_s17  ;;  %s16494_s1 = sshra.s32 %s311_s13, 4  ;;  %s16495_s1 = int_to_ptr.hbm [resolvable:$true] %s16494_s1 }
  0x2e   : > { %s16496_s2 = scalar_lea.hbm %s16495_s1, 32  ;;  %p16498_p9 = pneg %p16769_p7 }
  0x2f   : > { %p16497_p8 = scmp.ne.s32.totalorder %s16495_s1, %s16496_s2  ;;  %s16501_s18 = scalar_lea.hbm %s19024_s0, 64 }
  0x30   : > { %p16502_p11 = scmp.lt.s32.totalorder %s16495_s1, %s19024_s0  ;;  %p16503_p0 = scmp.lt.s32.totalorder %s16501_s18, %s16496_s2 }
  0x31   : > { %p16499_p10 = pnand %p16498_p9, %p16497_p8 }
  0x32   : > { %p16504_p2 = por %p16503_p0, %p16502_p11 }
  0x33   : > { %p16500_p13 = pneg %p16499_p10 }
  0x35   : > { %p16505_p5 = pnand %p16504_p2, %p16500_p13 }
  0x37   : > { %16508 = shalt.err (!%p16505_p5)
}
  0x38   : > { %s16614_s17 = smov 64   ;;  %s16615_s23 = smov 4  }
  0x39   : > { %16131 = dma.hbm_to_vmem [thread:$0]  (!%p16769_p7), %s311_s13, 512, %s313_s29, %s301_s16, %s16614_s17, %s16614_s17, %s16615_s23  }
  0x3a   : > { %324 = sbr.rel (%p16687_p3) target bundleno = 2332 (0x91c), region = 48 }
  0x3f   : > { %s16786_s28 = sand.u32 1, %s16594_s25  }
  0x40   : > { %s10926_s20 = sshll.u32 %s16786_s28, 5  ;;  %s327_s1 = scalar_lea.sflag [#allocation3], %s16786_s28 }
  0x41   : > { %s16790_s2 = scalar_lea.vmem [#allocation2], %s10926_s20 }
  0x42   : > { %16569 = dma.done.wait (%p16748_p12), %s327_s1, 512  }
  0x43   : > { %16571 = vsyncadd (%p16748_p12), %s327_s1, 4294966784 }
  0x44   : > { %16573 = dma.done.wait (%p47_p1), [#allocation6], 8320  }
  0x45   : > { %16575 = vsyncadd (%p47_p1), [#allocation6], 4294958976 }
  0x46   : > { %16577 = dma.done.wait (%p47_p1), [#allocation9], 65664  }
  0x47   : > { %16579 = vsyncadd (%p47_p1), [#allocation9], 4294901632 }
  0x48   : > { %16581 = dma.done.wait (%p47_p1), [#allocation12], 57456  }
  0x49   : > { %16583 = vsyncadd (%p47_p1), [#allocation12], 4294909840  ;;  %v11175_v0 = vld [vmem:[#allocation5 + $0x1c0] sm:$0xf]  ;;  %v15111_v2 = vld [vmem:[#allocation5 + $0x1c4] sm:$0xf] }
  0x4a   : > { %v15115_v1 = vld [vmem:[#allocation5 + $0x1dc] sm:$0xf0]  ;;  %v11177_v4 = vld [vmem:[#allocation5 + $0x1e0] sm:$0xf0]  ;;  %v11183_v5 = vld [vmem:[#allocation5 + $0x1c8] sm:$0xf] }
  0x4b   : > { %v11176_v3 = vor.u32 %v15115_v1, %v11175_v0  ;;  %v15116_v6 = vld [vmem:[#allocation5 + $0x1e4] sm:$0xf0]  ;;  %v11180_v7 = vor.u32 %v15111_v2, %v11177_v4  ;;  %v15112_v9 = vld [vmem:[#allocation5 + $0x1cc] sm:$0xf]  ;;  %v11143_v11 = vld [vmem:[#allocation5 + $0x180] sm:$0xf] }
  0x4c   : > { %v11184_v8 = vor.u32 %v15116_v6, %v11183_v5  ;;  %v11185_v10 = vld [vmem:[#allocation5 + $0x1e8] sm:$0xf0]  ;;  %v15107_v13 = vld [vmem:[#allocation5 + $0x19c] sm:$0xf0]  ;;  %v15103_v14 = vld [vmem:[#allocation5 + $0x184] sm:$0xf] }
  0x4d   : > { %828 = vmatpush.bf16.msra.mxu0 %v11176_v3  ;;  %v11188_v12 = vor.u32 %v15112_v9, %v11185_v10  ;;  %v11145_v15 = vld [vmem:[#allocation5 + $0x1a0] sm:$0xf0]  ;;  %857 = vmatpush.bf16.msra.mxu1 %v11180_v7  ;;  %v11144_v16 = vor.u32 %v15107_v13, %v11143_v11  ;;  %v11151_v18 = vld [vmem:[#allocation5 + $0x188] sm:$0xf]  ;;  %v15104_v20 = vld [vmem:[#allocation5 + $0x18c] sm:$0xf] }
  0x4e   : > { %886 = vmatpush.bf16.msra.mxu2 %v11184_v8  ;;  %v11148_v17 = vor.u32 %v15103_v14, %v11145_v15  ;;  %v15108_v19 = vld [vmem:[#allocation5 + $0x1a4] sm:$0xf0]  ;;  %v11153_v22 = vld [vmem:[#allocation5 + $0x1a8] sm:$0xf0]  ;;  %v11111_v23 = vld [vmem:[#allocation5 + $0x140] sm:$0xf] }
  0x4f   : > { %915 = vmatpush.bf16.msra.mxu3 %v11188_v12  ;;  %v11152_v21 = vor.u32 %v15108_v19, %v11151_v18  ;;  %v15099_v24 = vld [vmem:[#allocation5 + $0x15c] sm:$0xf0]  ;;  %v11156_v25 = vor.u32 %v15104_v20, %v11153_v22  ;;  %v15095_v26 = vld [vmem:[#allocation5 + $0x144] sm:$0xf]  ;;  %v11119_v28 = vld [vmem:[#allocation5 + $0x148] sm:$0xf] }
  0x50   : > { %v11113_v27 = vld [vmem:[#allocation5 + $0x160] sm:$0xf0]  ;;  %v11112_v29 = vor.u32 %v15099_v24, %v11111_v23  ;;  %v15100_v30 = vld [vmem:[#allocation5 + $0x164] sm:$0xf0]  ;;  %v15096_v31 = vld [vmem:[#allocation5 + $0x14c] sm:$0xf] }
  0x51   : > { %829 = vmatpush.bf16.msra.mxu0 %v11144_v16  ;;  %v11121_v32 = vld [vmem:[#allocation5 + $0x168] sm:$0xf0]  ;;  %858 = vmatpush.bf16.msra.mxu1 %v11148_v17  ;;  %v11116_v33 = vor.u32 %v15095_v26, %v11113_v27  ;;  %v11120_v34 = vor.u32 %v15100_v30, %v11119_v28  ;;  %v11079_v35 = vld [vmem:[#allocation5 + $0x100] sm:$0xf]  ;;  %v15087_v37 = vld [vmem:[#allocation5 + $0x104] sm:$0xf] }
  0x52   : > { %887 = vmatpush.bf16.msra.mxu2 %v11152_v21  ;;  %v15091_v36 = vld [vmem:[#allocation5 + $0x11c] sm:$0xf0]  ;;  %v11124_v38 = vor.u32 %v15096_v31, %v11121_v32  ;;  %v11081_v39 = vld [vmem:[#allocation5 + $0x120] sm:$0xf0]  ;;  %v11087_v40 = vld [vmem:[#allocation5 + $0x108] sm:$0xf] }
  0x53   : > { %916 = vmatpush.bf16.msra.mxu3 %v11156_v25  ;;  %v15092_v41 = vld [vmem:[#allocation5 + $0x124] sm:$0xf0]  ;;  %v15088_v42 = vld [vmem:[#allocation5 + $0x10c] sm:$0xf]  ;;  %v11080_v44 = vor.u32 %v15091_v36, %v11079_v35  ;;  %v11084_v45 = vor.u32 %v15087_v37, %v11081_v39  ;;  %v11047_v47 = vld [vmem:[#allocation5 + $0xc0] sm:$0xf] }
  0x54   : > { %v11089_v43 = vld [vmem:[#allocation5 + $0x128] sm:$0xf0]  ;;  %v11088_v46 = vor.u32 %v15092_v41, %v11087_v40  ;;  %v15083_v48 = vld [vmem:[#allocation5 + $0xdc] sm:$0xf0]  ;;  %v15079_v49 = vld [vmem:[#allocation5 + $0xc4] sm:$0xf] }
  0x55   : > { %830 = vmatpush.bf16.msra.mxu0 %v11112_v29  ;;  %859 = vmatpush.bf16.msra.mxu1 %v11116_v33  ;;  %v11092_v50 = vor.u32 %v15088_v42, %v11089_v43  ;;  %v11049_v51 = vld [vmem:[#allocation5 + $0xe0] sm:$0xf0]  ;;  %v11055_v52 = vld [vmem:[#allocation5 + $0xc8] sm:$0xf]  ;;  %v15080_v54 = vld [vmem:[#allocation5 + $0xcc] sm:$0xf]  ;;  %v11048_v56 = vor.u32 %v15083_v48, %v11047_v47 }
  0x56   : > { %888 = vmatpush.bf16.msra.mxu2 %v11120_v34  ;;  %v15084_v53 = vld [vmem:[#allocation5 + $0xe4] sm:$0xf0]  ;;  %v11057_v55 = vld [vmem:[#allocation5 + $0xe8] sm:$0xf0]  ;;  %v11052_v57 = vor.u32 %v15079_v49, %v11049_v51  ;;  %v11015_v59 = vld [vmem:[#allocation5 + $0x80] sm:$0xf] }
  0x57   : > { %917 = vmatpush.bf16.msra.mxu3 %v11124_v38  ;;  %v11056_v58 = vor.u32 %v15084_v53, %v11055_v52  ;;  %v15075_v60 = vld [vmem:[#allocation5 + $0x9c] sm:$0xf0]  ;;  %v15071_v61 = vld [vmem:[#allocation5 + $0x84] sm:$0xf]  ;;  %v11060_v62 = vor.u32 %v15080_v54, %v11057_v55  ;;  %v11023_v0 = vld [vmem:[#allocation5 + $0x88] sm:$0xf] }
  0x58   : > { %v11017_v63 = vld [vmem:[#allocation5 + $0xa0] sm:$0xf0]  ;;  %v15076_v1 = vld [vmem:[#allocation5 + $0xa4] sm:$0xf0]  ;;  %v15072_v2 = vld [vmem:[#allocation5 + $0x8c] sm:$0xf]  ;;  %v11016_v4 = vor.u32 %v15075_v60, %v11015_v59 }
  0x59   : > { %831 = vmatpush.bf16.msra.mxu0 %v11080_v44  ;;  %860 = vmatpush.bf16.msra.mxu1 %v11084_v45  ;;  %v11025_v3 = vld [vmem:[#allocation5 + $0xa8] sm:$0xf0]  ;;  %v11020_v5 = vor.u32 %v15071_v61, %v11017_v63  ;;  %v11024_v6 = vor.u32 %v15076_v1, %v11023_v0  ;;  %v10983_v7 = vld [vmem:[#allocation5 + $0x40] sm:$0xf]  ;;  %v15063_v9 = vld [vmem:[#allocation5 + $0x44] sm:$0xf] }
  0x5a   : > { %889 = vmatpush.bf16.msra.mxu2 %v11088_v46  ;;  %v15067_v8 = vld [vmem:[#allocation5 + $0x5c] sm:$0xf0]  ;;  %v11028_v10 = vor.u32 %v15072_v2, %v11025_v3  ;;  %v10985_v11 = vld [vmem:[#allocation5 + $0x60] sm:$0xf0]  ;;  %v10991_v12 = vld [vmem:[#allocation5 + $0x48] sm:$0xf] }
  0x5b   : > { %918 = vmatpush.bf16.msra.mxu3 %v11092_v50  ;;  %v15068_v13 = vld [vmem:[#allocation5 + $0x64] sm:$0xf0]  ;;  %v15064_v14 = vld [vmem:[#allocation5 + $0x4c] sm:$0xf]  ;;  %v10984_v16 = vor.u32 %v15067_v8, %v10983_v7  ;;  %v10951_v17 = vld [vmem:[#allocation5] sm:$0xf]  ;;  %v10988_v18 = vor.u32 %v15063_v9, %v10985_v11 }
  0x5c   : > { %v10993_v15 = vld [vmem:[#allocation5 + $0x68] sm:$0xf0]  ;;  %v10992_v19 = vor.u32 %v15068_v13, %v10991_v12  ;;  %v15059_v20 = vld [vmem:[#allocation5 + $0x1c] sm:$0xf0]  ;;  %v15055_v21 = vld [vmem:[#allocation5 + $0x4] sm:$0xf] }
  0x5d   : > { %832 = vmatpush.bf16.msra.mxu0 %v11048_v56  ;;  %861 = vmatpush.bf16.msra.mxu1 %v11052_v57  ;;  %v10953_v22 = vld [vmem:[#allocation5 + $0x20] sm:$0xf0]  ;;  %v10996_v23 = vor.u32 %v15064_v14, %v10993_v15  ;;  %v10959_v24 = vld [vmem:[#allocation5 + $0x8] sm:$0xf]  ;;  %v15056_v26 = vld [vmem:[#allocation5 + $0xc] sm:$0xf]  ;;  %v10952_v30 = vor.u32 %v15059_v20, %v10951_v17 }
  0x5e   : > { %890 = vmatpush.bf16.msra.mxu2 %v11056_v58  ;;  %v15060_v25 = vld [vmem:[#allocation5 + $0x24] sm:$0xf0]  ;;  %v10961_v27 = vld [vmem:[#allocation5 + $0x28] sm:$0xf0]  ;;  %v11199_v28 = vld [vmem:[#allocation5 + $0x1d8] sm:$0xf]  ;;  %v10956_v33 = vor.u32 %v15055_v21, %v10953_v22 }
  0x5f   : > { %919 = vmatpush.bf16.msra.mxu3 %v11060_v62  ;;  %v15118_v29 = vld [vmem:[#allocation5 + $0x1f4] sm:$0xf0]  ;;  %v15114_v31 = vld [vmem:[#allocation5 + $0x1dc] sm:$0xf]  ;;  %v10960_v34 = vor.u32 %v15060_v25, %v10959_v24  ;;  %v16809_v35 = vld [vmem:[%s16790_s2] sm:$0xff]  ;;  %v10964_v36 = vor.u32 %v15056_v26, %v10961_v27  ;;  %s16079_s9 = smul.u32 448, %s16786_s28 }
  0x60   : > { %v11201_v32 = vld [vmem:[#allocation5 + $0x1f8] sm:$0xf0]  ;;  %v11200_v37 = vor.u32 %v15118_v29, %v11199_v28  ;;  %v11191_v38 = vld [vmem:[#allocation5 + $0x1d0] sm:$0xf]  ;;  %v11167_v40 = vld [vmem:[#allocation5 + $0x198] sm:$0xf] }
  0x61   : > { %833 = vmatpush.bf16.msra.mxu0 %v11016_v4  ;;  %862 = vmatpush.bf16.msra.mxu1 %v11020_v5  ;;  %v15117_v39 = vld [vmem:[#allocation5 + $0x1ec] sm:$0xf0]  ;;  %v11204_v41 = vor.u32 %v15114_v31, %v11201_v32  ;;  %v15110_v42 = vld [vmem:[#allocation5 + $0x1b4] sm:$0xf0]  ;;  %v15113_v43 = vld [vmem:[#allocation5 + $0x1d4] sm:$0xf] }
  0x62   : > { %891 = vmatpush.bf16.msra.mxu2 %v11024_v6  ;;  %v11193_v44 = vld [vmem:[#allocation5 + $0x1f0] sm:$0xf0]  ;;  %v15106_v45 = vld [vmem:[#allocation5 + $0x19c] sm:$0xf]  ;;  %v11192_v47 = vor.u32 %v15117_v39, %v11191_v38  ;;  %v11168_v48 = vor.u32 %v15110_v42, %v11167_v40  ;;  %v11159_v50 = vld [vmem:[#allocation5 + $0x190] sm:$0xf] }
  0x63   : > { %920 = vmatpush.bf16.msra.mxu3 %v11028_v10  ;;  %v11169_v46 = vld [vmem:[#allocation5 + $0x1b8] sm:$0xf0]  ;;  %v11196_v49 = vor.u32 %v15113_v43, %v11193_v44  ;;  %v15109_v51 = vld [vmem:[#allocation5 + $0x1ac] sm:$0xf0]  ;;  %v11135_v52 = vld [vmem:[#allocation5 + $0x158] sm:$0xf] }
  0x64   : > { %v11172_v53 = vor.u32 %v15106_v45, %v11169_v46  ;;  %v15102_v54 = vld [vmem:[#allocation5 + $0x174] sm:$0xf0]  ;;  %v15105_v55 = vld [vmem:[#allocation5 + $0x194] sm:$0xf]  ;;  %v15098_v57 = vld [vmem:[#allocation5 + $0x15c] sm:$0xf]  ;;  %v11160_v59 = vor.u32 %v15109_v51, %v11159_v50 }
  0x65   : > { %834 = vmatpush.bf16.msra.mxu0 %v10984_v16  ;;  %863 = vmatpush.bf16.msra.mxu1 %v10988_v18  ;;  %v11161_v56 = vld [vmem:[#allocation5 + $0x1b0] sm:$0xf0]  ;;  %v11137_v58 = vld [vmem:[#allocation5 + $0x178] sm:$0xf0]  ;;  %v11136_v60 = vor.u32 %v15102_v54, %v11135_v52  ;;  %v11127_v62 = vld [vmem:[#allocation5 + $0x150] sm:$0xf] }
  0x66   : > { %892 = vmatpush.bf16.msra.mxu2 %v10992_v19  ;;  %v11164_v61 = vor.u32 %v15105_v55, %v11161_v56  ;;  %v15101_v63 = vld [vmem:[#allocation5 + $0x16c] sm:$0xf0]  ;;  %v11103_v0 = vld [vmem:[#allocation5 + $0x118] sm:$0xf]  ;;  %v11140_v1 = vor.u32 %v15098_v57, %v11137_v58  ;;  %v15097_v3 = vld [vmem:[#allocation5 + $0x154] sm:$0xf] }
  0x67   : > { %921 = vmatpush.bf16.msra.mxu3 %v10996_v23  ;;  %v15094_v2 = vld [vmem:[#allocation5 + $0x134] sm:$0xf0]  ;;  %v11129_v4 = vld [vmem:[#allocation5 + $0x170] sm:$0xf0]  ;;  %v15090_v5 = vld [vmem:[#allocation5 + $0x11c] sm:$0xf]  ;;  %v11128_v7 = vor.u32 %v15101_v63, %v11127_v62 }
  0x68   : > { %v11105_v6 = vld [vmem:[#allocation5 + $0x138] sm:$0xf0]  ;;  %v11104_v8 = vor.u32 %v15094_v2, %v11103_v0  ;;  %v11132_v9 = vor.u32 %v15097_v3, %v11129_v4  ;;  %v11095_v10 = vld [vmem:[#allocation5 + $0x110] sm:$0xf]  ;;  %v11071_v12 = vld [vmem:[#allocation5 + $0xd8] sm:$0xf] }
  0x69   : > { %835 = vmatpush.bf16.msra.mxu0 %v10952_v30  ;;  %864 = vmatpush.bf16.msra.mxu1 %v10956_v33  ;;  %v15093_v11 = vld [vmem:[#allocation5 + $0x12c] sm:$0xf0]  ;;  %v11108_v13 = vor.u32 %v15090_v5, %v11105_v6  ;;  %v15086_v14 = vld [vmem:[#allocation5 + $0xf4] sm:$0xf0]  ;;  %v15089_v15 = vld [vmem:[#allocation5 + $0x114] sm:$0xf] }
  0x6a   : > { %893 = vmatpush.bf16.msra.mxu2 %v10960_v34  ;;  %v11097_v16 = vld [vmem:[#allocation5 + $0x130] sm:$0xf0]  ;;  %v15082_v17 = vld [vmem:[#allocation5 + $0xdc] sm:$0xf]  ;;  %v16816_v19 = vld [vmem:[%s16790_s2 + $0x8] sm:$0xff]  ;;  %v11096_v20 = vor.u32 %v15093_v11, %v11095_v10  ;;  %v11072_v21 = vor.u32 %v15086_v14, %v11071_v12  ;;  %s17839_s15 = scalar_lea.vmem [#allocation14], %s16079_s9 }
  0x6b   : > { %922 = vmatpush.bf16.msra.mxu3 %v10964_v36  ;;  %v11073_v18 = vld [vmem:[#allocation5 + $0xf8] sm:$0xf0]  ;;  %v11100_v22 = vor.u32 %v15089_v15, %v11097_v16  ;;  %v11063_v23 = vld [vmem:[#allocation5 + $0xd0] sm:$0xf]  ;;  %v11039_v25 = vld [vmem:[#allocation5 + $0x98] sm:$0xf] }
  0x6c   : > { %836 = vmatmul.bf16.vlgmr.msra.gmra.mxu0 %v16809_v35  ;;  %865 = vmatmul.bf16.vlgmr.msra.gmra.mxu1 %v16809_v35  ;;  %v15085_v24 = vld [vmem:[#allocation5 + $0xec] sm:$0xf0]  ;;  %v11076_v26 = vor.u32 %v15082_v17, %v11073_v18  ;;  %v15078_v27 = vld [vmem:[#allocation5 + $0xb4] sm:$0xf0]  ;;  %v15081_v28 = vld [vmem:[#allocation5 + $0xd4] sm:$0xf] }
  0x6d   : > { %894 = vmatmul.bf16.vlgmr.msra.gmra.mxu2 %v16809_v35  ;;  %944 = vmatpush.bf16.msrb.mxu0 %v11192_v47  ;;  %v11065_v29 = vld [vmem:[#allocation5 + $0xf0] sm:$0xf0]  ;;  %v15074_v30 = vld [vmem:[#allocation5 + $0x9c] sm:$0xf]  ;;  %v11064_v32 = vor.u32 %v15085_v24, %v11063_v23  ;;  %v11040_v33 = vor.u32 %v15078_v27, %v11039_v25  ;;  %v15077_v38 = vld [vmem:[#allocation5 + $0xac] sm:$0xf0] }
  0x6e   : > { %1002 = vmatpush.bf16.msrb.mxu2 %v11200_v37  ;;  %923 = vmatmul.bf16.vlgmr.msra.gmra.mxu3 %v16809_v35  ;;  %v11041_v31 = vld [vmem:[#allocation5 + $0xb8] sm:$0xf0]  ;;  %v11068_v34 = vor.u32 %v15081_v28, %v11065_v29  ;;  %v11031_v37 = vld [vmem:[#allocation5 + $0x90] sm:$0xf]  ;;  %v11007_v39 = vld [vmem:[#allocation5 + $0x58] sm:$0xf] }
  0x6f   : > { %1031 = vmatpush.bf16.msrb.mxu3 %v11204_v41  ;;  %973 = vmatpush.bf16.msrb.mxu1 %v11196_v49  ;;  %v11044_v36 = vor.u32 %v15074_v30, %v11041_v31  ;;  %v11032_v40 = vor.u32 %v15077_v38, %v11031_v37  ;;  %v15070_v41 = vld [vmem:[#allocation5 + $0x74] sm:$0xf0]  ;;  %v15073_v42 = vld [vmem:[#allocation5 + $0x94] sm:$0xf]  ;;  %v15066_v46 = vld [vmem:[#allocation5 + $0x5c] sm:$0xf] }
  0x70   : > { %v11033_v43 = vld [vmem:[#allocation5 + $0xb0] sm:$0xf0]  ;;  %v11008_v44 = vor.u32 %v15070_v41, %v11007_v39  ;;  %v11009_v47 = vld [vmem:[#allocation5 + $0x78] sm:$0xf0]  ;;  %v15069_v50 = vld [vmem:[#allocation5 + $0x6c] sm:$0xf0] }
  0x71   : > { %945 = vmatpush.bf16.msrb.mxu0 %v11160_v59  ;;  %v11036_v45 = vor.u32 %v15073_v42, %v11033_v43  ;;  %v11012_v49 = vor.u32 %v15066_v46, %v11009_v47  ;;  %v10975_v51 = vld [vmem:[#allocation5 + $0x18] sm:$0xf]  ;;  %v15065_v54 = vld [vmem:[#allocation5 + $0x54] sm:$0xf]  ;;  %v15058_v56 = vld [vmem:[#allocation5 + $0x1c] sm:$0xf] }
  0x72   : > { %1003 = vmatpush.bf16.msrb.mxu2 %v11168_v48  ;;  %v10999_v48 = vld [vmem:[#allocation5 + $0x50] sm:$0xf]  ;;  %v15062_v52 = vld [vmem:[#allocation5 + $0x34] sm:$0xf0]  ;;  %v11001_v55 = vld [vmem:[#allocation5 + $0x70] sm:$0xf0] }
  0x73   : > { %1032 = vmatpush.bf16.msrb.mxu3 %v11172_v53  ;;  %974 = vmatpush.bf16.msrb.mxu1 %v11164_v61  ;;  %v11000_v53 = vor.u32 %v15069_v50, %v10999_v48  ;;  %v10976_v57 = vor.u32 %v15062_v52, %v10975_v51  ;;  %v11004_v58 = vor.u32 %v15065_v54, %v11001_v55  ;;  %v10977_v59 = vld [vmem:[#allocation5 + $0x38] sm:$0xf0]  ;;  %v15061_v61 = vld [vmem:[#allocation5 + $0x2c] sm:$0xf0]  ;;  %v15057_v63 = vld [vmem:[#allocation5 + $0x14] sm:$0xf] }
  0x74   : > { %v10980_v62 = vor.u32 %v15058_v56, %v10977_v59  ;;  %v10969_v0 = vld [vmem:[#allocation5 + $0x30] sm:$0xf0]  ;;  %v16830_v4 = vld [vmem:[%s16790_s2 + $0x18] sm:$0xff]  ;;  %v11943_v5 = vld [vmem:[#allocation8 + $0x5c0] sm:$0xf]  ;;  %s16080_s29 = smul.u32 448, %s16682_s8 }
  0x75   : > { %946 = vmatpush.bf16.msrb.mxu0 %v11128_v7  ;;  %v10972_v2 = vor.u32 %v15057_v63, %v10969_v0  ;;  %v16823_v3 = vld [vmem:[%s16790_s2 + $0x10] sm:$0xff]  ;;  %v15307_v6 = vld [vmem:[#allocation8 + $0x5dc] sm:$0xf0]  ;;  %s10780_s21 = sshll.u32 %s17839_s15, 4  ;;  %s10767_s22 = scalar_lea.sflag [#allocation4], %s16786_s28  ;;  %s10781_s21 = int_to_ptr.vmem [resolvable:$true] %s10780_s21 }
  0x76   : > { %1004 = vmatpush.bf16.msrb.mxu2 %v11136_v60  ;;  %v10967_v60 = vld [vmem:[#allocation5 + $0x10] sm:$0xf]  ;;  %v11431_v7 = vld [vmem:[#allocation8 + $0x1c0] sm:$0xf]  ;;  %s10779_s16 = scalar_lea.hbm %s19031_s7, %s16080_s29  ;;  %s16544_s20 = scalar_lea.hbm %s19031_s7, 896 }
  0x77   : > { %1033 = vmatpush.bf16.msrb.mxu3 %v11140_v1  ;;  %975 = vmatpush.bf16.msrb.mxu1 %v11132_v9  ;;  %v10968_v1 = vor.u32 %v15061_v61, %v10967_v60  ;;  %v15179_v9 = vld [vmem:[#allocation8 + $0x1dc] sm:$0xf0]  ;;  %s10782_s18 = sshll.u32 %s10779_s16, 4  ;;  %s10783_s18 = int_to_ptr.hbm [resolvable:$true] %s10782_s18 }
  0x78   : > { %v12199_v10 = vld [vmem:[#allocation8 + $0x7c0] sm:$0xf]  ;;  %v11432_v12 = vor.u32 %v15179_v9, %v11431_v7  ;;  %s16538_s11 = sshra.s32 %s10783_s18, 4  ;;  %s16539_s11 = int_to_ptr.hbm [resolvable:$true] %s16538_s11 }
  0x79   : > { %947 = vmatpush.bf16.msrb.mxu0 %v11096_v20  ;;  %v15371_v11 = vld [vmem:[#allocation8 + $0x7dc] sm:$0xf0]  ;;  %s16540_s8 = scalar_lea.hbm %s16539_s11, 448  ;;  %p16545_p12 = scmp.lt.s32.totalorder %s16539_s11, %s19031_s7 }
  0x7a   : > { %1005 = vmatpush.bf16.msrb.mxu2 %v11104_v8  ;;  %v11944_v8 = vor.u32 %v15307_v6, %v11943_v5  ;;  %v11687_v14 = vld [vmem:[#allocation8 + $0x3c0] sm:$0xf]  ;;  %p16541_p1 = scmp.ne.s32.totalorder %s16539_s11, %s16540_s8  ;;  %p16546_p7 = scmp.lt.s32.totalorder %s16544_s20, %s16540_s8 }
  0x7b   : > { %1034 = vmatpush.bf16.msrb.mxu3 %v11108_v13  ;;  %976 = vmatpush.bf16.msrb.mxu1 %v11100_v22  ;;  %v12200_v13 = vor.u32 %v15371_v11, %v12199_v10  ;;  %v15243_v15 = vld [vmem:[#allocation8 + $0x3dc] sm:$0xf0] }
  0x7c   : > { %841 = vmatmul.bf16.gmra.mxu0 %v16816_v19  ;;  %870 = vmatmul.bf16.gmra.mxu1 %v16816_v19  ;;  %v11911_v16 = vld [vmem:[#allocation8 + $0x580] sm:$0xf]  ;;  %v11688_v17 = vor.u32 %v15243_v15, %v11687_v14  ;;  %p16542_p3 = pnand %p16541_p1, %p16755_p4  ;;  %p16547_p8 = por %p16546_p7, %p16545_p12 }
  0x7d   : > { %899 = vmatmul.bf16.gmra.mxu2 %v16816_v19  ;;  %948 = vmatpush.bf16.msrb.mxu0 %v11064_v32  ;;  %v15299_v18 = vld [vmem:[#allocation8 + $0x59c] sm:$0xf0] }
  0x7e   : > { %1006 = vmatpush.bf16.msrb.mxu2 %v11072_v21  ;;  %928 = vmatmul.bf16.gmra.mxu3 %v16816_v19  ;;  %v11399_v20 = vld [vmem:[#allocation8 + $0x180] sm:$0xf]  ;;  %v11912_v22 = vor.u32 %v15299_v18, %v11911_v16  ;;  %p16543_p5 = pneg %p16542_p3 }
  0x7f   : > { %1035 = vmatpush.bf16.msrb.mxu3 %v11076_v26  ;;  %977 = vmatpush.bf16.msrb.mxu1 %v11068_v34  ;;  %v15171_v21 = vld [vmem:[#allocation8 + $0x19c] sm:$0xf0] }
  0x80   : > { %v11400_v23 = vor.u32 %v15171_v21, %v11399_v20  ;;  %v12167_v24 = vld [vmem:[#allocation8 + $0x780] sm:$0xf]  ;;  %p16548_p9 = pnand %p16547_p8, %p16543_p5 }
  0x81   : > { %949 = vmatpush.bf16.msrb.mxu0 %v11032_v40  ;;  %v15363_v25 = vld [vmem:[#allocation8 + $0x79c] sm:$0xf0] }
  0x82   : > { %1007 = vmatpush.bf16.msrb.mxu2 %v11040_v33  ;;  %v11655_v26 = vld [vmem:[#allocation8 + $0x380] sm:$0xf]  ;;  %v12168_v27 = vor.u32 %v15363_v25, %v12167_v24 }
  0x83   : > { %1036 = vmatpush.bf16.msrb.mxu3 %v11044_v36  ;;  %978 = vmatpush.bf16.msrb.mxu1 %v11036_v45  ;;  %v15235_v28 = vld [vmem:[#allocation8 + $0x39c] sm:$0xf0] }
  0x84   : > { %v11656_v29 = vor.u32 %v15235_v28, %v11655_v26  ;;  %v11879_v30 = vld [vmem:[#allocation8 + $0x540] sm:$0xf] }
  0x85   : > { %950 = vmatpush.bf16.msrb.mxu0 %v11000_v53  ;;  %v15291_v31 = vld [vmem:[#allocation8 + $0x55c] sm:$0xf0] }
  0x86   : > { %1008 = vmatpush.bf16.msrb.mxu2 %v11008_v44  ;;  %v11367_v32 = vld [vmem:[#allocation8 + $0x140] sm:$0xf]  ;;  %v11880_v33 = vor.u32 %v15291_v31, %v11879_v30 }
  0x87   : > { %1037 = vmatpush.bf16.msrb.mxu3 %v11012_v49  ;;  %979 = vmatpush.bf16.msrb.mxu1 %v11004_v58  ;;  %v15163_v34 = vld [vmem:[#allocation8 + $0x15c] sm:$0xf0] }
  0x88   : > { %v12135_v36 = vld [vmem:[#allocation8 + $0x740] sm:$0xf]  ;;  %v11368_v38 = vor.u32 %v15163_v34, %v11367_v32 }
  0x89   : > { %951 = vmatpush.bf16.msrb.mxu0 %v10968_v1  ;;  %v15355_v37 = vld [vmem:[#allocation8 + $0x75c] sm:$0xf0] }
  0x8a   : > { %1009 = vmatpush.bf16.msrb.mxu2 %v10976_v57  ;;  %v12136_v39 = vor.u32 %v15355_v37, %v12135_v36  ;;  %v11623_v40 = vld [vmem:[#allocation8 + $0x340] sm:$0xf] }
  0x8b   : > { %1038 = vmatpush.bf16.msrb.mxu3 %v10980_v62  ;;  %980 = vmatpush.bf16.msrb.mxu1 %v10972_v2  ;;  %v15227_v41 = vld [vmem:[#allocation8 + $0x35c] sm:$0xf0] }
  0x8c   : > { %846 = vmatmul.bf16.gmra.mxu0 %v16823_v3  ;;  %875 = vmatmul.bf16.gmra.mxu1 %v16823_v3  ;;  %v11847_v42 = vld [vmem:[#allocation8 + $0x500] sm:$0xf]  ;;  %v11624_v43 = vor.u32 %v15227_v41, %v11623_v40 }
  0x8d   : > { %904 = vmatmul.bf16.gmra.mxu2 %v16823_v3  ;;  %4246 = vmatpush.bf16.msra.mxu0 %v11432_v12  ;;  %v15283_v44 = vld [vmem:[#allocation8 + $0x51c] sm:$0xf0] }
  0x8e   : > { %933 = vmatmul.bf16.gmra.mxu3 %v16823_v3  ;;  %4304 = vmatpush.bf16.msra.mxu2 %v11944_v8  ;;  %v11335_v45 = vld [vmem:[#allocation8 + $0x100] sm:$0xf] }
  0x8f   : > { %4333 = vmatpush.bf16.msra.mxu3 %v12200_v13  ;;  %4275 = vmatpush.bf16.msra.mxu1 %v11688_v17  ;;  %v15155_v46 = vld [vmem:[#allocation8 + $0x11c] sm:$0xf0] }
  0x90   : > { %v11336_v47 = vor.u32 %v15155_v46, %v11335_v45  ;;  %v12103_v48 = vld [vmem:[#allocation8 + $0x700] sm:$0xf] }
  0x91   : > { %4247 = vmatpush.bf16.msra.mxu0 %v11400_v23  ;;  %v15347_v49 = vld [vmem:[#allocation8 + $0x71c] sm:$0xf0] }
  0x92   : > { %4305 = vmatpush.bf16.msra.mxu2 %v11912_v22  ;;  %v11591_v50 = vld [vmem:[#allocation8 + $0x300] sm:$0xf]  ;;  %v12104_v51 = vor.u32 %v15347_v49, %v12103_v48 }
  0x93   : > { %4334 = vmatpush.bf16.msra.mxu3 %v12168_v27  ;;  %4276 = vmatpush.bf16.msra.mxu1 %v11656_v29  ;;  %v15219_v52 = vld [vmem:[#allocation8 + $0x31c] sm:$0xf0] }
  0x94   : > { %v11592_v53 = vor.u32 %v15219_v52, %v11591_v50  ;;  %v11815_v54 = vld [vmem:[#allocation8 + $0x4c0] sm:$0xf] }
  0x95   : > { %4248 = vmatpush.bf16.msra.mxu0 %v11368_v38  ;;  %v15275_v55 = vld [vmem:[#allocation8 + $0x4dc] sm:$0xf0] }
  0x96   : > { %4306 = vmatpush.bf16.msra.mxu2 %v11880_v33  ;;  %v11303_v56 = vld [vmem:[#allocation8 + $0xc0] sm:$0xf]  ;;  %v11816_v57 = vor.u32 %v15275_v55, %v11815_v54 }
  0x97   : > { %4335 = vmatpush.bf16.msra.mxu3 %v12136_v39  ;;  %4277 = vmatpush.bf16.msra.mxu1 %v11624_v43  ;;  %v15147_v58 = vld [vmem:[#allocation8 + $0xdc] sm:$0xf0] }
  0x98   : > { %v12071_v59 = vld [vmem:[#allocation8 + $0x6c0] sm:$0xf]  ;;  %v11304_v61 = vor.u32 %v15147_v58, %v11303_v56 }
  0x99   : > { %4249 = vmatpush.bf16.msra.mxu0 %v11336_v47  ;;  %v15339_v60 = vld [vmem:[#allocation8 + $0x6dc] sm:$0xf0] }
  0x9a   : > { %v12072_v62 = vor.u32 %v15339_v60, %v12071_v59  ;;  %v11559_v63 = vld [vmem:[#allocation8 + $0x2c0] sm:$0xf] }
  0x9b   : > { %4336 = vmatpush.bf16.msra.mxu3 %v12104_v51  ;;  %4278 = vmatpush.bf16.msra.mxu1 %v11592_v53  ;;  %v15211_v0 = vld [vmem:[#allocation8 + $0x2dc] sm:$0xf0]  ;;  %v16852_v53 = vld [vmem:[#allocation7] sm:$0xff] }
  0x9c   : > { %851 = vmatmul.bf16.gmra.mxu0 %v16830_v4  ;;  %880 = vmatmul.bf16.gmra.mxu1 %v16830_v4  ;;  %v11783_v1 = vld [vmem:[#allocation8 + $0x480] sm:$0xf]  ;;  %v11560_v2 = vor.u32 %v15211_v0, %v11559_v63  ;;  %v16855_v55 = vperm.slane %v16852_v53, 0 }
  0x9d   : > { %909 = vmatmul.bf16.gmra.mxu2 %v16830_v4  ;;  %v15267_v5 = vld [vmem:[#allocation8 + $0x49c] sm:$0xf0]  ;;  %4250 = vmatpush.bf16.msra.mxu0 %v11304_v61 }
  0x9e   : > { %938 = vmatmul.bf16.gmra.mxu3 %v16830_v4  ;;  %v11271_v6 = vld [vmem:[#allocation8 + $0x80] sm:$0xf] }
  0x9f   : > { %v15139_v7 = vld [vmem:[#allocation8 + $0x9c] sm:$0xf0]  ;;  %4337 = vmatpush.bf16.msra.mxu3 %v12072_v62  ;;  %4279 = vmatpush.bf16.msra.mxu1 %v11560_v2 }
  0xa0   : > { %v11272_v8 = vor.u32 %v15139_v7, %v11271_v6  ;;  %v12039_v9 = vld [vmem:[#allocation8 + $0x680] sm:$0xf] }
  0xa1   : > { %v15331_v10 = vld [vmem:[#allocation8 + $0x69c] sm:$0xf0] }
  0xa2   : > { %v12040_v11 = vor.u32 %v15331_v10, %v12039_v9  ;;  %4251 = vmatpush.bf16.msra.mxu0 %v11272_v8  ;;  %v11527_v12 = vld [vmem:[#allocation8 + $0x280] sm:$0xf] }
  0xa3   : > { %v15203_v13 = vld [vmem:[#allocation8 + $0x29c] sm:$0xf0] }
  0xa4   : > { %4338 = vmatpush.bf16.msra.mxu3 %v12040_v11  ;;  %v11528_v14 = vor.u32 %v15203_v13, %v11527_v12  ;;  %v11751_v15 = vld [vmem:[#allocation8 + $0x440] sm:$0xf] }
  0xa5   : > { %v15259_v16 = vld [vmem:[#allocation8 + $0x45c] sm:$0xf0] }
  0xa6   : > { %v11752_v17 = vor.u32 %v15259_v16, %v11751_v15  ;;  %4280 = vmatpush.bf16.msra.mxu1 %v11528_v14  ;;  %v11239_v18 = vld [vmem:[#allocation8 + $0x40] sm:$0xf]  ;;  %v16864_v16 = vperm.slane %v16852_v53, 2 }
  0xa7   : > { %v15131_v20 = vld [vmem:[#allocation8 + $0x5c] sm:$0xf0] }
  0xa8   : > { %v11495_v21 = vld [vmem:[#allocation8 + $0x240] sm:$0xf]  ;;  %v11240_v22 = vor.u32 %v15131_v20, %v11239_v18  ;;  %v16868_v18 = vperm.slane %v16852_v53, 3 }
  0xa9   : > { %v15195_v23 = vld [vmem:[#allocation8 + $0x25c] sm:$0xf0] }
  0xaa   : > { %v11496_v24 = vor.u32 %v15195_v23, %v11495_v21  ;;  %4252 = vmatpush.bf16.msra.mxu0 %v11240_v22  ;;  %v12007_v25 = vld [vmem:[#allocation8 + $0x640] sm:$0xf] }
  0xab   : > { %v15323_v26 = vld [vmem:[#allocation8 + $0x65c] sm:$0xf0] }
  0xac   : > { %952 = vmatmul.bf16.vlgmr.msrb.gmra.mxu0 %v16809_v35  ;;  %981 = vmatmul.bf16.vlgmr.msrb.gmra.mxu1 %v16809_v35  ;;  %v11207_v27 = vld [vmem:[#allocation8] sm:$0xf]  ;;  %v12008_v28 = vor.u32 %v15323_v26, %v12007_v25 }
  0xad   : > { %1010 = vmatmul.bf16.vlgmr.msrb.gmra.mxu2 %v16809_v35  ;;  %4281 = vmatpush.bf16.msra.mxu1 %v11496_v24  ;;  %v15123_v29 = vld [vmem:[#allocation8 + $0x1c] sm:$0xf0] }
  0xae   : > { %1039 = vmatmul.bf16.vlgmr.msrb.gmra.mxu3 %v16809_v35  ;;  %v11848_v35 = vor.u32 %v15283_v44, %v11847_v42  ;;  %v11463_v30 = vld [vmem:[#allocation8 + $0x200] sm:$0xf]  ;;  %v11208_v32 = vor.u32 %v15123_v29, %v11207_v27 }
  0xaf   : > { %v15187_v31 = vld [vmem:[#allocation8 + $0x21c] sm:$0xf0]  ;;  %4339 = vmatpush.bf16.msra.mxu3 %v12008_v28 }
  0xb0   : > { %4307 = vmatpush.bf16.msra.mxu2 %v11848_v35  ;;  %v11719_v33 = vld [vmem:[#allocation8 + $0x400] sm:$0xf]  ;;  %4253 = vmatpush.bf16.msra.mxu0 %v11208_v32 }
  0xb1   : > { %v15251_v34 = vld [vmem:[#allocation8 + $0x41c] sm:$0xf0] }
  0xb2   : > { %v11720_v36 = vor.u32 %v15251_v34, %v11719_v33  ;;  %v11975_v37 = vld [vmem:[#allocation8 + $0x600] sm:$0xf] }
  0xb3   : > { %v15315_v38 = vld [vmem:[#allocation8 + $0x61c] sm:$0xf0] }
  0xb4   : > { %4308 = vmatpush.bf16.msra.mxu2 %v11816_v57  ;;  %v11976_v39 = vor.u32 %v15315_v38, %v11975_v37  ;;  %v12967_v40 = vld [vmem:[#allocation8 + $0xdc0] sm:$0xf]  ;;  %v16858_v57 = vperm.slane %v16852_v53, 1 }
  0xb5   : > { %v15563_v41 = vld [vmem:[#allocation8 + $0xddc] sm:$0xf0] }
  0xb6   : > { %4340 = vmatpush.bf16.msra.mxu3 %v11976_v39  ;;  %v12968_v42 = vor.u32 %v15563_v41, %v12967_v40  ;;  %v12455_v43 = vld [vmem:[#allocation8 + $0x9c0] sm:$0xf] }
  0xb7   : > { %v15435_v44 = vld [vmem:[#allocation8 + $0x9dc] sm:$0xf0] }
  0xb8   : > { %v13223_v45 = vld [vmem:[#allocation8 + $0xfc0] sm:$0xf]  ;;  %v12456_v46 = vor.u32 %v15435_v44, %v12455_v43 }
  0xb9   : > { %v15627_v35 = vld [vmem:[#allocation8 + $0xfdc] sm:$0xf0] }
  0xba   : > { %v13224_v47 = vor.u32 %v15627_v35, %v13223_v45  ;;  %4362 = vmatpush.bf16.msrb.mxu0 %v12456_v46  ;;  %v12711_v48 = vld [vmem:[#allocation8 + $0xbc0] sm:$0xf] }
  0xbb   : > { %v15499_v49 = vld [vmem:[#allocation8 + $0xbdc] sm:$0xf0] }
  0xbc   : > { %957 = vmatmul.bf16.gmra.mxu0 %v16816_v19  ;;  %986 = vmatmul.bf16.gmra.mxu1 %v16816_v19  ;;  %v12935_v50 = vld [vmem:[#allocation8 + $0xd80] sm:$0xf]  ;;  %v12712_v51 = vor.u32 %v15499_v49, %v12711_v48 }
  0xbd   : > { %1015 = vmatmul.bf16.gmra.mxu2 %v16816_v19  ;;  %4449 = vmatpush.bf16.msrb.mxu3 %v13224_v47  ;;  %v15555_v52 = vld [vmem:[#allocation8 + $0xd9c] sm:$0xf0] }
  0xbe   : > { %1044 = vmatmul.bf16.gmra.mxu3 %v16816_v19  ;;  %v11784_v19 = vor.u32 %v15267_v5, %v11783_v1  ;;  %v12936_v54 = vor.u32 %v15555_v52, %v12935_v50  ;;  %v12423_v59 = vld [vmem:[#allocation8 + $0x980] sm:$0xf] }
  0xbf   : > { %v15427_v60 = vld [vmem:[#allocation8 + $0x99c] sm:$0xf0] }
  0xc0   : > { %4309 = vmatpush.bf16.msra.mxu2 %v11784_v19  ;;  %v13191_v61 = vld [vmem:[#allocation8 + $0xf80] sm:$0xf]  ;;  %v12424_v63 = vor.u32 %v15427_v60, %v12423_v59 }
  0xc1   : > { %v15619_v0 = vld [vmem:[#allocation8 + $0xf9c] sm:$0xf0] }
  0xc2   : > { %v12679_v1 = vld [vmem:[#allocation8 + $0xb80] sm:$0xf]  ;;  %v13192_v6 = vor.u32 %v15619_v0, %v13191_v61  ;;  %4363 = vmatpush.bf16.msrb.mxu0 %v12424_v63 }
  0xc3   : > { %v15491_v2 = vld [vmem:[#allocation8 + $0xb9c] sm:$0xf0] }
  0xc4   : > { %4310 = vmatpush.bf16.msra.mxu2 %v11752_v17  ;;  %v12680_v7 = vor.u32 %v15491_v2, %v12679_v1  ;;  %v12903_v19 = vld [vmem:[#allocation8 + $0xd40] sm:$0xf]  ;;  %4450 = vmatpush.bf16.msrb.mxu3 %v13192_v6 }
  0xc5   : > { %v15547_v8 = vld [vmem:[#allocation8 + $0xd5c] sm:$0xf0] }
  0xc6   : > { %v12904_v11 = vor.u32 %v15547_v8, %v12903_v19  ;;  %v12391_v21 = vld [vmem:[#allocation8 + $0x940] sm:$0xf] }
  0xc7   : > { %v15419_v22 = vld [vmem:[#allocation8 + $0x95c] sm:$0xf0] }
  0xc8   : > { %4311 = vmatpush.bf16.msra.mxu2 %v11720_v36  ;;  %v12392_v24 = vor.u32 %v15419_v22, %v12391_v21  ;;  %v13159_v25 = vld [vmem:[#allocation8 + $0xf40] sm:$0xf] }
  0xc9   : > { %v15611_v26 = vld [vmem:[#allocation8 + $0xf5c] sm:$0xf0] }
  0xca   : > { %v13160_v28 = vor.u32 %v15611_v26, %v13159_v25  ;;  %4364 = vmatpush.bf16.msrb.mxu0 %v12392_v24  ;;  %v15483_v32 = vld [vmem:[#allocation8 + $0xb5c] sm:$0xf0] }
  0xcb   : > { %v15539_v37 = vld [vmem:[#allocation8 + $0xd1c] sm:$0xf0] }
  0xcc   : > { %962 = vmatmul.bf16.gmra.mxu0 %v16823_v3  ;;  %991 = vmatmul.bf16.gmra.mxu1 %v16823_v3  ;;  %v12359_v50 = vld [vmem:[#allocation8 + $0x900] sm:$0xf] }
  0xcd   : > { %1020 = vmatmul.bf16.gmra.mxu2 %v16823_v3  ;;  %4451 = vmatpush.bf16.msrb.mxu3 %v13160_v28  ;;  %v13127_v52 = vld [vmem:[#allocation8 + $0xf00] sm:$0xf] }
  0xce   : > { %1049 = vmatmul.bf16.gmra.mxu3 %v16823_v3  ;;  %v11464_v3 = vor.u32 %v15187_v31, %v11463_v30  ;;  %4420 = vmatpush.bf16.msrb.mxu2 %v12968_v42  ;;  %v12647_v31 = vld [vmem:[#allocation8 + $0xb40] sm:$0xf] }
  0xcf   : > { %v12648_v36 = vor.u32 %v15483_v32, %v12647_v31  ;;  %v15475_v59 = vld [vmem:[#allocation8 + $0xb1c] sm:$0xf0] }
  0xd0   : > { %4282 = vmatpush.bf16.msra.mxu1 %v11464_v3  ;;  %v12871_v3 = vld [vmem:[#allocation8 + $0xd00] sm:$0xf] }
  0xd1   : > { %v12872_v41 = vor.u32 %v15539_v37, %v12871_v3  ;;  %v12839_v63 = vld [vmem:[#allocation8 + $0xcc0] sm:$0xf] }
  0xd2   : > { %4421 = vmatpush.bf16.msrb.mxu2 %v12936_v54  ;;  %v15531_v0 = vld [vmem:[#allocation8 + $0xcdc] sm:$0xf0] }
  0xd3   : > { %v12583_v24 = vld [vmem:[#allocation8 + $0xac0] sm:$0xf] }
  0xd4   : > { %4391 = vmatpush.bf16.msrb.mxu1 %v12712_v51  ;;  %v15411_v51 = vld [vmem:[#allocation8 + $0x91c] sm:$0xf0] }
  0xd5   : > { %v12360_v54 = vor.u32 %v15411_v51, %v12359_v50  ;;  %v15467_v25 = vld [vmem:[#allocation8 + $0xadc] sm:$0xf0] }
  0xd6   : > { %4422 = vmatpush.bf16.msrb.mxu2 %v12904_v11  ;;  %v12327_v11 = vld [vmem:[#allocation8 + $0x8c0] sm:$0xf]  ;;  %v12584_v31 = vor.u32 %v15467_v25, %v12583_v24 }
  0xd7   : > { %4365 = vmatpush.bf16.msrb.mxu0 %v12360_v54  ;;  %v12807_v26 = vld [vmem:[#allocation8 + $0xc80] sm:$0xf] }
  0xd8   : > { %4392 = vmatpush.bf16.msrb.mxu1 %v12680_v7  ;;  %v15523_v32 = vld [vmem:[#allocation8 + $0xc9c] sm:$0xf0] }
  0xd9   : > { %v15379_v24 = vld [vmem:[#allocation8 + $0x81c] sm:$0xf0] }
  0xda   : > { %4423 = vmatpush.bf16.msrb.mxu2 %v12872_v41 }
  0xdc   : > { %967 = vmatmul.bf16.gmra.mxu0 %v16830_v4  ;;  %996 = vmatmul.bf16.gmra.mxu1 %v16830_v4 }
  0xdd   : > { %1025 = vmatmul.bf16.gmra.mxu2 %v16830_v4  ;;  %4393 = vmatpush.bf16.msrb.mxu1 %v12648_v36  ;;  %v12808_v36 = vor.u32 %v15523_v32, %v12807_v26 }
  0xde   : > { %1054 = vmatmul.bf16.gmra.mxu3 %v16830_v4 }
  0xe9   : > { %v837_v4 = vpop.f32.mrf.mxu0  ;;  %v866_v56 = vpop.f32.mrf.mxu1 }
  0xea   : > { %v838_v58 = vadd.f32 %v837_v4, %v16855_v55  ;;  %v867_v62 = vadd.f32 %v866_v56, %v16858_v57  ;;  %v15603_v56 = vld [vmem:[#allocation8 + $0xf1c] sm:$0xf0] }
  0xeb   : > { %v13128_v61 = vor.u32 %v15603_v56, %v13127_v52  ;;  %v13063_v52 = vld [vmem:[#allocation8 + $0xe80] sm:$0xf] }
  0xec   : > { %v1060_v12 = vmax.f32 %v838_v58, 0.0  ;;  %v1061_v15 = vmax.f32 %v867_v62, 0.0  ;;  %v12615_v58 = vld [vmem:[#allocation8 + $0xb00] sm:$0xf] }
  0xed   : > { %v12616_v62 = vor.u32 %v15475_v59, %v12615_v58  ;;  %4452 = vmatpush.bf16.msrb.mxu3 %v13128_v61  ;;  %v15515_v61 = vld [vmem:[#allocation8 + $0xc5c] sm:$0xf0] }
  0xef   : > { %4394 = vmatpush.bf16.msrb.mxu1 %v12616_v62 }
  0xf0   : > { %v895_v5 = vpop.f32.mrf.mxu2 }
  0xf1   : > { %v924_v9 = vpop.f32.mrf.mxu3  ;;  %v839_v10 = vpop.f32.mrf.mxu0  ;;  %v896_v29 = vadd.f32 %v895_v5, %v16864_v16  ;;  %v12840_v5 = vor.u32 %v15531_v0, %v12839_v63 }
  0xf2   : > { %v840_v13 = vadd.f32 %v839_v10, %v16855_v55  ;;  %v868_v14 = vpop.f32.mrf.mxu1  ;;  %v925_v33 = vadd.f32 %v924_v9, %v16868_v18 }
  0xf3   : > { %v869_v17 = vadd.f32 %v868_v14, %v16858_v57  ;;  %v1062_v44 = vmax.f32 %v896_v29, 0.0  ;;  %4424 = vmatpush.bf16.msrb.mxu2 %v12840_v5  ;;  %4395 = vmatpush.bf16.msrb.mxu1 %v12584_v31  ;;  %v12519_v5 = vld [vmem:[#allocation8 + $0xa40] sm:$0xf] }
  0xf4   : > { %v1068_v20 = vmax.f32 %v840_v13, 0.0  ;;  %v1063_v46 = vmax.f32 %v925_v33, 0.0 }
  0xf5   : > { %v1069_v23 = vmax.f32 %v869_v17, 0.0  ;;  %v15595_v17 = vld [vmem:[#allocation8 + $0xedc] sm:$0xf0] }
  0xf6   : > { %v16870_v27 = vpack.c.bf16 %v1068_v20, %v1060_v12  ;;  %v15403_v12 = vld [vmem:[#allocation8 + $0x8dc] sm:$0xf0] }
  0xf7   : > { %v16873_v30 = vpack.c.bf16 %v1069_v23, %v1061_v15  ;;  %v12328_v14 = vor.u32 %v15403_v12, %v12327_v11  ;;  %v13095_v15 = vld [vmem:[#allocation8 + $0xec0] sm:$0xf]  ;;  %4425 = vmatpush.bf16.msrb.mxu2 %v12808_v36 }
  0xf8   : > { %v897_v34 = vpop.f32.mrf.mxu2  ;;  %4254 = vmatmul.bf16.vlgmr.msra.gmra.mxu0 %v16870_v27  ;;  %v13096_v21 = vor.u32 %v15595_v17, %v13095_v15  ;;  %v15579_v15 = vld [vmem:[#allocation8 + $0xe5c] sm:$0xf0] }
  0xf9   : > { %v898_v38 = vadd.f32 %v897_v34, %v16864_v16  ;;  %v926_v39 = vpop.f32.mrf.mxu3  ;;  %4283 = vmatmul.bf16.vlgmr.msra.gmra.mxu1 %v16873_v30  ;;  %v842_v40 = vpop.f32.mrf.mxu0  ;;  %4366 = vmatpush.bf16.msrb.mxu0 %v12328_v14  ;;  %v13031_v14 = vld [vmem:[#allocation8 + $0xe40] sm:$0xf] }
  0xfa   : > { %v927_v42 = vadd.f32 %v926_v39, %v16868_v18  ;;  %v871_v43 = vpop.f32.mrf.mxu1  ;;  %v843_v49 = vadd.f32 %v842_v40, %v16855_v55  ;;  %4453 = vmatpush.bf16.msrb.mxu3 %v13096_v21  ;;  %v13032_v21 = vor.u32 %v15579_v15, %v13031_v14  ;;  %v12201_v14 = vld [vmem:[#allocation8 + $0x7e0] sm:$0xf0] }
  0xfb   : > { %v1070_v45 = vmax.f32 %v898_v38, 0.0  ;;  %v872_v4 = vadd.f32 %v871_v43, %v16858_v57  ;;  %v12295_v43 = vld [vmem:[#allocation8 + $0x880] sm:$0xf] }
  0xfc   : > { %v1071_v35 = vmax.f32 %v927_v42, 0.0  ;;  %v1076_v6 = vmax.f32 %v843_v49, 0.0  ;;  %v15459_v49 = vld [vmem:[#allocation8 + $0xa9c] sm:$0xf0] }
  0xfd   : > { %v16880_v47 = vpack.c.bf16 %v1070_v45, %v1062_v44  ;;  %v1077_v8 = vmax.f32 %v872_v4, 0.0  ;;  %v15395_v44 = vld [vmem:[#allocation8 + $0x89c] sm:$0xf0] }
  0xfe   : > { %v16882_v48 = vpack.c.bf16 %v1071_v35, %v1063_v46  ;;  %v12296_v46 = vor.u32 %v15395_v44, %v12295_v43  ;;  %v12551_v35 = vld [vmem:[#allocation8 + $0xa80] sm:$0xf] }
  0xff   : > { %4312 = vmatmul.bf16.vlgmr.msra.gmra.mxu2 %v16880_v47  ;;  %v15587_v4 = vld [vmem:[#allocation8 + $0xe9c] sm:$0xf0]  ;;  %v12552_v54 = vor.u32 %v15459_v49, %v12551_v35 }
 0x100   : > { %4341 = vmatmul.bf16.vlgmr.msra.gmra.mxu3 %v16882_v48  ;;  %v900_v60 = vpop.f32.mrf.mxu2  ;;  %4367 = vmatpush.bf16.msrb.mxu0 %v12296_v46  ;;  %v13064_v58 = vor.u32 %v15587_v4, %v13063_v52  ;;  %v12999_v44 = vld [vmem:[#allocation8 + $0xe00] sm:$0xf] }
 0x101   : > { %v929_v1 = vpop.f32.mrf.mxu3  ;;  %v844_v2 = vpop.f32.mrf.mxu0  ;;  %v901_v22 = vadd.f32 %v900_v60, %v16864_v16  ;;  %4396 = vmatpush.bf16.msrb.mxu1 %v12552_v54  ;;  %v12775_v60 = vld [vmem:[#allocation8 + $0xc40] sm:$0xf] }
 0x102   : > { %v845_v7 = vadd.f32 %v844_v2, %v16855_v55  ;;  %v873_v19 = vpop.f32.mrf.mxu1  ;;  %v930_v28 = vadd.f32 %v929_v1, %v16868_v18  ;;  %4454 = vmatpush.bf16.msrb.mxu3 %v13064_v58  ;;  %v12776_v0 = vor.u32 %v15515_v61, %v12775_v60  ;;  %v12263_v1 = vld [vmem:[#allocation8 + $0x840] sm:$0xf]  ;;  %v15303_v61 = vld [vmem:[#allocation8 + $0x5c4] sm:$0xf] }
 0x103   : > { %v874_v9 = vadd.f32 %v873_v19, %v16858_v57  ;;  %v1078_v39 = vmax.f32 %v901_v22, 0.0  ;;  %v15387_v2 = vld [vmem:[#allocation8 + $0x85c] sm:$0xf0] }
 0x104   : > { %v1084_v10 = vmax.f32 %v845_v7, 0.0  ;;  %v1079_v41 = vmax.f32 %v930_v28, 0.0  ;;  %4426 = vmatpush.bf16.msrb.mxu2 %v12776_v0  ;;  %v12231_v22 = vld [vmem:[#allocation8 + $0x800] sm:$0xf] }
 0x105   : > { %v1085_v13 = vmax.f32 %v874_v9, 0.0  ;;  %v15451_v9 = vld [vmem:[#allocation8 + $0xa5c] sm:$0xf0]  ;;  %v12232_v26 = vor.u32 %v15379_v24, %v12231_v22  ;;  %v11689_v24 = vld [vmem:[#allocation8 + $0x3e0] sm:$0xf0] }
 0x106   : > { %v16890_v20 = vpack.c.bf16 %v1084_v10, %v1076_v6  ;;  %v12520_v12 = vor.u32 %v15451_v9, %v12519_v5  ;;  %v12487_v28 = vld [vmem:[#allocation8 + $0xa00] sm:$0xf]  ;;  %4455 = vmatpush.bf16.msrb.mxu3 %v13032_v21  ;;  %v15175_v9 = vld [vmem:[#allocation8 + $0x1c4] sm:$0xf] }
 0x107   : > { %v16893_v23 = vpack.c.bf16 %v1085_v13, %v1077_v8  ;;  %v12264_v8 = vor.u32 %v15387_v2, %v12263_v1  ;;  %v15571_v46 = vld [vmem:[#allocation8 + $0xe1c] sm:$0xf0] }
 0x108   : > { %v902_v29 = vpop.f32.mrf.mxu2  ;;  %4259 = vmatmul.bf16.gmra.mxu0 %v16890_v20  ;;  %4397 = vmatpush.bf16.msrb.mxu1 %v12520_v12 }
 0x109   : > { %v903_v3 = vadd.f32 %v902_v29, %v16864_v16  ;;  %v931_v33 = vpop.f32.mrf.mxu3  ;;  %4288 = vmatmul.bf16.gmra.mxu1 %v16893_v23  ;;  %v847_v34 = vpop.f32.mrf.mxu0  ;;  %4368 = vmatpush.bf16.msrb.mxu0 %v12264_v8  ;;  %v15443_v29 = vld [vmem:[#allocation8 + $0xa1c] sm:$0xf0] }
 0x10a   : > { %v932_v37 = vadd.f32 %v931_v33, %v16868_v18  ;;  %v876_v38 = vpop.f32.mrf.mxu1  ;;  %v848_v51 = vadd.f32 %v847_v34, %v16855_v55  ;;  %v12743_v33 = vld [vmem:[#allocation8 + $0xc00] sm:$0xf] }
 0x10b   : > { %v1086_v40 = vmax.f32 %v903_v3, 0.0  ;;  %v877_v56 = vadd.f32 %v876_v38, %v16858_v57  ;;  %v12488_v3 = vor.u32 %v15443_v29, %v12487_v28  ;;  %v15507_v34 = vld [vmem:[#allocation8 + $0xc1c] sm:$0xf0] }
 0x10c   : > { %v1087_v42 = vmax.f32 %v932_v37, 0.0  ;;  %v1092_v6 = vmax.f32 %v848_v51, 0.0  ;;  %v12744_v38 = vor.u32 %v15507_v34, %v12743_v33  ;;  %v13000_v51 = vor.u32 %v15571_v46, %v12999_v44 }
 0x10d   : > { %v16900_v45 = vpack.c.bf16 %v1086_v40, %v1078_v39  ;;  %v1093_v10 = vmax.f32 %v877_v56, 0.0  ;;  %4369 = vmatpush.bf16.msrb.mxu0 %v12232_v26  ;;  %4398 = vmatpush.bf16.msrb.mxu1 %v12488_v3  ;;  %v15295_v26 = vld [vmem:[#allocation8 + $0x584] sm:$0xf] }
 0x10e   : > { %v16902_v50 = vpack.c.bf16 %v1087_v42, %v1079_v41  ;;  %4427 = vmatpush.bf16.msrb.mxu2 %v12744_v38  ;;  %4456 = vmatpush.bf16.msrb.mxu3 %v13000_v51  ;;  %v16941_v38 = vperm.slane %v16852_v53, 4  ;;  %v15359_v51 = vld [vmem:[#allocation8 + $0x784] sm:$0xf] }
 0x10f   : > { %4317 = vmatmul.bf16.gmra.mxu2 %v16900_v45 }
 0x110   : > { %4346 = vmatmul.bf16.gmra.mxu3 %v16902_v50  ;;  %v905_v59 = vpop.f32.mrf.mxu2 }
 0x111   : > { %v934_v62 = vpop.f32.mrf.mxu3  ;;  %v849_v63 = vpop.f32.mrf.mxu0  ;;  %v906_v31 = vadd.f32 %v905_v59, %v16864_v16 }
 0x112   : > { %v850_v7 = vadd.f32 %v849_v63, %v16855_v55  ;;  %v878_v19 = vpop.f32.mrf.mxu1  ;;  %v935_v36 = vadd.f32 %v934_v62, %v16868_v18  ;;  %v11945_v62 = vld [vmem:[#allocation8 + $0x5e0] sm:$0xf0] }
 0x113   : > { %v879_v11 = vadd.f32 %v878_v19, %v16858_v57  ;;  %v1094_v35 = vmax.f32 %v906_v31, 0.0  ;;  %v11948_v1 = vor.u32 %v15303_v61, %v11945_v62  ;;  %v11913_v31 = vld [vmem:[#allocation8 + $0x5a0] sm:$0xf0] }
 0x114   : > { %v1100_v13 = vmax.f32 %v850_v7, 0.0  ;;  %v1095_v52 = vmax.f32 %v935_v36, 0.0  ;;  %v11916_v36 = vor.u32 %v15295_v26, %v11913_v31  ;;  %v12137_v26 = vld [vmem:[#allocation8 + $0x760] sm:$0xf0] }
 0x115   : > { %v1101_v17 = vmax.f32 %v879_v11, 0.0  ;;  %4536 = vmatpush.bf16.msra.mxu2 %v11948_v1  ;;  %v11881_v1 = vld [vmem:[#allocation8 + $0x560] sm:$0xf0] }
 0x116   : > { %v16910_v25 = vpack.c.bf16 %v1100_v13, %v1092_v6  ;;  %v15367_v13 = vld [vmem:[#allocation8 + $0x7c4] sm:$0xf] }
 0x117   : > { %v16913_v32 = vpack.c.bf16 %v1101_v17, %v1093_v10  ;;  %v11433_v10 = vld [vmem:[#allocation8 + $0x1e0] sm:$0xf0]  ;;  %v12204_v17 = vor.u32 %v15367_v13, %v12201_v14 }
 0x118   : > { %v907_v37 = vpop.f32.mrf.mxu2  ;;  %4264 = vmatmul.bf16.gmra.mxu0 %v16910_v25  ;;  %v11436_v12 = vor.u32 %v15175_v9, %v11433_v10  ;;  %v16956_v10 = vperm.slane %v16852_v53, 6  ;;  %v15159_v14 = vld [vmem:[#allocation8 + $0x144] sm:$0xf] }
 0x119   : > { %v908_v39 = vadd.f32 %v907_v37, %v16864_v16  ;;  %v936_v40 = vpop.f32.mrf.mxu3  ;;  %4293 = vmatmul.bf16.gmra.mxu1 %v16913_v32  ;;  %v852_v41 = vpop.f32.mrf.mxu0  ;;  %4565 = vmatpush.bf16.msra.mxu3 %v12204_v17  ;;  %v11369_v17 = vld [vmem:[#allocation8 + $0x160] sm:$0xf0] }
 0x11a   : > { %v937_v42 = vadd.f32 %v936_v40, %v16868_v18  ;;  %v881_v43 = vpop.f32.mrf.mxu1  ;;  %v853_v58 = vadd.f32 %v852_v41, %v16855_v55  ;;  %4478 = vmatpush.bf16.msra.mxu0 %v11436_v12  ;;  %4537 = vmatpush.bf16.msra.mxu2 %v11916_v36  ;;  %v16960_v12 = vperm.slane %v16852_v53, 7 }
 0x11b   : > { %v1102_v49 = vmax.f32 %v908_v39, 0.0  ;;  %v882_v59 = vadd.f32 %v881_v43, %v16858_v57 }
 0x11c   : > { %v1103_v4 = vmax.f32 %v937_v42, 0.0  ;;  %v1108_v2 = vmax.f32 %v853_v58, 0.0  ;;  %v16944_v42 = vperm.slane %v16852_v53, 5  ;;  %v12169_v58 = vld [vmem:[#allocation8 + $0x7a0] sm:$0xf0] }
 0x11d   : > { %v16920_v54 = vpack.c.bf16 %v1102_v49, %v1094_v35  ;;  %v1109_v7 = vmax.f32 %v882_v59, 0.0  ;;  %v11401_v49 = vld [vmem:[#allocation8 + $0x1a0] sm:$0xf0]  ;;  %v12172_v62 = vor.u32 %v15359_v51, %v12169_v58 }
 0x11e   : > { %v16922_v56 = vpack.c.bf16 %v1103_v4, %v1095_v52  ;;  %v15231_v59 = vld [vmem:[#allocation8 + $0x384] sm:$0xf] }
 0x11f   : > { %4322 = vmatmul.bf16.gmra.mxu2 %v16920_v54  ;;  %4566 = vmatpush.bf16.msra.mxu3 %v12172_v62  ;;  %v11337_v62 = vld [vmem:[#allocation8 + $0x120] sm:$0xf0] }
 0x120   : > { %4351 = vmatmul.bf16.gmra.mxu3 %v16922_v56  ;;  %v910_v60 = vpop.f32.mrf.mxu2 }
 0x121   : > { %v939_v63 = vpop.f32.mrf.mxu3  ;;  %v854_v0 = vpop.f32.mrf.mxu0  ;;  %v911_v21 = vadd.f32 %v910_v60, %v16864_v16  ;;  %v11657_v60 = vld [vmem:[#allocation8 + $0x3a0] sm:$0xf0] }
 0x122   : > { %v855_v5 = vadd.f32 %v854_v0, %v16855_v55  ;;  %v883_v6 = vpop.f32.mrf.mxu1  ;;  %v15239_v55 = vld [vmem:[#allocation8 + $0x3c4] sm:$0xf] }
 0x123   : > { %v884_v19 = vadd.f32 %v883_v6, %v16858_v57  ;;  %v940_v57 = vadd.f32 %v939_v63, %v16868_v18  ;;  %v11692_v29 = vor.u32 %v15239_v55, %v11689_v24  ;;  %v1110_v40 = vmax.f32 %v911_v21, 0.0  ;;  %v15287_v0 = vld [vmem:[#allocation8 + $0x544] sm:$0xf] }
 0x124   : > { %v1116_v8 = vmax.f32 %v855_v5, 0.0  ;;  %v11660_v63 = vor.u32 %v15231_v59, %v11657_v60  ;;  %v11884_v6 = vor.u32 %v15287_v0, %v11881_v1  ;;  %v11372_v55 = vor.u32 %v15159_v14, %v11369_v17  ;;  %v15351_v24 = vld [vmem:[#allocation8 + $0x744] sm:$0xf] }
 0x125   : > { %v1117_v11 = vmax.f32 %v884_v19, 0.0  ;;  %4507 = vmatpush.bf16.msra.mxu1 %v11692_v29  ;;  %v1111_v43 = vmax.f32 %v940_v57, 0.0 }
 0x126   : > { %v16930_v15 = vpack.c.bf16 %v1116_v8, %v1108_v2  ;;  %4538 = vmatpush.bf16.msra.mxu2 %v11884_v6  ;;  %v11593_v6 = vld [vmem:[#allocation8 + $0x320] sm:$0xf0] }
 0x127   : > { %v16933_v22 = vpack.c.bf16 %v1117_v11, %v1109_v7 }
 0x128   : > { %v912_v28 = vpop.f32.mrf.mxu2  ;;  %4269 = vmatmul.bf16.gmra.mxu0 %v16930_v15 }
 0x129   : > { %v913_v3 = vadd.f32 %v912_v28, %v16864_v16  ;;  %v941_v33 = vpop.f32.mrf.mxu3  ;;  %4298 = vmatmul.bf16.gmra.mxu1 %v16933_v22  ;;  %v953_v34 = vpop.f32.mrf.mxu0  ;;  %v12140_v28 = vor.u32 %v15351_v24, %v12137_v26 }
 0x12a   : > { %v942_v37 = vadd.f32 %v941_v33, %v16868_v18  ;;  %v982_v39 = vpop.f32.mrf.mxu1  ;;  %v954_v35 = vadd.f32 %v953_v34, %v16941_v38  ;;  %v15167_v18 = vld [vmem:[#allocation8 + $0x184] sm:$0xf]  ;;  %4508 = vmatpush.bf16.msra.mxu1 %v11660_v63 }
 0x12b   : > { %v1118_v41 = vmax.f32 %v913_v3, 0.0  ;;  %v983_v52 = vadd.f32 %v982_v39, %v16944_v42  ;;  %v11404_v4 = vor.u32 %v15167_v18, %v11401_v49  ;;  %v15223_v3 = vld [vmem:[#allocation8 + $0x344] sm:$0xf]  ;;  %4567 = vmatpush.bf16.msra.mxu3 %v12140_v28 }
 0x12c   : > { %v1119_v16 = vmax.f32 %v942_v37, 0.0  ;;  %v1064_v7 = vmax.f32 %v954_v35, 0.0  ;;  %v11625_v33 = vld [vmem:[#allocation8 + $0x360] sm:$0xf0] }
 0x12d   : > { %v16946_v44 = vpack.c.bf16 %v1118_v41, %v1110_v40  ;;  %4479 = vmatpush.bf16.msra.mxu0 %v11404_v4  ;;  %v1065_v9 = vmax.f32 %v983_v52, 0.0  ;;  %v15279_v34 = vld [vmem:[#allocation8 + $0x504] sm:$0xf]  ;;  %v11628_v37 = vor.u32 %v15223_v3, %v11625_v33 }
 0x12e   : > { %v16948_v46 = vpack.c.bf16 %v1119_v16, %v1111_v43  ;;  %v11849_v39 = vld [vmem:[#allocation8 + $0x520] sm:$0xf0] }
 0x12f   : > { %4327 = vmatmul.bf16.gmra.mxu2 %v16946_v44  ;;  %v11852_v16 = vor.u32 %v15279_v34, %v11849_v39  ;;  %4509 = vmatpush.bf16.msra.mxu1 %v11628_v37  ;;  %v15343_v63 = vld [vmem:[#allocation8 + $0x704] sm:$0xf] }
 0x130   : > { %4356 = vmatmul.bf16.gmra.mxu3 %v16948_v46  ;;  %v1011_v61 = vpop.f32.mrf.mxu2  ;;  %v15143_v3 = vld [vmem:[#allocation8 + $0xc4] sm:$0xf] }
 0x131   : > { %v1040_v2 = vpop.f32.mrf.mxu3  ;;  %v955_v5 = vpop.f32.mrf.mxu0  ;;  %v1012_v29 = vadd.f32 %v1011_v61, %v16956_v10  ;;  %4480 = vmatpush.bf16.msra.mxu0 %v11372_v55  ;;  %4539 = vmatpush.bf16.msra.mxu2 %v11852_v16  ;;  %v15151_v61 = vld [vmem:[#allocation8 + $0x104] sm:$0xf] }
 0x132   : > { %v956_v19 = vadd.f32 %v955_v5, %v16941_v38  ;;  %v984_v8 = vpop.f32.mrf.mxu1  ;;  %v1041_v53 = vadd.f32 %v1040_v2, %v16960_v12  ;;  %v11340_v1 = vor.u32 %v15151_v61, %v11337_v62  ;;  %v12105_v2 = vld [vmem:[#allocation8 + $0x720] sm:$0xf0] }
 0x133   : > { %v985_v11 = vadd.f32 %v984_v8, %v16944_v42  ;;  %v1066_v49 = vmax.f32 %v1012_v29, 0.0  ;;  %v15215_v5 = vld [vmem:[#allocation8 + $0x304] sm:$0xf] }
 0x134   : > { %v1072_v13 = vmax.f32 %v956_v19, 0.0  ;;  %v1067_v52 = vmax.f32 %v1041_v53, 0.0  ;;  %v12108_v19 = vor.u32 %v15343_v63, %v12105_v2  ;;  %v11596_v8 = vor.u32 %v15215_v5, %v11593_v6  ;;  %v11305_v33 = vld [vmem:[#allocation8 + $0xe0] sm:$0xf0] }
 0x135   : > { %v1073_v21 = vmax.f32 %v985_v11, 0.0  ;;  %v11817_v11 = vld [vmem:[#allocation8 + $0x4e0] sm:$0xf0]  ;;  %4481 = vmatpush.bf16.msra.mxu0 %v11340_v1  ;;  %v11308_v53 = vor.u32 %v15143_v3, %v11305_v33 }
 0x136   : > { %v16962_v57 = vpack.c.bf16 %v1072_v13, %v1064_v7  ;;  %4568 = vmatpush.bf16.msra.mxu3 %v12108_v19  ;;  %4510 = vmatpush.bf16.msra.mxu1 %v11596_v8  ;;  %v12073_v37 = vld [vmem:[#allocation8 + $0x6e0] sm:$0xf0] }
 0x137   : > { %v16965_v31 = vpack.c.bf16 %v1073_v21, %v1065_v9  ;;  %v15271_v9 = vld [vmem:[#allocation8 + $0x4c4] sm:$0xf] }
 0x138   : > { %v1013_v36 = vpop.f32.mrf.mxu2  ;;  %4370 = vmatmul.bf16.vlgmr.msrb.gmra.mxu0 %v16962_v57  ;;  %v11820_v17 = vor.u32 %v15271_v9, %v11817_v11  ;;  %v15207_v16 = vld [vmem:[#allocation8 + $0x2c4] sm:$0xf] }
 0x139   : > { %v1014_v40 = vadd.f32 %v1013_v36, %v16956_v10  ;;  %v1042_v41 = vpop.f32.mrf.mxu3  ;;  %4399 = vmatmul.bf16.vlgmr.msrb.gmra.mxu1 %v16965_v31  ;;  %v958_v43 = vpop.f32.mrf.mxu0  ;;  %v15335_v36 = vld [vmem:[#allocation8 + $0x6c4] sm:$0xf]  ;;  %4482 = vmatpush.bf16.msra.mxu0 %v11308_v53 }
 0x13a   : > { %v1043_v35 = vadd.f32 %v1042_v41, %v16960_v12  ;;  %v987_v18 = vpop.f32.mrf.mxu1  ;;  %v959_v60 = vadd.f32 %v958_v43, %v16941_v38  ;;  %4540 = vmatpush.bf16.msra.mxu2 %v11820_v17  ;;  %v15135_v19 = vld [vmem:[#allocation8 + $0x84] sm:$0xf] }
 0x13b   : > { %v1074_v51 = vmax.f32 %v1014_v40, 0.0  ;;  %v988_v0 = vadd.f32 %v987_v18, %v16944_v42  ;;  %v12076_v40 = vor.u32 %v15335_v36, %v12073_v37  ;;  %v15263_v18 = vld [vmem:[#allocation8 + $0x484] sm:$0xf] }
 0x13c   : > { %v1075_v4 = vmax.f32 %v1043_v35, 0.0  ;;  %v1080_v21 = vmax.f32 %v959_v60, 0.0  ;;  %v11561_v35 = vld [vmem:[#allocation8 + $0x2e0] sm:$0xf0] }
 0x13d   : > { %v16972_v58 = vpack.c.bf16 %v1074_v51, %v1066_v49  ;;  %v1081_v26 = vmax.f32 %v988_v0, 0.0  ;;  %4569 = vmatpush.bf16.msra.mxu3 %v12076_v40  ;;  %v11273_v8 = vld [vmem:[#allocation8 + $0xa0] sm:$0xf0] }
 0x13e   : > { %v16974_v59 = vpack.c.bf16 %v1075_v4, %v1067_v52  ;;  %v11564_v52 = vor.u32 %v15207_v16, %v11561_v35  ;;  %v11785_v4 = vld [vmem:[#allocation8 + $0x4a0] sm:$0xf0]  ;;  %v11276_v11 = vor.u32 %v15135_v19, %v11273_v8 }
 0x13f   : > { %4428 = vmatmul.bf16.vlgmr.msrb.gmra.mxu2 %v16972_v58  ;;  %v11788_v63 = vor.u32 %v15263_v18, %v11785_v4  ;;  %v15255_v33 = vld [vmem:[#allocation8 + $0x444] sm:$0xf] }
 0x140   : > { %4457 = vmatmul.bf16.vlgmr.msrb.gmra.mxu3 %v16974_v59  ;;  %v1016_v7 = vpop.f32.mrf.mxu2  ;;  %4511 = vmatpush.bf16.msra.mxu1 %v11564_v52  ;;  %v15127_v53 = vld [vmem:[#allocation8 + $0x44] sm:$0xf] }
 0x141   : > { %v1045_v13 = vpop.f32.mrf.mxu3  ;;  %v960_v14 = vpop.f32.mrf.mxu0  ;;  %v1017_v41 = vadd.f32 %v1016_v7, %v16956_v10  ;;  %4541 = vmatpush.bf16.msra.mxu2 %v11788_v63  ;;  %4483 = vmatpush.bf16.msra.mxu0 %v11276_v11  ;;  %v15319_v16 = vld [vmem:[#allocation8 + $0x644] sm:$0xf] }
 0x142   : > { %v961_v55 = vadd.f32 %v960_v14, %v16941_v38  ;;  %v989_v24 = vpop.f32.mrf.mxu1  ;;  %v1046_v49 = vadd.f32 %v1045_v13, %v16960_v12  ;;  %v15199_v13 = vld [vmem:[#allocation8 + $0x284] sm:$0xf] }
 0x143   : > { %v990_v28 = vadd.f32 %v989_v24, %v16944_v42  ;;  %v1082_v2 = vmax.f32 %v1017_v41, 0.0  ;;  %v11529_v14 = vld [vmem:[#allocation8 + $0x2a0] sm:$0xf0] }
 0x144   : > { %v1088_v29 = vmax.f32 %v961_v55, 0.0  ;;  %v1083_v6 = vmax.f32 %v1046_v49, 0.0  ;;  %v15327_v55 = vld [vmem:[#allocation8 + $0x684] sm:$0xf] }
 0x145   : > { %v1089_v34 = vmax.f32 %v990_v28, 0.0  ;;  %v12041_v24 = vld [vmem:[#allocation8 + $0x6a0] sm:$0xf0] }
 0x146   : > { %v16982_v39 = vpack.c.bf16 %v1088_v29, %v1080_v21  ;;  %v12044_v29 = vor.u32 %v15327_v55, %v12041_v24  ;;  %v11241_v41 = vld [vmem:[#allocation8 + $0x60] sm:$0xf0] }
 0x147   : > { %v16985_v43 = vpack.c.bf16 %v1089_v34, %v1081_v26  ;;  %v11532_v26 = vor.u32 %v15199_v13, %v11529_v14  ;;  %v11753_v34 = vld [vmem:[#allocation8 + $0x460] sm:$0xf0]  ;;  %v11244_v52 = vor.u32 %v15127_v53, %v11241_v41 }
 0x148   : > { %v1018_v51 = vpop.f32.mrf.mxu2  ;;  %4375 = vmatmul.bf16.gmra.mxu0 %v16982_v39  ;;  %4570 = vmatpush.bf16.msra.mxu3 %v12044_v29  ;;  %v11756_v40 = vor.u32 %v15255_v33, %v11753_v34  ;;  %v12009_v35 = vld [vmem:[#allocation8 + $0x660] sm:$0xf0] }
 0x149   : > { %v1019_v60 = vadd.f32 %v1018_v51, %v16956_v10  ;;  %v1047_v61 = vpop.f32.mrf.mxu3  ;;  %4404 = vmatmul.bf16.gmra.mxu1 %v16985_v43  ;;  %v963_v62 = vpop.f32.mrf.mxu0  ;;  %v12012_v4 = vor.u32 %v15319_v16, %v12009_v35  ;;  %4484 = vmatpush.bf16.msra.mxu0 %v11244_v52  ;;  %v15183_v19 = vld [vmem:[#allocation8 + $0x204] sm:$0xf] }
 0x14a   : > { %v1048_v0 = vadd.f32 %v1047_v61, %v16960_v12  ;;  %v992_v1 = vpop.f32.mrf.mxu1  ;;  %v964_v21 = vadd.f32 %v963_v62, %v16941_v38  ;;  %4512 = vmatpush.bf16.msra.mxu1 %v11532_v26  ;;  %v11497_v61 = vld [vmem:[#allocation8 + $0x260] sm:$0xf0]  ;;  %4542 = vmatpush.bf16.msra.mxu2 %v11756_v40 }
 0x14b   : > { %v1090_v5 = vmax.f32 %v1019_v60, 0.0  ;;  %v993_v28 = vadd.f32 %v992_v1, %v16944_v42  ;;  %v15191_v60 = vld [vmem:[#allocation8 + $0x244] sm:$0xf] }
 0x14c   : > { %v1091_v7 = vmax.f32 %v1048_v0, 0.0  ;;  %v1096_v18 = vmax.f32 %v964_v21, 0.0  ;;  %v11500_v0 = vor.u32 %v15191_v60, %v11497_v61  ;;  %4571 = vmatpush.bf16.msra.mxu3 %v12012_v4  ;;  %v11465_v8 = vld [vmem:[#allocation8 + $0x220] sm:$0xf0] }
 0x14d   : > { %v16992_v9 = vpack.c.bf16 %v1090_v5, %v1082_v2  ;;  %v1097_v62 = vmax.f32 %v993_v28, 0.0  ;;  %v15119_v2 = vld [vmem:[#allocation8 + $0x4] sm:$0xf]  ;;  %v11468_v13 = vor.u32 %v15183_v19, %v11465_v8 }
 0x14e   : > { %v16994_v17 = vpack.c.bf16 %v1091_v7, %v1083_v6  ;;  %v11209_v5 = vld [vmem:[#allocation8 + $0x20] sm:$0xf0]  ;;  %4513 = vmatpush.bf16.msra.mxu1 %v11500_v0 }
 0x14f   : > { %4433 = vmatmul.bf16.gmra.mxu2 %v16992_v9  ;;  %v11212_v7 = vor.u32 %v15119_v2, %v11209_v5  ;;  %v15247_v26 = vld [vmem:[#allocation8 + $0x404] sm:$0xf] }
 0x150   : > { %4462 = vmatmul.bf16.gmra.mxu3 %v16994_v17  ;;  %v1021_v3 = vpop.f32.mrf.mxu2  ;;  %v11721_v28 = vld [vmem:[#allocation8 + $0x420] sm:$0xf0] }
 0x151   : > { %v1050_v36 = vpop.f32.mrf.mxu3  ;;  %v965_v37 = vpop.f32.mrf.mxu0  ;;  %v1022_v14 = vadd.f32 %v1021_v3, %v16956_v10  ;;  %4485 = vmatpush.bf16.msra.mxu0 %v11212_v7  ;;  %v11724_v53 = vor.u32 %v15247_v26, %v11721_v28  ;;  %v11977_v40 = vld [vmem:[#allocation8 + $0x620] sm:$0xf0] }
 0x152   : > { %v966_v49 = vadd.f32 %v965_v37, %v16941_v38  ;;  %v994_v51 = vpop.f32.mrf.mxu1  ;;  %v1051_v55 = vadd.f32 %v1050_v36, %v16960_v12  ;;  %v15311_v37 = vld [vmem:[#allocation8 + $0x604] sm:$0xf]  ;;  %4514 = vmatpush.bf16.msra.mxu1 %v11468_v13 }
 0x153   : > { %v995_v63 = vadd.f32 %v994_v51, %v16944_v42  ;;  %v11980_v36 = vor.u32 %v15311_v37, %v11977_v40  ;;  %v1098_v16 = vmax.f32 %v1022_v14, 0.0  ;;  %4543 = vmatpush.bf16.msra.mxu2 %v11724_v53  ;;  %v15431_v0 = vld [vmem:[#allocation8 + $0x9c4] sm:$0xf] }
 0x154   : > { %v1104_v1 = vmax.f32 %v966_v49, 0.0  ;;  %v15623_v7 = vld [vmem:[#allocation8 + $0xfc4] sm:$0xf] }
 0x155   : > { %v1105_v6 = vmax.f32 %v995_v63, 0.0  ;;  %4572 = vmatpush.bf16.msra.mxu3 %v11980_v36  ;;  %v12969_v63 = vld [vmem:[#allocation8 + $0xde0] sm:$0xf0] }
 0x156   : > { %v17002_v11 = vpack.c.bf16 %v1104_v1, %v1096_v18  ;;  %v1099_v18 = vmax.f32 %v1051_v55, 0.0  ;;  %v13225_v19 = vld [vmem:[#allocation8 + $0xfe0] sm:$0xf0] }
 0x157   : > { %v17005_v21 = vpack.c.bf16 %v1105_v6, %v1097_v62  ;;  %v15559_v62 = vld [vmem:[#allocation8 + $0xdc4] sm:$0xf] }
 0x158   : > { %v1023_v24 = vpop.f32.mrf.mxu2  ;;  %4380 = vmatmul.bf16.gmra.mxu0 %v17002_v11  ;;  %v12972_v5 = vor.u32 %v15559_v62, %v12969_v63  ;;  %v12457_v6 = vld [vmem:[#allocation8 + $0x9e0] sm:$0xf0] }
 0x159   : > { %v1024_v29 = vadd.f32 %v1023_v24, %v16956_v10  ;;  %v1052_v33 = vpop.f32.mrf.mxu3  ;;  %4409 = vmatmul.bf16.gmra.mxu1 %v17005_v21  ;;  %v968_v34 = vpop.f32.mrf.mxu0  ;;  %v12460_v55 = vor.u32 %v15431_v0, %v12457_v6  ;;  %v13228_v24 = vor.u32 %v15623_v7, %v13225_v19  ;;  %v12713_v53 = vld [vmem:[#allocation8 + $0xbe0] sm:$0xf0] }
 0x15a   : > { %v1053_v3 = vadd.f32 %v1052_v33, %v16960_v12  ;;  %v997_v41 = vpop.f32.mrf.mxu1  ;;  %v969_v4 = vadd.f32 %v968_v34, %v16941_v38  ;;  %4652 = vmatpush.bf16.msrb.mxu2 %v12972_v5  ;;  %v15495_v34 = vld [vmem:[#allocation8 + $0xbc4] sm:$0xf] }
 0x15b   : > { %v1106_v35 = vmax.f32 %v1024_v29, 0.0  ;;  %v998_v60 = vadd.f32 %v997_v41, %v16944_v42  ;;  %4594 = vmatpush.bf16.msrb.mxu0 %v12460_v55  ;;  %4681 = vmatpush.bf16.msrb.mxu3 %v13228_v24  ;;  %v12716_v40 = vor.u32 %v15495_v34, %v12713_v53  ;;  %v15615_v62 = vld [vmem:[#allocation8 + $0xf84] sm:$0xf] }
 0x15c   : > { %v1107_v49 = vmax.f32 %v1053_v3, 0.0  ;;  %v1112_v8 = vmax.f32 %v969_v4, 0.0  ;;  %v15423_v4 = vld [vmem:[#allocation8 + $0x984] sm:$0xf] }
 0x15d   : > { %v17012_v51 = vpack.c.bf16 %v1106_v35, %v1098_v16  ;;  %v1113_v26 = vmax.f32 %v998_v60, 0.0  ;;  %4623 = vmatpush.bf16.msrb.mxu1 %v12716_v40  ;;  %v12937_v16 = vld [vmem:[#allocation8 + $0xda0] sm:$0xf0] }
 0x15e   : > { %v17014_v52 = vpack.c.bf16 %v1107_v49, %v1099_v18  ;;  %v12425_v60 = vld [vmem:[#allocation8 + $0x9a0] sm:$0xf0] }
 0x15f   : > { %4438 = vmatmul.bf16.gmra.mxu2 %v17012_v51  ;;  %v12428_v63 = vor.u32 %v15423_v4, %v12425_v60  ;;  %v13193_v0 = vld [vmem:[#allocation8 + $0xfa0] sm:$0xf0] }
 0x160   : > { %4467 = vmatmul.bf16.gmra.mxu3 %v17014_v52  ;;  %v1026_v61 = vpop.f32.mrf.mxu2  ;;  %v13196_v5 = vor.u32 %v15615_v62, %v13193_v0  ;;  %v15543_v55 = vld [vmem:[#allocation8 + $0xd44] sm:$0xf] }
 0x161   : > { %v1055_v1 = vpop.f32.mrf.mxu3  ;;  %v970_v2 = vpop.f32.mrf.mxu0  ;;  %v1027_v3 = vadd.f32 %v1026_v61, %v16956_v10  ;;  %4595 = vmatpush.bf16.msrb.mxu0 %v12428_v63  ;;  %v12905_v24 = vld [vmem:[#allocation8 + $0xd60] sm:$0xf0] }
 0x162   : > { %v971_v13 = vadd.f32 %v970_v2, %v16941_v38  ;;  %v999_v14 = vpop.f32.mrf.mxu1  ;;  %v1056_v38 = vadd.f32 %v1055_v1, %v16960_v12  ;;  %4682 = vmatpush.bf16.msrb.mxu3 %v13196_v5  ;;  %v13161_v34 = vld [vmem:[#allocation8 + $0xf60] sm:$0xf0] }
 0x163   : > { %v1000_v28 = vadd.f32 %v999_v14, %v16944_v42  ;;  %v15551_v42 = vld [vmem:[#allocation8 + $0xd84] sm:$0xf]  ;;  %v1114_v1 = vmax.f32 %v1027_v3, 0.0 }
 0x164   : > { %v1120_v29 = vmax.f32 %v971_v13, 0.0  ;;  %v12940_v49 = vor.u32 %v15551_v42, %v12937_v16  ;;  %v1115_v6 = vmax.f32 %v1056_v38, 0.0  ;;  %v12649_v42 = vld [vmem:[#allocation8 + $0xb60] sm:$0xf0] }
 0x165   : > { %v1121_v33 = vmax.f32 %v1000_v28, 0.0  ;;  %v12908_v28 = vor.u32 %v15543_v55, %v12905_v24  ;;  %v15535_v4 = vld [vmem:[#allocation8 + $0xd04] sm:$0xf] }
 0x166   : > { %v17022_v37 = vpack.c.bf16 %v1120_v29, %v1112_v8  ;;  %4653 = vmatpush.bf16.msrb.mxu2 %v12940_v49  ;;  %v12681_v8 = vld [vmem:[#allocation8 + $0xba0] sm:$0xf0] }
 0x167   : > { %v17025_v41 = vpack.c.bf16 %v1121_v33, %v1113_v26  ;;  %v15415_v26 = vld [vmem:[#allocation8 + $0x944] sm:$0xf] }
 0x168   : > { %v1028_v36 = vpop.f32.mrf.mxu2  ;;  %4385 = vmatmul.bf16.gmra.mxu0 %v17022_v37  ;;  %v12393_v29 = vld [vmem:[#allocation8 + $0x960] sm:$0xf0] }
 0x169   : > { %v1029_v35 = vadd.f32 %v1028_v36, %v16956_v10  ;;  %v1057_v18 = vpop.f32.mrf.mxu3  ;;  %4414 = vmatmul.bf16.gmra.mxu1 %v17025_v41  ;;  %v15487_v10 = vld [vmem:[#allocation8 + $0xb84] sm:$0xf]  ;;  %v12396_v40 = vor.u32 %v15415_v26, %v12393_v29 }
 0x16a   : > { %v1058_v61 = vadd.f32 %v1057_v18, %v16960_v12  ;;  %v12684_v14 = vor.u32 %v15487_v10, %v12681_v8  ;;  %v17037_v12 = vld [vmem:[#allocation10] sm:$0xff]  ;;  %4654 = vmatpush.bf16.msrb.mxu2 %v12908_v28 }
 0x16b   : > { %v1122_v2 = vmax.f32 %v1029_v35, 0.0  ;;  %v15607_v33 = vld [vmem:[#allocation8 + $0xf44] sm:$0xf]  ;;  %v17041_v53 = vperm.slane %v17037_v12, 0  ;;  %4596 = vmatpush.bf16.msrb.mxu0 %v12396_v40 }
 0x16c   : > { %v1123_v7 = vmax.f32 %v1058_v61, 0.0  ;;  %4624 = vmatpush.bf16.msrb.mxu1 %v12684_v14  ;;  %v13164_v3 = vor.u32 %v15607_v33, %v13161_v34  ;;  %v15479_v36 = vld [vmem:[#allocation8 + $0xb44] sm:$0xf] }
 0x16d   : > { %v17032_v19 = vpack.c.bf16 %v1122_v2, %v1114_v1  ;;  %v12652_v18 = vor.u32 %v15479_v36, %v12649_v42  ;;  %v12873_v60 = vld [vmem:[#allocation8 + $0xd20] sm:$0xf0] }
 0x16e   : > { %v17034_v13 = vpack.c.bf16 %v1123_v7, %v1115_v6  ;;  %4683 = vmatpush.bf16.msrb.mxu3 %v13164_v3  ;;  %v12876_v62 = vor.u32 %v15535_v4, %v12873_v60  ;;  %v15407_v61 = vld [vmem:[#allocation8 + $0x904] sm:$0xf] }
 0x16f   : > { %4443 = vmatmul.bf16.gmra.mxu2 %v17032_v19  ;;  %v12361_v63 = vld [vmem:[#allocation8 + $0x920] sm:$0xf0] }
 0x170   : > { %4472 = vmatmul.bf16.gmra.mxu3 %v17034_v13  ;;  %4625 = vmatpush.bf16.msrb.mxu1 %v12652_v18  ;;  %v15599_v0 = vld [vmem:[#allocation8 + $0xf04] sm:$0xf]  ;;  %v12364_v1 = vor.u32 %v15407_v61, %v12361_v63 }
 0x171   : > { %v13129_v2 = vld [vmem:[#allocation8 + $0xf20] sm:$0xf0]  ;;  %4655 = vmatpush.bf16.msrb.mxu2 %v12876_v62 }
 0x172   : > { %v13132_v5 = vor.u32 %v15599_v0, %v13129_v2  ;;  %4597 = vmatpush.bf16.msrb.mxu0 %v12364_v1  ;;  %v15471_v7 = vld [vmem:[#allocation8 + $0xb04] sm:$0xf] }
 0x173   : > { %v12617_v10 = vld [vmem:[#allocation8 + $0xb20] sm:$0xf0] }
 0x174   : > { %4684 = vmatpush.bf16.msrb.mxu3 %v13132_v5  ;;  %v12620_v55 = vor.u32 %v15471_v7, %v12617_v10  ;;  %v15527_v26 = vld [vmem:[#allocation8 + $0xcc4] sm:$0xf] }
 0x175   : > { %v4255_v38 = vpop.f32.mrf.mxu0  ;;  %v12841_v28 = vld [vmem:[#allocation8 + $0xce0] sm:$0xf0] }
 0x176   : > { %v4256_v16 = vadd.f32 %v4255_v38, %v17041_v53  ;;  %v4284_v35 = vpop.f32.mrf.mxu1  ;;  %4626 = vmatpush.bf16.msrb.mxu1 %v12620_v55  ;;  %v15399_v29 = vld [vmem:[#allocation8 + $0x8c4] sm:$0xf]  ;;  %v12844_v33 = vor.u32 %v15527_v26, %v12841_v28 }
 0x177   : > { %v12329_v34 = vld [vmem:[#allocation8 + $0x8e0] sm:$0xf0] }
 0x178   : > { %v4285_v49 = vadd.f32 %v4284_v35, %v4256_v16  ;;  %4486 = vmatmul.bf16.vlgmr.msra.gmra.mxu0 %v16870_v27  ;;  %v15591_v40 = vld [vmem:[#allocation8 + $0xec4] sm:$0xf]  ;;  %v12332_v36 = vor.u32 %v15399_v29, %v12329_v34  ;;  %4656 = vmatpush.bf16.msrb.mxu2 %v12844_v33 }
 0x179   : > { %4515 = vmatmul.bf16.vlgmr.msra.gmra.mxu1 %v16873_v30  ;;  %v13097_v3 = vld [vmem:[#allocation8 + $0xee0] sm:$0xf0] }
 0x17a   : > { %v13100_v42 = vor.u32 %v15591_v40, %v13097_v3  ;;  %4598 = vmatpush.bf16.msrb.mxu0 %v12332_v36  ;;  %v15463_v60 = vld [vmem:[#allocation8 + $0xac4] sm:$0xf] }
 0x17b   : > { %v12585_v62 = vld [vmem:[#allocation8 + $0xae0] sm:$0xf0] }
 0x17c   : > { %4685 = vmatpush.bf16.msrb.mxu3 %v13100_v42  ;;  %v12588_v0 = vor.u32 %v15463_v60, %v12585_v62  ;;  %v15519_v2 = vld [vmem:[#allocation8 + $0xc84] sm:$0xf] }
 0x17d   : > { %v4257_v6 = vpop.f32.mrf.mxu0  ;;  %v12809_v5 = vld [vmem:[#allocation8 + $0xca0] sm:$0xf0] }
 0x17e   : > { %v4258_v8 = vadd.f32 %v4257_v6, %v17041_v53  ;;  %v4286_v14 = vpop.f32.mrf.mxu1  ;;  %4627 = vmatpush.bf16.msrb.mxu1 %v12588_v0  ;;  %v15391_v6 = vld [vmem:[#allocation8 + $0x884] sm:$0xf] }
 0x17f   : > { %4544 = vmatmul.bf16.vlgmr.msra.gmra.mxu2 %v16880_v47  ;;  %v12297_v7 = vld [vmem:[#allocation8 + $0x8a0] sm:$0xf0] }
 0x180   : > { %v4287_v24 = vadd.f32 %v4286_v14, %v4258_v8  ;;  %4573 = vmatmul.bf16.vlgmr.msra.gmra.mxu3 %v16882_v48  ;;  %v15583_v10 = vld [vmem:[#allocation8 + $0xe84] sm:$0xf]  ;;  %v12300_v14 = vor.u32 %v15391_v6, %v12297_v7 }
 0x181   : > { %v13065_v55 = vld [vmem:[#allocation8 + $0xea0] sm:$0xf0] }
 0x182   : > { %v4313_v38 = vpop.f32.mrf.mxu2  ;;  %v13068_v29 = vor.u32 %v15583_v10, %v13065_v55  ;;  %4599 = vmatpush.bf16.msrb.mxu0 %v12300_v14  ;;  %v15455_v33 = vld [vmem:[#allocation8 + $0xa84] sm:$0xf] }
 0x183   : > { %v4314_v16 = vadd.f32 %v4313_v38, %v4285_v49  ;;  %v4342_v35 = vpop.f32.mrf.mxu3  ;;  %v12812_v49 = vor.u32 %v15519_v2, %v12809_v5  ;;  %v12553_v34 = vld [vmem:[#allocation8 + $0xaa0] sm:$0xf0] }
 0x184   : > { %4686 = vmatpush.bf16.msrb.mxu3 %v13068_v29  ;;  %v12556_v38 = vor.u32 %v15455_v33, %v12553_v34  ;;  %v12265_v62 = vld [vmem:[#allocation8 + $0x860] sm:$0xf0] }
 0x185   : > { %v17049_v18 = vadd.f32 %v4342_v35, %v4314_v16  ;;  %v4260_v4 = vpop.f32.mrf.mxu0  ;;  %4657 = vmatpush.bf16.msrb.mxu2 %v12812_v49  ;;  %v12777_v35 = vld [vmem:[#allocation8 + $0xc60] sm:$0xf0] }
 0x186   : > { %v4261_v61 = vadd.f32 %v4260_v4, %v17041_v53  ;;  %v4289_v63 = vpop.f32.mrf.mxu1  ;;  %4628 = vmatpush.bf16.msrb.mxu1 %v12556_v38  ;;  %v15383_v4 = vld [vmem:[#allocation8 + $0x844] sm:$0xf] }
 0x187   : > { %v12268_v2 = vor.u32 %v15383_v4, %v12265_v62  ;;  %v15447_v49 = vld [vmem:[#allocation8 + $0xa44] sm:$0xf] }
 0x188   : > { %v4290_v1 = vadd.f32 %v4289_v63, %v4261_v61  ;;  %4491 = vmatmul.bf16.gmra.mxu0 %v16890_v20  ;;  %v15575_v61 = vld [vmem:[#allocation8 + $0xe44] sm:$0xf] }
 0x189   : > { %4520 = vmatmul.bf16.gmra.mxu1 %v16893_v23  ;;  %v13033_v63 = vld [vmem:[#allocation8 + $0xe60] sm:$0xf0]  ;;  %4600 = vmatpush.bf16.msrb.mxu0 %v12268_v2 }
 0x18a   : > { %v4315_v8 = vpop.f32.mrf.mxu2  ;;  %v13036_v5 = vor.u32 %v15575_v61, %v13033_v63  ;;  %v12521_v6 = vld [vmem:[#allocation8 + $0xa60] sm:$0xf0] }
 0x18b   : > { %v4316_v26 = vadd.f32 %v4315_v8, %v4287_v24  ;;  %v4344_v28 = vpop.f32.mrf.mxu3  ;;  %v15511_v24 = vld [vmem:[#allocation8 + $0xc44] sm:$0xf]  ;;  %v12524_v8 = vor.u32 %v15447_v49, %v12521_v6 }
 0x18c   : > { %v12780_v60 = vor.u32 %v15511_v24, %v12777_v35  ;;  %4687 = vmatpush.bf16.msrb.mxu3 %v13036_v5  ;;  %v15375_v14 = vld [vmem:[#allocation8 + $0x804] sm:$0xf] }
 0x18d   : > { %v17054_v40 = vadd.f32 %v4344_v28, %v4316_v26  ;;  %v4262_v3 = vpop.f32.mrf.mxu0  ;;  %v12233_v55 = vld [vmem:[#allocation8 + $0x820] sm:$0xf0]  ;;  %4629 = vmatpush.bf16.msrb.mxu1 %v12524_v8  ;;  %v15308_v8 = vld [vmem:[#allocation8 + $0x5e4] sm:$0xf0] }
 0x18e   : > { %v4263_v36 = vadd.f32 %v4262_v3, %v17041_v53  ;;  %v4291_v42 = vpop.f32.mrf.mxu1  ;;  %4658 = vmatpush.bf16.msrb.mxu2 %v12780_v60  ;;  %v15439_v26 = vld [vmem:[#allocation8 + $0xa04] sm:$0xf]  ;;  %v12236_v33 = vor.u32 %v15375_v14, %v12233_v55  ;;  %v11439_v14 = vld [vmem:[#allocation8 + $0x1c8] sm:$0xf] }
 0x18f   : > { %4549 = vmatmul.bf16.gmra.mxu2 %v16900_v45  ;;  %v12489_v34 = vld [vmem:[#allocation8 + $0xa20] sm:$0xf0] }
 0x190   : > { %v4292_v16 = vadd.f32 %v4291_v42, %v4263_v36  ;;  %4578 = vmatmul.bf16.gmra.mxu3 %v16902_v50  ;;  %v12492_v36 = vor.u32 %v15439_v26, %v12489_v34  ;;  %v12745_v24 = vld [vmem:[#allocation8 + $0xc20] sm:$0xf0]  ;;  %4601 = vmatpush.bf16.msrb.mxu0 %v12236_v33  ;;  %v15180_v26 = vld [vmem:[#allocation8 + $0x1e4] sm:$0xf0] }
 0x191   : > { %v15567_v4 = vld [vmem:[#allocation8 + $0xe04] sm:$0xf]  ;;  %v11440_v34 = vor.u32 %v15180_v26, %v11439_v14 }
 0x192   : > { %v4318_v0 = vpop.f32.mrf.mxu2  ;;  %v13001_v60 = vld [vmem:[#allocation8 + $0xe20] sm:$0xf0]  ;;  %4630 = vmatpush.bf16.msrb.mxu1 %v12492_v36 }
 0x193   : > { %v4319_v7 = vadd.f32 %v4318_v0, %v4290_v1  ;;  %v4347_v10 = vpop.f32.mrf.mxu3  ;;  %v15503_v1 = vld [vmem:[#allocation8 + $0xc04] sm:$0xf]  ;;  %v13004_v61 = vor.u32 %v15567_v4, %v13001_v60  ;;  %v11695_v60 = vld [vmem:[#allocation8 + $0x3c8] sm:$0xf] }
 0x194   : > { %v12748_v35 = vor.u32 %v15503_v1, %v12745_v24  ;;  %4710 = vmatpush.bf16.msra.mxu0 %v11440_v34 }
 0x195   : > { %v17059_v28 = vadd.f32 %v4347_v10, %v4319_v7  ;;  %v4265_v29 = vpop.f32.mrf.mxu0  ;;  %4688 = vmatpush.bf16.msrb.mxu3 %v13004_v61  ;;  %v11951_v10 = vld [vmem:[#allocation8 + $0x5c8] sm:$0xf] }
 0x196   : > { %v4266_v3 = vadd.f32 %v4265_v29, %v17041_v53  ;;  %v4294_v38 = vpop.f32.mrf.mxu1  ;;  %4659 = vmatpush.bf16.msrb.mxu2 %v12748_v35  ;;  %v11952_v55 = vor.u32 %v15308_v8, %v11951_v10  ;;  %v15372_v29 = vld [vmem:[#allocation8 + $0x7e4] sm:$0xf0] }
 0x197   : > { %v12175_v10 = vld [vmem:[#allocation8 + $0x788] sm:$0xf] }
 0x198   : > { %v4295_v42 = vadd.f32 %v4294_v38, %v4266_v3  ;;  %4496 = vmatmul.bf16.gmra.mxu0 %v16910_v25 }
 0x199   : > { %4525 = vmatmul.bf16.gmra.mxu1 %v16913_v32 }
 0x19a   : > { %v4320_v62 = vpop.f32.mrf.mxu2  ;;  %4768 = vmatpush.bf16.msra.mxu2 %v11952_v55  ;;  %v15364_v55 = vld [vmem:[#allocation8 + $0x7a4] sm:$0xf0] }
 0x19b   : > { %v4321_v63 = vadd.f32 %v4320_v62, %v4292_v16  ;;  %v4349_v0 = vpop.f32.mrf.mxu3  ;;  %v12207_v16 = vld [vmem:[#allocation8 + $0x7c8] sm:$0xf] }
 0x19c   : > { %v12208_v3 = vor.u32 %v15372_v29, %v12207_v16  ;;  %v15244_v62 = vld [vmem:[#allocation8 + $0x3e4] sm:$0xf0]  ;;  %v12176_v29 = vor.u32 %v15364_v55, %v12175_v10 }
 0x19d   : > { %v17064_v2 = vadd.f32 %v4349_v0, %v4321_v63  ;;  %v4267_v5 = vpop.f32.mrf.mxu0  ;;  %v11696_v63 = vor.u32 %v15244_v62, %v11695_v60  ;;  %v11919_v0 = vld [vmem:[#allocation8 + $0x588] sm:$0xf] }
 0x19e   : > { %v4268_v49 = vadd.f32 %v4267_v5, %v17041_v53  ;;  %v4296_v6 = vpop.f32.mrf.mxu1  ;;  %4797 = vmatpush.bf16.msra.mxu3 %v12208_v3  ;;  %v15300_v5 = vld [vmem:[#allocation8 + $0x5a4] sm:$0xf0] }
 0x19f   : > { %4554 = vmatmul.bf16.gmra.mxu2 %v16920_v54  ;;  %4739 = vmatpush.bf16.msra.mxu1 %v11696_v63  ;;  %v15292_v62 = vld [vmem:[#allocation8 + $0x564] sm:$0xf0] }
 0x1a0   : > { %v4297_v7 = vadd.f32 %v4296_v6, %v4268_v49  ;;  %4583 = vmatmul.bf16.gmra.mxu3 %v16922_v56  ;;  %v11407_v49 = vld [vmem:[#allocation8 + $0x188] sm:$0xf] }
 0x1a1   : > { %v15172_v6 = vld [vmem:[#allocation8 + $0x1a4] sm:$0xf0] }
 0x1a2   : > { %v4323_v33 = vpop.f32.mrf.mxu2  ;;  %v11408_v14 = vor.u32 %v15172_v6, %v11407_v49  ;;  %4798 = vmatpush.bf16.msra.mxu3 %v12176_v29  ;;  %v11375_v63 = vld [vmem:[#allocation8 + $0x148] sm:$0xf] }
 0x1a3   : > { %v4324_v38 = vadd.f32 %v4323_v33, %v4295_v42  ;;  %v4352_v36 = vpop.f32.mrf.mxu3  ;;  %v11920_v42 = vor.u32 %v15300_v5, %v11919_v0  ;;  %v15164_v0 = vld [vmem:[#allocation8 + $0x164] sm:$0xf0] }
 0x1a4   : > { %4711 = vmatpush.bf16.msra.mxu0 %v11408_v14  ;;  %v11376_v6 = vor.u32 %v15164_v0, %v11375_v63  ;;  %v12143_v10 = vld [vmem:[#allocation8 + $0x748] sm:$0xf] }
 0x1a5   : > { %v17069_v1 = vadd.f32 %v4352_v36, %v4324_v38  ;;  %v4270_v24 = vpop.f32.mrf.mxu0  ;;  %4769 = vmatpush.bf16.msra.mxu2 %v11920_v42  ;;  %v11631_v29 = vld [vmem:[#allocation8 + $0x348] sm:$0xf] }
 0x1a6   : > { %v4271_v35 = vadd.f32 %v4270_v24, %v17041_v53  ;;  %v4299_v4 = vpop.f32.mrf.mxu1  ;;  %v11663_v24 = vld [vmem:[#allocation8 + $0x388] sm:$0xf] }
 0x1a8   : > { %v4300_v61 = vadd.f32 %v4299_v4, %v4271_v35  ;;  %4501 = vmatmul.bf16.gmra.mxu0 %v16930_v15  ;;  %v15236_v35 = vld [vmem:[#allocation8 + $0x3a4] sm:$0xf0] }
 0x1a9   : > { %4530 = vmatmul.bf16.gmra.mxu1 %v16933_v22  ;;  %v11887_v4 = vld [vmem:[#allocation8 + $0x548] sm:$0xf]  ;;  %v11664_v60 = vor.u32 %v15236_v35, %v11663_v24  ;;  %4712 = vmatpush.bf16.msra.mxu0 %v11376_v6 }
 0x1aa   : > { %v4325_v8 = vpop.f32.mrf.mxu2  ;;  %v11888_v49 = vor.u32 %v15292_v62, %v11887_v4  ;;  %v15284_v24 = vld [vmem:[#allocation8 + $0x524] sm:$0xf0] }
 0x1ab   : > { %v4326_v26 = vadd.f32 %v4325_v8, %v4297_v7  ;;  %v4354_v16 = vpop.f32.mrf.mxu3  ;;  %4740 = vmatpush.bf16.msra.mxu1 %v11664_v60  ;;  %v11343_v4 = vld [vmem:[#allocation8 + $0x108] sm:$0xf] }
 0x1ac   : > { %4770 = vmatpush.bf16.msra.mxu2 %v11888_v49  ;;  %v12111_v60 = vld [vmem:[#allocation8 + $0x708] sm:$0xf] }
 0x1ad   : > { %v17074_v33 = vadd.f32 %v4354_v16, %v4326_v26  ;;  %v4272_v34 = vpop.f32.mrf.mxu0 }
 0x1ae   : > { %v4273_v3 = vadd.f32 %v4272_v34, %v17041_v53  ;;  %v4301_v38 = vpop.f32.mrf.mxu1  ;;  %v15356_v53 = vld [vmem:[#allocation8 + $0x764] sm:$0xf0] }
 0x1af   : > { %4559 = vmatmul.bf16.gmra.mxu2 %v16946_v44  ;;  %v12144_v8 = vor.u32 %v15356_v53, %v12143_v10  ;;  %v15228_v34 = vld [vmem:[#allocation8 + $0x364] sm:$0xf0] }
 0x1b0   : > { %v4302_v36 = vadd.f32 %v4301_v38, %v4273_v3  ;;  %4588 = vmatmul.bf16.gmra.mxu3 %v16948_v46  ;;  %v11855_v38 = vld [vmem:[#allocation8 + $0x508] sm:$0xf] }
 0x1b1   : > { %4799 = vmatpush.bf16.msra.mxu3 %v12144_v8  ;;  %v11856_v35 = vor.u32 %v15284_v24, %v11855_v38  ;;  %v15148_v38 = vld [vmem:[#allocation8 + $0xe4] sm:$0xf0] }
 0x1b2   : > { %v4328_v7 = vpop.f32.mrf.mxu2 }
 0x1b3   : > { %v4329_v5 = vadd.f32 %v4328_v7, %v4300_v61  ;;  %v4357_v42 = vpop.f32.mrf.mxu3  ;;  %v11632_v61 = vor.u32 %v15228_v34, %v11631_v29  ;;  %v15156_v7 = vld [vmem:[#allocation8 + $0x124] sm:$0xf0]  ;;  %4771 = vmatpush.bf16.msra.mxu2 %v11856_v35 }
 0x1b4   : > { %v11344_v63 = vor.u32 %v15156_v7, %v11343_v4  ;;  %v15276_v34 = vld [vmem:[#allocation8 + $0x4e4] sm:$0xf0] }
 0x1b5   : > { %v17079_v14 = vadd.f32 %v4357_v42, %v4329_v5  ;;  %v4371_v55 = vpop.f32.mrf.mxu0  ;;  %4741 = vmatpush.bf16.msra.mxu1 %v11632_v61  ;;  %v11311_v61 = vld [vmem:[#allocation8 + $0xc8] sm:$0xf] }
 0x1b6   : > { %v4372_v26 = vadd.f32 %v4371_v55, %v17049_v18  ;;  %v4400_v16 = vpop.f32.mrf.mxu1  ;;  %v15348_v18 = vld [vmem:[#allocation8 + $0x724] sm:$0xf0]  ;;  %4713 = vmatpush.bf16.msra.mxu0 %v11344_v63  ;;  %v11312_v7 = vor.u32 %v15148_v38, %v11311_v61 }
 0x1b7   : > { %v12112_v42 = vor.u32 %v15348_v18, %v12111_v60  ;;  %v11599_v55 = vld [vmem:[#allocation8 + $0x308] sm:$0xf] }
 0x1b8   : > { %v4401_v3 = vadd.f32 %v4400_v16, %v4372_v26  ;;  %4602 = vmatmul.bf16.vlgmr.msrb.gmra.mxu0 %v16962_v57  ;;  %v15220_v26 = vld [vmem:[#allocation8 + $0x324] sm:$0xf0] }
 0x1b9   : > { %4631 = vmatmul.bf16.vlgmr.msrb.gmra.mxu1 %v16965_v31  ;;  %4800 = vmatpush.bf16.msra.mxu3 %v12112_v42  ;;  %v11823_v16 = vld [vmem:[#allocation8 + $0x4c8] sm:$0xf]  ;;  %v11600_v29 = vor.u32 %v15220_v26, %v11599_v55 }
 0x1ba   : > { %v4330_v62 = vpop.f32.mrf.mxu2  ;;  %v11824_v4 = vor.u32 %v15276_v34, %v11823_v16  ;;  %v12079_v60 = vld [vmem:[#allocation8 + $0x6c8] sm:$0xf]  ;;  %4714 = vmatpush.bf16.msra.mxu0 %v11312_v7 }
 0x1bb   : > { %v4331_v0 = vadd.f32 %v4330_v62, %v4302_v36  ;;  %v4359_v5 = vpop.f32.mrf.mxu3  ;;  %4742 = vmatpush.bf16.msra.mxu1 %v11600_v29  ;;  %v11567_v42 = vld [vmem:[#allocation8 + $0x2c8] sm:$0xf] }
 0x1bc   : > { %4772 = vmatpush.bf16.msra.mxu2 %v11824_v4  ;;  %v15268_v55 = vld [vmem:[#allocation8 + $0x4a4] sm:$0xf0] }
 0x1bd   : > { %v17084_v49 = vadd.f32 %v4359_v5, %v4331_v0  ;;  %v4373_v6 = vpop.f32.mrf.mxu0  ;;  %v11279_v16 = vld [vmem:[#allocation8 + $0x88] sm:$0xf] }
 0x1be   : > { %v4374_v10 = vadd.f32 %v4373_v6, %v17054_v40  ;;  %v4402_v53 = vpop.f32.mrf.mxu1  ;;  %v15340_v40 = vld [vmem:[#allocation8 + $0x6e4] sm:$0xf0] }
 0x1bf   : > { %4660 = vmatmul.bf16.vlgmr.msrb.gmra.mxu2 %v16972_v58  ;;  %v12080_v62 = vor.u32 %v15340_v40, %v12079_v60  ;;  %v15212_v6 = vld [vmem:[#allocation8 + $0x2e4] sm:$0xf0] }
 0x1c0   : > { %v4403_v8 = vadd.f32 %v4402_v53, %v4374_v10  ;;  %4689 = vmatmul.bf16.vlgmr.msrb.gmra.mxu3 %v16974_v59  ;;  %v11791_v53 = vld [vmem:[#allocation8 + $0x488] sm:$0xf] }
 0x1c1   : > { %4801 = vmatpush.bf16.msra.mxu3 %v12080_v62  ;;  %v11792_v26 = vor.u32 %v15268_v55, %v11791_v53  ;;  %v12047_v29 = vld [vmem:[#allocation8 + $0x688] sm:$0xf] }
 0x1c2   : > { %v4429_v36 = vpop.f32.mrf.mxu2  ;;  %v11535_v4 = vld [vmem:[#allocation8 + $0x288] sm:$0xf] }
 0x1c3   : > { %v4430_v24 = vadd.f32 %v4429_v36, %v4401_v3  ;;  %v4458_v35 = vpop.f32.mrf.mxu3  ;;  %v11568_v3 = vor.u32 %v15212_v6, %v11567_v42  ;;  %v15140_v36 = vld [vmem:[#allocation8 + $0xa4] sm:$0xf0]  ;;  %4773 = vmatpush.bf16.msra.mxu2 %v11792_v26 }
 0x1c4   : > { %v11280_v61 = vor.u32 %v15140_v36, %v11279_v16  ;;  %v15204_v7 = vld [vmem:[#allocation8 + $0x2a4] sm:$0xf0] }
 0x1c5   : > { %v4459_v63 = vadd.f32 %v4458_v35, %v4430_v24  ;;  %v4376_v18 = vpop.f32.mrf.mxu0  ;;  %4743 = vmatpush.bf16.msra.mxu1 %v11568_v3  ;;  %v11536_v62 = vor.u32 %v15204_v7, %v11535_v4  ;;  %v15132_v3 = vld [vmem:[#allocation8 + $0x64] sm:$0xf0] }
 0x1c6   : > { %v4377_v0 = vadd.f32 %v4376_v18, %v17059_v28  ;;  %v4405_v5 = vpop.f32.mrf.mxu1  ;;  %v15332_v28 = vld [vmem:[#allocation8 + $0x6a4] sm:$0xf0]  ;;  %4715 = vmatpush.bf16.msra.mxu0 %v11280_v61 }
 0x1c7   : > { %v12048_v35 = vor.u32 %v15332_v28, %v12047_v29  ;;  %v11503_v53 = vld [vmem:[#allocation8 + $0x248] sm:$0xf] }
 0x1c8   : > { %v4406_v10 = vadd.f32 %v4405_v5, %v4377_v0  ;;  %4607 = vmatmul.bf16.gmra.mxu0 %v16982_v39  ;;  %v6102_v5 = vmax.f32 %v4459_v63, 0.0  ;;  %v11759_v26 = vld [vmem:[#allocation8 + $0x448] sm:$0xf] }
 0x1c9   : > { %4636 = vmatmul.bf16.gmra.mxu1 %v16985_v43  ;;  %4802 = vmatpush.bf16.msra.mxu3 %v12048_v35  ;;  %v15260_v16 = vld [vmem:[#allocation8 + $0x464] sm:$0xf0] }
 0x1ca   : > { %v4431_v34 = vpop.f32.mrf.mxu2  ;;  %4744 = vmatpush.bf16.msra.mxu1 %v11536_v62  ;;  %v12015_v29 = vld [vmem:[#allocation8 + $0x648] sm:$0xf] }
 0x1cb   : > { %v4432_v38 = vadd.f32 %v4431_v34, %v4403_v8  ;;  %v4460_v24 = vpop.f32.mrf.mxu3  ;;  %v11247_v8 = vld [vmem:[#allocation8 + $0x48] sm:$0xf] }
 0x1cc   : > { %v11248_v36 = vor.u32 %v15132_v3, %v11247_v8  ;;  %v15324_v61 = vld [vmem:[#allocation8 + $0x664] sm:$0xf0] }
 0x1cd   : > { %v4461_v60 = vadd.f32 %v4460_v24, %v4432_v38  ;;  %v4378_v40 = vpop.f32.mrf.mxu0  ;;  %v15196_v63 = vld [vmem:[#allocation8 + $0x264] sm:$0xf0]  ;;  %v12016_v24 = vor.u32 %v15324_v61, %v12015_v29 }
 0x1ce   : > { %v4379_v18 = vadd.f32 %v4378_v40, %v17064_v2  ;;  %v4407_v0 = vpop.f32.mrf.mxu1  ;;  %v11760_v2 = vor.u32 %v15260_v16, %v11759_v26  ;;  %4716 = vmatpush.bf16.msra.mxu0 %v11248_v36  ;;  %v11504_v35 = vor.u32 %v15196_v63, %v11503_v53  ;;  %v11215_v4 = vld [vmem:[#allocation8 + $0x8] sm:$0xf] }
 0x1cf   : > { %v6110_v42 = vmax.f32 %v4461_v60, 0.0  ;;  %4665 = vmatmul.bf16.gmra.mxu2 %v16992_v9  ;;  %v15124_v7 = vld [vmem:[#allocation8 + $0x24] sm:$0xf0]  ;;  %4803 = vmatpush.bf16.msra.mxu3 %v12016_v24 }
 0x1d0   : > { %v4408_v6 = vadd.f32 %v4407_v0, %v4379_v18  ;;  %4694 = vmatmul.bf16.gmra.mxu3 %v16994_v17  ;;  %4774 = vmatpush.bf16.msra.mxu2 %v11760_v2  ;;  %v11471_v60 = vld [vmem:[#allocation8 + $0x208] sm:$0xf]  ;;  %v11216_v18 = vor.u32 %v15124_v7, %v11215_v4 }
 0x1d1   : > { %v17095_v55 = vpack.c.bf16 %v6110_v42, %v6102_v5  ;;  %4745 = vmatpush.bf16.msra.mxu1 %v11504_v35  ;;  %v15188_v0 = vld [vmem:[#allocation8 + $0x224] sm:$0xf0] }
 0x1d2   : > { %v4434_v34 = vpop.f32.mrf.mxu2  ;;  %v11472_v8 = vor.u32 %v15188_v0, %v11471_v60  ;;  %4717 = vmatpush.bf16.msra.mxu0 %v11216_v18  ;;  %v11727_v3 = vld [vmem:[#allocation8 + $0x408] sm:$0xf] }
 0x1d3   : > { %19090 = vst [vmem:[#allocation20_spill] sm:$0xff] %v17095_v55  ;;  %v4435_v28 = vadd.f32 %v4434_v34, %v4406_v10  ;;  %v4463_v38 = vpop.f32.mrf.mxu3  ;;  %v15252_v53 = vld [vmem:[#allocation8 + $0x424] sm:$0xf0] }
 0x1d4   : > { %v11728_v26 = vor.u32 %v15252_v53, %v11727_v3  ;;  %v11983_v16 = vld [vmem:[#allocation8 + $0x608] sm:$0xf] }
 0x1d5   : > { %v4464_v40 = vadd.f32 %v4463_v38, %v4435_v28  ;;  %v4381_v62 = vpop.f32.mrf.mxu0  ;;  %v15316_v36 = vld [vmem:[#allocation8 + $0x624] sm:$0xf0]  ;;  %4746 = vmatpush.bf16.msra.mxu1 %v11472_v8 }
 0x1d6   : > { %v4382_v5 = vadd.f32 %v4381_v62, %v17069_v1  ;;  %v4410_v42 = vpop.f32.mrf.mxu1  ;;  %v11984_v34 = vor.u32 %v15316_v36, %v11983_v16  ;;  %4775 = vmatpush.bf16.msra.mxu2 %v11728_v26  ;;  %v12975_v60 = vld [vmem:[#allocation8 + $0xdc8] sm:$0xf] }
 0x1d7   : > { %v6118_v24 = vmax.f32 %v4464_v40, 0.0  ;;  %v15564_v62 = vld [vmem:[#allocation8 + $0xde4] sm:$0xf0] }
 0x1d8   : > { %v4411_v10 = vadd.f32 %v4410_v42, %v4382_v5  ;;  %4612 = vmatmul.bf16.gmra.mxu0 %v17002_v11  ;;  %4804 = vmatpush.bf16.msra.mxu3 %v11984_v34  ;;  %v12976_v0 = vor.u32 %v15564_v62, %v12975_v60  ;;  %v15436_v5 = vld [vmem:[#allocation8 + $0x9e4] sm:$0xf0] }
 0x1d9   : > { %4641 = vmatmul.bf16.gmra.mxu1 %v17005_v21  ;;  %v13231_v42 = vld [vmem:[#allocation8 + $0xfc8] sm:$0xf] }
 0x1da   : > { %v4436_v29 = vpop.f32.mrf.mxu2  ;;  %v15628_v8 = vld [vmem:[#allocation8 + $0xfe4] sm:$0xf0]  ;;  %4884 = vmatpush.bf16.msrb.mxu2 %v12976_v0 }
 0x1db   : > { %v4437_v2 = vadd.f32 %v4436_v29, %v4408_v6  ;;  %v4465_v61 = vpop.f32.mrf.mxu3  ;;  %v12463_v6 = vld [vmem:[#allocation8 + $0x9c8] sm:$0xf]  ;;  %v13232_v40 = vor.u32 %v15628_v8, %v13231_v42 }
 0x1dc   : > { %v12464_v53 = vor.u32 %v15436_v5, %v12463_v6  ;;  %v12719_v36 = vld [vmem:[#allocation8 + $0xbc8] sm:$0xf] }
 0x1dd   : > { %v4466_v1 = vadd.f32 %v4465_v61, %v4437_v2  ;;  %v4383_v63 = vpop.f32.mrf.mxu0  ;;  %4913 = vmatpush.bf16.msrb.mxu3 %v13232_v40  ;;  %v15500_v29 = vld [vmem:[#allocation8 + $0xbe4] sm:$0xf0] }
 0x1de   : > { %v4384_v28 = vadd.f32 %v4383_v63, %v17074_v33  ;;  %v4412_v38 = vpop.f32.mrf.mxu1  ;;  %4826 = vmatpush.bf16.msrb.mxu0 %v12464_v53  ;;  %v12720_v61 = vor.u32 %v15500_v29, %v12719_v36  ;;  %v12943_v63 = vld [vmem:[#allocation8 + $0xd88] sm:$0xf] }
 0x1df   : > { %v6126_v35 = vmax.f32 %v4466_v1, 0.0  ;;  %4670 = vmatmul.bf16.gmra.mxu2 %v17012_v51  ;;  %v15620_v6 = vld [vmem:[#allocation8 + $0xfa4] sm:$0xf0] }
 0x1e0   : > { %v4413_v4 = vadd.f32 %v4412_v38, %v4384_v28  ;;  %4699 = vmatmul.bf16.gmra.mxu3 %v17014_v52  ;;  %4855 = vmatpush.bf16.msrb.mxu1 %v12720_v61  ;;  %v12431_v38 = vld [vmem:[#allocation8 + $0x988] sm:$0xf] }
 0x1e1   : > { %v17103_v7 = vpack.c.bf16 %v6126_v35, %v6118_v24  ;;  %v15428_v24 = vld [vmem:[#allocation8 + $0x9a4] sm:$0xf0] }
 0x1e2   : > { %v4439_v18 = vpop.f32.mrf.mxu2  ;;  %v13199_v35 = vld [vmem:[#allocation8 + $0xf88] sm:$0xf]  ;;  %v12432_v62 = vor.u32 %v15428_v24, %v12431_v38  ;;  %v17114_v24 = vperm.slane %v17037_v12, 1 }
 0x1e3   : > { %19091 = vst [vmem:[#allocation21_spill] sm:$0xff] %v17103_v7  ;;  %v4440_v3 = vadd.f32 %v4439_v18, %v4411_v10  ;;  %v4468_v33 = vpop.f32.mrf.mxu3  ;;  %v15556_v10 = vld [vmem:[#allocation8 + $0xda4] sm:$0xf0] }
 0x1e4   : > { %v12944_v28 = vor.u32 %v15556_v10, %v12943_v63  ;;  %4827 = vmatpush.bf16.msrb.mxu0 %v12432_v62  ;;  %v12687_v8 = vld [vmem:[#allocation8 + $0xb88] sm:$0xf] }
 0x1e5   : > { %v4469_v26 = vadd.f32 %v4468_v33, %v4440_v3  ;;  %v4386_v16 = vpop.f32.mrf.mxu0  ;;  %v15492_v3 = vld [vmem:[#allocation8 + $0xba4] sm:$0xf0] }
 0x1e6   : > { %v4387_v34 = vadd.f32 %v4386_v16, %v17079_v14  ;;  %v4415_v2 = vpop.f32.mrf.mxu1  ;;  %4885 = vmatpush.bf16.msrb.mxu2 %v12944_v28  ;;  %v13200_v14 = vor.u32 %v15620_v6, %v13199_v35  ;;  %v12688_v40 = vor.u32 %v15492_v3, %v12687_v8  ;;  %v15420_v10 = vld [vmem:[#allocation8 + $0x964] sm:$0xf0] }
 0x1e7   : > { %v6134_v16 = vmax.f32 %v4469_v26, 0.0  ;;  %v13167_v28 = vld [vmem:[#allocation8 + $0xf48] sm:$0xf] }
 0x1e8   : > { %v4416_v1 = vadd.f32 %v4415_v2, %v4387_v34  ;;  %4617 = vmatmul.bf16.gmra.mxu0 %v17022_v37  ;;  %4914 = vmatpush.bf16.msrb.mxu3 %v13200_v14  ;;  %v15548_v34 = vld [vmem:[#allocation8 + $0xd64] sm:$0xf0] }
 0x1e9   : > { %4646 = vmatmul.bf16.gmra.mxu1 %v17025_v41  ;;  %v12399_v2 = vld [vmem:[#allocation8 + $0x948] sm:$0xf] }
 0x1ea   : > { %v4441_v60 = vpop.f32.mrf.mxu2  ;;  %4856 = vmatpush.bf16.msrb.mxu1 %v12688_v40  ;;  %v15612_v38 = vld [vmem:[#allocation8 + $0xf64] sm:$0xf0]  ;;  %v12400_v26 = vor.u32 %v15420_v10, %v12399_v2 }
 0x1eb   : > { %v4442_v18 = vadd.f32 %v4441_v60, %v4413_v4  ;;  %v4470_v0 = vpop.f32.mrf.mxu3  ;;  %v12911_v4 = vld [vmem:[#allocation8 + $0xd48] sm:$0xf]  ;;  %v13168_v35 = vor.u32 %v15612_v38, %v13167_v28 }
 0x1ec   : > { %v12912_v63 = vor.u32 %v15548_v34, %v12911_v4  ;;  %4828 = vmatpush.bf16.msrb.mxu0 %v12400_v26  ;;  %v15484_v14 = vld [vmem:[#allocation8 + $0xb64] sm:$0xf0] }
 0x1ed   : > { %v4471_v5 = vadd.f32 %v4470_v0, %v4442_v18  ;;  %v4388_v42 = vpop.f32.mrf.mxu0  ;;  %4915 = vmatpush.bf16.msrb.mxu3 %v13168_v35  ;;  %v12655_v0 = vld [vmem:[#allocation8 + $0xb48] sm:$0xf] }
 0x1ee   : > { %v4389_v33 = vadd.f32 %v4388_v42, %v17084_v49  ;;  %v4417_v53 = vpop.f32.mrf.mxu1  ;;  %4886 = vmatpush.bf16.msrb.mxu2 %v12912_v63  ;;  %v12656_v8 = vor.u32 %v15484_v14, %v12655_v0  ;;  %v12879_v12 = vld [vmem:[#allocation8 + $0xd08] sm:$0xf] }
 0x1ef   : > { %v6142_v36 = vmax.f32 %v4471_v5, 0.0  ;;  %4675 = vmatmul.bf16.gmra.mxu2 %v17032_v19  ;;  %v15412_v40 = vld [vmem:[#allocation8 + $0x924] sm:$0xf0] }
 0x1f0   : > { %v4418_v29 = vadd.f32 %v4417_v53, %v4389_v33  ;;  %4704 = vmatmul.bf16.gmra.mxu3 %v17034_v13  ;;  %4857 = vmatpush.bf16.msrb.mxu1 %v12656_v8  ;;  %v15540_v33 = vld [vmem:[#allocation8 + $0xd24] sm:$0xf0] }
 0x1f1   : > { %v17111_v61 = vpack.c.bf16 %v6142_v36, %v6134_v16  ;;  %v12367_v53 = vld [vmem:[#allocation8 + $0x908] sm:$0xf] }
 0x1f2   : > { %v4444_v49 = vpop.f32.mrf.mxu2  ;;  %v13135_v16 = vld [vmem:[#allocation8 + $0xf08] sm:$0xf]  ;;  %v12368_v4 = vor.u32 %v15412_v40, %v12367_v53 }
 0x1f3   : > { %19092 = vst [vmem:[#allocation22_spill] sm:$0xff] %v17111_v61  ;;  %v4445_v60 = vadd.f32 %v4444_v49, %v4416_v1  ;;  %v4473_v62 = vpop.f32.mrf.mxu3  ;;  %v12880_v1 = vor.u32 %v15540_v33, %v12879_v12  ;;  %v15604_v34 = vld [vmem:[#allocation8 + $0xf24] sm:$0xf0] }
 0x1f4   : > { %v13136_v10 = vor.u32 %v15604_v34, %v13135_v16  ;;  %4829 = vmatpush.bf16.msrb.mxu0 %v12368_v4  ;;  %v12623_v49 = vld [vmem:[#allocation8 + $0xb08] sm:$0xf] }
 0x1f5   : > { %v4474_v6 = vadd.f32 %v4473_v62, %v4445_v60  ;;  %v4487_v18 = vpop.f32.mrf.mxu0  ;;  %4887 = vmatpush.bf16.msrb.mxu2 %v12880_v1  ;;  %v15476_v26 = vld [vmem:[#allocation8 + $0xb24] sm:$0xf0] }
 0x1f6   : > { %v4488_v5 = vadd.f32 %v4487_v18, %v17114_v24  ;;  %v4516_v42 = vpop.f32.mrf.mxu1  ;;  %4916 = vmatpush.bf16.msrb.mxu3 %v13136_v10  ;;  %v12624_v62 = vor.u32 %v15476_v26, %v12623_v49  ;;  %v15404_v33 = vld [vmem:[#allocation8 + $0x8e4] sm:$0xf0] }
 0x1f7   : > { %v6150_v18 = vmax.f32 %v4474_v6, 0.0  ;;  %v13103_v1 = vld [vmem:[#allocation8 + $0xec8] sm:$0xf] }
 0x1f8   : > { %v4517_v3 = vadd.f32 %v4516_v42, %v4488_v5  ;;  %4718 = vmatmul.bf16.vlgmr.msra.gmra.mxu0 %v16870_v27  ;;  %4858 = vmatpush.bf16.msrb.mxu1 %v12624_v62  ;;  %v15532_v5 = vld [vmem:[#allocation8 + $0xce4] sm:$0xf0] }
 0x1f9   : > { %4747 = vmatmul.bf16.vlgmr.msra.gmra.mxu1 %v16873_v30  ;;  %v12335_v42 = vld [vmem:[#allocation8 + $0x8c8] sm:$0xf] }
 0x1fa   : > { %v4446_v36 = vpop.f32.mrf.mxu2  ;;  %v15596_v53 = vld [vmem:[#allocation8 + $0xee4] sm:$0xf0]  ;;  %v12336_v16 = vor.u32 %v15404_v33, %v12335_v42 }
 0x1fb   : > { %v4447_v2 = vadd.f32 %v4446_v36, %v4418_v29  ;;  %v4475_v63 = vpop.f32.mrf.mxu3  ;;  %v12847_v29 = vld [vmem:[#allocation8 + $0xcc8] sm:$0xf]  ;;  %v13104_v36 = vor.u32 %v15596_v53, %v13103_v1 }
 0x1fc   : > { %v12848_v12 = vor.u32 %v15532_v5, %v12847_v29  ;;  %4830 = vmatpush.bf16.msrb.mxu0 %v12336_v16  ;;  %v15468_v10 = vld [vmem:[#allocation8 + $0xae4] sm:$0xf0] }
 0x1fd   : > { %v4476_v28 = vadd.f32 %v4475_v63, %v4447_v2  ;;  %v4489_v38 = vpop.f32.mrf.mxu0  ;;  %4917 = vmatpush.bf16.msrb.mxu3 %v13104_v36  ;;  %v12591_v63 = vld [vmem:[#allocation8 + $0xac8] sm:$0xf] }
 0x1fe   : > { %v4490_v35 = vadd.f32 %v4489_v38, %v17114_v24  ;;  %v4518_v60 = vpop.f32.mrf.mxu1  ;;  %4888 = vmatpush.bf16.msrb.mxu2 %v12848_v12  ;;  %v12592_v49 = vor.u32 %v15468_v10, %v12591_v63  ;;  %v12303_v62 = vld [vmem:[#allocation8 + $0x888] sm:$0xf] }
 0x1ff   : > { %v6158_v0 = vmax.f32 %v4476_v28, 0.0  ;;  %4776 = vmatmul.bf16.vlgmr.msra.gmra.mxu2 %v16880_v47  ;;  %v15588_v42 = vld [vmem:[#allocation8 + $0xea4] sm:$0xf0] }
 0x200   : > { %v4519_v14 = vadd.f32 %v4518_v60, %v4490_v35  ;;  %4805 = vmatmul.bf16.vlgmr.msra.gmra.mxu3 %v16882_v48  ;;  %4859 = vmatpush.bf16.msrb.mxu1 %v12592_v49  ;;  %v12815_v35 = vld [vmem:[#allocation8 + $0xc88] sm:$0xf] }
 0x201   : > { %v17122_v8 = vpack.c.bf16 %v6158_v0, %v6150_v18  ;;  %v15524_v60 = vld [vmem:[#allocation8 + $0xca4] sm:$0xf0] }
 0x202   : > { %v4545_v40 = vpop.f32.mrf.mxu2  ;;  %v15396_v18 = vld [vmem:[#allocation8 + $0x8a4] sm:$0xf0] }
 0x203   : > { %19093 = vst [vmem:[#allocation23_spill] sm:$0xff] %v17122_v8  ;;  %v4546_v6 = vadd.f32 %v4545_v40, %v4517_v3  ;;  %v4574_v4 = vpop.f32.mrf.mxu3  ;;  %v12816_v3 = vor.u32 %v15524_v60, %v12815_v35  ;;  %v13071_v0 = vld [vmem:[#allocation8 + $0xe88] sm:$0xf]  ;;  %v12304_v5 = vor.u32 %v15396_v18, %v12303_v62  ;;  %v12497_v8 = vld [vmem:[#allocation8 + $0xa28] sm:$0xf0] }
 0x204   : > { %v13072_v1 = vor.u32 %v15588_v42, %v13071_v0  ;;  %v12559_v53 = vld [vmem:[#allocation8 + $0xa88] sm:$0xf] }
 0x205   : > { %v17124_v34 = vadd.f32 %v4574_v4, %v4546_v6  ;;  %v4492_v2 = vpop.f32.mrf.mxu0  ;;  %4889 = vmatpush.bf16.msrb.mxu2 %v12816_v3  ;;  %4831 = vmatpush.bf16.msrb.mxu0 %v12304_v5  ;;  %v15460_v40 = vld [vmem:[#allocation8 + $0xaa4] sm:$0xf0] }
 0x206   : > { %v4493_v28 = vadd.f32 %v4492_v2, %v17114_v24  ;;  %v4521_v38 = vpop.f32.mrf.mxu1  ;;  %4918 = vmatpush.bf16.msrb.mxu3 %v13072_v1  ;;  %v12560_v6 = vor.u32 %v15460_v40, %v12559_v53  ;;  %v15516_v10 = vld [vmem:[#allocation8 + $0xc64] sm:$0xf0] }
 0x207   : > { %v15388_v49 = vld [vmem:[#allocation8 + $0x864] sm:$0xf0] }
 0x208   : > { %v4522_v26 = vadd.f32 %v4521_v38, %v4493_v28  ;;  %4723 = vmatmul.bf16.gmra.mxu0 %v16890_v20  ;;  %4860 = vmatpush.bf16.msrb.mxu1 %v12560_v6  ;;  %v12271_v28 = vld [vmem:[#allocation8 + $0x848] sm:$0xf] }
 0x209   : > { %4752 = vmatmul.bf16.gmra.mxu1 %v16893_v23  ;;  %v13039_v35 = vld [vmem:[#allocation8 + $0xe48] sm:$0xf]  ;;  %v12272_v62 = vor.u32 %v15388_v49, %v12271_v28 }
 0x20a   : > { %v4547_v29 = vpop.f32.mrf.mxu2  ;;  %v15580_v60 = vld [vmem:[#allocation8 + $0xe64] sm:$0xf0] }
 0x20b   : > { %v4548_v12 = vadd.f32 %v4547_v29, %v4519_v14  ;;  %v4576_v33 = vpop.f32.mrf.mxu3  ;;  %v12783_v14 = vld [vmem:[#allocation8 + $0xc48] sm:$0xf]  ;;  %v13040_v18 = vor.u32 %v15580_v60, %v13039_v35  ;;  %4832 = vmatpush.bf16.msrb.mxu0 %v12272_v62 }
 0x20c   : > { %v12784_v38 = vor.u32 %v15516_v10, %v12783_v14  ;;  %v12527_v0 = vld [vmem:[#allocation8 + $0xa48] sm:$0xf] }
 0x20d   : > { %v17129_v16 = vadd.f32 %v4576_v33, %v4548_v12  ;;  %v4494_v36 = vpop.f32.mrf.mxu0  ;;  %v15452_v29 = vld [vmem:[#allocation8 + $0xa64] sm:$0xf0]  ;;  %4919 = vmatpush.bf16.msrb.mxu3 %v13040_v18 }
 0x20e   : > { %v4495_v4 = vadd.f32 %v4494_v36, %v17114_v24  ;;  %v4523_v2 = vpop.f32.mrf.mxu1  ;;  %4890 = vmatpush.bf16.msrb.mxu2 %v12784_v38  ;;  %v12528_v12 = vor.u32 %v15452_v29, %v12527_v0  ;;  %v12239_v33 = vld [vmem:[#allocation8 + $0x808] sm:$0xf] }
 0x20f   : > { %4781 = vmatmul.bf16.gmra.mxu2 %v16900_v45  ;;  %v15380_v1 = vld [vmem:[#allocation8 + $0x824] sm:$0xf0] }
 0x210   : > { %v4524_v63 = vadd.f32 %v4523_v2, %v4495_v4  ;;  %4810 = vmatmul.bf16.gmra.mxu3 %v16902_v50  ;;  %v12495_v53 = vld [vmem:[#allocation8 + $0xa08] sm:$0xf]  ;;  %4861 = vmatpush.bf16.msrb.mxu1 %v12528_v12  ;;  %v12240_v6 = vor.u32 %v15380_v1, %v12239_v33  ;;  %v15304_v1 = vld [vmem:[#allocation8 + $0x5cc] sm:$0xf] }
 0x211   : > { %v15444_v4 = vld [vmem:[#allocation8 + $0xa24] sm:$0xf0] }
 0x212   : > { %v4550_v3 = vpop.f32.mrf.mxu2  ;;  %v12496_v10 = vor.u32 %v15444_v4, %v12495_v53  ;;  %v15508_v38 = vld [vmem:[#allocation8 + $0xc24] sm:$0xf0]  ;;  %4833 = vmatpush.bf16.msrb.mxu0 %v12240_v6  ;;  %v11953_v53 = vld [vmem:[#allocation8 + $0x5e8] sm:$0xf0] }
 0x213   : > { %v4551_v5 = vadd.f32 %v4550_v3, %v4522_v26  ;;  %v4579_v42 = vpop.f32.mrf.mxu3  ;;  %v12751_v26 = vld [vmem:[#allocation8 + $0xc08] sm:$0xf]  ;;  %v11956_v6 = vor.u32 %v15304_v1, %v11953_v53  ;;  %v11441_v4 = vld [vmem:[#allocation8 + $0x1e8] sm:$0xf0] }
 0x214   : > { %v12752_v49 = vor.u32 %v15508_v38, %v12751_v26  ;;  %v13007_v35 = vld [vmem:[#allocation8 + $0xe08] sm:$0xf]  ;;  %4862 = vmatpush.bf16.msrb.mxu1 %v12496_v10  ;;  %v11921_v1 = vld [vmem:[#allocation8 + $0x5a8] sm:$0xf0] }
 0x215   : > { %v17134_v40 = vadd.f32 %v4579_v42, %v4551_v5  ;;  %v4497_v36 = vpop.f32.mrf.mxu0  ;;  %v15572_v60 = vld [vmem:[#allocation8 + $0xe24] sm:$0xf0]  ;;  %v15168_v53 = vld [vmem:[#allocation8 + $0x18c] sm:$0xf] }
 0x216   : > { %v4498_v2 = vadd.f32 %v4497_v36, %v17114_v24  ;;  %v4526_v14 = vpop.f32.mrf.mxu1  ;;  %v13008_v62 = vor.u32 %v15572_v60, %v13007_v35  ;;  %4891 = vmatpush.bf16.msrb.mxu2 %v12752_v49  ;;  %v15176_v36 = vld [vmem:[#allocation8 + $0x1cc] sm:$0xf] }
 0x217   : > { %v11444_v10 = vor.u32 %v15176_v36, %v11441_v4  ;;  %v11409_v36 = vld [vmem:[#allocation8 + $0x1a8] sm:$0xf0] }
 0x218   : > { %v4527_v28 = vadd.f32 %v4526_v14, %v4498_v2  ;;  %4728 = vmatmul.bf16.gmra.mxu0 %v16910_v25  ;;  %4920 = vmatpush.bf16.msrb.mxu3 %v13008_v62  ;;  %v12209_v2 = vld [vmem:[#allocation8 + $0x7e8] sm:$0xf0] }
 0x219   : > { %4757 = vmatmul.bf16.gmra.mxu1 %v16913_v32  ;;  %4942 = vmatpush.bf16.msra.mxu0 %v11444_v10 }
 0x21a   : > { %v4552_v3 = vpop.f32.mrf.mxu2  ;;  %5000 = vmatpush.bf16.msra.mxu2 %v11956_v6  ;;  %v15360_v6 = vld [vmem:[#allocation8 + $0x78c] sm:$0xf] }
 0x21b   : > { %v4553_v18 = vadd.f32 %v4552_v3, %v4524_v63  ;;  %v4581_v0 = vpop.f32.mrf.mxu3  ;;  %v15368_v63 = vld [vmem:[#allocation8 + $0x7cc] sm:$0xf] }
 0x21c   : > { %v12212_v26 = vor.u32 %v15368_v63, %v12209_v2  ;;  %v11412_v63 = vor.u32 %v15168_v53, %v11409_v36  ;;  %v12177_v2 = vld [vmem:[#allocation8 + $0x7a8] sm:$0xf0] }
 0x21d   : > { %v17139_v29 = vadd.f32 %v4581_v0, %v4553_v18  ;;  %v4499_v5 = vpop.f32.mrf.mxu0  ;;  %v15240_v18 = vld [vmem:[#allocation8 + $0x3cc] sm:$0xf] }
 0x21e   : > { %v4500_v42 = vadd.f32 %v4499_v5, %v17114_v24  ;;  %v4528_v12 = vpop.f32.mrf.mxu1  ;;  %5029 = vmatpush.bf16.msra.mxu3 %v12212_v26  ;;  %v11697_v0 = vld [vmem:[#allocation8 + $0x3e8] sm:$0xf0]  ;;  %v12180_v26 = vor.u32 %v15360_v6, %v12177_v2  ;;  %4943 = vmatpush.bf16.msra.mxu0 %v11412_v63 }
 0x21f   : > { %4786 = vmatmul.bf16.gmra.mxu2 %v16920_v54  ;;  %v11377_v53 = vld [vmem:[#allocation8 + $0x168] sm:$0xf0] }
 0x220   : > { %v4529_v33 = vadd.f32 %v4528_v12, %v4500_v42  ;;  %4815 = vmatmul.bf16.gmra.mxu3 %v16922_v56  ;;  %v11700_v42 = vor.u32 %v15240_v18, %v11697_v0  ;;  %v15296_v12 = vld [vmem:[#allocation8 + $0x58c] sm:$0xf] }
 0x221   : > { %v15232_v18 = vld [vmem:[#allocation8 + $0x38c] sm:$0xf] }
 0x222   : > { %v4555_v14 = vpop.f32.mrf.mxu2  ;;  %4971 = vmatpush.bf16.msra.mxu1 %v11700_v42  ;;  %5030 = vmatpush.bf16.msra.mxu3 %v12180_v26  ;;  %v11665_v0 = vld [vmem:[#allocation8 + $0x3a8] sm:$0xf0] }
 0x223   : > { %v4556_v38 = vadd.f32 %v4555_v14, %v4527_v28  ;;  %v4584_v49 = vpop.f32.mrf.mxu3  ;;  %v11924_v28 = vor.u32 %v15296_v12, %v11921_v1  ;;  %v15288_v42 = vld [vmem:[#allocation8 + $0x54c] sm:$0xf]  ;;  %v11668_v12 = vor.u32 %v15232_v18, %v11665_v0 }
 0x224   : > { %v11889_v1 = vld [vmem:[#allocation8 + $0x568] sm:$0xf0] }
 0x225   : > { %v17144_v35 = vadd.f32 %v4584_v49, %v4556_v38  ;;  %v4502_v60 = vpop.f32.mrf.mxu0  ;;  %5001 = vmatpush.bf16.msra.mxu2 %v11924_v28  ;;  %v15160_v28 = vld [vmem:[#allocation8 + $0x14c] sm:$0xf] }
 0x226   : > { %v4503_v3 = vadd.f32 %v4502_v60, %v17114_v24  ;;  %v4531_v62 = vpop.f32.mrf.mxu1  ;;  %v11380_v63 = vor.u32 %v15160_v28, %v11377_v53  ;;  %v15352_v2 = vld [vmem:[#allocation8 + $0x74c] sm:$0xf]  ;;  %4972 = vmatpush.bf16.msra.mxu1 %v11668_v12 }
 0x227   : > { %v11633_v18 = vld [vmem:[#allocation8 + $0x368] sm:$0xf0] }
 0x228   : > { %v4532_v5 = vadd.f32 %v4531_v62, %v4503_v3  ;;  %4733 = vmatmul.bf16.gmra.mxu0 %v16930_v15  ;;  %v11345_v28 = vld [vmem:[#allocation8 + $0x128] sm:$0xf0] }
 0x229   : > { %4762 = vmatmul.bf16.gmra.mxu1 %v16933_v22  ;;  %4944 = vmatpush.bf16.msra.mxu0 %v11380_v63  ;;  %v15344_v53 = vld [vmem:[#allocation8 + $0x70c] sm:$0xf] }
 0x22a   : > { %v4557_v4 = vpop.f32.mrf.mxu2 }
 0x22b   : > { %v4558_v14 = vadd.f32 %v4557_v4, %v4529_v33  ;;  %v4586_v10 = vpop.f32.mrf.mxu3  ;;  %v11892_v4 = vor.u32 %v15288_v42, %v11889_v1  ;;  %v15280_v42 = vld [vmem:[#allocation8 + $0x50c] sm:$0xf] }
 0x22c   : > { %v15152_v1 = vld [vmem:[#allocation8 + $0x10c] sm:$0xf] }
 0x22d   : > { %v17149_v38 = vadd.f32 %v4586_v10, %v4558_v14  ;;  %v4504_v49 = vpop.f32.mrf.mxu0  ;;  %5002 = vmatpush.bf16.msra.mxu2 %v11892_v4 }
 0x22e   : > { %v4505_v60 = vadd.f32 %v4504_v49, %v17114_v24  ;;  %v4533_v3 = vpop.f32.mrf.mxu1  ;;  %v12145_v24 = vld [vmem:[#allocation8 + $0x768] sm:$0xf0] }
 0x22f   : > { %4791 = vmatmul.bf16.gmra.mxu2 %v16946_v44  ;;  %v12148_v14 = vor.u32 %v15352_v2, %v12145_v24 }
 0x230   : > { %v4534_v62 = vadd.f32 %v4533_v3, %v4505_v60  ;;  %4820 = vmatmul.bf16.gmra.mxu3 %v16948_v46  ;;  %v15224_v3 = vld [vmem:[#allocation8 + $0x34c] sm:$0xf] }
 0x231   : > { %5031 = vmatpush.bf16.msra.mxu3 %v12148_v14 }
 0x232   : > { %v4560_v33 = vpop.f32.mrf.mxu2 }
 0x233   : > { %v4561_v36 = vadd.f32 %v4560_v33, %v4532_v5  ;;  %v4589_v6 = vpop.f32.mrf.mxu3  ;;  %v11636_v5 = vor.u32 %v15224_v3, %v11633_v18  ;;  %v11857_v33 = vld [vmem:[#allocation8 + $0x528] sm:$0xf0] }
 0x234   : > { %v11860_v12 = vor.u32 %v15280_v42, %v11857_v33  ;;  %v15216_v3 = vld [vmem:[#allocation8 + $0x30c] sm:$0xf] }
 0x235   : > { %v17154_v10 = vadd.f32 %v4589_v6, %v4561_v36  ;;  %v4603_v26 = vpop.f32.mrf.mxu0  ;;  %4973 = vmatpush.bf16.msra.mxu1 %v11636_v5  ;;  %v11348_v6 = vor.u32 %v15152_v1, %v11345_v28  ;;  %v11601_v18 = vld [vmem:[#allocation8 + $0x328] sm:$0xf0] }
 0x236   : > { %v4604_v49 = vadd.f32 %v4603_v26, %v17124_v34  ;;  %v4632_v60 = vpop.f32.mrf.mxu1  ;;  %v12113_v34 = vld [vmem:[#allocation8 + $0x728] sm:$0xf0]  ;;  %5003 = vmatpush.bf16.msra.mxu2 %v11860_v12  ;;  %v11604_v42 = vor.u32 %v15216_v3, %v11601_v18 }
 0x237   : > { %v12116_v2 = vor.u32 %v15344_v53, %v12113_v34  ;;  %4945 = vmatpush.bf16.msra.mxu0 %v11348_v6  ;;  %v15272_v5 = vld [vmem:[#allocation8 + $0x4cc] sm:$0xf] }
 0x238   : > { %v4633_v0 = vadd.f32 %v4632_v60, %v4604_v49  ;;  %4834 = vmatmul.bf16.vlgmr.msrb.gmra.mxu0 %v16962_v57  ;;  %v11825_v33 = vld [vmem:[#allocation8 + $0x4e8] sm:$0xf0] }
 0x239   : > { %4863 = vmatmul.bf16.vlgmr.msrb.gmra.mxu1 %v16965_v31  ;;  %5032 = vmatpush.bf16.msra.mxu3 %v12116_v2  ;;  %v15144_v12 = vld [vmem:[#allocation8 + $0xcc] sm:$0xf] }
 0x23a   : > { %v4562_v36 = vpop.f32.mrf.mxu2  ;;  %v11313_v1 = vld [vmem:[#allocation8 + $0xe8] sm:$0xf0]  ;;  %4974 = vmatpush.bf16.msra.mxu1 %v11604_v42 }
 0x23b   : > { %v4563_v4 = vadd.f32 %v4562_v36, %v4534_v62  ;;  %v4591_v63 = vpop.f32.mrf.mxu3  ;;  %v11828_v36 = vor.u32 %v15272_v5, %v11825_v33  ;;  %v11316_v6 = vor.u32 %v15144_v12, %v11313_v1  ;;  %v15336_v34 = vld [vmem:[#allocation8 + $0x6cc] sm:$0xf] }
 0x23c   : > { %v11569_v3 = vld [vmem:[#allocation8 + $0x2e8] sm:$0xf0] }
 0x23d   : > { %v17159_v24 = vadd.f32 %v4591_v63, %v4563_v4  ;;  %v4605_v14 = vpop.f32.mrf.mxu0  ;;  %5004 = vmatpush.bf16.msra.mxu2 %v11828_v36  ;;  %4946 = vmatpush.bf16.msra.mxu0 %v11316_v6  ;;  %v15264_v5 = vld [vmem:[#allocation8 + $0x48c] sm:$0xf] }
 0x23e   : > { %v4606_v26 = vadd.f32 %v4605_v14, %v17129_v16  ;;  %v4634_v49 = vpop.f32.mrf.mxu1  ;;  %v12081_v16 = vld [vmem:[#allocation8 + $0x6e8] sm:$0xf0] }
 0x23f   : > { %4892 = vmatmul.bf16.vlgmr.msrb.gmra.mxu2 %v16972_v58  ;;  %v12084_v4 = vor.u32 %v15336_v34, %v12081_v16  ;;  %v15136_v33 = vld [vmem:[#allocation8 + $0x8c] sm:$0xf] }
 0x240   : > { %v4635_v60 = vadd.f32 %v4634_v49, %v4606_v26  ;;  %4921 = vmatmul.bf16.vlgmr.msrb.gmra.mxu3 %v16974_v59  ;;  %v15208_v49 = vld [vmem:[#allocation8 + $0x2cc] sm:$0xf] }
 0x241   : > { %5033 = vmatpush.bf16.msra.mxu3 %v12084_v4  ;;  %v11281_v12 = vld [vmem:[#allocation8 + $0xa8] sm:$0xf0] }
 0x242   : > { %v4661_v62 = vpop.f32.mrf.mxu2  ;;  %v15328_v1 = vld [vmem:[#allocation8 + $0x68c] sm:$0xf] }
 0x243   : > { %v4662_v28 = vadd.f32 %v4661_v62, %v4633_v0  ;;  %v4690_v53 = vpop.f32.mrf.mxu3  ;;  %v11572_v0 = vor.u32 %v15208_v49, %v11569_v3  ;;  %v11793_v62 = vld [vmem:[#allocation8 + $0x4a8] sm:$0xf0] }
 0x244   : > { %v11796_v42 = vor.u32 %v15264_v5, %v11793_v62  ;;  %v15200_v16 = vld [vmem:[#allocation8 + $0x28c] sm:$0xf] }
 0x245   : > { %v4691_v63 = vadd.f32 %v4690_v53, %v4662_v28  ;;  %v4608_v2 = vpop.f32.mrf.mxu0  ;;  %4975 = vmatpush.bf16.msra.mxu1 %v11572_v0  ;;  %v11284_v53 = vor.u32 %v15136_v33, %v11281_v12  ;;  %v11537_v4 = vld [vmem:[#allocation8 + $0x2a8] sm:$0xf0] }
 0x246   : > { %v4609_v14 = vadd.f32 %v4608_v2, %v17134_v40  ;;  %v4637_v26 = vpop.f32.mrf.mxu1  ;;  %v12049_v40 = vld [vmem:[#allocation8 + $0x6a8] sm:$0xf0]  ;;  %5005 = vmatpush.bf16.msra.mxu2 %v11796_v42 }
 0x247   : > { %v12052_v34 = vor.u32 %v15328_v1, %v12049_v40  ;;  %4947 = vmatpush.bf16.msra.mxu0 %v11284_v53  ;;  %v6103_v5 = vmax.f32 %v4691_v63, 0.0  ;;  %v11249_v42 = vld [vmem:[#allocation8 + $0x68] sm:$0xf0] }
 0x248   : > { %v4638_v18 = vadd.f32 %v4637_v26, %v4609_v14  ;;  %4839 = vmatmul.bf16.gmra.mxu0 %v16982_v39  ;;  %v11540_v26 = vor.u32 %v15200_v16, %v11537_v4  ;;  %v15192_v33 = vld [vmem:[#allocation8 + $0x24c] sm:$0xf] }
 0x249   : > { %4868 = vmatmul.bf16.gmra.mxu1 %v16985_v43  ;;  %5034 = vmatpush.bf16.msra.mxu3 %v12052_v34  ;;  %v15256_v1 = vld [vmem:[#allocation8 + $0x44c] sm:$0xf] }
 0x24a   : > { %v4663_v28 = vpop.f32.mrf.mxu2  ;;  %4976 = vmatpush.bf16.msra.mxu1 %v11540_v26  ;;  %v15320_v40 = vld [vmem:[#allocation8 + $0x64c] sm:$0xf] }
 0x24b   : > { %v4664_v36 = vadd.f32 %v4663_v28, %v4635_v60  ;;  %v4692_v6 = vpop.f32.mrf.mxu3  ;;  %v15128_v60 = vld [vmem:[#allocation8 + $0x4c] sm:$0xf] }
 0x24c   : > { %v11761_v28 = vld [vmem:[#allocation8 + $0x468] sm:$0xf0]  ;;  %v11252_v53 = vor.u32 %v15128_v60, %v11249_v42 }
 0x24d   : > { %v4693_v2 = vadd.f32 %v4692_v6, %v4664_v36  ;;  %v4610_v14 = vpop.f32.mrf.mxu0  ;;  %v12017_v6 = vld [vmem:[#allocation8 + $0x668] sm:$0xf0] }
 0x24e   : > { %v4611_v49 = vadd.f32 %v4610_v14, %v17139_v29  ;;  %v4639_v3 = vpop.f32.mrf.mxu1  ;;  %v11764_v29 = vor.u32 %v15256_v1, %v11761_v28  ;;  %v11505_v63 = vld [vmem:[#allocation8 + $0x268] sm:$0xf0]  ;;  %4948 = vmatpush.bf16.msra.mxu0 %v11252_v53  ;;  %v12020_v4 = vor.u32 %v15320_v40, %v12017_v6 }
 0x24f   : > { %v6111_v62 = vmax.f32 %v4693_v2, 0.0  ;;  %4897 = vmatmul.bf16.gmra.mxu2 %v16992_v9  ;;  %v11508_v2 = vor.u32 %v15192_v33, %v11505_v63  ;;  %v15120_v14 = vld [vmem:[#allocation8 + $0xc] sm:$0xf] }
 0x250   : > { %v4640_v0 = vadd.f32 %v4639_v3, %v4611_v49  ;;  %4926 = vmatmul.bf16.gmra.mxu3 %v16994_v17  ;;  %5006 = vmatpush.bf16.msra.mxu2 %v11764_v29  ;;  %v11217_v26 = vld [vmem:[#allocation8 + $0x28] sm:$0xf0] }
 0x251   : > { %v17170_v12 = vpack.c.bf16 %v6111_v62, %v6103_v5  ;;  %v15184_v49 = vld [vmem:[#allocation8 + $0x20c] sm:$0xf]  ;;  %5035 = vmatpush.bf16.msra.mxu3 %v12020_v4  ;;  %4977 = vmatpush.bf16.msra.mxu1 %v11508_v2  ;;  %v11220_v62 = vor.u32 %v15120_v14, %v11217_v26 }
 0x252   : > { %v4666_v36 = vpop.f32.mrf.mxu2  ;;  %v11473_v60 = vld [vmem:[#allocation8 + $0x228] sm:$0xf0] }
 0x253   : > { %19094 = vst [vmem:[#allocation24_spill] sm:$0xff] %v17170_v12  ;;  %v4667_v34 = vadd.f32 %v4666_v36, %v4638_v18  ;;  %v4695_v16 = vpop.f32.mrf.mxu3  ;;  %v11476_v28 = vor.u32 %v15184_v49, %v11473_v60  ;;  %4949 = vmatpush.bf16.msra.mxu0 %v11220_v62  ;;  %v15248_v53 = vld [vmem:[#allocation8 + $0x40c] sm:$0xf] }
 0x254   : > { %v11729_v33 = vld [vmem:[#allocation8 + $0x428] sm:$0xf0] }
 0x255   : > { %v4696_v3 = vadd.f32 %v4695_v16, %v4667_v34  ;;  %v4613_v5 = vpop.f32.mrf.mxu0  ;;  %v11732_v40 = vor.u32 %v15248_v53, %v11729_v33  ;;  %v15312_v36 = vld [vmem:[#allocation8 + $0x60c] sm:$0xf]  ;;  %4978 = vmatpush.bf16.msra.mxu1 %v11476_v28 }
 0x256   : > { %v4614_v42 = vadd.f32 %v4613_v5, %v17144_v35  ;;  %v4642_v1 = vpop.f32.mrf.mxu1  ;;  %v11985_v29 = vld [vmem:[#allocation8 + $0x628] sm:$0xf0] }
 0x257   : > { %v11988_v63 = vor.u32 %v15312_v36, %v11985_v29  ;;  %5007 = vmatpush.bf16.msra.mxu2 %v11732_v40  ;;  %v6119_v26 = vmax.f32 %v4696_v3, 0.0  ;;  %v15560_v60 = vld [vmem:[#allocation8 + $0xdcc] sm:$0xf] }
 0x258   : > { %v4643_v18 = vadd.f32 %v4642_v1, %v4614_v42  ;;  %4844 = vmatmul.bf16.gmra.mxu0 %v17002_v11  ;;  %v12977_v42 = vld [vmem:[#allocation8 + $0xde8] sm:$0xf0] }
 0x259   : > { %4873 = vmatmul.bf16.gmra.mxu1 %v17005_v21  ;;  %5036 = vmatpush.bf16.msra.mxu3 %v11988_v63  ;;  %v12980_v28 = vor.u32 %v15560_v60, %v12977_v42  ;;  %v12465_v53 = vld [vmem:[#allocation8 + $0x9e8] sm:$0xf0] }
 0x25a   : > { %v4668_v6 = vpop.f32.mrf.mxu2  ;;  %v15624_v33 = vld [vmem:[#allocation8 + $0xfcc] sm:$0xf] }
 0x25b   : > { %v4669_v34 = vadd.f32 %v4668_v6, %v4640_v0  ;;  %v4697_v16 = vpop.f32.mrf.mxu3  ;;  %v15432_v0 = vld [vmem:[#allocation8 + $0x9cc] sm:$0xf]  ;;  %5116 = vmatpush.bf16.msrb.mxu2 %v12980_v28 }
 0x25c   : > { %v13233_v40 = vld [vmem:[#allocation8 + $0xfe8] sm:$0xf0]  ;;  %v12468_v29 = vor.u32 %v15432_v0, %v12465_v53 }
 0x25d   : > { %v4698_v35 = vadd.f32 %v4697_v16, %v4669_v34  ;;  %v4615_v4 = vpop.f32.mrf.mxu0  ;;  %v13236_v3 = vor.u32 %v15624_v33, %v13233_v40  ;;  %v15496_v34 = vld [vmem:[#allocation8 + $0xbcc] sm:$0xf] }
 0x25e   : > { %v4616_v2 = vadd.f32 %v4615_v4, %v17149_v38  ;;  %v4644_v14 = vpop.f32.mrf.mxu1  ;;  %5058 = vmatpush.bf16.msrb.mxu0 %v12468_v29  ;;  %v12721_v16 = vld [vmem:[#allocation8 + $0xbe8] sm:$0xf0] }
 0x25f   : > { %v6127_v49 = vmax.f32 %v4698_v35, 0.0  ;;  %4902 = vmatmul.bf16.gmra.mxu2 %v17012_v51  ;;  %5145 = vmatpush.bf16.msrb.mxu3 %v13236_v3  ;;  %v15424_v60 = vld [vmem:[#allocation8 + $0x98c] sm:$0xf] }
 0x260   : > { %v4645_v5 = vadd.f32 %v4644_v14, %v4616_v2  ;;  %4931 = vmatmul.bf16.gmra.mxu3 %v17014_v52  ;;  %v12724_v2 = vor.u32 %v15496_v34, %v12721_v16  ;;  %v12433_v42 = vld [vmem:[#allocation8 + $0x9a8] sm:$0xf0] }
 0x261   : > { %v17178_v62 = vpack.c.bf16 %v6127_v49, %v6119_v26  ;;  %v15552_v26 = vld [vmem:[#allocation8 + $0xd8c] sm:$0xf]  ;;  %v12436_v28 = vor.u32 %v15424_v60, %v12433_v42 }
 0x262   : > { %v4671_v1 = vpop.f32.mrf.mxu2  ;;  %5087 = vmatpush.bf16.msrb.mxu1 %v12724_v2  ;;  %v15616_v0 = vld [vmem:[#allocation8 + $0xf8c] sm:$0xf] }
 0x263   : > { %19095 = vst [vmem:[#allocation25_spill] sm:$0xff] %v17178_v62  ;;  %v4672_v36 = vadd.f32 %v4671_v1, %v4643_v18  ;;  %v4700_v38 = vpop.f32.mrf.mxu3  ;;  %v12945_v18 = vld [vmem:[#allocation8 + $0xda8] sm:$0xf0]  ;;  %5059 = vmatpush.bf16.msrb.mxu0 %v12436_v28  ;;  %v17188_v28 = vld [vmem:[#allocation10] sm:$0xff] }
 0x264   : > { %v12948_v49 = vor.u32 %v15552_v26, %v12945_v18  ;;  %v13201_v53 = vld [vmem:[#allocation8 + $0xfa8] sm:$0xf0] }
 0x265   : > { %v4701_v6 = vadd.f32 %v4700_v38, %v4672_v36  ;;  %v4618_v63 = vpop.f32.mrf.mxu0  ;;  %v15488_v29 = vld [vmem:[#allocation8 + $0xb8c] sm:$0xf] }
 0x266   : > { %v4619_v35 = vadd.f32 %v4618_v63, %v17154_v10  ;;  %v4647_v4 = vpop.f32.mrf.mxu1  ;;  %5117 = vmatpush.bf16.msrb.mxu2 %v12948_v49  ;;  %v13204_v10 = vor.u32 %v15616_v0, %v13201_v53  ;;  %v12689_v3 = vld [vmem:[#allocation8 + $0xba8] sm:$0xf0] }
 0x267   : > { %v12692_v16 = vor.u32 %v15488_v29, %v12689_v3  ;;  %v12913_v26 = vld [vmem:[#allocation8 + $0xd68] sm:$0xf0] }
 0x268   : > { %v4648_v14 = vadd.f32 %v4647_v4, %v4619_v35  ;;  %4849 = vmatmul.bf16.gmra.mxu0 %v17022_v37  ;;  %5146 = vmatpush.bf16.msrb.mxu3 %v13204_v10  ;;  %v6135_v35 = vmax.f32 %v4701_v6, 0.0  ;;  %v15416_v18 = vld [vmem:[#allocation8 + $0x94c] sm:$0xf]  ;;  %v17191_v6 = vperm.slane %v17188_v28, 2 }
 0x269   : > { %4878 = vmatmul.bf16.gmra.mxu1 %v17025_v41  ;;  %v12401_v42 = vld [vmem:[#allocation8 + $0x968] sm:$0xf0] }
 0x26a   : > { %v4673_v1 = vpop.f32.mrf.mxu2  ;;  %5088 = vmatpush.bf16.msrb.mxu1 %v12692_v16  ;;  %v15608_v0 = vld [vmem:[#allocation8 + $0xf4c] sm:$0xf]  ;;  %v12404_v53 = vor.u32 %v15416_v18, %v12401_v42 }
 0x26b   : > { %v4674_v33 = vadd.f32 %v4673_v1, %v4645_v5  ;;  %v4702_v40 = vpop.f32.mrf.mxu3  ;;  %v15544_v5 = vld [vmem:[#allocation8 + $0xd4c] sm:$0xf] }
 0x26c   : > { %v12916_v60 = vor.u32 %v15544_v5, %v12913_v26  ;;  %v13169_v1 = vld [vmem:[#allocation8 + $0xf68] sm:$0xf0]  ;;  %5060 = vmatpush.bf16.msrb.mxu0 %v12404_v53 }
 0x26d   : > { %v4703_v36 = vadd.f32 %v4702_v40, %v4674_v33  ;;  %v4620_v38 = vpop.f32.mrf.mxu0  ;;  %v13172_v33 = vor.u32 %v15608_v0, %v13169_v1  ;;  %v15480_v29 = vld [vmem:[#allocation8 + $0xb4c] sm:$0xf] }
 0x26e   : > { %v4621_v63 = vadd.f32 %v4620_v38, %v17159_v24  ;;  %v4649_v34 = vpop.f32.mrf.mxu1  ;;  %5118 = vmatpush.bf16.msrb.mxu2 %v12916_v60  ;;  %v12657_v3 = vld [vmem:[#allocation8 + $0xb68] sm:$0xf0] }
 0x26f   : > { %v6143_v4 = vmax.f32 %v4703_v36, 0.0  ;;  %4907 = vmatmul.bf16.gmra.mxu2 %v17032_v19  ;;  %5147 = vmatpush.bf16.msrb.mxu3 %v13172_v33  ;;  %v12660_v16 = vor.u32 %v15480_v29, %v12657_v3  ;;  %v12881_v5 = vld [vmem:[#allocation8 + $0xd28] sm:$0xf0] }
 0x270   : > { %v4650_v2 = vadd.f32 %v4649_v34, %v4621_v63  ;;  %4936 = vmatmul.bf16.gmra.mxu3 %v17034_v13  ;;  %v15408_v26 = vld [vmem:[#allocation8 + $0x90c] sm:$0xf] }
 0x271   : > { %v17186_v49 = vpack.c.bf16 %v6143_v4, %v6135_v35  ;;  %5089 = vmatpush.bf16.msrb.mxu1 %v12660_v16  ;;  %v15536_v4 = vld [vmem:[#allocation8 + $0xd0c] sm:$0xf] }
 0x272   : > { %v4676_v24 = vpop.f32.mrf.mxu2  ;;  %v12369_v18 = vld [vmem:[#allocation8 + $0x928] sm:$0xf0] }
 0x273   : > { %19096 = vst [vmem:[#allocation26_spill] sm:$0xff] %v17186_v49  ;;  %v4677_v40 = vadd.f32 %v4676_v24, %v4648_v14  ;;  %v4705_v10 = vpop.f32.mrf.mxu3  ;;  %v12884_v14 = vor.u32 %v15536_v4, %v12881_v5  ;;  %v15600_v60 = vld [vmem:[#allocation8 + $0xf0c] sm:$0xf]  ;;  %v12372_v0 = vor.u32 %v15408_v26, %v12369_v18  ;;  %v11927_v49 = vld [vmem:[#allocation8 + $0x590] sm:$0xf] }
 0x274   : > { %v13137_v1 = vld [vmem:[#allocation8 + $0xf28] sm:$0xf0] }
 0x275   : > { %v4706_v36 = vadd.f32 %v4705_v10, %v4677_v40  ;;  %v4719_v38 = vpop.f32.mrf.mxu0  ;;  %5119 = vmatpush.bf16.msrb.mxu2 %v12884_v14  ;;  %v13140_v33 = vor.u32 %v15600_v60, %v13137_v1  ;;  %5061 = vmatpush.bf16.msrb.mxu0 %v12372_v0  ;;  %v12625_v29 = vld [vmem:[#allocation8 + $0xb28] sm:$0xf0] }
 0x276   : > { %v4720_v63 = vadd.f32 %v4719_v38, %v17191_v6  ;;  %v4748_v34 = vpop.f32.mrf.mxu1  ;;  %v15472_v38 = vld [vmem:[#allocation8 + $0xb0c] sm:$0xf] }
 0x277   : > { %5148 = vmatpush.bf16.msrb.mxu3 %v13140_v33  ;;  %v6151_v16 = vmax.f32 %v4706_v36, 0.0  ;;  %v12849_v14 = vld [vmem:[#allocation8 + $0xce8] sm:$0xf0] }
 0x278   : > { %v4749_v35 = vadd.f32 %v4748_v34, %v4720_v63  ;;  %4950 = vmatmul.bf16.vlgmr.msra.gmra.mxu0 %v16870_v27  ;;  %v12628_v34 = vor.u32 %v15472_v38, %v12625_v29  ;;  %v15400_v26 = vld [vmem:[#allocation8 + $0x8cc] sm:$0xf] }
 0x279   : > { %4979 = vmatmul.bf16.vlgmr.msra.gmra.mxu1 %v16873_v30  ;;  %v15592_v0 = vld [vmem:[#allocation8 + $0xecc] sm:$0xf] }
 0x27a   : > { %v4678_v42 = vpop.f32.mrf.mxu2  ;;  %5090 = vmatpush.bf16.msrb.mxu1 %v12628_v34  ;;  %v13105_v1 = vld [vmem:[#allocation8 + $0xee8] sm:$0xf0] }
 0x27b   : > { %v4679_v24 = vadd.f32 %v4678_v42, %v4650_v2  ;;  %v4707_v53 = vpop.f32.mrf.mxu3  ;;  %v15528_v2 = vld [vmem:[#allocation8 + $0xccc] sm:$0xf]  ;;  %v13108_v33 = vor.u32 %v15592_v0, %v13105_v1 }
 0x27c   : > { %v12852_v60 = vor.u32 %v15528_v2, %v12849_v14  ;;  %v12337_v42 = vld [vmem:[#allocation8 + $0x8e8] sm:$0xf0] }
 0x27d   : > { %v4708_v40 = vadd.f32 %v4707_v53, %v4679_v24  ;;  %v4721_v10 = vpop.f32.mrf.mxu0  ;;  %v12340_v53 = vor.u32 %v15400_v26, %v12337_v42  ;;  %5149 = vmatpush.bf16.msrb.mxu3 %v13108_v33  ;;  %v15464_v29 = vld [vmem:[#allocation8 + $0xacc] sm:$0xf] }
 0x27e   : > { %v4722_v3 = vadd.f32 %v4721_v10, %v17191_v6  ;;  %v4750_v63 = vpop.f32.mrf.mxu1  ;;  %5120 = vmatpush.bf16.msrb.mxu2 %v12852_v60  ;;  %v15520_v2 = vld [vmem:[#allocation8 + $0xc8c] sm:$0xf] }
 0x27f   : > { %v6159_v4 = vmax.f32 %v4708_v40, 0.0  ;;  %5008 = vmatmul.bf16.vlgmr.msra.gmra.mxu2 %v16880_v47  ;;  %5062 = vmatpush.bf16.msrb.mxu0 %v12340_v53  ;;  %v12817_v14 = vld [vmem:[#allocation8 + $0xca8] sm:$0xf0] }
 0x280   : > { %v4751_v5 = vadd.f32 %v4750_v63, %v4722_v3  ;;  %5037 = vmatmul.bf16.vlgmr.msra.gmra.mxu3 %v16882_v48  ;;  %v12593_v3 = vld [vmem:[#allocation8 + $0xae8] sm:$0xf0] }
 0x281   : > { %v17199_v18 = vpack.c.bf16 %v6159_v4, %v6151_v16  ;;  %v12596_v16 = vor.u32 %v15464_v29, %v12593_v3  ;;  %v15392_v26 = vld [vmem:[#allocation8 + $0x88c] sm:$0xf] }
 0x282   : > { %v4777_v24 = vpop.f32.mrf.mxu2  ;;  %v12305_v60 = vld [vmem:[#allocation8 + $0x8a8] sm:$0xf0] }
 0x283   : > { %19097 = vst [vmem:[#allocation27_spill] sm:$0xff] %v17199_v18  ;;  %v4778_v36 = vadd.f32 %v4777_v24, %v4749_v35  ;;  %v4806_v40 = vpop.f32.mrf.mxu3  ;;  %5091 = vmatpush.bf16.msrb.mxu1 %v12596_v16  ;;  %v12820_v35 = vor.u32 %v15520_v2, %v12817_v14  ;;  %v15584_v42 = vld [vmem:[#allocation8 + $0xe8c] sm:$0xf]  ;;  %v12308_v1 = vor.u32 %v15392_v26, %v12305_v60 }
 0x284   : > { %v13073_v24 = vld [vmem:[#allocation8 + $0xea8] sm:$0xf0] }
 0x285   : > { %v17201_v10 = vadd.f32 %v4806_v40, %v4778_v36  ;;  %v4724_v38 = vpop.f32.mrf.mxu0  ;;  %5121 = vmatpush.bf16.msrb.mxu2 %v12820_v35  ;;  %v13076_v36 = vor.u32 %v15584_v42, %v13073_v24  ;;  %5063 = vmatpush.bf16.msrb.mxu0 %v12308_v1  ;;  %v15456_v40 = vld [vmem:[#allocation8 + $0xa8c] sm:$0xf] }
 0x286   : > { %v4725_v63 = vadd.f32 %v4724_v38, %v17191_v6  ;;  %v4753_v34 = vpop.f32.mrf.mxu1  ;;  %v12561_v38 = vld [vmem:[#allocation8 + $0xaa8] sm:$0xf0] }
 0x287   : > { %5150 = vmatpush.bf16.msrb.mxu3 %v13076_v36  ;;  %v12785_v14 = vld [vmem:[#allocation8 + $0xc68] sm:$0xf0] }
 0x288   : > { %v4754_v4 = vadd.f32 %v4753_v34, %v4725_v63  ;;  %4955 = vmatmul.bf16.gmra.mxu0 %v16890_v20  ;;  %v12564_v63 = vor.u32 %v15456_v40, %v12561_v38  ;;  %v15384_v35 = vld [vmem:[#allocation8 + $0x84c] sm:$0xf] }
 0x289   : > { %4984 = vmatmul.bf16.gmra.mxu1 %v16893_v23  ;;  %v12273_v60 = vld [vmem:[#allocation8 + $0x868] sm:$0xf0] }
 0x28a   : > { %v4779_v0 = vpop.f32.mrf.mxu2  ;;  %5092 = vmatpush.bf16.msrb.mxu1 %v12564_v63  ;;  %v15576_v42 = vld [vmem:[#allocation8 + $0xe4c] sm:$0xf]  ;;  %v12276_v24 = vor.u32 %v15384_v35, %v12273_v60 }
 0x28b   : > { %v4780_v53 = vadd.f32 %v4779_v0, %v4751_v5  ;;  %v4808_v33 = vpop.f32.mrf.mxu3  ;;  %v15512_v5 = vld [vmem:[#allocation8 + $0xc4c] sm:$0xf] }
 0x28c   : > { %v12788_v26 = vor.u32 %v15512_v5, %v12785_v14  ;;  %v13041_v0 = vld [vmem:[#allocation8 + $0xe68] sm:$0xf0]  ;;  %5064 = vmatpush.bf16.msrb.mxu0 %v12276_v24 }
 0x28d   : > { %v17206_v29 = vadd.f32 %v4808_v33, %v4780_v53  ;;  %v4726_v3 = vpop.f32.mrf.mxu0  ;;  %v13044_v53 = vor.u32 %v15576_v42, %v13041_v0  ;;  %v15448_v33 = vld [vmem:[#allocation8 + $0xa4c] sm:$0xf] }
 0x28e   : > { %v4727_v34 = vadd.f32 %v4726_v3, %v17191_v6  ;;  %v4755_v16 = vpop.f32.mrf.mxu1  ;;  %v12529_v36 = vld [vmem:[#allocation8 + $0xa68] sm:$0xf0]  ;;  %5122 = vmatpush.bf16.msrb.mxu2 %v12788_v26 }
 0x28f   : > { %5013 = vmatmul.bf16.gmra.mxu2 %v16900_v45  ;;  %v12532_v3 = vor.u32 %v15448_v33, %v12529_v36  ;;  %5151 = vmatpush.bf16.msrb.mxu3 %v13044_v53  ;;  %v15376_v63 = vld [vmem:[#allocation8 + $0x80c] sm:$0xf] }
 0x290   : > { %v4756_v2 = vadd.f32 %v4755_v16, %v4727_v34  ;;  %5042 = vmatmul.bf16.gmra.mxu3 %v16902_v50  ;;  %v12241_v34 = vld [vmem:[#allocation8 + $0x828] sm:$0xf0] }
 0x291   : > { %v15440_v16 = vld [vmem:[#allocation8 + $0xa0c] sm:$0xf]  ;;  %5093 = vmatpush.bf16.msrb.mxu1 %v12532_v3  ;;  %v12244_v14 = vor.u32 %v15376_v63, %v12241_v34 }
 0x292   : > { %v4782_v1 = vpop.f32.mrf.mxu2  ;;  %v12500_v42 = vor.u32 %v15440_v16, %v12497_v8  ;;  %v12753_v26 = vld [vmem:[#allocation8 + $0xc28] sm:$0xf0] }
 0x293   : > { %v4783_v40 = vadd.f32 %v4782_v1, %v4754_v4  ;;  %v4811_v38 = vpop.f32.mrf.mxu3  ;;  %v15504_v4 = vld [vmem:[#allocation8 + $0xc0c] sm:$0xf]  ;;  %5065 = vmatpush.bf16.msrb.mxu0 %v12244_v14  ;;  %v15309_v14 = vld [vmem:[#allocation8 + $0x5ec] sm:$0xf0] }
 0x294   : > { %v12756_v1 = vor.u32 %v15504_v4, %v12753_v26  ;;  %v15568_v24 = vld [vmem:[#allocation8 + $0xe0c] sm:$0xf]  ;;  %v15373_v4 = vld [vmem:[#allocation8 + $0x7ec] sm:$0xf0] }
 0x295   : > { %v17211_v18 = vadd.f32 %v4811_v38, %v4783_v40  ;;  %v4729_v5 = vpop.f32.mrf.mxu0  ;;  %v13009_v53 = vld [vmem:[#allocation8 + $0xe28] sm:$0xf0]  ;;  %5094 = vmatpush.bf16.msrb.mxu1 %v12500_v42  ;;  %v15181_v42 = vld [vmem:[#allocation8 + $0x1ec] sm:$0xf0] }
 0x296   : > { %v4730_v35 = vadd.f32 %v4729_v5, %v17191_v6  ;;  %v4758_v60 = vpop.f32.mrf.mxu1  ;;  %v13012_v36 = vor.u32 %v15568_v24, %v13009_v53  ;;  %5123 = vmatpush.bf16.msrb.mxu2 %v12756_v1  ;;  %v11959_v5 = vld [vmem:[#allocation8 + $0x5d0] sm:$0xf] }
 0x298   : > { %v4759_v0 = vadd.f32 %v4758_v60, %v4730_v35  ;;  %4960 = vmatmul.bf16.gmra.mxu0 %v16910_v25  ;;  %5152 = vmatpush.bf16.msrb.mxu3 %v13012_v36  ;;  %v11447_v35 = vld [vmem:[#allocation8 + $0x1d0] sm:$0xf]  ;;  %v11960_v60 = vor.u32 %v15309_v14, %v11959_v5 }
 0x299   : > { %4989 = vmatmul.bf16.gmra.mxu1 %v16913_v32  ;;  %v11448_v1 = vor.u32 %v15181_v42, %v11447_v35  ;;  %v15301_v35 = vld [vmem:[#allocation8 + $0x5ac] sm:$0xf0] }
 0x29a   : > { %v4784_v33 = vpop.f32.mrf.mxu2  ;;  %5232 = vmatpush.bf16.msra.mxu2 %v11960_v60  ;;  %v11415_v60 = vld [vmem:[#allocation8 + $0x190] sm:$0xf] }
 0x29b   : > { %v4785_v40 = vadd.f32 %v4784_v33, %v4756_v2  ;;  %v4813_v38 = vpop.f32.mrf.mxu3  ;;  %v12215_v2 = vld [vmem:[#allocation8 + $0x7d0] sm:$0xf]  ;;  %5174 = vmatpush.bf16.msra.mxu0 %v11448_v1 }
 0x29c   : > { %v12216_v24 = vor.u32 %v15373_v4, %v12215_v2  ;;  %v15173_v42 = vld [vmem:[#allocation8 + $0x1ac] sm:$0xf0] }
 0x29d   : > { %v17216_v3 = vadd.f32 %v4813_v38, %v4785_v40  ;;  %v4731_v8 = vpop.f32.mrf.mxu0  ;;  %v12183_v2 = vld [vmem:[#allocation8 + $0x790] sm:$0xf] }
 0x29e   : > { %v4732_v63 = vadd.f32 %v4731_v8, %v17191_v6  ;;  %v4760_v34 = vpop.f32.mrf.mxu1  ;;  %5261 = vmatpush.bf16.msra.mxu3 %v12216_v24  ;;  %v15365_v1 = vld [vmem:[#allocation8 + $0x7ac] sm:$0xf0] }
 0x29f   : > { %5018 = vmatmul.bf16.gmra.mxu2 %v16920_v54 }
 0x2a0   : > { %v4761_v16 = vadd.f32 %v4760_v34, %v4732_v63  ;;  %5047 = vmatmul.bf16.gmra.mxu3 %v16922_v56  ;;  %v11703_v63 = vld [vmem:[#allocation8 + $0x3d0] sm:$0xf] }
 0x2a1   : > { %v15245_v34 = vld [vmem:[#allocation8 + $0x3ec] sm:$0xf0] }
 0x2a2   : > { %v4787_v26 = vpop.f32.mrf.mxu2  ;;  %v11704_v14 = vor.u32 %v15245_v34, %v11703_v63  ;;  %v11671_v34 = vld [vmem:[#allocation8 + $0x390] sm:$0xf] }
 0x2a3   : > { %v4788_v53 = vadd.f32 %v4787_v26, %v4759_v0  ;;  %v4816_v33 = vpop.f32.mrf.mxu3  ;;  %v11928_v0 = vor.u32 %v15301_v35, %v11927_v49  ;;  %v11416_v26 = vor.u32 %v15173_v42, %v11415_v60  ;;  %v11895_v35 = vld [vmem:[#allocation8 + $0x550] sm:$0xf] }
 0x2a4   : > { %5203 = vmatpush.bf16.msra.mxu1 %v11704_v14  ;;  %v15237_v14 = vld [vmem:[#allocation8 + $0x3ac] sm:$0xf0] }
 0x2a5   : > { %v17221_v36 = vadd.f32 %v4816_v33, %v4788_v53  ;;  %v4734_v40 = vpop.f32.mrf.mxu0  ;;  %5233 = vmatpush.bf16.msra.mxu2 %v11928_v0  ;;  %v12184_v33 = vor.u32 %v15365_v1, %v12183_v2  ;;  %5175 = vmatpush.bf16.msra.mxu0 %v11416_v26  ;;  %v11672_v60 = vor.u32 %v15237_v14, %v11671_v34  ;;  %v15293_v0 = vld [vmem:[#allocation8 + $0x56c] sm:$0xf0] }
 0x2a6   : > { %v4735_v38 = vadd.f32 %v4734_v40, %v17191_v6  ;;  %v4763_v8 = vpop.f32.mrf.mxu1  ;;  %v11383_v42 = vld [vmem:[#allocation8 + $0x150] sm:$0xf]  ;;  %v11896_v1 = vor.u32 %v15293_v0, %v11895_v35 }
 0x2a7   : > { %5262 = vmatpush.bf16.msra.mxu3 %v12184_v33  ;;  %v15165_v2 = vld [vmem:[#allocation8 + $0x16c] sm:$0xf0] }
 0x2a8   : > { %v4764_v5 = vadd.f32 %v4763_v8, %v4735_v38  ;;  %4965 = vmatmul.bf16.gmra.mxu0 %v16930_v15  ;;  %5204 = vmatpush.bf16.msra.mxu1 %v11672_v60  ;;  %v11639_v34 = vld [vmem:[#allocation8 + $0x350] sm:$0xf] }
 0x2a9   : > { %4994 = vmatmul.bf16.gmra.mxu1 %v16933_v22  ;;  %5234 = vmatpush.bf16.msra.mxu2 %v11896_v1  ;;  %v15229_v14 = vld [vmem:[#allocation8 + $0x36c] sm:$0xf0] }
 0x2aa   : > { %v4789_v4 = vpop.f32.mrf.mxu2  ;;  %v11863_v35 = vld [vmem:[#allocation8 + $0x510] sm:$0xf] }
 0x2ab   : > { %v4790_v24 = vadd.f32 %v4789_v4, %v4761_v16  ;;  %v4818_v53 = vpop.f32.mrf.mxu3  ;;  %v11351_v0 = vld [vmem:[#allocation8 + $0x110] sm:$0xf] }
 0x2ad   : > { %v17226_v40 = vadd.f32 %v4818_v53, %v4790_v24  ;;  %v4736_v38 = vpop.f32.mrf.mxu0  ;;  %v11384_v24 = vor.u32 %v15165_v2, %v11383_v42  ;;  %v12151_v53 = vld [vmem:[#allocation8 + $0x750] sm:$0xf] }
 0x2ae   : > { %v4737_v8 = vadd.f32 %v4736_v38, %v17191_v6  ;;  %v4765_v63 = vpop.f32.mrf.mxu1  ;;  %v15357_v6 = vld [vmem:[#allocation8 + $0x76c] sm:$0xf0] }
 0x2af   : > { %5023 = vmatmul.bf16.gmra.mxu2 %v16946_v44  ;;  %v12152_v33 = vor.u32 %v15357_v6, %v12151_v53  ;;  %5176 = vmatpush.bf16.msra.mxu0 %v11384_v24  ;;  %v15157_v42 = vld [vmem:[#allocation8 + $0x12c] sm:$0xf0] }
 0x2b0   : > { %v4766_v49 = vadd.f32 %v4765_v63, %v4737_v8  ;;  %5052 = vmatmul.bf16.gmra.mxu3 %v16948_v46  ;;  %v12119_v2 = vld [vmem:[#allocation8 + $0x710] sm:$0xf] }
 0x2b1   : > { %5263 = vmatpush.bf16.msra.mxu3 %v12152_v33 }
 0x2b2   : > { %v4792_v16 = vpop.f32.mrf.mxu2 }
 0x2b3   : > { %v4793_v4 = vadd.f32 %v4792_v16, %v4764_v5  ;;  %v4821_v26 = vpop.f32.mrf.mxu3  ;;  %v11640_v5 = vor.u32 %v15229_v14, %v11639_v34  ;;  %v15285_v16 = vld [vmem:[#allocation8 + $0x52c] sm:$0xf0] }
 0x2b4   : > { %v11864_v60 = vor.u32 %v15285_v16, %v11863_v35  ;;  %v11607_v34 = vld [vmem:[#allocation8 + $0x310] sm:$0xf] }
 0x2b5   : > { %v17231_v38 = vadd.f32 %v4821_v26, %v4793_v4  ;;  %v4835_v8 = vpop.f32.mrf.mxu0  ;;  %5205 = vmatpush.bf16.msra.mxu1 %v11640_v5  ;;  %v11352_v26 = vor.u32 %v15157_v42, %v11351_v0  ;;  %v15221_v14 = vld [vmem:[#allocation8 + $0x32c] sm:$0xf0] }
 0x2b6   : > { %v4836_v63 = vadd.f32 %v4835_v8, %v17201_v10  ;;  %v4864_v61 = vpop.f32.mrf.mxu1  ;;  %v15349_v10 = vld [vmem:[#allocation8 + $0x72c] sm:$0xf0]  ;;  %5235 = vmatpush.bf16.msra.mxu2 %v11864_v60  ;;  %v11608_v35 = vor.u32 %v15221_v14, %v11607_v34 }
 0x2b7   : > { %v12120_v53 = vor.u32 %v15349_v10, %v12119_v2  ;;  %5177 = vmatpush.bf16.msra.mxu0 %v11352_v26  ;;  %v11831_v5 = vld [vmem:[#allocation8 + $0x4d0] sm:$0xf] }
 0x2b8   : > { %v4865_v62 = vadd.f32 %v4864_v61, %v4836_v63  ;;  %5066 = vmatmul.bf16.vlgmr.msrb.gmra.mxu0 %v16962_v57  ;;  %v15277_v16 = vld [vmem:[#allocation8 + $0x4ec] sm:$0xf0] }
 0x2b9   : > { %5095 = vmatmul.bf16.vlgmr.msrb.gmra.mxu1 %v16965_v31  ;;  %5264 = vmatpush.bf16.msra.mxu3 %v12120_v53  ;;  %v11319_v60 = vld [vmem:[#allocation8 + $0xd0] sm:$0xf] }
 0x2ba   : > { %v4794_v4 = vpop.f32.mrf.mxu2  ;;  %v15149_v0 = vld [vmem:[#allocation8 + $0xec] sm:$0xf0]  ;;  %5206 = vmatpush.bf16.msra.mxu1 %v11608_v35 }
 0x2bb   : > { %v4795_v1 = vadd.f32 %v4794_v4, %v4766_v49  ;;  %v4823_v24 = vpop.f32.mrf.mxu3  ;;  %v11832_v4 = vor.u32 %v15277_v16, %v11831_v5  ;;  %v11320_v26 = vor.u32 %v15149_v0, %v11319_v60  ;;  %v12087_v10 = vld [vmem:[#allocation8 + $0x6d0] sm:$0xf] }
 0x2bc   : > { %v15213_v34 = vld [vmem:[#allocation8 + $0x2ec] sm:$0xf0] }
 0x2bd   : > { %v17236_v61 = vadd.f32 %v4823_v24, %v4795_v1  ;;  %v4837_v6 = vpop.f32.mrf.mxu0  ;;  %5236 = vmatpush.bf16.msra.mxu2 %v11832_v4  ;;  %5178 = vmatpush.bf16.msra.mxu0 %v11320_v26  ;;  %v11799_v5 = vld [vmem:[#allocation8 + $0x490] sm:$0xf] }
 0x2be   : > { %v4838_v33 = vadd.f32 %v4837_v6, %v17206_v29  ;;  %v4866_v8 = vpop.f32.mrf.mxu1  ;;  %v15341_v29 = vld [vmem:[#allocation8 + $0x6ec] sm:$0xf0] }
 0x2bf   : > { %5124 = vmatmul.bf16.vlgmr.msrb.gmra.mxu2 %v16972_v58  ;;  %v12088_v1 = vor.u32 %v15341_v29, %v12087_v10  ;;  %v11287_v16 = vld [vmem:[#allocation8 + $0x90] sm:$0xf] }
 0x2c0   : > { %v4867_v63 = vadd.f32 %v4866_v8, %v4838_v33  ;;  %5153 = vmatmul.bf16.vlgmr.msrb.gmra.mxu3 %v16974_v59  ;;  %v11575_v8 = vld [vmem:[#allocation8 + $0x2d0] sm:$0xf] }
 0x2c1   : > { %5265 = vmatpush.bf16.msra.mxu3 %v12088_v1  ;;  %v15141_v60 = vld [vmem:[#allocation8 + $0xac] sm:$0xf0] }
 0x2c2   : > { %v4893_v49 = vpop.f32.mrf.mxu2  ;;  %v12055_v0 = vld [vmem:[#allocation8 + $0x690] sm:$0xf] }
 0x2c3   : > { %v4894_v42 = vadd.f32 %v4893_v49, %v4865_v62  ;;  %v4922_v2 = vpop.f32.mrf.mxu3  ;;  %v11576_v62 = vor.u32 %v15213_v34, %v11575_v8  ;;  %v15269_v49 = vld [vmem:[#allocation8 + $0x4ac] sm:$0xf0] }
 0x2c4   : > { %v11800_v35 = vor.u32 %v15269_v49, %v11799_v5  ;;  %v11543_v29 = vld [vmem:[#allocation8 + $0x290] sm:$0xf] }
 0x2c5   : > { %v4923_v24 = vadd.f32 %v4922_v2, %v4894_v42  ;;  %v4840_v53 = vpop.f32.mrf.mxu0  ;;  %5207 = vmatpush.bf16.msra.mxu1 %v11576_v62  ;;  %v11288_v2 = vor.u32 %v15141_v60, %v11287_v16  ;;  %v15205_v1 = vld [vmem:[#allocation8 + $0x2ac] sm:$0xf0] }
 0x2c6   : > { %v4841_v6 = vadd.f32 %v4840_v53, %v17211_v18  ;;  %v4869_v33 = vpop.f32.mrf.mxu1  ;;  %v15333_v18 = vld [vmem:[#allocation8 + $0x6ac] sm:$0xf0]  ;;  %5237 = vmatpush.bf16.msra.mxu2 %v11800_v35 }
 0x2c7   : > { %v12056_v10 = vor.u32 %v15333_v18, %v12055_v0  ;;  %5179 = vmatpush.bf16.msra.mxu0 %v11288_v2  ;;  %v6104_v5 = vmax.f32 %v4923_v24, 0.0  ;;  %v15133_v35 = vld [vmem:[#allocation8 + $0x6c] sm:$0xf0] }
 0x2c8   : > { %v4870_v14 = vadd.f32 %v4869_v33, %v4841_v6  ;;  %5071 = vmatmul.bf16.gmra.mxu0 %v16982_v39  ;;  %v11544_v33 = vor.u32 %v15205_v1, %v11543_v29  ;;  %v11511_v16 = vld [vmem:[#allocation8 + $0x250] sm:$0xf] }
 0x2c9   : > { %5100 = vmatmul.bf16.gmra.mxu1 %v16985_v43  ;;  %5266 = vmatpush.bf16.msra.mxu3 %v12056_v10  ;;  %v11767_v0 = vld [vmem:[#allocation8 + $0x450] sm:$0xf] }
 0x2ca   : > { %v4895_v42 = vpop.f32.mrf.mxu2  ;;  %5208 = vmatpush.bf16.msra.mxu1 %v11544_v33  ;;  %v12023_v18 = vld [vmem:[#allocation8 + $0x650] sm:$0xf] }
 0x2cb   : > { %v4896_v4 = vadd.f32 %v4895_v42, %v4867_v63  ;;  %v4924_v26 = vpop.f32.mrf.mxu3  ;;  %v11255_v63 = vld [vmem:[#allocation8 + $0x50] sm:$0xf] }
 0x2cc   : > { %v15261_v42 = vld [vmem:[#allocation8 + $0x46c] sm:$0xf0]  ;;  %v11256_v2 = vor.u32 %v15133_v35, %v11255_v63 }
 0x2cd   : > { %v4925_v53 = vadd.f32 %v4924_v26, %v4896_v4  ;;  %v4842_v6 = vpop.f32.mrf.mxu0  ;;  %v15325_v26 = vld [vmem:[#allocation8 + $0x66c] sm:$0xf0] }
 0x2ce   : > { %v4843_v8 = vadd.f32 %v4842_v6, %v17216_v3  ;;  %v4871_v34 = vpop.f32.mrf.mxu1  ;;  %v11768_v3 = vor.u32 %v15261_v42, %v11767_v0  ;;  %v15197_v24 = vld [vmem:[#allocation8 + $0x26c] sm:$0xf0]  ;;  %5180 = vmatpush.bf16.msra.mxu0 %v11256_v2  ;;  %v12024_v1 = vor.u32 %v15325_v26, %v12023_v18 }
 0x2cf   : > { %v6112_v49 = vmax.f32 %v4925_v53, 0.0  ;;  %5129 = vmatmul.bf16.gmra.mxu2 %v16992_v9  ;;  %v11512_v53 = vor.u32 %v15197_v24, %v11511_v16  ;;  %v11223_v6 = vld [vmem:[#allocation8 + $0x10] sm:$0xf] }
 0x2d0   : > { %v4872_v62 = vadd.f32 %v4871_v34, %v4843_v8  ;;  %5158 = vmatmul.bf16.gmra.mxu3 %v16994_v17  ;;  %5238 = vmatpush.bf16.msra.mxu2 %v11768_v3  ;;  %v15125_v33 = vld [vmem:[#allocation8 + $0x2c] sm:$0xf0] }
 0x2d1   : > { %v17247_v60 = vpack.c.bf16 %v6112_v49, %v6104_v5  ;;  %v11479_v8 = vld [vmem:[#allocation8 + $0x210] sm:$0xf]  ;;  %5267 = vmatpush.bf16.msra.mxu3 %v12024_v1  ;;  %5209 = vmatpush.bf16.msra.mxu1 %v11512_v53  ;;  %v11224_v49 = vor.u32 %v15125_v33, %v11223_v6 }
 0x2d2   : > { %v4898_v4 = vpop.f32.mrf.mxu2  ;;  %v15189_v63 = vld [vmem:[#allocation8 + $0x22c] sm:$0xf0] }
 0x2d3   : > { %19098 = vst [vmem:[#allocation28_spill] sm:$0xff] %v17247_v60  ;;  %v4899_v10 = vadd.f32 %v4898_v4, %v4870_v14  ;;  %v4927_v29 = vpop.f32.mrf.mxu3  ;;  %v11480_v42 = vor.u32 %v15189_v63, %v11479_v8  ;;  %5181 = vmatpush.bf16.msra.mxu0 %v11224_v49  ;;  %v11735_v2 = vld [vmem:[#allocation8 + $0x410] sm:$0xf] }
 0x2d4   : > { %v15253_v16 = vld [vmem:[#allocation8 + $0x42c] sm:$0xf0] }
 0x2d5   : > { %v4928_v34 = vadd.f32 %v4927_v29, %v4899_v10  ;;  %v4845_v5 = vpop.f32.mrf.mxu0  ;;  %v11736_v18 = vor.u32 %v15253_v16, %v11735_v2  ;;  %v11991_v4 = vld [vmem:[#allocation8 + $0x610] sm:$0xf]  ;;  %5210 = vmatpush.bf16.msra.mxu1 %v11480_v42 }
 0x2d6   : > { %v4846_v35 = vadd.f32 %v4845_v5, %v17221_v36  ;;  %v4874_v0 = vpop.f32.mrf.mxu1  ;;  %v15317_v3 = vld [vmem:[#allocation8 + $0x62c] sm:$0xf0] }
 0x2d7   : > { %v11992_v24 = vor.u32 %v15317_v3, %v11991_v4  ;;  %5239 = vmatpush.bf16.msra.mxu2 %v11736_v18  ;;  %v6120_v33 = vmax.f32 %v4928_v34, 0.0  ;;  %v12983_v63 = vld [vmem:[#allocation8 + $0xdd0] sm:$0xf] }
 0x2d8   : > { %v4875_v14 = vadd.f32 %v4874_v0, %v4846_v35  ;;  %5076 = vmatmul.bf16.gmra.mxu0 %v17002_v11  ;;  %v15565_v35 = vld [vmem:[#allocation8 + $0xdec] sm:$0xf0] }
 0x2d9   : > { %5105 = vmatmul.bf16.gmra.mxu1 %v17005_v21  ;;  %5268 = vmatpush.bf16.msra.mxu3 %v11992_v24  ;;  %v12984_v42 = vor.u32 %v15565_v35, %v12983_v63  ;;  %v15437_v2 = vld [vmem:[#allocation8 + $0x9ec] sm:$0xf0] }
 0x2da   : > { %v4900_v26 = vpop.f32.mrf.mxu2  ;;  %v13239_v16 = vld [vmem:[#allocation8 + $0xfd0] sm:$0xf] }
 0x2db   : > { %v4901_v10 = vadd.f32 %v4900_v26, %v4872_v62  ;;  %v4929_v29 = vpop.f32.mrf.mxu3  ;;  %v12471_v62 = vld [vmem:[#allocation8 + $0x9d0] sm:$0xf]  ;;  %5348 = vmatpush.bf16.msrb.mxu2 %v12984_v42 }
 0x2dc   : > { %v15629_v18 = vld [vmem:[#allocation8 + $0xfec] sm:$0xf0]  ;;  %v12472_v3 = vor.u32 %v15437_v2, %v12471_v62 }
 0x2dd   : > { %v4930_v36 = vadd.f32 %v4929_v29, %v4901_v10  ;;  %v4847_v1 = vpop.f32.mrf.mxu0  ;;  %v13240_v34 = vor.u32 %v15629_v18, %v13239_v16  ;;  %v12727_v10 = vld [vmem:[#allocation8 + $0xbd0] sm:$0xf] }
 0x2de   : > { %v4848_v53 = vadd.f32 %v4847_v1, %v17226_v40  ;;  %v4876_v6 = vpop.f32.mrf.mxu1  ;;  %5290 = vmatpush.bf16.msrb.mxu0 %v12472_v3  ;;  %v15501_v29 = vld [vmem:[#allocation8 + $0xbec] sm:$0xf0] }
 0x2df   : > { %v6128_v8 = vmax.f32 %v4930_v36, 0.0  ;;  %5134 = vmatmul.bf16.gmra.mxu2 %v17012_v51  ;;  %5377 = vmatpush.bf16.msrb.mxu3 %v13240_v34  ;;  %v12439_v63 = vld [vmem:[#allocation8 + $0x990] sm:$0xf] }
 0x2e0   : > { %v4877_v5 = vadd.f32 %v4876_v6, %v4848_v53  ;;  %5163 = vmatmul.bf16.gmra.mxu3 %v17014_v52  ;;  %v12728_v53 = vor.u32 %v15501_v29, %v12727_v10  ;;  %v15429_v35 = vld [vmem:[#allocation8 + $0x9ac] sm:$0xf0] }
 0x2e1   : > { %v17255_v49 = vpack.c.bf16 %v6128_v8, %v6120_v33  ;;  %v12951_v33 = vld [vmem:[#allocation8 + $0xd90] sm:$0xf]  ;;  %v12440_v42 = vor.u32 %v15429_v35, %v12439_v63 }
 0x2e2   : > { %v4903_v0 = vpop.f32.mrf.mxu2  ;;  %5319 = vmatpush.bf16.msrb.mxu1 %v12728_v53  ;;  %v13207_v62 = vld [vmem:[#allocation8 + $0xf90] sm:$0xf] }
 0x2e3   : > { %19099 = vst [vmem:[#allocation29_spill] sm:$0xff] %v17255_v49  ;;  %v4904_v4 = vadd.f32 %v4903_v0, %v4875_v14  ;;  %v4932_v40 = vpop.f32.mrf.mxu3  ;;  %v15557_v14 = vld [vmem:[#allocation8 + $0xdac] sm:$0xf0]  ;;  %5291 = vmatpush.bf16.msrb.mxu0 %v12440_v42  ;;  %v17266_v42 = vperm.slane %v17188_v28, 3 }
 0x2e4   : > { %v12952_v8 = vor.u32 %v15557_v14, %v12951_v33  ;;  %v15621_v2 = vld [vmem:[#allocation8 + $0xfac] sm:$0xf0] }
 0x2e5   : > { %v4933_v26 = vadd.f32 %v4932_v40, %v4904_v4  ;;  %v4850_v24 = vpop.f32.mrf.mxu0  ;;  %v12695_v3 = vld [vmem:[#allocation8 + $0xb90] sm:$0xf] }
 0x2e6   : > { %v4851_v36 = vadd.f32 %v4850_v24, %v17231_v38  ;;  %v4879_v1 = vpop.f32.mrf.mxu1  ;;  %5349 = vmatpush.bf16.msrb.mxu2 %v12952_v8  ;;  %v13208_v38 = vor.u32 %v15621_v2, %v13207_v62  ;;  %v15493_v34 = vld [vmem:[#allocation8 + $0xbac] sm:$0xf0] }
 0x2e7   : > { %v12696_v29 = vor.u32 %v15493_v34, %v12695_v3  ;;  %v15549_v33 = vld [vmem:[#allocation8 + $0xd6c] sm:$0xf0] }
 0x2e8   : > { %v4880_v6 = vadd.f32 %v4879_v1, %v4851_v36  ;;  %5081 = vmatmul.bf16.gmra.mxu0 %v17022_v37  ;;  %5378 = vmatpush.bf16.msrb.mxu3 %v13208_v38  ;;  %v6136_v36 = vmax.f32 %v4933_v26, 0.0  ;;  %v12407_v14 = vld [vmem:[#allocation8 + $0x950] sm:$0xf] }
 0x2e9   : > { %5110 = vmatmul.bf16.gmra.mxu1 %v17025_v41  ;;  %v15421_v35 = vld [vmem:[#allocation8 + $0x96c] sm:$0xf0] }
 0x2ea   : > { %v4905_v0 = vpop.f32.mrf.mxu2  ;;  %5320 = vmatpush.bf16.msrb.mxu1 %v12696_v29  ;;  %v13175_v62 = vld [vmem:[#allocation8 + $0xf50] sm:$0xf]  ;;  %v12408_v26 = vor.u32 %v15421_v35, %v12407_v14 }
 0x2eb   : > { %v4906_v16 = vadd.f32 %v4905_v0, %v4877_v5  ;;  %v4934_v18 = vpop.f32.mrf.mxu3  ;;  %v12919_v5 = vld [vmem:[#allocation8 + $0xd50] sm:$0xf] }
 0x2ec   : > { %v12920_v63 = vor.u32 %v15549_v33, %v12919_v5  ;;  %v15613_v0 = vld [vmem:[#allocation8 + $0xf6c] sm:$0xf0]  ;;  %5292 = vmatpush.bf16.msrb.mxu0 %v12408_v26 }
 0x2ed   : > { %v4935_v4 = vadd.f32 %v4934_v18, %v4906_v16  ;;  %v4852_v40 = vpop.f32.mrf.mxu0  ;;  %v13176_v2 = vor.u32 %v15613_v0, %v13175_v62  ;;  %v15485_v3 = vld [vmem:[#allocation8 + $0xb6c] sm:$0xf0] }
 0x2ee   : > { %v4853_v24 = vadd.f32 %v4852_v40, %v17236_v61  ;;  %v4881_v10 = vpop.f32.mrf.mxu1  ;;  %5350 = vmatpush.bf16.msrb.mxu2 %v12920_v63  ;;  %v12663_v40 = vld [vmem:[#allocation8 + $0xb50] sm:$0xf] }
 0x2ef   : > { %v6144_v1 = vmax.f32 %v4935_v4, 0.0  ;;  %5139 = vmatmul.bf16.gmra.mxu2 %v17032_v19  ;;  %5379 = vmatpush.bf16.msrb.mxu3 %v13176_v2  ;;  %v12887_v28 = vld [vmem:[#allocation8 + $0xd10] sm:$0xf] }
 0x2f0   : > { %v4882_v53 = vadd.f32 %v4881_v10, %v4853_v24  ;;  %5168 = vmatmul.bf16.gmra.mxu3 %v17034_v13  ;;  %v12664_v10 = vor.u32 %v15485_v3, %v12663_v40  ;;  %v15413_v5 = vld [vmem:[#allocation8 + $0x92c] sm:$0xf0] }
 0x2f1   : > { %v17263_v8 = vpack.c.bf16 %v6144_v1, %v6136_v36  ;;  %v15541_v36 = vld [vmem:[#allocation8 + $0xd2c] sm:$0xf0] }
 0x2f2   : > { %v4908_v61 = vpop.f32.mrf.mxu2  ;;  %5321 = vmatpush.bf16.msrb.mxu1 %v12664_v10  ;;  %v12375_v1 = vld [vmem:[#allocation8 + $0x910] sm:$0xf] }
 0x2f3   : > { %19100 = vst [vmem:[#allocation30_spill] sm:$0xff] %v17263_v8  ;;  %v4909_v16 = vadd.f32 %v4908_v61, %v4880_v6  ;;  %v4937_v18 = vpop.f32.mrf.mxu3  ;;  %v12888_v6 = vor.u32 %v15541_v36, %v12887_v28  ;;  %v13143_v33 = vld [vmem:[#allocation8 + $0xf10] sm:$0xf]  ;;  %v12376_v63 = vor.u32 %v15413_v5, %v12375_v1 }
 0x2f4   : > { %v15605_v35 = vld [vmem:[#allocation8 + $0xf2c] sm:$0xf0] }
 0x2f5   : > { %v4938_v38 = vadd.f32 %v4937_v18, %v4909_v16  ;;  %v4951_v4 = vpop.f32.mrf.mxu0  ;;  %5351 = vmatpush.bf16.msrb.mxu2 %v12888_v6  ;;  %v13144_v61 = vor.u32 %v15605_v35, %v13143_v33  ;;  %5293 = vmatpush.bf16.msrb.mxu0 %v12376_v63  ;;  %v12631_v16 = vld [vmem:[#allocation8 + $0xb10] sm:$0xf] }
 0x2f6   : > { %v4952_v34 = vadd.f32 %v4951_v4, %v17266_v42  ;;  %v4980_v24 = vpop.f32.mrf.mxu1  ;;  %v15477_v18 = vld [vmem:[#allocation8 + $0xb2c] sm:$0xf0] }
 0x2f7   : > { %5380 = vmatpush.bf16.msrb.mxu3 %v13144_v61  ;;  %v12632_v3 = vor.u32 %v15477_v18, %v12631_v16  ;;  %v15533_v28 = vld [vmem:[#allocation8 + $0xcec] sm:$0xf0] }
 0x2f8   : > { %v4981_v29 = vadd.f32 %v4980_v24, %v4952_v34  ;;  %5182 = vmatmul.bf16.vlgmr.msra.gmra.mxu0 %v16870_v27  ;;  %v6152_v34 = vmax.f32 %v4938_v38, 0.0  ;;  %v12343_v36 = vld [vmem:[#allocation8 + $0x8d0] sm:$0xf] }
 0x2f9   : > { %5211 = vmatmul.bf16.vlgmr.msra.gmra.mxu1 %v16873_v30  ;;  %v15405_v5 = vld [vmem:[#allocation8 + $0x8ec] sm:$0xf0] }
 0x2fa   : > { %v4910_v14 = vpop.f32.mrf.mxu2  ;;  %5322 = vmatpush.bf16.msrb.mxu1 %v12632_v3  ;;  %v13111_v33 = vld [vmem:[#allocation8 + $0xed0] sm:$0xf]  ;;  %v12344_v35 = vor.u32 %v15405_v5, %v12343_v36 }
 0x2fb   : > { %v4911_v62 = vadd.f32 %v4910_v14, %v4882_v53  ;;  %v4939_v0 = vpop.f32.mrf.mxu3  ;;  %v12855_v53 = vld [vmem:[#allocation8 + $0xcd0] sm:$0xf] }
 0x2fc   : > { %v12856_v1 = vor.u32 %v15533_v28, %v12855_v53  ;;  %v15597_v14 = vld [vmem:[#allocation8 + $0xeec] sm:$0xf0]  ;;  %5294 = vmatpush.bf16.msrb.mxu0 %v12344_v35 }
 0x2fd   : > { %v4940_v26 = vadd.f32 %v4939_v0, %v4911_v62  ;;  %v4953_v2 = vpop.f32.mrf.mxu0  ;;  %v13112_v62 = vor.u32 %v15597_v14, %v13111_v33  ;;  %v15469_v16 = vld [vmem:[#allocation8 + $0xaec] sm:$0xf0] }
 0x2fe   : > { %v4954_v4 = vadd.f32 %v4953_v2, %v17266_v42  ;;  %v4982_v40 = vpop.f32.mrf.mxu1  ;;  %5352 = vmatpush.bf16.msrb.mxu2 %v12856_v1  ;;  %v12599_v2 = vld [vmem:[#allocation8 + $0xad0] sm:$0xf] }
 0x2ff   : > { %v6160_v24 = vmax.f32 %v4940_v26, 0.0  ;;  %5240 = vmatmul.bf16.vlgmr.msra.gmra.mxu2 %v16880_v47  ;;  %5381 = vmatpush.bf16.msrb.mxu3 %v13112_v62  ;;  %v12311_v53 = vld [vmem:[#allocation8 + $0x890] sm:$0xf] }
 0x300   : > { %v4983_v10 = vadd.f32 %v4982_v40, %v4954_v4  ;;  %5269 = vmatmul.bf16.vlgmr.msra.gmra.mxu3 %v16882_v48  ;;  %v12600_v40 = vor.u32 %v15469_v16, %v12599_v2  ;;  %v15397_v28 = vld [vmem:[#allocation8 + $0x8ac] sm:$0xf0] }
 0x301   : > { %v17274_v6 = vpack.c.bf16 %v6160_v24, %v6152_v34  ;;  %v12823_v34 = vld [vmem:[#allocation8 + $0xc90] sm:$0xf]  ;;  %v12312_v5 = vor.u32 %v15397_v28, %v12311_v53 }
 0x302   : > { %v5009_v63 = vpop.f32.mrf.mxu2  ;;  %5323 = vmatpush.bf16.msrb.mxu1 %v12600_v40  ;;  %v15525_v24 = vld [vmem:[#allocation8 + $0xcac] sm:$0xf0] }
 0x303   : > { %19101 = vst [vmem:[#allocation31_spill] sm:$0xff] %v17274_v6  ;;  %v5010_v38 = vadd.f32 %v5009_v63, %v4981_v29  ;;  %v5038_v0 = vpop.f32.mrf.mxu3  ;;  %v12824_v29 = vor.u32 %v15525_v24, %v12823_v34  ;;  %v13079_v36 = vld [vmem:[#allocation8 + $0xe90] sm:$0xf]  ;;  %5295 = vmatpush.bf16.msrb.mxu0 %v12312_v5  ;;  %v15297_v6 = vld [vmem:[#allocation8 + $0x594] sm:$0xf] }
 0x304   : > { %v15589_v33 = vld [vmem:[#allocation8 + $0xeac] sm:$0xf0] }
 0x305   : > { %v17276_v61 = vadd.f32 %v5038_v0, %v5010_v38  ;;  %v4956_v26 = vpop.f32.mrf.mxu0  ;;  %5353 = vmatpush.bf16.msrb.mxu2 %v12824_v29  ;;  %v13080_v35 = vor.u32 %v15589_v33, %v13079_v36  ;;  %v12567_v62 = vld [vmem:[#allocation8 + $0xa90] sm:$0xf] }
 0x306   : > { %v4957_v18 = vadd.f32 %v4956_v26, %v17266_v42  ;;  %v4985_v4 = vpop.f32.mrf.mxu1  ;;  %v15461_v38 = vld [vmem:[#allocation8 + $0xaac] sm:$0xf0] }
 0x307   : > { %5382 = vmatpush.bf16.msrb.mxu3 %v13080_v35  ;;  %v12568_v2 = vor.u32 %v15461_v38, %v12567_v62  ;;  %v15517_v40 = vld [vmem:[#allocation8 + $0xc6c] sm:$0xf0] }
 0x308   : > { %v4986_v3 = vadd.f32 %v4985_v4, %v4957_v18  ;;  %5187 = vmatmul.bf16.gmra.mxu0 %v16890_v20  ;;  %v12279_v34 = vld [vmem:[#allocation8 + $0x850] sm:$0xf] }
 0x309   : > { %5216 = vmatmul.bf16.gmra.mxu1 %v16893_v23  ;;  %v15389_v29 = vld [vmem:[#allocation8 + $0x86c] sm:$0xf0] }
 0x30a   : > { %v5011_v1 = vpop.f32.mrf.mxu2  ;;  %5324 = vmatpush.bf16.msrb.mxu1 %v12568_v2  ;;  %v13047_v53 = vld [vmem:[#allocation8 + $0xe50] sm:$0xf] }
 0x30b   : > { %v5012_v14 = vadd.f32 %v5011_v1, %v4983_v10  ;;  %v5040_v63 = vpop.f32.mrf.mxu3  ;;  %v12791_v10 = vld [vmem:[#allocation8 + $0xc50] sm:$0xf]  ;;  %v12280_v1 = vor.u32 %v15389_v29, %v12279_v34 }
 0x30c   : > { %v12792_v24 = vor.u32 %v15517_v40, %v12791_v10  ;;  %v15581_v28 = vld [vmem:[#allocation8 + $0xe6c] sm:$0xf0] }
 0x30d   : > { %v17281_v0 = vadd.f32 %v5040_v63, %v5012_v14  ;;  %v4958_v26 = vpop.f32.mrf.mxu0  ;;  %v13048_v5 = vor.u32 %v15581_v28, %v13047_v53  ;;  %v12535_v33 = vld [vmem:[#allocation8 + $0xa50] sm:$0xf]  ;;  %5296 = vmatpush.bf16.msrb.mxu0 %v12280_v1 }
 0x30e   : > { %v4959_v16 = vadd.f32 %v4958_v26, %v17266_v42  ;;  %v4987_v18 = vpop.f32.mrf.mxu1  ;;  %v15453_v14 = vld [vmem:[#allocation8 + $0xa6c] sm:$0xf0]  ;;  %5354 = vmatpush.bf16.msrb.mxu2 %v12792_v24 }
 0x30f   : > { %5245 = vmatmul.bf16.gmra.mxu2 %v16900_v45  ;;  %v12536_v62 = vor.u32 %v15453_v14, %v12535_v33  ;;  %5383 = vmatpush.bf16.msrb.mxu3 %v13048_v5  ;;  %v12247_v38 = vld [vmem:[#allocation8 + $0x810] sm:$0xf] }
 0x310   : > { %v4988_v4 = vadd.f32 %v4987_v18, %v4959_v16  ;;  %5274 = vmatmul.bf16.gmra.mxu3 %v16902_v50  ;;  %v15381_v26 = vld [vmem:[#allocation8 + $0x82c] sm:$0xf0] }
 0x311   : > { %v12503_v2 = vld [vmem:[#allocation8 + $0xa10] sm:$0xf]  ;;  %5325 = vmatpush.bf16.msrb.mxu1 %v12536_v62  ;;  %v12248_v10 = vor.u32 %v15381_v26, %v12247_v38 }
 0x312   : > { %v5014_v36 = vpop.f32.mrf.mxu2  ;;  %v15445_v40 = vld [vmem:[#allocation8 + $0xa2c] sm:$0xf0] }
 0x313   : > { %v5015_v63 = vadd.f32 %v5014_v36, %v4986_v3  ;;  %v5043_v35 = vpop.f32.mrf.mxu3  ;;  %v12504_v53 = vor.u32 %v15445_v40, %v12503_v2  ;;  %v12759_v3 = vld [vmem:[#allocation8 + $0xc10] sm:$0xf]  ;;  %5297 = vmatpush.bf16.msrb.mxu0 %v12248_v10  ;;  %v15305_v10 = vld [vmem:[#allocation8 + $0x5d4] sm:$0xf] }
 0x314   : > { %v15509_v24 = vld [vmem:[#allocation8 + $0xc2c] sm:$0xf0]  ;;  %v11961_v40 = vld [vmem:[#allocation8 + $0x5f0] sm:$0xf0] }
 0x315   : > { %v17286_v16 = vadd.f32 %v5043_v35, %v5015_v63  ;;  %v4961_v18 = vpop.f32.mrf.mxu0  ;;  %v12760_v36 = vor.u32 %v15509_v24, %v12759_v3  ;;  %v13015_v1 = vld [vmem:[#allocation8 + $0xe10] sm:$0xf]  ;;  %5326 = vmatpush.bf16.msrb.mxu1 %v12504_v53  ;;  %v11449_v53 = vld [vmem:[#allocation8 + $0x1f0] sm:$0xf0] }
 0x316   : > { %v4962_v34 = vadd.f32 %v4961_v18, %v17266_v42  ;;  %v4990_v29 = vpop.f32.mrf.mxu1  ;;  %v15573_v5 = vld [vmem:[#allocation8 + $0xe2c] sm:$0xf0]  ;;  %v12217_v3 = vld [vmem:[#allocation8 + $0x7f0] sm:$0xf0] }
 0x317   : > { %v13016_v14 = vor.u32 %v15573_v5, %v13015_v1  ;;  %5355 = vmatpush.bf16.msrb.mxu2 %v12760_v36 }
 0x318   : > { %v4991_v28 = vadd.f32 %v4990_v29, %v4962_v34  ;;  %5192 = vmatmul.bf16.gmra.mxu0 %v16910_v25  ;;  %v15177_v34 = vld [vmem:[#allocation8 + $0x1d4] sm:$0xf]  ;;  %v11964_v29 = vor.u32 %v15305_v10, %v11961_v40 }
 0x319   : > { %5221 = vmatmul.bf16.gmra.mxu1 %v16913_v32  ;;  %5384 = vmatpush.bf16.msrb.mxu3 %v13016_v14  ;;  %v11452_v36 = vor.u32 %v15177_v34, %v11449_v53  ;;  %v11929_v34 = vld [vmem:[#allocation8 + $0x5b0] sm:$0xf0] }
 0x31a   : > { %v5016_v33 = vpop.f32.mrf.mxu2  ;;  %v11417_v53 = vld [vmem:[#allocation8 + $0x1b0] sm:$0xf0] }
 0x31b   : > { %v5017_v63 = vadd.f32 %v5016_v33, %v4988_v4  ;;  %v5045_v35 = vpop.f32.mrf.mxu3  ;;  %v15369_v4 = vld [vmem:[#allocation8 + $0x7d4] sm:$0xf]  ;;  %5464 = vmatpush.bf16.msra.mxu2 %v11964_v29  ;;  %5406 = vmatpush.bf16.msra.mxu0 %v11452_v36 }
 0x31c   : > { %v12220_v1 = vor.u32 %v15369_v4, %v12217_v3  ;;  %v15169_v29 = vld [vmem:[#allocation8 + $0x194] sm:$0xf] }
 0x31d   : > { %v17291_v62 = vadd.f32 %v5045_v35, %v5017_v63  ;;  %v4963_v38 = vpop.f32.mrf.mxu0  ;;  %v15361_v4 = vld [vmem:[#allocation8 + $0x794] sm:$0xf] }
 0x31e   : > { %v4964_v26 = vadd.f32 %v4963_v38, %v17266_v42  ;;  %v4992_v2 = vpop.f32.mrf.mxu1  ;;  %5493 = vmatpush.bf16.msra.mxu3 %v12220_v1  ;;  %v12185_v36 = vld [vmem:[#allocation8 + $0x7b0] sm:$0xf0] }
 0x31f   : > { %5250 = vmatmul.bf16.gmra.mxu2 %v16920_v54 }
 0x320   : > { %v4993_v18 = vadd.f32 %v4992_v2, %v4964_v26  ;;  %5279 = vmatmul.bf16.gmra.mxu3 %v16922_v56  ;;  %v15241_v26 = vld [vmem:[#allocation8 + $0x3d4] sm:$0xf] }
 0x321   : > { %v11705_v2 = vld [vmem:[#allocation8 + $0x3f0] sm:$0xf0] }
 0x322   : > { %v5019_v24 = vpop.f32.mrf.mxu2  ;;  %v11708_v40 = vor.u32 %v15241_v26, %v11705_v2  ;;  %v15233_v2 = vld [vmem:[#allocation8 + $0x394] sm:$0xf] }
 0x323   : > { %v5020_v5 = vadd.f32 %v5019_v24, %v4991_v28  ;;  %v5048_v33 = vpop.f32.mrf.mxu3  ;;  %v11932_v28 = vor.u32 %v15297_v6, %v11929_v34  ;;  %v11420_v24 = vor.u32 %v15169_v29, %v11417_v53  ;;  %v15289_v34 = vld [vmem:[#allocation8 + $0x554] sm:$0xf] }
 0x324   : > { %5435 = vmatpush.bf16.msra.mxu1 %v11708_v40  ;;  %v11673_v40 = vld [vmem:[#allocation8 + $0x3b0] sm:$0xf0] }
 0x325   : > { %v17296_v14 = vadd.f32 %v5048_v33, %v5020_v5  ;;  %v4966_v63 = vpop.f32.mrf.mxu0  ;;  %5465 = vmatpush.bf16.msra.mxu2 %v11932_v28  ;;  %v12188_v33 = vor.u32 %v15361_v4, %v12185_v36  ;;  %5407 = vmatpush.bf16.msra.mxu0 %v11420_v24  ;;  %v11676_v29 = vor.u32 %v15233_v2, %v11673_v40  ;;  %v11897_v28 = vld [vmem:[#allocation8 + $0x570] sm:$0xf0] }
 0x326   : > { %v4967_v35 = vadd.f32 %v4966_v63, %v17266_v42  ;;  %v4995_v38 = vpop.f32.mrf.mxu1  ;;  %v15161_v53 = vld [vmem:[#allocation8 + $0x154] sm:$0xf]  ;;  %v11900_v36 = vor.u32 %v15289_v34, %v11897_v28 }
 0x327   : > { %5494 = vmatpush.bf16.msra.mxu3 %v12188_v33  ;;  %v11385_v4 = vld [vmem:[#allocation8 + $0x170] sm:$0xf0] }
 0x328   : > { %v4996_v10 = vadd.f32 %v4995_v38, %v4967_v35  ;;  %5197 = vmatmul.bf16.gmra.mxu0 %v16930_v15  ;;  %5436 = vmatpush.bf16.msra.mxu1 %v11676_v29  ;;  %v15225_v2 = vld [vmem:[#allocation8 + $0x354] sm:$0xf] }
 0x329   : > { %5226 = vmatmul.bf16.gmra.mxu1 %v16933_v22  ;;  %5466 = vmatpush.bf16.msra.mxu2 %v11900_v36  ;;  %v11641_v40 = vld [vmem:[#allocation8 + $0x370] sm:$0xf0] }
 0x32a   : > { %v5021_v3 = vpop.f32.mrf.mxu2  ;;  %v15281_v34 = vld [vmem:[#allocation8 + $0x514] sm:$0xf] }
 0x32b   : > { %v5022_v1 = vadd.f32 %v5021_v3, %v4993_v18  ;;  %v5050_v5 = vpop.f32.mrf.mxu3  ;;  %v15153_v28 = vld [vmem:[#allocation8 + $0x114] sm:$0xf] }
 0x32d   : > { %v17301_v63 = vadd.f32 %v5050_v5, %v5022_v1  ;;  %v4968_v35 = vpop.f32.mrf.mxu0  ;;  %v11388_v1 = vor.u32 %v15161_v53, %v11385_v4  ;;  %v15353_v5 = vld [vmem:[#allocation8 + $0x754] sm:$0xf] }
 0x32e   : > { %v4969_v38 = vadd.f32 %v4968_v35, %v17266_v42  ;;  %v4997_v26 = vpop.f32.mrf.mxu1  ;;  %v12153_v42 = vld [vmem:[#allocation8 + $0x770] sm:$0xf0] }
 0x32f   : > { %5255 = vmatmul.bf16.gmra.mxu2 %v16946_v44  ;;  %v12156_v33 = vor.u32 %v15353_v5, %v12153_v42  ;;  %5408 = vmatpush.bf16.msra.mxu0 %v11388_v1  ;;  %v11353_v53 = vld [vmem:[#allocation8 + $0x130] sm:$0xf0] }
 0x330   : > { %v4998_v6 = vadd.f32 %v4997_v26, %v4969_v38  ;;  %5284 = vmatmul.bf16.gmra.mxu3 %v16948_v46  ;;  %v15345_v4 = vld [vmem:[#allocation8 + $0x714] sm:$0xf] }
 0x331   : > { %5495 = vmatpush.bf16.msra.mxu3 %v12156_v33 }
 0x332   : > { %v5024_v18 = vpop.f32.mrf.mxu2 }
 0x333   : > { %v5025_v3 = vadd.f32 %v5024_v18, %v4996_v10  ;;  %v5053_v24 = vpop.f32.mrf.mxu3  ;;  %v11644_v10 = vor.u32 %v15225_v2, %v11641_v40  ;;  %v11865_v18 = vld [vmem:[#allocation8 + $0x530] sm:$0xf0] }
 0x334   : > { %v11868_v29 = vor.u32 %v15281_v34, %v11865_v18  ;;  %v15217_v2 = vld [vmem:[#allocation8 + $0x314] sm:$0xf] }
 0x335   : > { %v17306_v35 = vadd.f32 %v5053_v24, %v5025_v3  ;;  %v5067_v38 = vpop.f32.mrf.mxu0  ;;  %5437 = vmatpush.bf16.msra.mxu1 %v11644_v10  ;;  %v11356_v24 = vor.u32 %v15153_v28, %v11353_v53  ;;  %v11609_v40 = vld [vmem:[#allocation8 + $0x330] sm:$0xf0] }
 0x336   : > { %v5068_v26 = vadd.f32 %v5067_v38, %v17276_v61  ;;  %v5096_v8 = vpop.f32.mrf.mxu1  ;;  %v12121_v61 = vld [vmem:[#allocation8 + $0x730] sm:$0xf0]  ;;  %5467 = vmatpush.bf16.msra.mxu2 %v11868_v29  ;;  %v11612_v34 = vor.u32 %v15217_v2, %v11609_v40 }
 0x337   : > { %v12124_v5 = vor.u32 %v15345_v4, %v12121_v61  ;;  %5409 = vmatpush.bf16.msra.mxu0 %v11356_v24  ;;  %v15273_v10 = vld [vmem:[#allocation8 + $0x4d4] sm:$0xf] }
 0x338   : > { %v5097_v49 = vadd.f32 %v5096_v8, %v5068_v26  ;;  %5298 = vmatmul.bf16.vlgmr.msrb.gmra.mxu0 %v16962_v57  ;;  %v11833_v18 = vld [vmem:[#allocation8 + $0x4f0] sm:$0xf0] }
 0x339   : > { %5327 = vmatmul.bf16.vlgmr.msrb.gmra.mxu1 %v16965_v31  ;;  %5496 = vmatpush.bf16.msra.mxu3 %v12124_v5  ;;  %v15145_v29 = vld [vmem:[#allocation8 + $0xd4] sm:$0xf] }
 0x33a   : > { %v5026_v3 = vpop.f32.mrf.mxu2  ;;  %v11321_v28 = vld [vmem:[#allocation8 + $0xf0] sm:$0xf0]  ;;  %5438 = vmatpush.bf16.msra.mxu1 %v11612_v34 }
 0x33b   : > { %v5027_v36 = vadd.f32 %v5026_v3, %v4998_v6  ;;  %v5055_v1 = vpop.f32.mrf.mxu3  ;;  %v11836_v3 = vor.u32 %v15273_v10, %v11833_v18  ;;  %v11324_v24 = vor.u32 %v15145_v29, %v11321_v28  ;;  %v15337_v61 = vld [vmem:[#allocation8 + $0x6d4] sm:$0xf] }
 0x33c   : > { %v11577_v2 = vld [vmem:[#allocation8 + $0x2f0] sm:$0xf0] }
 0x33d   : > { %v17311_v8 = vadd.f32 %v5055_v1, %v5027_v36  ;;  %v5069_v42 = vpop.f32.mrf.mxu0  ;;  %5468 = vmatpush.bf16.msra.mxu2 %v11836_v3  ;;  %5410 = vmatpush.bf16.msra.mxu0 %v11324_v24  ;;  %v15265_v10 = vld [vmem:[#allocation8 + $0x494] sm:$0xf] }
 0x33e   : > { %v5070_v33 = vadd.f32 %v5069_v42, %v17281_v0  ;;  %v5098_v38 = vpop.f32.mrf.mxu1  ;;  %v12089_v0 = vld [vmem:[#allocation8 + $0x6f0] sm:$0xf0] }
 0x33f   : > { %5356 = vmatmul.bf16.vlgmr.msrb.gmra.mxu2 %v16972_v58  ;;  %v12092_v36 = vor.u32 %v15337_v61, %v12089_v0  ;;  %v15137_v18 = vld [vmem:[#allocation8 + $0x94] sm:$0xf] }
 0x340   : > { %v5099_v26 = vadd.f32 %v5098_v38, %v5070_v33  ;;  %5385 = vmatmul.bf16.vlgmr.msrb.gmra.mxu3 %v16974_v59  ;;  %v15209_v38 = vld [vmem:[#allocation8 + $0x2d4] sm:$0xf] }
 0x341   : > { %5497 = vmatpush.bf16.msra.mxu3 %v12092_v36  ;;  %v11289_v29 = vld [vmem:[#allocation8 + $0xb0] sm:$0xf0] }
 0x342   : > { %v5125_v6 = vpop.f32.mrf.mxu2  ;;  %v15329_v28 = vld [vmem:[#allocation8 + $0x694] sm:$0xf] }
 0x343   : > { %v5126_v53 = vadd.f32 %v5125_v6, %v5097_v49  ;;  %v5154_v4 = vpop.f32.mrf.mxu3  ;;  %v11580_v49 = vor.u32 %v15209_v38, %v11577_v2  ;;  %v11801_v6 = vld [vmem:[#allocation8 + $0x4b0] sm:$0xf0] }
 0x344   : > { %v11804_v34 = vor.u32 %v15265_v10, %v11801_v6  ;;  %v15201_v0 = vld [vmem:[#allocation8 + $0x294] sm:$0xf] }
 0x345   : > { %v5155_v1 = vadd.f32 %v5154_v4, %v5126_v53  ;;  %v5072_v5 = vpop.f32.mrf.mxu0  ;;  %5439 = vmatpush.bf16.msra.mxu1 %v11580_v49  ;;  %v11292_v4 = vor.u32 %v15137_v18, %v11289_v29  ;;  %v11545_v36 = vld [vmem:[#allocation8 + $0x2b0] sm:$0xf0] }
 0x346   : > { %v5073_v42 = vadd.f32 %v5072_v5, %v17286_v16  ;;  %v5101_v33 = vpop.f32.mrf.mxu1  ;;  %v12057_v16 = vld [vmem:[#allocation8 + $0x6b0] sm:$0xf0]  ;;  %5469 = vmatpush.bf16.msra.mxu2 %v11804_v34 }
 0x347   : > { %v12060_v61 = vor.u32 %v15329_v28, %v12057_v16  ;;  %5411 = vmatpush.bf16.msra.mxu0 %v11292_v4  ;;  %v6105_v10 = vmax.f32 %v5155_v1, 0.0  ;;  %v11257_v34 = vld [vmem:[#allocation8 + $0x70] sm:$0xf0] }
 0x348   : > { %v5102_v40 = vadd.f32 %v5101_v33, %v5073_v42  ;;  %5303 = vmatmul.bf16.gmra.mxu0 %v16982_v39  ;;  %v11548_v33 = vor.u32 %v15201_v0, %v11545_v36  ;;  %v15193_v18 = vld [vmem:[#allocation8 + $0x254] sm:$0xf] }
 0x349   : > { %5332 = vmatmul.bf16.gmra.mxu1 %v16985_v43  ;;  %5498 = vmatpush.bf16.msra.mxu3 %v12060_v61  ;;  %v15257_v28 = vld [vmem:[#allocation8 + $0x454] sm:$0xf] }
 0x34a   : > { %v5127_v53 = vpop.f32.mrf.mxu2  ;;  %5440 = vmatpush.bf16.msra.mxu1 %v11548_v33  ;;  %v15321_v16 = vld [vmem:[#allocation8 + $0x654] sm:$0xf] }
 0x34b   : > { %v5128_v3 = vadd.f32 %v5127_v53, %v5099_v26  ;;  %v5156_v24 = vpop.f32.mrf.mxu3  ;;  %v15129_v26 = vld [vmem:[#allocation8 + $0x54] sm:$0xf] }
 0x34c   : > { %v11769_v53 = vld [vmem:[#allocation8 + $0x470] sm:$0xf0]  ;;  %v11260_v4 = vor.u32 %v15129_v26, %v11257_v34 }
 0x34d   : > { %v5157_v5 = vadd.f32 %v5156_v24, %v5128_v3  ;;  %v5074_v42 = vpop.f32.mrf.mxu0  ;;  %v12025_v24 = vld [vmem:[#allocation8 + $0x670] sm:$0xf0] }
 0x34e   : > { %v5075_v38 = vadd.f32 %v5074_v42, %v17291_v62  ;;  %v5103_v2 = vpop.f32.mrf.mxu1  ;;  %v11772_v62 = vor.u32 %v15257_v28, %v11769_v53  ;;  %v11513_v1 = vld [vmem:[#allocation8 + $0x270] sm:$0xf0]  ;;  %5412 = vmatpush.bf16.msra.mxu0 %v11260_v4  ;;  %v12028_v36 = vor.u32 %v15321_v16, %v12025_v24 }
 0x34f   : > { %v6113_v6 = vmax.f32 %v5157_v5, 0.0  ;;  %5361 = vmatmul.bf16.gmra.mxu2 %v16992_v9  ;;  %v11516_v5 = vor.u32 %v15193_v18, %v11513_v1  ;;  %v15121_v42 = vld [vmem:[#allocation8 + $0x14] sm:$0xf] }
 0x350   : > { %v5104_v49 = vadd.f32 %v5103_v2, %v5075_v38  ;;  %5390 = vmatmul.bf16.gmra.mxu3 %v16994_v17  ;;  %5470 = vmatpush.bf16.msra.mxu2 %v11772_v62  ;;  %v11225_v33 = vld [vmem:[#allocation8 + $0x30] sm:$0xf0] }
 0x351   : > { %v17322_v29 = vpack.c.bf16 %v6113_v6, %v6105_v10  ;;  %v15185_v38 = vld [vmem:[#allocation8 + $0x214] sm:$0xf]  ;;  %5499 = vmatpush.bf16.msra.mxu3 %v12028_v36  ;;  %5441 = vmatpush.bf16.msra.mxu1 %v11516_v5  ;;  %v11228_v6 = vor.u32 %v15121_v42, %v11225_v33 }
 0x352   : > { %v5130_v3 = vpop.f32.mrf.mxu2  ;;  %v11481_v26 = vld [vmem:[#allocation8 + $0x230] sm:$0xf0] }
 0x353   : > { %19102 = vst [vmem:[#allocation32_spill] sm:$0xff] %v17322_v29  ;;  %v5131_v61 = vadd.f32 %v5130_v3, %v5102_v40  ;;  %v5159_v0 = vpop.f32.mrf.mxu3  ;;  %v11484_v53 = vor.u32 %v15185_v38, %v11481_v26  ;;  %5413 = vmatpush.bf16.msra.mxu0 %v11228_v6  ;;  %v15249_v4 = vld [vmem:[#allocation8 + $0x414] sm:$0xf] }
 0x354   : > { %v11737_v18 = vld [vmem:[#allocation8 + $0x430] sm:$0xf0] }
 0x355   : > { %v5160_v2 = vadd.f32 %v5159_v0, %v5131_v61  ;;  %v5077_v10 = vpop.f32.mrf.mxu0  ;;  %v11740_v16 = vor.u32 %v15249_v4, %v11737_v18  ;;  %v15313_v3 = vld [vmem:[#allocation8 + $0x614] sm:$0xf]  ;;  %5442 = vmatpush.bf16.msra.mxu1 %v11484_v53 }
 0x356   : > { %v5078_v34 = vadd.f32 %v5077_v10, %v17296_v14  ;;  %v5106_v28 = vpop.f32.mrf.mxu1  ;;  %v11993_v62 = vld [vmem:[#allocation8 + $0x630] sm:$0xf0] }
 0x357   : > { %v11996_v1 = vor.u32 %v15313_v3, %v11993_v62  ;;  %5471 = vmatpush.bf16.msra.mxu2 %v11740_v16  ;;  %v6121_v33 = vmax.f32 %v5160_v2, 0.0  ;;  %v15561_v26 = vld [vmem:[#allocation8 + $0xdd4] sm:$0xf] }
 0x358   : > { %v5107_v40 = vadd.f32 %v5106_v28, %v5078_v34  ;;  %5308 = vmatmul.bf16.gmra.mxu0 %v17002_v11  ;;  %v12985_v34 = vld [vmem:[#allocation8 + $0xdf0] sm:$0xf0] }
 0x359   : > { %5337 = vmatmul.bf16.gmra.mxu1 %v17005_v21  ;;  %5500 = vmatpush.bf16.msra.mxu3 %v11996_v1  ;;  %v12988_v53 = vor.u32 %v15561_v26, %v12985_v34  ;;  %v12473_v4 = vld [vmem:[#allocation8 + $0x9f0] sm:$0xf0] }
 0x35a   : > { %v5132_v24 = vpop.f32.mrf.mxu2  ;;  %v15625_v18 = vld [vmem:[#allocation8 + $0xfd4] sm:$0xf] }
 0x35b   : > { %v5133_v61 = vadd.f32 %v5132_v24, %v5104_v49  ;;  %v5161_v0 = vpop.f32.mrf.mxu3  ;;  %v15433_v49 = vld [vmem:[#allocation8 + $0x9d4] sm:$0xf]  ;;  %5580 = vmatpush.bf16.msrb.mxu2 %v12988_v53 }
 0x35c   : > { %v13241_v16 = vld [vmem:[#allocation8 + $0xff0] sm:$0xf0]  ;;  %v12476_v62 = vor.u32 %v15433_v49, %v12473_v4 }
 0x35d   : > { %v5162_v14 = vadd.f32 %v5161_v0, %v5133_v61  ;;  %v5079_v36 = vpop.f32.mrf.mxu0  ;;  %v13244_v2 = vor.u32 %v15625_v18, %v13241_v16  ;;  %v15497_v61 = vld [vmem:[#allocation8 + $0xbd4] sm:$0xf] }
 0x35e   : > { %v5080_v5 = vadd.f32 %v5079_v36, %v17301_v63  ;;  %v5108_v42 = vpop.f32.mrf.mxu1  ;;  %5522 = vmatpush.bf16.msrb.mxu0 %v12476_v62  ;;  %v12729_v0 = vld [vmem:[#allocation8 + $0xbf0] sm:$0xf0] }
 0x35f   : > { %v6129_v38 = vmax.f32 %v5162_v14, 0.0  ;;  %5366 = vmatmul.bf16.gmra.mxu2 %v17012_v51  ;;  %5609 = vmatpush.bf16.msrb.mxu3 %v13244_v2  ;;  %v15425_v26 = vld [vmem:[#allocation8 + $0x994] sm:$0xf] }
 0x360   : > { %v5109_v10 = vadd.f32 %v5108_v42, %v5080_v5  ;;  %5395 = vmatmul.bf16.gmra.mxu3 %v17014_v52  ;;  %v12732_v5 = vor.u32 %v15497_v61, %v12729_v0  ;;  %v12441_v34 = vld [vmem:[#allocation8 + $0x9b0] sm:$0xf0] }
 0x361   : > { %v17330_v6 = vpack.c.bf16 %v6129_v38, %v6121_v33  ;;  %v15553_v33 = vld [vmem:[#allocation8 + $0xd94] sm:$0xf]  ;;  %v12444_v53 = vor.u32 %v15425_v26, %v12441_v34 }
 0x362   : > { %v5135_v28 = vpop.f32.mrf.mxu2  ;;  %5551 = vmatpush.bf16.msrb.mxu1 %v12732_v5  ;;  %v15617_v49 = vld [vmem:[#allocation8 + $0xf94] sm:$0xf] }
 0x363   : > { %19103 = vst [vmem:[#allocation33_spill] sm:$0xff] %v17330_v6  ;;  %v5136_v3 = vadd.f32 %v5135_v28, %v5107_v40  ;;  %v5164_v63 = vpop.f32.mrf.mxu3  ;;  %v12953_v40 = vld [vmem:[#allocation8 + $0xdb0] sm:$0xf0]  ;;  %5523 = vmatpush.bf16.msrb.mxu0 %v12444_v53  ;;  %v17340_v53 = vld [vmem:[#allocation10] sm:$0xff]  ;;  %v11935_v6 = vld [vmem:[#allocation8 + $0x598] sm:$0xf] }
 0x364   : > { %v12956_v38 = vor.u32 %v15553_v33, %v12953_v40  ;;  %v13209_v4 = vld [vmem:[#allocation8 + $0xfb0] sm:$0xf0] }
 0x365   : > { %v5165_v24 = vadd.f32 %v5164_v63, %v5136_v3  ;;  %v5082_v1 = vpop.f32.mrf.mxu0  ;;  %v15489_v62 = vld [vmem:[#allocation8 + $0xb94] sm:$0xf] }
 0x366   : > { %v5083_v14 = vadd.f32 %v5082_v1, %v17306_v35  ;;  %v5111_v36 = vpop.f32.mrf.mxu1  ;;  %5581 = vmatpush.bf16.msrb.mxu2 %v12956_v38  ;;  %v13212_v35 = vor.u32 %v15617_v49, %v13209_v4  ;;  %v12697_v2 = vld [vmem:[#allocation8 + $0xbb0] sm:$0xf0] }
 0x367   : > { %v12700_v0 = vor.u32 %v15489_v62, %v12697_v2  ;;  %v12921_v33 = vld [vmem:[#allocation8 + $0xd70] sm:$0xf0] }
 0x368   : > { %v5112_v42 = vadd.f32 %v5111_v36, %v5083_v14  ;;  %5313 = vmatmul.bf16.gmra.mxu0 %v17022_v37  ;;  %5610 = vmatpush.bf16.msrb.mxu3 %v13212_v35  ;;  %v6137_v14 = vmax.f32 %v5165_v24, 0.0  ;;  %v15417_v40 = vld [vmem:[#allocation8 + $0x954] sm:$0xf]  ;;  %v17343_v24 = vperm.slane %v17340_v53, 4 }
 0x369   : > { %5342 = vmatmul.bf16.gmra.mxu1 %v17025_v41  ;;  %v12409_v34 = vld [vmem:[#allocation8 + $0x970] sm:$0xf0] }
 0x36a   : > { %v5137_v28 = vpop.f32.mrf.mxu2  ;;  %5552 = vmatpush.bf16.msrb.mxu1 %v12700_v0  ;;  %v15609_v49 = vld [vmem:[#allocation8 + $0xf54] sm:$0xf]  ;;  %v12412_v4 = vor.u32 %v15417_v40, %v12409_v34 }
 0x36b   : > { %v5138_v18 = vadd.f32 %v5137_v28, %v5109_v10  ;;  %v5166_v16 = vpop.f32.mrf.mxu3  ;;  %v15545_v10 = vld [vmem:[#allocation8 + $0xd54] sm:$0xf] }
 0x36c   : > { %v12924_v26 = vor.u32 %v15545_v10, %v12921_v33  ;;  %v13177_v28 = vld [vmem:[#allocation8 + $0xf70] sm:$0xf0]  ;;  %5524 = vmatpush.bf16.msrb.mxu0 %v12412_v4 }
 0x36d   : > { %v5167_v3 = vadd.f32 %v5166_v16, %v5138_v18  ;;  %v5084_v63 = vpop.f32.mrf.mxu0  ;;  %v13180_v18 = vor.u32 %v15609_v49, %v13177_v28  ;;  %v15481_v62 = vld [vmem:[#allocation8 + $0xb54] sm:$0xf] }
 0x36e   : > { %v5085_v1 = vadd.f32 %v5084_v63, %v17311_v8  ;;  %v5113_v61 = vpop.f32.mrf.mxu1  ;;  %5582 = vmatpush.bf16.msrb.mxu2 %v12924_v26  ;;  %v12665_v2 = vld [vmem:[#allocation8 + $0xb70] sm:$0xf0] }
 0x36f   : > { %v6145_v36 = vmax.f32 %v5167_v3, 0.0  ;;  %5371 = vmatmul.bf16.gmra.mxu2 %v17032_v19  ;;  %5611 = vmatpush.bf16.msrb.mxu3 %v13180_v18  ;;  %v12668_v0 = vor.u32 %v15481_v62, %v12665_v2  ;;  %v12889_v10 = vld [vmem:[#allocation8 + $0xd30] sm:$0xf0] }
 0x370   : > { %v5114_v5 = vadd.f32 %v5113_v61, %v5085_v1  ;;  %5400 = vmatmul.bf16.gmra.mxu3 %v17034_v13  ;;  %v15409_v33 = vld [vmem:[#allocation8 + $0x914] sm:$0xf] }
 0x371   : > { %v17338_v38 = vpack.c.bf16 %v6145_v36, %v6137_v14  ;;  %5553 = vmatpush.bf16.msrb.mxu1 %v12668_v0  ;;  %v15537_v36 = vld [vmem:[#allocation8 + $0xd14] sm:$0xf] }
 0x372   : > { %v5140_v8 = vpop.f32.mrf.mxu2  ;;  %v12377_v40 = vld [vmem:[#allocation8 + $0x930] sm:$0xf0] }
 0x373   : > { %19104 = vst [vmem:[#allocation34_spill] sm:$0xff] %v17338_v38  ;;  %v5141_v16 = vadd.f32 %v5140_v8, %v5112_v42  ;;  %v5169_v35 = vpop.f32.mrf.mxu3  ;;  %v12892_v42 = vor.u32 %v15537_v36, %v12889_v10  ;;  %v15601_v26 = vld [vmem:[#allocation8 + $0xf14] sm:$0xf]  ;;  %v12380_v49 = vor.u32 %v15409_v33, %v12377_v40 }
 0x374   : > { %v13145_v28 = vld [vmem:[#allocation8 + $0xf30] sm:$0xf0] }
 0x375   : > { %v5170_v3 = vadd.f32 %v5169_v35, %v5141_v16  ;;  %v5183_v63 = vpop.f32.mrf.mxu0  ;;  %5583 = vmatpush.bf16.msrb.mxu2 %v12892_v42  ;;  %v13148_v18 = vor.u32 %v15601_v26, %v13145_v28  ;;  %5525 = vmatpush.bf16.msrb.mxu0 %v12380_v49  ;;  %v12633_v62 = vld [vmem:[#allocation8 + $0xb30] sm:$0xf0] }
 0x376   : > { %v5184_v1 = vadd.f32 %v5183_v63, %v17343_v24  ;;  %v5212_v61 = vpop.f32.mrf.mxu1  ;;  %v15473_v63 = vld [vmem:[#allocation8 + $0xb14] sm:$0xf] }
 0x377   : > { %5612 = vmatpush.bf16.msrb.mxu3 %v13148_v18  ;;  %v6153_v0 = vmax.f32 %v5170_v3, 0.0  ;;  %v12857_v42 = vld [vmem:[#allocation8 + $0xcf0] sm:$0xf0] }
 0x378   : > { %v5213_v14 = vadd.f32 %v5212_v61, %v5184_v1  ;;  %5414 = vmatmul.bf16.vlgmr.msra.gmra.mxu0 %v16870_v27  ;;  %v12636_v61 = vor.u32 %v15473_v63, %v12633_v62  ;;  %v15401_v33 = vld [vmem:[#allocation8 + $0x8d4] sm:$0xf] }
 0x379   : > { %5443 = vmatmul.bf16.vlgmr.msra.gmra.mxu1 %v16873_v30  ;;  %v15593_v49 = vld [vmem:[#allocation8 + $0xed4] sm:$0xf] }
 0x37a   : > { %v5142_v34 = vpop.f32.mrf.mxu2  ;;  %5554 = vmatpush.bf16.msrb.mxu1 %v12636_v61  ;;  %v13113_v28 = vld [vmem:[#allocation8 + $0xef0] sm:$0xf0] }
 0x37b   : > { %v5143_v8 = vadd.f32 %v5142_v34, %v5114_v5  ;;  %v5171_v4 = vpop.f32.mrf.mxu3  ;;  %v15529_v5 = vld [vmem:[#allocation8 + $0xcd4] sm:$0xf]  ;;  %v13116_v18 = vor.u32 %v15593_v49, %v13113_v28 }
 0x37c   : > { %v12860_v26 = vor.u32 %v15529_v5, %v12857_v42  ;;  %v12345_v34 = vld [vmem:[#allocation8 + $0x8f0] sm:$0xf0] }
 0x37d   : > { %v5172_v16 = vadd.f32 %v5171_v4, %v5143_v8  ;;  %v5185_v35 = vpop.f32.mrf.mxu0  ;;  %v12348_v4 = vor.u32 %v15401_v33, %v12345_v34  ;;  %5613 = vmatpush.bf16.msrb.mxu3 %v13116_v18  ;;  %v15465_v62 = vld [vmem:[#allocation8 + $0xad4] sm:$0xf] }
 0x37e   : > { %v5186_v2 = vadd.f32 %v5185_v35, %v17343_v24  ;;  %v5214_v1 = vpop.f32.mrf.mxu1  ;;  %5584 = vmatpush.bf16.msrb.mxu2 %v12860_v26  ;;  %v15521_v5 = vld [vmem:[#allocation8 + $0xc94] sm:$0xf] }
 0x37f   : > { %v6161_v36 = vmax.f32 %v5172_v16, 0.0  ;;  %5472 = vmatmul.bf16.vlgmr.msra.gmra.mxu2 %v16880_v47  ;;  %5526 = vmatpush.bf16.msrb.mxu0 %v12348_v4  ;;  %v12825_v42 = vld [vmem:[#allocation8 + $0xcb0] sm:$0xf0] }
 0x380   : > { %v5215_v10 = vadd.f32 %v5214_v1, %v5186_v2  ;;  %5501 = vmatmul.bf16.vlgmr.msra.gmra.mxu3 %v16882_v48  ;;  %v12601_v2 = vld [vmem:[#allocation8 + $0xaf0] sm:$0xf0] }
 0x381   : > { %v17351_v40 = vpack.c.bf16 %v6161_v36, %v6153_v0  ;;  %v12604_v0 = vor.u32 %v15465_v62, %v12601_v2  ;;  %v15393_v33 = vld [vmem:[#allocation8 + $0x894] sm:$0xf] }
 0x382   : > { %v5241_v8 = vpop.f32.mrf.mxu2  ;;  %v12313_v26 = vld [vmem:[#allocation8 + $0x8b0] sm:$0xf0] }
 0x383   : > { %19105 = vst [vmem:[#allocation35_spill] sm:$0xff] %v17351_v40  ;;  %v5242_v3 = vadd.f32 %v5241_v8, %v5213_v14  ;;  %v5270_v16 = vpop.f32.mrf.mxu3  ;;  %5555 = vmatpush.bf16.msrb.mxu1 %v12604_v0  ;;  %v12828_v14 = vor.u32 %v15521_v5, %v12825_v42  ;;  %v15585_v34 = vld [vmem:[#allocation8 + $0xe94] sm:$0xf]  ;;  %v12316_v28 = vor.u32 %v15393_v33, %v12313_v26 }
 0x384   : > { %v13081_v8 = vld [vmem:[#allocation8 + $0xeb0] sm:$0xf0] }
 0x385   : > { %v17353_v35 = vadd.f32 %v5270_v16, %v5242_v3  ;;  %v5188_v63 = vpop.f32.mrf.mxu0  ;;  %5585 = vmatpush.bf16.msrb.mxu2 %v12828_v14  ;;  %v13084_v3 = vor.u32 %v15585_v34, %v13081_v8  ;;  %5527 = vmatpush.bf16.msrb.mxu0 %v12316_v28  ;;  %v15457_v16 = vld [vmem:[#allocation8 + $0xa94] sm:$0xf] }
 0x386   : > { %v5189_v1 = vadd.f32 %v5188_v63, %v17343_v24  ;;  %v5217_v61 = vpop.f32.mrf.mxu1  ;;  %v12569_v63 = vld [vmem:[#allocation8 + $0xab0] sm:$0xf0] }
 0x387   : > { %5614 = vmatpush.bf16.msrb.mxu3 %v13084_v3  ;;  %v12793_v42 = vld [vmem:[#allocation8 + $0xc70] sm:$0xf0] }
 0x388   : > { %v5218_v36 = vadd.f32 %v5217_v61, %v5189_v1  ;;  %5419 = vmatmul.bf16.gmra.mxu0 %v16890_v20  ;;  %v12572_v1 = vor.u32 %v15457_v16, %v12569_v63  ;;  %v15385_v14 = vld [vmem:[#allocation8 + $0x854] sm:$0xf] }
 0x389   : > { %5448 = vmatmul.bf16.gmra.mxu1 %v16893_v23  ;;  %v12281_v26 = vld [vmem:[#allocation8 + $0x870] sm:$0xf0] }
 0x38a   : > { %v5243_v49 = vpop.f32.mrf.mxu2  ;;  %5556 = vmatpush.bf16.msrb.mxu1 %v12572_v1  ;;  %v15577_v34 = vld [vmem:[#allocation8 + $0xe54] sm:$0xf]  ;;  %v12284_v8 = vor.u32 %v15385_v14, %v12281_v26 }
 0x38b   : > { %v5244_v4 = vadd.f32 %v5243_v49, %v5215_v10  ;;  %v5272_v18 = vpop.f32.mrf.mxu3  ;;  %v15513_v10 = vld [vmem:[#allocation8 + $0xc54] sm:$0xf] }
 0x38c   : > { %v12796_v33 = vor.u32 %v15513_v10, %v12793_v42  ;;  %v13049_v49 = vld [vmem:[#allocation8 + $0xe70] sm:$0xf0]  ;;  %5528 = vmatpush.bf16.msrb.mxu0 %v12284_v8 }
 0x38d   : > { %v17358_v62 = vadd.f32 %v5272_v18, %v5244_v4  ;;  %v5190_v2 = vpop.f32.mrf.mxu0  ;;  %v13052_v4 = vor.u32 %v15577_v34, %v13049_v49  ;;  %v15449_v18 = vld [vmem:[#allocation8 + $0xa54] sm:$0xf] }
 0x38e   : > { %v5191_v61 = vadd.f32 %v5190_v2, %v17343_v24  ;;  %v5219_v0 = vpop.f32.mrf.mxu1  ;;  %v12537_v3 = vld [vmem:[#allocation8 + $0xa70] sm:$0xf0]  ;;  %5586 = vmatpush.bf16.msrb.mxu2 %v12796_v33 }
 0x38f   : > { %5477 = vmatmul.bf16.gmra.mxu2 %v16900_v45  ;;  %v12540_v2 = vor.u32 %v15449_v18, %v12537_v3  ;;  %5615 = vmatpush.bf16.msrb.mxu3 %v13052_v4  ;;  %v15377_v1 = vld [vmem:[#allocation8 + $0x814] sm:$0xf] }
 0x390   : > { %v5220_v5 = vadd.f32 %v5219_v0, %v5191_v61  ;;  %5506 = vmatmul.bf16.gmra.mxu3 %v16902_v50  ;;  %v12249_v61 = vld [vmem:[#allocation8 + $0x830] sm:$0xf0] }
 0x391   : > { %v15441_v0 = vld [vmem:[#allocation8 + $0xa14] sm:$0xf]  ;;  %5557 = vmatpush.bf16.msrb.mxu1 %v12540_v2  ;;  %v12252_v42 = vor.u32 %v15377_v1, %v12249_v61 }
 0x392   : > { %v5246_v28 = vpop.f32.mrf.mxu2  ;;  %v12505_v38 = vld [vmem:[#allocation8 + $0xa30] sm:$0xf0] }
 0x393   : > { %v5247_v16 = vadd.f32 %v5246_v28, %v5218_v36  ;;  %v5275_v63 = vpop.f32.mrf.mxu3  ;;  %v12508_v34 = vor.u32 %v15441_v0, %v12505_v38  ;;  %v15505_v36 = vld [vmem:[#allocation8 + $0xc14] sm:$0xf]  ;;  %5529 = vmatpush.bf16.msrb.mxu0 %v12252_v42  ;;  %v15310_v42 = vld [vmem:[#allocation8 + $0x5f4] sm:$0xf0] }
 0x394   : > { %v12761_v33 = vld [vmem:[#allocation8 + $0xc30] sm:$0xf0] }
 0x395   : > { %v17363_v40 = vadd.f32 %v5275_v63, %v5247_v16  ;;  %v5193_v10 = vpop.f32.mrf.mxu0  ;;  %v12764_v28 = vor.u32 %v15505_v36, %v12761_v33  ;;  %v15569_v8 = vld [vmem:[#allocation8 + $0xe14] sm:$0xf]  ;;  %5558 = vmatpush.bf16.msrb.mxu1 %v12508_v34  ;;  %v15182_v34 = vld [vmem:[#allocation8 + $0x1f4] sm:$0xf0] }
 0x396   : > { %v5194_v14 = vadd.f32 %v5193_v10, %v17343_v24  ;;  %v5222_v26 = vpop.f32.mrf.mxu1  ;;  %v13017_v4 = vld [vmem:[#allocation8 + $0xe30] sm:$0xf0]  ;;  %v11967_v10 = vld [vmem:[#allocation8 + $0x5d8] sm:$0xf] }
 0x397   : > { %v13020_v3 = vor.u32 %v15569_v8, %v13017_v4  ;;  %5587 = vmatpush.bf16.msrb.mxu2 %v12764_v28  ;;  %v15374_v36 = vld [vmem:[#allocation8 + $0x7f4] sm:$0xf0] }
 0x398   : > { %v5223_v49 = vadd.f32 %v5222_v26, %v5194_v14  ;;  %5424 = vmatmul.bf16.gmra.mxu0 %v16910_v25  ;;  %v11455_v14 = vld [vmem:[#allocation8 + $0x1d8] sm:$0xf]  ;;  %v11968_v26 = vor.u32 %v15310_v42, %v11967_v10 }
 0x399   : > { %5453 = vmatmul.bf16.gmra.mxu1 %v16913_v32  ;;  %5616 = vmatpush.bf16.msrb.mxu3 %v13020_v3  ;;  %v11456_v28 = vor.u32 %v15182_v34, %v11455_v14  ;;  %v15302_v14 = vld [vmem:[#allocation8 + $0x5b4] sm:$0xf0] }
 0x39a   : > { %v5248_v18 = vpop.f32.mrf.mxu2  ;;  %v15174_v34 = vld [vmem:[#allocation8 + $0x1b4] sm:$0xf0] }
 0x39b   : > { %v5249_v16 = vadd.f32 %v5248_v18, %v5220_v5  ;;  %v5277_v63 = vpop.f32.mrf.mxu3  ;;  %v12223_v5 = vld [vmem:[#allocation8 + $0x7d8] sm:$0xf]  ;;  %5696 = vmatpush.bf16.msra.mxu2 %v11968_v26  ;;  %5638 = vmatpush.bf16.msra.mxu0 %v11456_v28 }
 0x39c   : > { %v12224_v8 = vor.u32 %v15374_v36, %v12223_v5  ;;  %v11423_v26 = vld [vmem:[#allocation8 + $0x198] sm:$0xf] }
 0x39d   : > { %v17368_v2 = vadd.f32 %v5277_v63, %v5249_v16  ;;  %v5195_v38 = vpop.f32.mrf.mxu0  ;;  %v12191_v5 = vld [vmem:[#allocation8 + $0x798] sm:$0xf] }
 0x39e   : > { %v5196_v1 = vadd.f32 %v5195_v38, %v17343_v24  ;;  %v5224_v61 = vpop.f32.mrf.mxu1  ;;  %5725 = vmatpush.bf16.msra.mxu3 %v12224_v8  ;;  %v15366_v28 = vld [vmem:[#allocation8 + $0x7b4] sm:$0xf0] }
 0x39f   : > { %5482 = vmatmul.bf16.gmra.mxu2 %v16920_v54 }
 0x3a0   : > { %v5225_v0 = vadd.f32 %v5224_v61, %v5196_v1  ;;  %5511 = vmatmul.bf16.gmra.mxu3 %v16922_v56  ;;  %v11711_v1 = vld [vmem:[#allocation8 + $0x3d8] sm:$0xf] }
 0x3a1   : > { %v15246_v61 = vld [vmem:[#allocation8 + $0x3f4] sm:$0xf0] }
 0x3a2   : > { %v5251_v33 = vpop.f32.mrf.mxu2  ;;  %v11712_v42 = vor.u32 %v15246_v61, %v11711_v1  ;;  %v11679_v61 = vld [vmem:[#allocation8 + $0x398] sm:$0xf] }
 0x3a3   : > { %v5252_v4 = vadd.f32 %v5251_v33, %v5223_v49  ;;  %v5280_v18 = vpop.f32.mrf.mxu3  ;;  %v11936_v49 = vor.u32 %v15302_v14, %v11935_v6  ;;  %v11424_v33 = vor.u32 %v15174_v34, %v11423_v26  ;;  %v11903_v14 = vld [vmem:[#allocation8 + $0x558] sm:$0xf] }
 0x3a4   : > { %5667 = vmatpush.bf16.msra.mxu1 %v11712_v42  ;;  %v15238_v42 = vld [vmem:[#allocation8 + $0x3b4] sm:$0xf0] }
 0x3a5   : > { %v17373_v3 = vadd.f32 %v5280_v18, %v5252_v4  ;;  %v5198_v16 = vpop.f32.mrf.mxu0  ;;  %5697 = vmatpush.bf16.msra.mxu2 %v11936_v49  ;;  %v12192_v18 = vor.u32 %v15366_v28, %v12191_v5  ;;  %5639 = vmatpush.bf16.msra.mxu0 %v11424_v33  ;;  %v11680_v26 = vor.u32 %v15238_v42, %v11679_v61  ;;  %v15294_v49 = vld [vmem:[#allocation8 + $0x574] sm:$0xf0] }
 0x3a6   : > { %v5199_v63 = vadd.f32 %v5198_v16, %v17343_v24  ;;  %v5227_v38 = vpop.f32.mrf.mxu1  ;;  %v11391_v34 = vld [vmem:[#allocation8 + $0x158] sm:$0xf]  ;;  %v11904_v28 = vor.u32 %v15294_v49, %v11903_v14 }
 0x3a7   : > { %5726 = vmatpush.bf16.msra.mxu3 %v12192_v18  ;;  %v15166_v5 = vld [vmem:[#allocation8 + $0x174] sm:$0xf0] }
 0x3a8   : > { %v5228_v10 = vadd.f32 %v5227_v38, %v5199_v63  ;;  %5429 = vmatmul.bf16.gmra.mxu0 %v16930_v15  ;;  %5668 = vmatpush.bf16.msra.mxu1 %v11680_v26  ;;  %v11647_v61 = vld [vmem:[#allocation8 + $0x358] sm:$0xf] }
 0x3a9   : > { %5458 = vmatmul.bf16.gmra.mxu1 %v16933_v22  ;;  %5698 = vmatpush.bf16.msra.mxu2 %v11904_v28  ;;  %v15230_v42 = vld [vmem:[#allocation8 + $0x374] sm:$0xf0] }
 0x3aa   : > { %v5253_v36 = vpop.f32.mrf.mxu2  ;;  %v11871_v14 = vld [vmem:[#allocation8 + $0x518] sm:$0xf] }
 0x3ab   : > { %v5254_v8 = vadd.f32 %v5253_v36, %v5225_v0  ;;  %v5282_v4 = vpop.f32.mrf.mxu3  ;;  %v11359_v49 = vld [vmem:[#allocation8 + $0x118] sm:$0xf] }
 0x3ad   : > { %v17378_v16 = vadd.f32 %v5282_v4, %v5254_v8  ;;  %v5200_v63 = vpop.f32.mrf.mxu0  ;;  %v11392_v8 = vor.u32 %v15166_v5, %v11391_v34  ;;  %v12159_v4 = vld [vmem:[#allocation8 + $0x758] sm:$0xf] }
 0x3ae   : > { %v5201_v38 = vadd.f32 %v5200_v63, %v17343_v24  ;;  %v5229_v1 = vpop.f32.mrf.mxu1  ;;  %v15358_v24 = vld [vmem:[#allocation8 + $0x774] sm:$0xf0] }
 0x3af   : > { %5487 = vmatmul.bf16.gmra.mxu2 %v16946_v44  ;;  %v12160_v18 = vor.u32 %v15358_v24, %v12159_v4  ;;  %5640 = vmatpush.bf16.msra.mxu0 %v11392_v8  ;;  %v15158_v34 = vld [vmem:[#allocation8 + $0x134] sm:$0xf0] }
 0x3b0   : > { %v5230_v6 = vadd.f32 %v5229_v1, %v5201_v38  ;;  %5516 = vmatmul.bf16.gmra.mxu3 %v16948_v46  ;;  %v12127_v5 = vld [vmem:[#allocation8 + $0x718] sm:$0xf] }
 0x3b1   : > { %5727 = vmatpush.bf16.msra.mxu3 %v12160_v18 }
 0x3b2   : > { %v5256_v0 = vpop.f32.mrf.mxu2 }
 0x3b3   : > { %v5257_v36 = vadd.f32 %v5256_v0, %v5228_v10  ;;  %v5285_v33 = vpop.f32.mrf.mxu3  ;;  %v11648_v10 = vor.u32 %v15230_v42, %v11647_v61  ;;  %v15286_v0 = vld [vmem:[#allocation8 + $0x534] sm:$0xf0] }
 0x3b4   : > { %v11872_v26 = vor.u32 %v15286_v0, %v11871_v14  ;;  %v11615_v61 = vld [vmem:[#allocation8 + $0x318] sm:$0xf] }
 0x3b5   : > { %v17383_v63 = vadd.f32 %v5285_v33, %v5257_v36  ;;  %v5299_v38 = vpop.f32.mrf.mxu0  ;;  %5669 = vmatpush.bf16.msra.mxu1 %v11648_v10  ;;  %v11360_v33 = vor.u32 %v15158_v34, %v11359_v49  ;;  %v15222_v42 = vld [vmem:[#allocation8 + $0x334] sm:$0xf0] }
 0x3b6   : > { %v5300_v1 = vadd.f32 %v5299_v38, %v17353_v35  ;;  %v5328_v7 = vpop.f32.mrf.mxu1  ;;  %v15350_v35 = vld [vmem:[#allocation8 + $0x734] sm:$0xf0]  ;;  %5699 = vmatpush.bf16.msra.mxu2 %v11872_v26  ;;  %v11616_v14 = vor.u32 %v15222_v42, %v11615_v61 }
 0x3b7   : > { %v12128_v4 = vor.u32 %v15350_v35, %v12127_v5  ;;  %5641 = vmatpush.bf16.msra.mxu0 %v11360_v33  ;;  %v11839_v10 = vld [vmem:[#allocation8 + $0x4d8] sm:$0xf] }
 0x3b8   : > { %v5329_v29 = vadd.f32 %v5328_v7, %v5300_v1  ;;  %5530 = vmatmul.bf16.vlgmr.msrb.gmra.mxu0 %v16962_v57  ;;  %v15278_v0 = vld [vmem:[#allocation8 + $0x4f4] sm:$0xf0] }
 0x3b9   : > { %5559 = vmatmul.bf16.vlgmr.msrb.gmra.mxu1 %v16965_v31  ;;  %5728 = vmatpush.bf16.msra.mxu3 %v12128_v4  ;;  %v11327_v26 = vld [vmem:[#allocation8 + $0xd8] sm:$0xf] }
 0x3ba   : > { %v5258_v36 = vpop.f32.mrf.mxu2  ;;  %v15150_v49 = vld [vmem:[#allocation8 + $0xf4] sm:$0xf0]  ;;  %5670 = vmatpush.bf16.msra.mxu1 %v11616_v14 }
 0x3bb   : > { %v5259_v28 = vadd.f32 %v5258_v36, %v5230_v6  ;;  %v5287_v8 = vpop.f32.mrf.mxu3  ;;  %v11840_v36 = vor.u32 %v15278_v0, %v11839_v10  ;;  %v11328_v33 = vor.u32 %v15150_v49, %v11327_v26  ;;  %v12095_v35 = vld [vmem:[#allocation8 + $0x6d8] sm:$0xf] }
 0x3bc   : > { %v15214_v61 = vld [vmem:[#allocation8 + $0x2f4] sm:$0xf0] }
 0x3bd   : > { %v17388_v7 = vadd.f32 %v5287_v8, %v5259_v28  ;;  %v5301_v24 = vpop.f32.mrf.mxu0  ;;  %5700 = vmatpush.bf16.msra.mxu2 %v11840_v36  ;;  %5642 = vmatpush.bf16.msra.mxu0 %v11328_v33  ;;  %v11807_v10 = vld [vmem:[#allocation8 + $0x498] sm:$0xf] }
 0x3be   : > { %v5302_v18 = vadd.f32 %v5301_v24, %v17358_v62  ;;  %v5330_v38 = vpop.f32.mrf.mxu1  ;;  %v15342_v62 = vld [vmem:[#allocation8 + $0x6f4] sm:$0xf0] }
 0x3bf   : > { %5588 = vmatmul.bf16.vlgmr.msrb.gmra.mxu2 %v16972_v58  ;;  %v12096_v28 = vor.u32 %v15342_v62, %v12095_v35  ;;  %v11295_v0 = vld [vmem:[#allocation8 + $0x98] sm:$0xf] }
 0x3c0   : > { %v5331_v1 = vadd.f32 %v5330_v38, %v5302_v18  ;;  %5617 = vmatmul.bf16.vlgmr.msrb.gmra.mxu3 %v16974_v59  ;;  %v11583_v38 = vld [vmem:[#allocation8 + $0x2d8] sm:$0xf] }
 0x3c1   : > { %5729 = vmatpush.bf16.msra.mxu3 %v12096_v28  ;;  %v15142_v26 = vld [vmem:[#allocation8 + $0xb4] sm:$0xf0] }
 0x3c2   : > { %v5357_v6 = vpop.f32.mrf.mxu2  ;;  %v12063_v49 = vld [vmem:[#allocation8 + $0x698] sm:$0xf] }
 0x3c3   : > { %v5358_v34 = vadd.f32 %v5357_v6, %v5329_v29  ;;  %v5386_v5 = vpop.f32.mrf.mxu3  ;;  %v11584_v29 = vor.u32 %v15214_v61, %v11583_v38  ;;  %v15270_v6 = vld [vmem:[#allocation8 + $0x4b4] sm:$0xf0] }
 0x3c4   : > { %v11808_v14 = vor.u32 %v15270_v6, %v11807_v10  ;;  %v11551_v62 = vld [vmem:[#allocation8 + $0x298] sm:$0xf] }
 0x3c5   : > { %v5387_v8 = vadd.f32 %v5386_v5, %v5358_v34  ;;  %v5304_v4 = vpop.f32.mrf.mxu0  ;;  %5671 = vmatpush.bf16.msra.mxu1 %v11584_v29  ;;  %v11296_v5 = vor.u32 %v15142_v26, %v11295_v0  ;;  %v15206_v28 = vld [vmem:[#allocation8 + $0x2b4] sm:$0xf0] }
 0x3c6   : > { %v5305_v24 = vadd.f32 %v5304_v4, %v17363_v40  ;;  %v5333_v18 = vpop.f32.mrf.mxu1  ;;  %v15334_v40 = vld [vmem:[#allocation8 + $0x6b4] sm:$0xf0]  ;;  %5701 = vmatpush.bf16.msra.mxu2 %v11808_v14 }
 0x3c7   : > { %v12064_v35 = vor.u32 %v15334_v40, %v12063_v49  ;;  %5643 = vmatpush.bf16.msra.mxu0 %v11296_v5  ;;  %v6106_v10 = vmax.f32 %v5387_v8, 0.0  ;;  %v15134_v14 = vld [vmem:[#allocation8 + $0x74] sm:$0xf0] }
 0x3c8   : > { %v5334_v42 = vadd.f32 %v5333_v18, %v5305_v24  ;;  %5535 = vmatmul.bf16.gmra.mxu0 %v16982_v39  ;;  %v11552_v18 = vor.u32 %v15206_v28, %v11551_v62  ;;  %v11519_v0 = vld [vmem:[#allocation8 + $0x258] sm:$0xf] }
 0x3c9   : > { %5564 = vmatmul.bf16.gmra.mxu1 %v16985_v43  ;;  %5730 = vmatpush.bf16.msra.mxu3 %v12064_v35  ;;  %v11775_v49 = vld [vmem:[#allocation8 + $0x458] sm:$0xf] }
 0x3ca   : > { %v5359_v34 = vpop.f32.mrf.mxu2  ;;  %5672 = vmatpush.bf16.msra.mxu1 %v11552_v18  ;;  %v12031_v40 = vld [vmem:[#allocation8 + $0x658] sm:$0xf] }
 0x3cb   : > { %v5360_v36 = vadd.f32 %v5359_v34, %v5331_v1  ;;  %v5388_v33 = vpop.f32.mrf.mxu3  ;;  %v11263_v1 = vld [vmem:[#allocation8 + $0x58] sm:$0xf] }
 0x3cc   : > { %v15262_v34 = vld [vmem:[#allocation8 + $0x474] sm:$0xf0]  ;;  %v11264_v5 = vor.u32 %v15134_v14, %v11263_v1 }
 0x3cd   : > { %v5389_v4 = vadd.f32 %v5388_v33, %v5360_v36  ;;  %v5306_v24 = vpop.f32.mrf.mxu0  ;;  %v15326_v33 = vld [vmem:[#allocation8 + $0x674] sm:$0xf0] }
 0x3ce   : > { %v5307_v38 = vadd.f32 %v5306_v24, %v17368_v2  ;;  %v5335_v61 = vpop.f32.mrf.mxu1  ;;  %v11776_v2 = vor.u32 %v15262_v34, %v11775_v49  ;;  %v15198_v8 = vld [vmem:[#allocation8 + $0x274] sm:$0xf0]  ;;  %5644 = vmatpush.bf16.msra.mxu0 %v11264_v5  ;;  %v12032_v28 = vor.u32 %v15326_v33, %v12031_v40 }
 0x3cf   : > { %v6114_v6 = vmax.f32 %v5389_v4, 0.0  ;;  %5593 = vmatmul.bf16.gmra.mxu2 %v16992_v9  ;;  %v11520_v4 = vor.u32 %v15198_v8, %v11519_v0  ;;  %v11231_v24 = vld [vmem:[#allocation8 + $0x18] sm:$0xf] }
 0x3d0   : > { %v5336_v29 = vadd.f32 %v5335_v61, %v5307_v38  ;;  %5622 = vmatmul.bf16.gmra.mxu3 %v16994_v17  ;;  %5702 = vmatpush.bf16.msra.mxu2 %v11776_v2  ;;  %v15126_v18 = vld [vmem:[#allocation8 + $0x34] sm:$0xf0] }
 0x3d1   : > { %v17399_v26 = vpack.c.bf16 %v6114_v6, %v6106_v10  ;;  %v11487_v38 = vld [vmem:[#allocation8 + $0x218] sm:$0xf]  ;;  %5731 = vmatpush.bf16.msra.mxu3 %v12032_v28  ;;  %5673 = vmatpush.bf16.msra.mxu1 %v11520_v4  ;;  %v11232_v6 = vor.u32 %v15126_v18, %v11231_v24 }
 0x3d2   : > { %v5362_v36 = vpop.f32.mrf.mxu2  ;;  %v15190_v1 = vld [vmem:[#allocation8 + $0x234] sm:$0xf0] }
 0x3d3   : > { %19106 = vst [vmem:[#allocation36_spill] sm:$0xff] %v17399_v26  ;;  %v5363_v35 = vadd.f32 %v5362_v36, %v5334_v42  ;;  %v5391_v62 = vpop.f32.mrf.mxu3  ;;  %v11488_v34 = vor.u32 %v15190_v1, %v11487_v38  ;;  %5645 = vmatpush.bf16.msra.mxu0 %v11232_v6  ;;  %v11743_v5 = vld [vmem:[#allocation8 + $0x418] sm:$0xf] }
 0x3d4   : > { %v15254_v0 = vld [vmem:[#allocation8 + $0x434] sm:$0xf0] }
 0x3d5   : > { %v5392_v61 = vadd.f32 %v5391_v62, %v5363_v35  ;;  %v5309_v10 = vpop.f32.mrf.mxu0  ;;  %v11744_v40 = vor.u32 %v15254_v0, %v11743_v5  ;;  %v11999_v36 = vld [vmem:[#allocation8 + $0x618] sm:$0xf]  ;;  %5674 = vmatpush.bf16.msra.mxu1 %v11488_v34 }
 0x3d6   : > { %v5310_v14 = vadd.f32 %v5309_v10, %v17373_v3  ;;  %v5338_v49 = vpop.f32.mrf.mxu1  ;;  %v15318_v2 = vld [vmem:[#allocation8 + $0x634] sm:$0xf0] }
 0x3d7   : > { %v12000_v8 = vor.u32 %v15318_v2, %v11999_v36  ;;  %5703 = vmatpush.bf16.msra.mxu2 %v11744_v40  ;;  %v6122_v18 = vmax.f32 %v5392_v61, 0.0  ;;  %v12991_v1 = vld [vmem:[#allocation8 + $0xdd8] sm:$0xf] }
 0x3d8   : > { %v5339_v42 = vadd.f32 %v5338_v49, %v5310_v14  ;;  %5540 = vmatmul.bf16.gmra.mxu0 %v17002_v11  ;;  %v15566_v14 = vld [vmem:[#allocation8 + $0xdf4] sm:$0xf0] }
 0x3d9   : > { %5569 = vmatmul.bf16.gmra.mxu1 %v17005_v21  ;;  %5732 = vmatpush.bf16.msra.mxu3 %v12000_v8  ;;  %v12992_v34 = vor.u32 %v15566_v14, %v12991_v1  ;;  %v15438_v5 = vld [vmem:[#allocation8 + $0x9f4] sm:$0xf0] }
 0x3da   : > { %v5364_v33 = vpop.f32.mrf.mxu2  ;;  %v13247_v0 = vld [vmem:[#allocation8 + $0xfd8] sm:$0xf] }
 0x3db   : > { %v5365_v35 = vadd.f32 %v5364_v33, %v5336_v29  ;;  %v5393_v62 = vpop.f32.mrf.mxu3  ;;  %v12479_v29 = vld [vmem:[#allocation8 + $0x9d8] sm:$0xf]  ;;  %5812 = vmatpush.bf16.msrb.mxu2 %v12992_v34 }
 0x3dc   : > { %v15630_v40 = vld [vmem:[#allocation8 + $0xff4] sm:$0xf0]  ;;  %v12480_v2 = vor.u32 %v15438_v5, %v12479_v29 }
 0x3dd   : > { %v5394_v3 = vadd.f32 %v5393_v62, %v5365_v35  ;;  %v5311_v28 = vpop.f32.mrf.mxu0  ;;  %v13248_v61 = vor.u32 %v15630_v40, %v13247_v0  ;;  %v12735_v35 = vld [vmem:[#allocation8 + $0xbd8] sm:$0xf] }
 0x3de   : > { %v5312_v4 = vadd.f32 %v5311_v28, %v17378_v16  ;;  %v5340_v24 = vpop.f32.mrf.mxu1  ;;  %5754 = vmatpush.bf16.msrb.mxu0 %v12480_v2  ;;  %v15502_v62 = vld [vmem:[#allocation8 + $0xbf4] sm:$0xf0] }
 0x3df   : > { %v6130_v38 = vmax.f32 %v5394_v3, 0.0  ;;  %5598 = vmatmul.bf16.gmra.mxu2 %v17012_v51  ;;  %5841 = vmatpush.bf16.msrb.mxu3 %v13248_v61  ;;  %v12447_v1 = vld [vmem:[#allocation8 + $0x998] sm:$0xf] }
 0x3e0   : > { %v5341_v10 = vadd.f32 %v5340_v24, %v5312_v4  ;;  %5627 = vmatmul.bf16.gmra.mxu3 %v17014_v52  ;;  %v12736_v4 = vor.u32 %v15502_v62, %v12735_v35  ;;  %v15430_v14 = vld [vmem:[#allocation8 + $0x9b4] sm:$0xf0] }
 0x3e1   : > { %v17407_v6 = vpack.c.bf16 %v6130_v38, %v6122_v18  ;;  %v12959_v18 = vld [vmem:[#allocation8 + $0xd98] sm:$0xf]  ;;  %v12448_v34 = vor.u32 %v15430_v14, %v12447_v1 }
 0x3e2   : > { %v5367_v49 = vpop.f32.mrf.mxu2  ;;  %5783 = vmatpush.bf16.msrb.mxu1 %v12736_v4  ;;  %v13215_v29 = vld [vmem:[#allocation8 + $0xf98] sm:$0xf] }
 0x3e3   : > { %19107 = vst [vmem:[#allocation37_spill] sm:$0xff] %v17407_v6  ;;  %v5368_v36 = vadd.f32 %v5367_v49, %v5339_v42  ;;  %v5396_v16 = vpop.f32.mrf.mxu3  ;;  %v15558_v42 = vld [vmem:[#allocation8 + $0xdb4] sm:$0xf0]  ;;  %5755 = vmatpush.bf16.msrb.mxu0 %v12448_v34  ;;  %v17418_v34 = vperm.slane %v17340_v53, 5 }
 0x3e4   : > { %v12960_v38 = vor.u32 %v15558_v42, %v12959_v18  ;;  %v15622_v5 = vld [vmem:[#allocation8 + $0xfb4] sm:$0xf0] }
 0x3e5   : > { %v5397_v33 = vadd.f32 %v5396_v16, %v5368_v36  ;;  %v5314_v8 = vpop.f32.mrf.mxu0  ;;  %v12703_v2 = vld [vmem:[#allocation8 + $0xb98] sm:$0xf] }
 0x3e6   : > { %v5315_v3 = vadd.f32 %v5314_v8, %v17383_v63  ;;  %v5343_v28 = vpop.f32.mrf.mxu1  ;;  %5813 = vmatpush.bf16.msrb.mxu2 %v12960_v38  ;;  %v13216_v63 = vor.u32 %v15622_v5, %v13215_v29  ;;  %v15494_v61 = vld [vmem:[#allocation8 + $0xbb4] sm:$0xf0] }
 0x3e7   : > { %v12704_v62 = vor.u32 %v15494_v61, %v12703_v2  ;;  %v15550_v18 = vld [vmem:[#allocation8 + $0xd74] sm:$0xf0] }
 0x3e8   : > { %v5344_v24 = vadd.f32 %v5343_v28, %v5315_v3  ;;  %5545 = vmatmul.bf16.gmra.mxu0 %v17022_v37  ;;  %5842 = vmatpush.bf16.msrb.mxu3 %v13216_v63  ;;  %v6138_v3 = vmax.f32 %v5397_v33, 0.0  ;;  %v12415_v42 = vld [vmem:[#allocation8 + $0x958] sm:$0xf] }
 0x3e9   : > { %5574 = vmatmul.bf16.gmra.mxu1 %v17025_v41  ;;  %v15422_v14 = vld [vmem:[#allocation8 + $0x974] sm:$0xf0] }
 0x3ea   : > { %v5369_v49 = vpop.f32.mrf.mxu2  ;;  %5784 = vmatpush.bf16.msrb.mxu1 %v12704_v62  ;;  %v13183_v29 = vld [vmem:[#allocation8 + $0xf58] sm:$0xf]  ;;  %v12416_v33 = vor.u32 %v15422_v14, %v12415_v42 }
 0x3eb   : > { %v5370_v0 = vadd.f32 %v5369_v49, %v5341_v10  ;;  %v5398_v40 = vpop.f32.mrf.mxu3  ;;  %v12927_v10 = vld [vmem:[#allocation8 + $0xd58] sm:$0xf] }
 0x3ec   : > { %v12928_v1 = vor.u32 %v15550_v18, %v12927_v10  ;;  %v15614_v49 = vld [vmem:[#allocation8 + $0xf74] sm:$0xf0]  ;;  %5756 = vmatpush.bf16.msrb.mxu0 %v12416_v33 }
 0x3ed   : > { %v5399_v36 = vadd.f32 %v5398_v40, %v5370_v0  ;;  %v5316_v16 = vpop.f32.mrf.mxu0  ;;  %v13184_v5 = vor.u32 %v15614_v49, %v13183_v29  ;;  %v15486_v2 = vld [vmem:[#allocation8 + $0xb74] sm:$0xf0] }
 0x3ee   : > { %v5317_v8 = vadd.f32 %v5316_v16, %v17388_v7  ;;  %v5345_v35 = vpop.f32.mrf.mxu1  ;;  %5814 = vmatpush.bf16.msrb.mxu2 %v12928_v1  ;;  %v12671_v16 = vld [vmem:[#allocation8 + $0xb58] sm:$0xf] }
 0x3ef   : > { %v6146_v28 = vmax.f32 %v5399_v36, 0.0  ;;  %5603 = vmatmul.bf16.gmra.mxu2 %v17032_v19  ;;  %5843 = vmatpush.bf16.msrb.mxu3 %v13184_v5  ;;  %v12895_v53 = vld [vmem:[#allocation8 + $0xd18] sm:$0xf] }
 0x3f0   : > { %v5346_v4 = vadd.f32 %v5345_v35, %v5317_v8  ;;  %5632 = vmatmul.bf16.gmra.mxu3 %v17034_v13  ;;  %v12672_v35 = vor.u32 %v15486_v2, %v12671_v16  ;;  %v15414_v10 = vld [vmem:[#allocation8 + $0x934] sm:$0xf0] }
 0x3f1   : > { %v17415_v38 = vpack.c.bf16 %v6146_v28, %v6138_v3  ;;  %v15542_v3 = vld [vmem:[#allocation8 + $0xd34] sm:$0xf0] }
 0x3f2   : > { %v5372_v7 = vpop.f32.mrf.mxu2  ;;  %5785 = vmatpush.bf16.msrb.mxu1 %v12672_v35  ;;  %v12383_v28 = vld [vmem:[#allocation8 + $0x918] sm:$0xf] }
 0x3f3   : > { %19108 = vst [vmem:[#allocation38_spill] sm:$0xff] %v17415_v38  ;;  %v5373_v0 = vadd.f32 %v5372_v7, %v5344_v24  ;;  %v5401_v40 = vpop.f32.mrf.mxu3  ;;  %v12896_v24 = vor.u32 %v15542_v3, %v12895_v53  ;;  %v13151_v18 = vld [vmem:[#allocation8 + $0xf18] sm:$0xf]  ;;  %v12384_v1 = vor.u32 %v15414_v10, %v12383_v28 }
 0x3f4   : > { %v15606_v14 = vld [vmem:[#allocation8 + $0xf34] sm:$0xf0] }
 0x3f5   : > { %v5402_v63 = vadd.f32 %v5401_v40, %v5373_v0  ;;  %v5415_v36 = vpop.f32.mrf.mxu0  ;;  %5815 = vmatpush.bf16.msrb.mxu2 %v12896_v24  ;;  %v13152_v7 = vor.u32 %v15606_v14, %v13151_v18  ;;  %5757 = vmatpush.bf16.msrb.mxu0 %v12384_v1  ;;  %v12639_v0 = vld [vmem:[#allocation8 + $0xb18] sm:$0xf] }
 0x3f6   : > { %v5416_v61 = vadd.f32 %v5415_v36, %v17418_v34  ;;  %v5444_v8 = vpop.f32.mrf.mxu1  ;;  %v15478_v40 = vld [vmem:[#allocation8 + $0xb34] sm:$0xf0] }
 0x3f7   : > { %5844 = vmatpush.bf16.msrb.mxu3 %v13152_v7  ;;  %v12640_v2 = vor.u32 %v15478_v40, %v12639_v0  ;;  %v15534_v53 = vld [vmem:[#allocation8 + $0xcf4] sm:$0xf0] }
 0x3f8   : > { %v5445_v62 = vadd.f32 %v5444_v8, %v5416_v61  ;;  %5646 = vmatmul.bf16.vlgmr.msra.gmra.mxu0 %v16870_v27  ;;  %v6154_v61 = vmax.f32 %v5402_v63, 0.0  ;;  %v12351_v3 = vld [vmem:[#allocation8 + $0x8d8] sm:$0xf] }
 0x3f9   : > { %5675 = vmatmul.bf16.vlgmr.msra.gmra.mxu1 %v16873_v30  ;;  %v15406_v10 = vld [vmem:[#allocation8 + $0x8f4] sm:$0xf0] }
 0x3fa   : > { %v5374_v42 = vpop.f32.mrf.mxu2  ;;  %5786 = vmatpush.bf16.msrb.mxu1 %v12640_v2  ;;  %v13119_v18 = vld [vmem:[#allocation8 + $0xed8] sm:$0xf]  ;;  %v12352_v14 = vor.u32 %v15406_v10, %v12351_v3 }
 0x3fb   : > { %v5375_v29 = vadd.f32 %v5374_v42, %v5346_v4  ;;  %v5403_v49 = vpop.f32.mrf.mxu3  ;;  %v12863_v4 = vld [vmem:[#allocation8 + $0xcd8] sm:$0xf] }
 0x3fc   : > { %v12864_v28 = vor.u32 %v15534_v53, %v12863_v4  ;;  %v15598_v42 = vld [vmem:[#allocation8 + $0xef4] sm:$0xf0]  ;;  %5758 = vmatpush.bf16.msrb.mxu0 %v12352_v14 }
 0x3fd   : > { %v5404_v33 = vadd.f32 %v5403_v49, %v5375_v29  ;;  %v5417_v5 = vpop.f32.mrf.mxu0  ;;  %v13120_v29 = vor.u32 %v15598_v42, %v13119_v18  ;;  %v15470_v0 = vld [vmem:[#allocation8 + $0xaf4] sm:$0xf0] }
 0x3fe   : > { %v5418_v36 = vadd.f32 %v5417_v5, %v17418_v34  ;;  %v5446_v16 = vpop.f32.mrf.mxu1  ;;  %5816 = vmatpush.bf16.msrb.mxu2 %v12864_v28  ;;  %v12607_v5 = vld [vmem:[#allocation8 + $0xad8] sm:$0xf] }
 0x3ff   : > { %v6162_v8 = vmax.f32 %v5404_v33, 0.0  ;;  %5704 = vmatmul.bf16.vlgmr.msra.gmra.mxu2 %v16880_v47  ;;  %5845 = vmatpush.bf16.msrb.mxu3 %v13120_v29  ;;  %v12319_v4 = vld [vmem:[#allocation8 + $0x898] sm:$0xf] }
 0x400   : > { %v5447_v35 = vadd.f32 %v5446_v16, %v5418_v36  ;;  %5733 = vmatmul.bf16.vlgmr.msra.gmra.mxu3 %v16882_v48  ;;  %v12608_v16 = vor.u32 %v15470_v0, %v12607_v5  ;;  %v15398_v53 = vld [vmem:[#allocation8 + $0x8b4] sm:$0xf0] }
 0x401   : > { %v17426_v24 = vpack.c.bf16 %v6162_v8, %v6154_v61  ;;  %v12831_v61 = vld [vmem:[#allocation8 + $0xc98] sm:$0xf]  ;;  %v12320_v10 = vor.u32 %v15398_v53, %v12319_v4 }
 0x402   : > { %v5473_v1 = vpop.f32.mrf.mxu2  ;;  %5787 = vmatpush.bf16.msrb.mxu1 %v12608_v16  ;;  %v15526_v8 = vld [vmem:[#allocation8 + $0xcb4] sm:$0xf0] }
 0x403   : > { %19109 = vst [vmem:[#allocation39_spill] sm:$0xff] %v17426_v24  ;;  %v5474_v63 = vadd.f32 %v5473_v1, %v5445_v62  ;;  %v5502_v49 = vpop.f32.mrf.mxu3  ;;  %v12832_v62 = vor.u32 %v15526_v8, %v12831_v61  ;;  %v13087_v3 = vld [vmem:[#allocation8 + $0xe98] sm:$0xf]  ;;  %5759 = vmatpush.bf16.msrb.mxu0 %v12320_v10  ;;  %v15298_v24 = vld [vmem:[#allocation8 + $0x59c] sm:$0xf] }
 0x404   : > { %v15590_v18 = vld [vmem:[#allocation8 + $0xeb4] sm:$0xf0] }
 0x405   : > { %v17428_v7 = vadd.f32 %v5502_v49, %v5474_v63  ;;  %v5420_v33 = vpop.f32.mrf.mxu0  ;;  %5817 = vmatpush.bf16.msrb.mxu2 %v12832_v62  ;;  %v13088_v14 = vor.u32 %v15590_v18, %v13087_v3  ;;  %v12575_v29 = vld [vmem:[#allocation8 + $0xa98] sm:$0xf] }
 0x406   : > { %v5421_v40 = vadd.f32 %v5420_v33, %v17418_v34  ;;  %v5449_v36 = vpop.f32.mrf.mxu1  ;;  %v15462_v63 = vld [vmem:[#allocation8 + $0xab4] sm:$0xf0] }
 0x407   : > { %5846 = vmatpush.bf16.msrb.mxu3 %v13088_v14  ;;  %v12576_v5 = vor.u32 %v15462_v63, %v12575_v29  ;;  %v15518_v16 = vld [vmem:[#allocation8 + $0xc74] sm:$0xf0] }
 0x408   : > { %v5450_v2 = vadd.f32 %v5449_v36, %v5421_v40  ;;  %5651 = vmatmul.bf16.gmra.mxu0 %v16890_v20  ;;  %v12287_v61 = vld [vmem:[#allocation8 + $0x858] sm:$0xf] }
 0x409   : > { %5680 = vmatmul.bf16.gmra.mxu1 %v16893_v23  ;;  %v15390_v62 = vld [vmem:[#allocation8 + $0x874] sm:$0xf0] }
 0x40a   : > { %v5475_v28 = vpop.f32.mrf.mxu2  ;;  %5788 = vmatpush.bf16.msrb.mxu1 %v12576_v5  ;;  %v13055_v4 = vld [vmem:[#allocation8 + $0xe58] sm:$0xf] }
 0x40b   : > { %v5476_v42 = vadd.f32 %v5475_v28, %v5447_v35  ;;  %v5504_v1 = vpop.f32.mrf.mxu3  ;;  %v12799_v35 = vld [vmem:[#allocation8 + $0xc58] sm:$0xf]  ;;  %v12288_v28 = vor.u32 %v15390_v62, %v12287_v61 }
 0x40c   : > { %v12800_v8 = vor.u32 %v15518_v16, %v12799_v35  ;;  %v15582_v53 = vld [vmem:[#allocation8 + $0xe74] sm:$0xf0] }
 0x40d   : > { %v17433_v49 = vadd.f32 %v5504_v1, %v5476_v42  ;;  %v5422_v33 = vpop.f32.mrf.mxu0  ;;  %v13056_v10 = vor.u32 %v15582_v53, %v13055_v4  ;;  %v12543_v18 = vld [vmem:[#allocation8 + $0xa58] sm:$0xf]  ;;  %5760 = vmatpush.bf16.msrb.mxu0 %v12288_v28 }
 0x40e   : > { %v5423_v0 = vadd.f32 %v5422_v33, %v17418_v34  ;;  %v5451_v40 = vpop.f32.mrf.mxu1  ;;  %v15454_v42 = vld [vmem:[#allocation8 + $0xa74] sm:$0xf0]  ;;  %5818 = vmatpush.bf16.msrb.mxu2 %v12800_v8 }
 0x40f   : > { %5709 = vmatmul.bf16.gmra.mxu2 %v16900_v45  ;;  %v12544_v29 = vor.u32 %v15454_v42, %v12543_v18  ;;  %5847 = vmatpush.bf16.msrb.mxu3 %v13056_v10  ;;  %v12255_v63 = vld [vmem:[#allocation8 + $0x818] sm:$0xf] }
 0x410   : > { %v5452_v36 = vadd.f32 %v5451_v40, %v5423_v0  ;;  %5738 = vmatmul.bf16.gmra.mxu3 %v16902_v50  ;;  %v15382_v33 = vld [vmem:[#allocation8 + $0x834] sm:$0xf0] }
 0x411   : > { %v12511_v5 = vld [vmem:[#allocation8 + $0xa18] sm:$0xf]  ;;  %5789 = vmatpush.bf16.msrb.mxu1 %v12544_v29  ;;  %v12256_v35 = vor.u32 %v15382_v33, %v12255_v63 }
 0x412   : > { %v5478_v3 = vpop.f32.mrf.mxu2  ;;  %v15446_v16 = vld [vmem:[#allocation8 + $0xa34] sm:$0xf0] }
 0x413   : > { %v5479_v1 = vadd.f32 %v5478_v3, %v5450_v2  ;;  %v5507_v14 = vpop.f32.mrf.mxu3  ;;  %v12512_v4 = vor.u32 %v15446_v16, %v12511_v5  ;;  %v12767_v2 = vld [vmem:[#allocation8 + $0xc18] sm:$0xf]  ;;  %5761 = vmatpush.bf16.msrb.mxu0 %v12256_v35  ;;  %v15306_v35 = vld [vmem:[#allocation8 + $0x5dc] sm:$0xf] }
 0x414   : > { %v15510_v8 = vld [vmem:[#allocation8 + $0xc34] sm:$0xf0]  ;;  %v11969_v16 = vld [vmem:[#allocation8 + $0x5f8] sm:$0xf0] }
 0x415   : > { %v17438_v0 = vadd.f32 %v5507_v14, %v5479_v1  ;;  %v5425_v40 = vpop.f32.mrf.mxu0  ;;  %v12768_v3 = vor.u32 %v15510_v8, %v12767_v2  ;;  %v13023_v28 = vld [vmem:[#allocation8 + $0xe18] sm:$0xf]  ;;  %5790 = vmatpush.bf16.msrb.mxu1 %v12512_v4  ;;  %v11457_v4 = vld [vmem:[#allocation8 + $0x1f8] sm:$0xf0] }
 0x416   : > { %v5426_v61 = vadd.f32 %v5425_v40, %v17418_v34  ;;  %v5454_v62 = vpop.f32.mrf.mxu1  ;;  %v15574_v10 = vld [vmem:[#allocation8 + $0xe34] sm:$0xf0]  ;;  %v12225_v2 = vld [vmem:[#allocation8 + $0x7f8] sm:$0xf0] }
 0x417   : > { %v13024_v42 = vor.u32 %v15574_v10, %v13023_v28  ;;  %5819 = vmatpush.bf16.msrb.mxu2 %v12768_v3 }
 0x418   : > { %v5455_v53 = vadd.f32 %v5454_v62, %v5426_v61  ;;  %5656 = vmatmul.bf16.gmra.mxu0 %v16910_v25  ;;  %v15178_v61 = vld [vmem:[#allocation8 + $0x1dc] sm:$0xf]  ;;  %v11972_v62 = vor.u32 %v15306_v35, %v11969_v16 }
 0x419   : > { %5685 = vmatmul.bf16.gmra.mxu1 %v16913_v32  ;;  %5848 = vmatpush.bf16.msrb.mxu3 %v13024_v42  ;;  %v11460_v3 = vor.u32 %v15178_v61, %v11457_v4  ;;  %v11937_v61 = vld [vmem:[#allocation8 + $0x5b8] sm:$0xf0] }
 0x41a   : > { %v5480_v18 = vpop.f32.mrf.mxu2  ;;  %v11425_v4 = vld [vmem:[#allocation8 + $0x1b8] sm:$0xf0] }
 0x41b   : > { %v5481_v1 = vadd.f32 %v5480_v18, %v5452_v36  ;;  %v5509_v14 = vpop.f32.mrf.mxu3  ;;  %v15370_v36 = vld [vmem:[#allocation8 + $0x7dc] sm:$0xf]  ;;  %5928 = vmatpush.bf16.msra.mxu2 %v11972_v62  ;;  %5870 = vmatpush.bf16.msra.mxu0 %v11460_v3 }
 0x41c   : > { %v12228_v28 = vor.u32 %v15370_v36, %v12225_v2  ;;  %v15170_v62 = vld [vmem:[#allocation8 + $0x19c] sm:$0xf] }
 0x41d   : > { %v17443_v29 = vadd.f32 %v5509_v14, %v5481_v1  ;;  %v5427_v63 = vpop.f32.mrf.mxu0  ;;  %v15362_v36 = vld [vmem:[#allocation8 + $0x79c] sm:$0xf] }
 0x41e   : > { %v5428_v33 = vadd.f32 %v5427_v63, %v17418_v34  ;;  %v5456_v5 = vpop.f32.mrf.mxu1  ;;  %5957 = vmatpush.bf16.msra.mxu3 %v12228_v28  ;;  %v12193_v3 = vld [vmem:[#allocation8 + $0x7b8] sm:$0xf0] }
 0x41f   : > { %5714 = vmatmul.bf16.gmra.mxu2 %v16920_v54 }
 0x420   : > { %v5457_v40 = vadd.f32 %v5456_v5, %v5428_v33  ;;  %5743 = vmatmul.bf16.gmra.mxu3 %v16922_v56  ;;  %v15242_v33 = vld [vmem:[#allocation8 + $0x3dc] sm:$0xf] }
 0x421   : > { %v11713_v5 = vld [vmem:[#allocation8 + $0x3f8] sm:$0xf0] }
 0x422   : > { %v5483_v8 = vpop.f32.mrf.mxu2  ;;  %v11716_v16 = vor.u32 %v15242_v33, %v11713_v5  ;;  %v15234_v5 = vld [vmem:[#allocation8 + $0x39c] sm:$0xf] }
 0x423   : > { %v5484_v10 = vadd.f32 %v5483_v8, %v5455_v53  ;;  %v5512_v18 = vpop.f32.mrf.mxu3  ;;  %v11940_v53 = vor.u32 %v15298_v24, %v11937_v61  ;;  %v11428_v8 = vor.u32 %v15170_v62, %v11425_v4  ;;  %v15290_v61 = vld [vmem:[#allocation8 + $0x55c] sm:$0xf] }
 0x424   : > { %5899 = vmatpush.bf16.msra.mxu1 %v11716_v16  ;;  %v11681_v16 = vld [vmem:[#allocation8 + $0x3b8] sm:$0xf0] }
 0x425   : > { %v17448_v42 = vadd.f32 %v5512_v18, %v5484_v10  ;;  %v5430_v1 = vpop.f32.mrf.mxu0  ;;  %5929 = vmatpush.bf16.msra.mxu2 %v11940_v53  ;;  %v12196_v18 = vor.u32 %v15362_v36, %v12193_v3  ;;  %5871 = vmatpush.bf16.msra.mxu0 %v11428_v8  ;;  %v11684_v62 = vor.u32 %v15234_v5, %v11681_v16  ;;  %v11905_v53 = vld [vmem:[#allocation8 + $0x578] sm:$0xf0] }
 0x426   : > { %v5431_v14 = vadd.f32 %v5430_v1, %v17418_v34  ;;  %v5459_v63 = vpop.f32.mrf.mxu1  ;;  %v15162_v4 = vld [vmem:[#allocation8 + $0x15c] sm:$0xf]  ;;  %v11908_v3 = vor.u32 %v15290_v61, %v11905_v53 }
 0x427   : > { %5958 = vmatpush.bf16.msra.mxu3 %v12196_v18  ;;  %v11393_v36 = vld [vmem:[#allocation8 + $0x178] sm:$0xf0] }
 0x428   : > { %v5460_v35 = vadd.f32 %v5459_v63, %v5431_v14  ;;  %5661 = vmatmul.bf16.gmra.mxu0 %v16930_v15  ;;  %5900 = vmatpush.bf16.msra.mxu1 %v11684_v62  ;;  %v15226_v5 = vld [vmem:[#allocation8 + $0x35c] sm:$0xf] }
 0x429   : > { %5690 = vmatmul.bf16.gmra.mxu1 %v16933_v22  ;;  %5930 = vmatpush.bf16.msra.mxu2 %v11908_v3  ;;  %v11649_v16 = vld [vmem:[#allocation8 + $0x378] sm:$0xf0] }
 0x42a   : > { %v5485_v2 = vpop.f32.mrf.mxu2  ;;  %v15282_v61 = vld [vmem:[#allocation8 + $0x51c] sm:$0xf] }
 0x42b   : > { %v5486_v28 = vadd.f32 %v5485_v2, %v5457_v40  ;;  %v5514_v10 = vpop.f32.mrf.mxu3  ;;  %v15154_v53 = vld [vmem:[#allocation8 + $0x11c] sm:$0xf] }
 0x42d   : > { %v17453_v1 = vadd.f32 %v5514_v10, %v5486_v28  ;;  %v5432_v14 = vpop.f32.mrf.mxu0  ;;  %v11396_v28 = vor.u32 %v15162_v4, %v11393_v36  ;;  %v15354_v10 = vld [vmem:[#allocation8 + $0x75c] sm:$0xf] }
 0x42e   : > { %v5433_v63 = vadd.f32 %v5432_v14, %v17418_v34  ;;  %v5461_v33 = vpop.f32.mrf.mxu1  ;;  %v12161_v34 = vld [vmem:[#allocation8 + $0x778] sm:$0xf0] }
 0x42f   : > { %5719 = vmatmul.bf16.gmra.mxu2 %v16946_v44  ;;  %v12164_v18 = vor.u32 %v15354_v10, %v12161_v34  ;;  %5872 = vmatpush.bf16.msra.mxu0 %v11396_v28  ;;  %v11361_v4 = vld [vmem:[#allocation8 + $0x138] sm:$0xf0] }
 0x430   : > { %v5462_v24 = vadd.f32 %v5461_v33, %v5433_v63  ;;  %5748 = vmatmul.bf16.gmra.mxu3 %v16948_v46  ;;  %v15346_v36 = vld [vmem:[#allocation8 + $0x71c] sm:$0xf] }
 0x431   : > { %5959 = vmatpush.bf16.msra.mxu3 %v12164_v18 }
 0x432   : > { %v5488_v40 = vpop.f32.mrf.mxu2 }
 0x433   : > { %v5489_v2 = vadd.f32 %v5488_v40, %v5460_v35  ;;  %v5517_v8 = vpop.f32.mrf.mxu3  ;;  %v11652_v35 = vor.u32 %v15226_v5, %v11649_v16  ;;  %v11873_v40 = vld [vmem:[#allocation8 + $0x538] sm:$0xf0] }
 0x434   : > { %v11876_v62 = vor.u32 %v15282_v61, %v11873_v40  ;;  %v15218_v5 = vld [vmem:[#allocation8 + $0x31c] sm:$0xf] }
 0x435   : > { %v17458_v14 = vadd.f32 %v5517_v8, %v5489_v2  ;;  %v5531_v63 = vpop.f32.mrf.mxu0  ;;  %5901 = vmatpush.bf16.msra.mxu1 %v11652_v35  ;;  %v11364_v8 = vor.u32 %v15154_v53, %v11361_v4  ;;  %v11617_v16 = vld [vmem:[#allocation8 + $0x338] sm:$0xf0] }
 0x436   : > { %v5532_v33 = vadd.f32 %v5531_v63, %v17428_v7  ;;  %v5560_v38 = vpop.f32.mrf.mxu1  ;;  %v12129_v7 = vld [vmem:[#allocation8 + $0x738] sm:$0xf0]  ;;  %5931 = vmatpush.bf16.msra.mxu2 %v11876_v62  ;;  %v11620_v61 = vor.u32 %v15218_v5, %v11617_v16 }
 0x437   : > { %v12132_v10 = vor.u32 %v15346_v36, %v12129_v7  ;;  %5873 = vmatpush.bf16.msra.mxu0 %v11364_v8  ;;  %v15274_v35 = vld [vmem:[#allocation8 + $0x4dc] sm:$0xf] }
 0x438   : > { %v5561_v6 = vadd.f32 %v5560_v38, %v5532_v33  ;;  %5762 = vmatmul.bf16.vlgmr.msrb.gmra.mxu0 %v16962_v57  ;;  %v11841_v40 = vld [vmem:[#allocation8 + $0x4f8] sm:$0xf0] }
 0x439   : > { %5791 = vmatmul.bf16.vlgmr.msrb.gmra.mxu1 %v16965_v31  ;;  %5960 = vmatpush.bf16.msra.mxu3 %v12132_v10  ;;  %v15146_v62 = vld [vmem:[#allocation8 + $0xdc] sm:$0xf] }
 0x43a   : > { %v5490_v2 = vpop.f32.mrf.mxu2  ;;  %v11329_v53 = vld [vmem:[#allocation8 + $0xf8] sm:$0xf0]  ;;  %5902 = vmatpush.bf16.msra.mxu1 %v11620_v61 }
 0x43b   : > { %v5491_v3 = vadd.f32 %v5490_v2, %v5462_v24  ;;  %v5519_v28 = vpop.f32.mrf.mxu3  ;;  %v11844_v2 = vor.u32 %v15274_v35, %v11841_v40  ;;  %v11332_v8 = vor.u32 %v15146_v62, %v11329_v53  ;;  %v15338_v7 = vld [vmem:[#allocation8 + $0x6dc] sm:$0xf] }
 0x43c   : > { %v11585_v5 = vld [vmem:[#allocation8 + $0x2f8] sm:$0xf0] }
 0x43d   : > { %v17463_v38 = vadd.f32 %v5519_v28, %v5491_v3  ;;  %v5533_v34 = vpop.f32.mrf.mxu0  ;;  %5932 = vmatpush.bf16.msra.mxu2 %v11844_v2  ;;  %5874 = vmatpush.bf16.msra.mxu0 %v11332_v8  ;;  %v15266_v35 = vld [vmem:[#allocation8 + $0x49c] sm:$0xf] }
 0x43e   : > { %v5534_v18 = vadd.f32 %v5533_v34, %v17433_v49  ;;  %v5562_v63 = vpop.f32.mrf.mxu1  ;;  %v12097_v49 = vld [vmem:[#allocation8 + $0x6f8] sm:$0xf0] }
 0x43f   : > { %5820 = vmatmul.bf16.vlgmr.msrb.gmra.mxu2 %v16972_v58  ;;  %v12100_v3 = vor.u32 %v15338_v7, %v12097_v49  ;;  %v15138_v40 = vld [vmem:[#allocation8 + $0x9c] sm:$0xf] }
 0x440   : > { %v5563_v33 = vadd.f32 %v5562_v63, %v5534_v18  ;;  %5849 = vmatmul.bf16.vlgmr.msrb.gmra.mxu3 %v16974_v59  ;;  %v15210_v63 = vld [vmem:[#allocation8 + $0x2dc] sm:$0xf] }
 0x441   : > { %5961 = vmatpush.bf16.msra.mxu3 %v12100_v3  ;;  %v11297_v62 = vld [vmem:[#allocation8 + $0xb8] sm:$0xf0] }
 0x442   : > { %v5589_v24 = vpop.f32.mrf.mxu2  ;;  %v15330_v53 = vld [vmem:[#allocation8 + $0x69c] sm:$0xf] }
 0x443   : > { %v5590_v4 = vadd.f32 %v5589_v24, %v5561_v6  ;;  %v5618_v36 = vpop.f32.mrf.mxu3  ;;  %v11588_v6 = vor.u32 %v15210_v63, %v11585_v5  ;;  %v11809_v24 = vld [vmem:[#allocation8 + $0x4b8] sm:$0xf0] }
 0x444   : > { %v11812_v61 = vor.u32 %v15266_v35, %v11809_v24  ;;  %v15202_v49 = vld [vmem:[#allocation8 + $0x29c] sm:$0xf] }
 0x445   : > { %v5619_v28 = vadd.f32 %v5618_v36, %v5590_v4  ;;  %v5536_v10 = vpop.f32.mrf.mxu0  ;;  %5903 = vmatpush.bf16.msra.mxu1 %v11588_v6  ;;  %v11300_v36 = vor.u32 %v15138_v40, %v11297_v62  ;;  %v11553_v3 = vld [vmem:[#allocation8 + $0x2b8] sm:$0xf0] }
 0x446   : > { %v5537_v34 = vadd.f32 %v5536_v10, %v17438_v0  ;;  %v5565_v18 = vpop.f32.mrf.mxu1  ;;  %v12065_v0 = vld [vmem:[#allocation8 + $0x6b8] sm:$0xf0]  ;;  %5933 = vmatpush.bf16.msra.mxu2 %v11812_v61 }
 0x447   : > { %v12068_v7 = vor.u32 %v15330_v53, %v12065_v0  ;;  %5875 = vmatpush.bf16.msra.mxu0 %v11300_v36  ;;  %v6107_v35 = vmax.f32 %v5619_v28, 0.0  ;;  %v11265_v61 = vld [vmem:[#allocation8 + $0x78] sm:$0xf0] }
 0x448   : > { %v5566_v16 = vadd.f32 %v5565_v18, %v5537_v34  ;;  %5767 = vmatmul.bf16.gmra.mxu0 %v16982_v39  ;;  %v11556_v18 = vor.u32 %v15202_v49, %v11553_v3  ;;  %v15194_v40 = vld [vmem:[#allocation8 + $0x25c] sm:$0xf] }
 0x449   : > { %5796 = vmatmul.bf16.gmra.mxu1 %v16985_v43  ;;  %5962 = vmatpush.bf16.msra.mxu3 %v12068_v7  ;;  %v15258_v53 = vld [vmem:[#allocation8 + $0x45c] sm:$0xf] }
 0x44a   : > { %v5591_v4 = vpop.f32.mrf.mxu2  ;;  %5904 = vmatpush.bf16.msra.mxu1 %v11556_v18  ;;  %v15322_v0 = vld [vmem:[#allocation8 + $0x65c] sm:$0xf] }
 0x44b   : > { %v5592_v2 = vadd.f32 %v5591_v4, %v5563_v33  ;;  %v5620_v8 = vpop.f32.mrf.mxu3  ;;  %v15130_v33 = vld [vmem:[#allocation8 + $0x5c] sm:$0xf] }
 0x44c   : > { %v11777_v4 = vld [vmem:[#allocation8 + $0x478] sm:$0xf0]  ;;  %v11268_v36 = vor.u32 %v15130_v33, %v11265_v61 }
 0x44d   : > { %v5621_v10 = vadd.f32 %v5620_v8, %v5592_v2  ;;  %v5538_v34 = vpop.f32.mrf.mxu0  ;;  %v12033_v8 = vld [vmem:[#allocation8 + $0x678] sm:$0xf0] }
 0x44e   : > { %v5539_v63 = vadd.f32 %v5538_v34, %v17443_v29  ;;  %v5567_v5 = vpop.f32.mrf.mxu1  ;;  %v11780_v29 = vor.u32 %v15258_v53, %v11777_v4  ;;  %v11521_v28 = vld [vmem:[#allocation8 + $0x278] sm:$0xf0]  ;;  %5876 = vmatpush.bf16.msra.mxu0 %v11268_v36  ;;  %v12036_v3 = vor.u32 %v15322_v0, %v12033_v8 }
 0x44f   : > { %v6115_v24 = vmax.f32 %v5621_v10, 0.0  ;;  %5825 = vmatmul.bf16.gmra.mxu2 %v16992_v9  ;;  %v11524_v10 = vor.u32 %v15194_v40, %v11521_v28  ;;  %v15122_v34 = vld [vmem:[#allocation8 + $0x1c] sm:$0xf] }
 0x450   : > { %v5568_v6 = vadd.f32 %v5567_v5, %v5539_v63  ;;  %5854 = vmatmul.bf16.gmra.mxu3 %v16994_v17  ;;  %5934 = vmatpush.bf16.msra.mxu2 %v11780_v29  ;;  %v11233_v18 = vld [vmem:[#allocation8 + $0x38] sm:$0xf0] }
 0x451   : > { %v17474_v62 = vpack.c.bf16 %v6115_v24, %v6107_v35  ;;  %v15186_v63 = vld [vmem:[#allocation8 + $0x21c] sm:$0xf]  ;;  %5963 = vmatpush.bf16.msra.mxu3 %v12036_v3  ;;  %5905 = vmatpush.bf16.msra.mxu1 %v11524_v10  ;;  %v11236_v24 = vor.u32 %v15122_v34, %v11233_v18 }
 0x452   : > { %v5594_v2 = vpop.f32.mrf.mxu2  ;;  %v11489_v33 = vld [vmem:[#allocation8 + $0x238] sm:$0xf0] }
 0x453   : > { %19110 = vst [vmem:[#allocation40_spill] sm:$0xff] %v17474_v62  ;;  %v5595_v7 = vadd.f32 %v5594_v2, %v5566_v16  ;;  %v5623_v49 = vpop.f32.mrf.mxu3  ;;  %v11492_v4 = vor.u32 %v15186_v63, %v11489_v33  ;;  %5877 = vmatpush.bf16.msra.mxu0 %v11236_v24  ;;  %v15250_v36 = vld [vmem:[#allocation8 + $0x41c] sm:$0xf] }
 0x454   : > { %v11745_v40 = vld [vmem:[#allocation8 + $0x438] sm:$0xf0] }
 0x455   : > { %v5624_v5 = vadd.f32 %v5623_v49, %v5595_v7  ;;  %v5541_v35 = vpop.f32.mrf.mxu0  ;;  %v11748_v0 = vor.u32 %v15250_v36, %v11745_v40  ;;  %v15314_v2 = vld [vmem:[#allocation8 + $0x61c] sm:$0xf]  ;;  %5906 = vmatpush.bf16.msra.mxu1 %v11492_v4 }
 0x456   : > { %v5542_v61 = vadd.f32 %v5541_v35, %v17448_v42  ;;  %v5570_v53 = vpop.f32.mrf.mxu1  ;;  %v12001_v29 = vld [vmem:[#allocation8 + $0x638] sm:$0xf0] }
 0x457   : > { %v12004_v28 = vor.u32 %v15314_v2, %v12001_v29  ;;  %5935 = vmatpush.bf16.msra.mxu2 %v11748_v0  ;;  %v6123_v18 = vmax.f32 %v5624_v5, 0.0  ;;  %v15562_v33 = vld [vmem:[#allocation8 + $0xddc] sm:$0xf] }
 0x458   : > { %v5571_v16 = vadd.f32 %v5570_v53, %v5542_v61  ;;  %5772 = vmatmul.bf16.gmra.mxu0 %v17002_v11  ;;  %v12993_v61 = vld [vmem:[#allocation8 + $0xdf8] sm:$0xf0] }
 0x459   : > { %5801 = vmatmul.bf16.gmra.mxu1 %v17005_v21  ;;  %5964 = vmatpush.bf16.msra.mxu3 %v12004_v28  ;;  %v12996_v4 = vor.u32 %v15562_v33, %v12993_v61  ;;  %v12481_v36 = vld [vmem:[#allocation8 + $0x9f8] sm:$0xf0] }
 0x45a   : > { %v5596_v8 = vpop.f32.mrf.mxu2  ;;  %v15626_v40 = vld [vmem:[#allocation8 + $0xfdc] sm:$0xf] }
 0x45b   : > { %v5597_v7 = vadd.f32 %v5596_v8, %v5568_v6  ;;  %v5625_v49 = vpop.f32.mrf.mxu3  ;;  %v15434_v6 = vld [vmem:[#allocation8 + $0x9dc] sm:$0xf]  ;;  %6044 = vmatpush.bf16.msrb.mxu2 %v12996_v4 }
 0x45c   : > { %v13249_v0 = vld [vmem:[#allocation8 + $0xff8] sm:$0xf0]  ;;  %v12484_v29 = vor.u32 %v15434_v6, %v12481_v36 }
 0x45d   : > { %v5626_v42 = vadd.f32 %v5625_v49, %v5597_v7  ;;  %v5543_v3 = vpop.f32.mrf.mxu0  ;;  %v13252_v5 = vor.u32 %v15626_v40, %v13249_v0  ;;  %v15498_v7 = vld [vmem:[#allocation8 + $0xbdc] sm:$0xf] }
 0x45e   : > { %v5544_v10 = vadd.f32 %v5543_v3, %v17453_v1  ;;  %v5572_v34 = vpop.f32.mrf.mxu1  ;;  %5986 = vmatpush.bf16.msrb.mxu0 %v12484_v29  ;;  %v12737_v49 = vld [vmem:[#allocation8 + $0xbf8] sm:$0xf0] }
 0x45f   : > { %v6131_v63 = vmax.f32 %v5626_v42, 0.0  ;;  %5830 = vmatmul.bf16.gmra.mxu2 %v17012_v51  ;;  %6073 = vmatpush.bf16.msrb.mxu3 %v13252_v5  ;;  %v15426_v33 = vld [vmem:[#allocation8 + $0x99c] sm:$0xf] }
 0x460   : > { %v5573_v35 = vadd.f32 %v5572_v34, %v5544_v10  ;;  %5859 = vmatmul.bf16.gmra.mxu3 %v17014_v52  ;;  %v12740_v10 = vor.u32 %v15498_v7, %v12737_v49  ;;  %v12449_v61 = vld [vmem:[#allocation8 + $0x9b8] sm:$0xf0] }
 0x461   : > { %v17482_v24 = vpack.c.bf16 %v6131_v63, %v6123_v18  ;;  %v15554_v18 = vld [vmem:[#allocation8 + $0xd9c] sm:$0xf]  ;;  %v12452_v4 = vor.u32 %v15426_v33, %v12449_v61 }
 0x462   : > { %v5599_v53 = vpop.f32.mrf.mxu2  ;;  %6015 = vmatpush.bf16.msrb.mxu1 %v12740_v10  ;;  %v15618_v6 = vld [vmem:[#allocation8 + $0xf9c] sm:$0xf] }
 0x463   : > { %19111 = vst [vmem:[#allocation41_spill] sm:$0xff] %v17482_v24  ;;  %v5600_v2 = vadd.f32 %v5599_v53, %v5571_v16  ;;  %v5628_v1 = vpop.f32.mrf.mxu3  ;;  %v12961_v16 = vld [vmem:[#allocation8 + $0xdb8] sm:$0xf0]  ;;  %5987 = vmatpush.bf16.msrb.mxu0 %v12452_v4  ;;  %v17492_v4 = vld [vmem:[#allocation10] sm:$0xff] }
 0x464   : > { %v12964_v63 = vor.u32 %v15554_v18, %v12961_v16  ;;  %v13217_v36 = vld [vmem:[#allocation8 + $0xfb8] sm:$0xf0] }
 0x465   : > { %v5629_v8 = vadd.f32 %v5628_v1, %v5600_v2  ;;  %v5546_v28 = vpop.f32.mrf.mxu0  ;;  %v15490_v29 = vld [vmem:[#allocation8 + $0xb9c] sm:$0xf] }
 0x466   : > { %v5547_v42 = vadd.f32 %v5546_v28, %v17458_v14  ;;  %v5575_v3 = vpop.f32.mrf.mxu1  ;;  %6045 = vmatpush.bf16.msrb.mxu2 %v12964_v63  ;;  %v13220_v14 = vor.u32 %v15618_v6, %v13217_v36  ;;  %v12705_v5 = vld [vmem:[#allocation8 + $0xbb8] sm:$0xf0] }
 0x467   : > { %v12708_v49 = vor.u32 %v15490_v29, %v12705_v5  ;;  %v12929_v18 = vld [vmem:[#allocation8 + $0xd78] sm:$0xf0] }
 0x468   : > { %v5576_v34 = vadd.f32 %v5575_v3, %v5547_v42  ;;  %5777 = vmatmul.bf16.gmra.mxu0 %v17022_v37  ;;  %6074 = vmatpush.bf16.msrb.mxu3 %v13220_v14  ;;  %v6139_v42 = vmax.f32 %v5629_v8, 0.0  ;;  %v15418_v16 = vld [vmem:[#allocation8 + $0x95c] sm:$0xf]  ;;  %v17495_v8 = vperm.slane %v17492_v4, 6 }
 0x469   : > { %5806 = vmatmul.bf16.gmra.mxu1 %v17025_v41  ;;  %v12417_v61 = vld [vmem:[#allocation8 + $0x978] sm:$0xf0] }
 0x46a   : > { %v5601_v53 = vpop.f32.mrf.mxu2  ;;  %6016 = vmatpush.bf16.msrb.mxu1 %v12708_v49  ;;  %v15610_v6 = vld [vmem:[#allocation8 + $0xf5c] sm:$0xf]  ;;  %v12420_v36 = vor.u32 %v15418_v16, %v12417_v61 }
 0x46b   : > { %v5602_v40 = vadd.f32 %v5601_v53, %v5573_v35  ;;  %v5630_v0 = vpop.f32.mrf.mxu3  ;;  %v15546_v35 = vld [vmem:[#allocation8 + $0xd5c] sm:$0xf] }
 0x46c   : > { %v12932_v33 = vor.u32 %v15546_v35, %v12929_v18  ;;  %v13185_v53 = vld [vmem:[#allocation8 + $0xf78] sm:$0xf0]  ;;  %5988 = vmatpush.bf16.msrb.mxu0 %v12420_v36 }
 0x46d   : > { %v5631_v2 = vadd.f32 %v5630_v0, %v5602_v40  ;;  %v5548_v1 = vpop.f32.mrf.mxu0  ;;  %v13188_v40 = vor.u32 %v15610_v6, %v13185_v53  ;;  %v15482_v29 = vld [vmem:[#allocation8 + $0xb5c] sm:$0xf] }
 0x46e   : > { %v5549_v28 = vadd.f32 %v5548_v1, %v17463_v38  ;;  %v5577_v7 = vpop.f32.mrf.mxu1  ;;  %6046 = vmatpush.bf16.msrb.mxu2 %v12932_v33  ;;  %v12673_v5 = vld [vmem:[#allocation8 + $0xb78] sm:$0xf0] }
 0x46f   : > { %v6147_v3 = vmax.f32 %v5631_v2, 0.0  ;;  %5835 = vmatmul.bf16.gmra.mxu2 %v17032_v19  ;;  %6075 = vmatpush.bf16.msrb.mxu3 %v13188_v40  ;;  %v12676_v49 = vor.u32 %v15482_v29, %v12673_v5  ;;  %v12897_v35 = vld [vmem:[#allocation8 + $0xd38] sm:$0xf0] }
 0x470   : > { %v5578_v10 = vadd.f32 %v5577_v7, %v5549_v28  ;;  %5864 = vmatmul.bf16.gmra.mxu3 %v17034_v13  ;;  %v15410_v18 = vld [vmem:[#allocation8 + $0x91c] sm:$0xf] }
 0x471   : > { %v17490_v63 = vpack.c.bf16 %v6147_v3, %v6139_v42  ;;  %6017 = vmatpush.bf16.msrb.mxu1 %v12676_v49  ;;  %v15538_v3 = vld [vmem:[#allocation8 + $0xd1c] sm:$0xf] }
 0x472   : > { %v5604_v38 = vpop.f32.mrf.mxu2  ;;  %v12385_v16 = vld [vmem:[#allocation8 + $0x938] sm:$0xf0] }
 0x473   : > { %v5605_v0 = vadd.f32 %v5604_v38, %v5576_v34  ;;  %v5633_v14 = vpop.f32.mrf.mxu3  ;;  %v12900_v34 = vor.u32 %v15538_v3, %v12897_v35  ;;  %v15602_v33 = vld [vmem:[#allocation8 + $0xf1c] sm:$0xf]  ;;  %v12388_v6 = vor.u32 %v15410_v18, %v12385_v16 }
 0x474   : > { %v13153_v53 = vld [vmem:[#allocation8 + $0xf38] sm:$0xf0] }
 0x475   : > { %v5634_v2 = vadd.f32 %v5633_v14, %v5605_v0  ;;  %v5647_v1 = vpop.f32.mrf.mxu0  ;;  %6047 = vmatpush.bf16.msrb.mxu2 %v12900_v34  ;;  %v13156_v40 = vor.u32 %v15602_v33, %v13153_v53  ;;  %5989 = vmatpush.bf16.msrb.mxu0 %v12388_v6  ;;  %v12865_v3 = vld [vmem:[#allocation8 + $0xcf8] sm:$0xf0] }
 0x476   : > { %v5648_v28 = vadd.f32 %v5647_v1, %v17495_v8  ;;  %v5676_v7 = vpop.f32.mrf.mxu1  ;;  %v12641_v1 = vld [vmem:[#allocation8 + $0xb38] sm:$0xf0] }
 0x477   : > { %6076 = vmatpush.bf16.msrb.mxu3 %v13156_v40  ;;  %v15402_v35 = vld [vmem:[#allocation8 + $0x8dc] sm:$0xf] }
 0x478   : > { %v5677_v42 = vadd.f32 %v5676_v7, %v5648_v28  ;;  %5878 = vmatmul.bf16.vlgmr.msra.gmra.mxu0 %v16870_v27  ;;  %v15474_v27 = vld [vmem:[#allocation8 + $0xb1c] sm:$0xf]  ;;  %v6155_v28 = vmax.f32 %v5634_v2, 0.0 }
 0x479   : > { %5907 = vmatmul.bf16.vlgmr.msra.gmra.mxu1 %v16873_v30  ;;  %v12644_v5 = vor.u32 %v15474_v27, %v12641_v1  ;;  %v12353_v16 = vld [vmem:[#allocation8 + $0x8f8] sm:$0xf0] }
 0x47a   : > { %v5606_v61 = vpop.f32.mrf.mxu2  ;;  %v15594_v33 = vld [vmem:[#allocation8 + $0xedc] sm:$0xf]  ;;  %v12356_v53 = vor.u32 %v15402_v35, %v12353_v16 }
 0x47b   : > { %v5607_v38 = vadd.f32 %v5606_v61, %v5578_v10  ;;  %v5635_v36 = vpop.f32.mrf.mxu3  ;;  %6018 = vmatpush.bf16.msrb.mxu1 %v12644_v5  ;;  %v15530_v10 = vld [vmem:[#allocation8 + $0xcdc] sm:$0xf] }
 0x47c   : > { %v12868_v18 = vor.u32 %v15530_v10, %v12865_v3  ;;  %v13121_v61 = vld [vmem:[#allocation8 + $0xef8] sm:$0xf0]  ;;  %5990 = vmatpush.bf16.msrb.mxu0 %v12356_v53 }
 0x47d   : > { %v5636_v0 = vadd.f32 %v5635_v36, %v5607_v38  ;;  %v5649_v14 = vpop.f32.mrf.mxu0  ;;  %v13124_v38 = vor.u32 %v15594_v33, %v13121_v61  ;;  %v15466_v40 = vld [vmem:[#allocation8 + $0xadc] sm:$0xf] }
 0x47e   : > { %v5650_v29 = vadd.f32 %v5649_v14, %v17495_v8  ;;  %v5678_v30 = vpop.f32.mrf.mxu1  ;;  %6048 = vmatpush.bf16.msrb.mxu2 %v12868_v18  ;;  %v12833_v5 = vld [vmem:[#allocation8 + $0xcb8] sm:$0xf0] }
 0x47f   : > { %v6163_v7 = vmax.f32 %v5636_v0, 0.0  ;;  %5936 = vmatmul.bf16.vlgmr.msra.gmra.mxu2 %v16880_v47  ;;  %6077 = vmatpush.bf16.msrb.mxu3 %v13124_v38  ;;  %v12609_v0 = vld [vmem:[#allocation8 + $0xaf8] sm:$0xf0] }
 0x480   : > { %v5679_v49 = vadd.f32 %v5678_v30, %v5650_v29  ;;  %5965 = vmatmul.bf16.vlgmr.msra.gmra.mxu3 %v16882_v48  ;;  %v12612_v1 = vor.u32 %v15466_v40, %v12609_v0  ;;  %v15522_v30 = vld [vmem:[#allocation8 + $0xc9c] sm:$0xf] }
 0x481   : > { %v17503_v34 = vpack.c.bf16 %v6163_v7, %v6155_v28  ;;  %v15394_v28 = vld [vmem:[#allocation8 + $0x89c] sm:$0xf] }
 0x482   : > { %v5705_v6 = vpop.f32.mrf.mxu2  ;;  %6019 = vmatpush.bf16.msrb.mxu1 %v12612_v1  ;;  %v12321_v7 = vld [vmem:[#allocation8 + $0x8b8] sm:$0xf0] }
 0x483   : > { %v5706_v2 = vadd.f32 %v5705_v6, %v5677_v42  ;;  %v5734_v36 = vpop.f32.mrf.mxu3  ;;  %v12836_v42 = vor.u32 %v15522_v30, %v12833_v5  ;;  %v15586_v10 = vld [vmem:[#allocation8 + $0xe9c] sm:$0xf]  ;;  %v12324_v35 = vor.u32 %v15394_v28, %v12321_v7 }
 0x484   : > { %v13089_v18 = vld [vmem:[#allocation8 + $0xeb8] sm:$0xf0] }
 0x485   : > { %v17505_v47 = vadd.f32 %v5734_v36, %v5706_v2  ;;  %v5652_v48 = vpop.f32.mrf.mxu0  ;;  %6049 = vmatpush.bf16.msrb.mxu2 %v12836_v42  ;;  %v13092_v61 = vor.u32 %v15586_v10, %v13089_v18  ;;  %5991 = vmatpush.bf16.msrb.mxu0 %v12324_v35  ;;  %v15458_v6 = vld [vmem:[#allocation8 + $0xa9c] sm:$0xf] }
 0x486   : > { %v5653_v14 = vadd.f32 %v5652_v48, %v17495_v8  ;;  %v5681_v27 = vpop.f32.mrf.mxu1  ;;  %v12577_v53 = vld [vmem:[#allocation8 + $0xab8] sm:$0xf0] }
 0x487   : > { %6078 = vmatpush.bf16.msrb.mxu3 %v13092_v61  ;;  %v12580_v2 = vor.u32 %v15458_v6, %v12577_v53  ;;  %v12801_v40 = vld [vmem:[#allocation8 + $0xc78] sm:$0xf0] }
 0x488   : > { %v5682_v29 = vadd.f32 %v5681_v27, %v5653_v14  ;;  %5883 = vmatmul.bf16.gmra.mxu0 %v16890_v20  ;;  %v15386_v0 = vld [vmem:[#allocation8 + $0x85c] sm:$0xf] }
 0x489   : > { %5912 = vmatmul.bf16.gmra.mxu1 %v16893_v23  ;;  %v12289_v27 = vld [vmem:[#allocation8 + $0x878] sm:$0xf0] }
 0x48a   : > { %v5707_v3 = vpop.f32.mrf.mxu2  ;;  %6020 = vmatpush.bf16.msrb.mxu1 %v12580_v2  ;;  %v15578_v1 = vld [vmem:[#allocation8 + $0xe5c] sm:$0xf]  ;;  %v12292_v42 = vor.u32 %v15386_v0, %v12289_v27 }
 0x48b   : > { %v5708_v16 = vadd.f32 %v5707_v3, %v5679_v49  ;;  %v5736_v33 = vpop.f32.mrf.mxu3  ;;  %v15514_v49 = vld [vmem:[#allocation8 + $0xc5c] sm:$0xf] }
 0x48c   : > { %v12804_v14 = vor.u32 %v15514_v49, %v12801_v40  ;;  %v13057_v30 = vld [vmem:[#allocation8 + $0xe78] sm:$0xf0]  ;;  %5992 = vmatpush.bf16.msrb.mxu0 %v12292_v42 }
 0x48d   : > { %v17510_v20 = vadd.f32 %v5736_v33, %v5708_v16  ;;  %v5654_v38 = vpop.f32.mrf.mxu0  ;;  %v13060_v28 = vor.u32 %v15578_v1, %v13057_v30  ;;  %v15450_v7 = vld [vmem:[#allocation8 + $0xa5c] sm:$0xf] }
 0x48e   : > { %v5655_v23 = vadd.f32 %v5654_v38, %v17495_v8  ;;  %v5683_v36 = vpop.f32.mrf.mxu1  ;;  %v12545_v10 = vld [vmem:[#allocation8 + $0xa78] sm:$0xf0]  ;;  %6050 = vmatpush.bf16.msrb.mxu2 %v12804_v14 }
 0x48f   : > { %5941 = vmatmul.bf16.gmra.mxu2 %v16900_v45  ;;  %v12548_v45 = vor.u32 %v15450_v7, %v12545_v10  ;;  %6079 = vmatpush.bf16.msrb.mxu3 %v13060_v28  ;;  %v15378_v18 = vld [vmem:[#allocation8 + $0x81c] sm:$0xf] }
 0x490   : > { %v5684_v48 = vadd.f32 %v5683_v36, %v5655_v23  ;;  %5970 = vmatmul.bf16.gmra.mxu3 %v16902_v50  ;;  %v12257_v50 = vld [vmem:[#allocation8 + $0x838] sm:$0xf0] }
 0x491   : > { %v15442_v16 = vld [vmem:[#allocation8 + $0xa1c] sm:$0xf]  ;;  %6021 = vmatpush.bf16.msrb.mxu1 %v12548_v45  ;;  %v12260_v6 = vor.u32 %v15378_v18, %v12257_v50 }
 0x492   : > { %v5710_v5 = vpop.f32.mrf.mxu2  ;;  %v12513_v53 = vld [vmem:[#allocation8 + $0xa38] sm:$0xf0] }
 0x493   : > { %v5711_v3 = vadd.f32 %v5710_v5, %v5682_v29  ;;  %v5739_v35 = vpop.f32.mrf.mxu3  ;;  %v12516_v23 = vor.u32 %v15442_v16, %v12513_v53  ;;  %v15506_v29 = vld [vmem:[#allocation8 + $0xc1c] sm:$0xf]  ;;  %5993 = vmatpush.bf16.msrb.mxu0 %v12260_v6 }
 0x494   : > { %v12769_v49 = vld [vmem:[#allocation8 + $0xc38] sm:$0xf0] }
 0x495   : > { %v17515_v33 = vadd.f32 %v5739_v35, %v5711_v3  ;;  %v5657_v61 = vpop.f32.mrf.mxu0  ;;  %v12772_v40 = vor.u32 %v15506_v29, %v12769_v49  ;;  %v15570_v0 = vld [vmem:[#allocation8 + $0xe1c] sm:$0xf]  ;;  %6022 = vmatpush.bf16.msrb.mxu1 %v12516_v23  ;;  %v15795_v29 = vld [vmem:[#allocation11 + $0x520] sm:$0xf0] }
 0x496   : > { %v5658_v38 = vadd.f32 %v5657_v61, %v17495_v8  ;;  %v5686_v2 = vpop.f32.mrf.mxu1  ;;  %v13025_v14 = vld [vmem:[#allocation8 + $0xe38] sm:$0xf0] }
 0x497   : > { %v13028_v1 = vor.u32 %v15570_v0, %v13025_v14  ;;  %6051 = vmatpush.bf16.msrb.mxu2 %v12772_v40 }
 0x498   : > { %v5687_v36 = vadd.f32 %v5686_v2, %v5658_v38  ;;  %5888 = vmatmul.bf16.gmra.mxu0 %v16910_v25 }
 0x499   : > { %5917 = vmatmul.bf16.gmra.mxu1 %v16913_v32  ;;  %6080 = vmatpush.bf16.msrb.mxu3 %v13028_v1 }
 0x49a   : > { %v5712_v27 = vpop.f32.mrf.mxu2 }
 0x49b   : > { %v5713_v30 = vadd.f32 %v5712_v27, %v5684_v48  ;;  %v5741_v5 = vpop.f32.mrf.mxu3 }
 0x49d   : > { %v17520_v42 = vadd.f32 %v5741_v5, %v5713_v30  ;;  %v5659_v28 = vpop.f32.mrf.mxu0  ;;  %v15683_v30 = vld [vmem:[#allocation11 + $0x1a0] sm:$0xf0]  ;;  %v14123_v5 = vld [vmem:[#allocation11 + $0x6c8] sm:$0xf] }
 0x49e   : > { %v5660_v25 = vadd.f32 %v5659_v28, %v17495_v8  ;;  %v5688_v7 = vpop.f32.mrf.mxu1  ;;  %v15851_v28 = vld [vmem:[#allocation11 + $0x6e0] sm:$0xf0] }
 0x49f   : > { %5946 = vmatmul.bf16.gmra.mxu2 %v16920_v54 }
 0x4a0   : > { %v5689_v32 = vadd.f32 %v5688_v7, %v5660_v25  ;;  %5975 = vmatmul.bf16.gmra.mxu3 %v16922_v56  ;;  %v13675_v25 = vld [vmem:[#allocation11 + $0x348] sm:$0xf]  ;;  %v15739_v7 = vld [vmem:[#allocation11 + $0x360] sm:$0xf0] }
 0x4a2   : > { %v5715_v10 = vpop.f32.mrf.mxu2 }
 0x4a3   : > { %v5716_v3 = vadd.f32 %v5715_v10, %v5687_v36  ;;  %v5744_v35 = vpop.f32.mrf.mxu3  ;;  %v13899_v36 = vld [vmem:[#allocation11 + $0x508] sm:$0xf]  ;;  %v13676_v10 = vor.u32 %v15739_v7, %v13675_v25  ;;  %v13367_v25 = vld [vmem:[#allocation11 + $0xe0] sm:$0xf] }
 0x4a4   : > { %v13591_v7 = vld [vmem:[#allocation11 + $0x2a0] sm:$0xf] }
 0x4a5   : > { %v17525_v45 = vadd.f32 %v5744_v35, %v5716_v3  ;;  %v5662_v48 = vpop.f32.mrf.mxu0  ;;  %v13871_v3 = vld [vmem:[#allocation11 + $0x4d0] sm:$0xf]  ;;  %v15788_v35 = vld [vmem:[#allocation11 + $0x4e8] sm:$0xf0]  ;;  %9059 = vmatpush.bf16.msra.mxu1 %v13676_v10 }
 0x4a6   : > { %v5663_v18 = vadd.f32 %v5662_v48, %v17495_v8  ;;  %v5691_v50 = vpop.f32.mrf.mxu1 }
 0x4a8   : > { %v5692_v16 = vadd.f32 %v5691_v50, %v5663_v18  ;;  %5893 = vmatmul.bf16.gmra.mxu0 %v16930_v15  ;;  %v13900_v15 = vor.u32 %v15795_v29, %v13899_v36  ;;  %v13395_v29 = vld [vmem:[#allocation11 + $0x118] sm:$0xf] }
 0x4a9   : > { %5922 = vmatmul.bf16.gmra.mxu1 %v16933_v22 }
 0x4aa   : > { %v5717_v61 = vpop.f32.mrf.mxu2  ;;  %9088 = vmatpush.bf16.msra.mxu2 %v13900_v15  ;;  %v13619_v15 = vld [vmem:[#allocation11 + $0x2d8] sm:$0xf] }
 0x4ab   : > { %v5718_v6 = vadd.f32 %v5717_v61, %v5689_v32  ;;  %v5746_v54 = vpop.f32.mrf.mxu3  ;;  %v14124_v32 = vor.u32 %v15851_v28, %v14123_v5  ;;  %v13647_v61 = vld [vmem:[#allocation11 + $0x310] sm:$0xf] }
 0x4ad   : > { %v17530_v53 = vadd.f32 %v5746_v54, %v5718_v6  ;;  %v5664_v56 = vpop.f32.mrf.mxu0  ;;  %9117 = vmatpush.bf16.msra.mxu3 %v14124_v32 }
 0x4ae   : > { %v5665_v38 = vadd.f32 %v5664_v56, %v17495_v8  ;;  %v5693_v2 = vpop.f32.mrf.mxu1  ;;  %v13451_v8 = vld [vmem:[#allocation11 + $0x188] sm:$0xf] }
 0x4af   : > { %5951 = vmatmul.bf16.gmra.mxu2 %v16946_v44 }
 0x4b0   : > { %v5694_v23 = vadd.f32 %v5693_v2, %v5665_v38  ;;  %5980 = vmatmul.bf16.gmra.mxu3 %v16948_v46  ;;  %v13452_v46 = vor.u32 %v15683_v30, %v13451_v8  ;;  %v15781_v30 = vld [vmem:[#allocation11 + $0x4b0] sm:$0xf0] }
 0x4b2   : > { %v5720_v49 = vpop.f32.mrf.mxu2  ;;  %9030 = vmatpush.bf16.msra.mxu0 %v13452_v46 }
 0x4b3   : > { %v5721_v40 = vadd.f32 %v5720_v49, %v5692_v16  ;;  %v5749_v22 = vpop.f32.mrf.mxu3  ;;  %v13423_v16 = vld [vmem:[#allocation11 + $0x150] sm:$0xf]  ;;  %v15669_v49 = vld [vmem:[#allocation11 + $0x130] sm:$0xf0] }
 0x4b5   : > { %v17535_v0 = vadd.f32 %v5749_v22, %v5721_v40  ;;  %v5763_v14 = vpop.f32.mrf.mxu0  ;;  %v14095_v40 = vld [vmem:[#allocation11 + $0x690] sm:$0xf]  ;;  %v15844_v22 = vld [vmem:[#allocation11 + $0x6a8] sm:$0xf0] }
 0x4b6   : > { %v5764_v27 = vadd.f32 %v5763_v14, %v17505_v47  ;;  %v5792_v1 = vpop.f32.mrf.mxu1  ;;  %v13872_v47 = vor.u32 %v15788_v35, %v13871_v3  ;;  %v13843_v14 = vld [vmem:[#allocation11 + $0x498] sm:$0xf]  ;;  %v14096_v8 = vor.u32 %v15844_v22, %v14095_v40  ;;  %v15718_v35 = vld [vmem:[#allocation11 + $0x2b8] sm:$0xf0] }
 0x4b7   : > { %v13844_v28 = vor.u32 %v15781_v30, %v13843_v14  ;;  %v15830_v40 = vld [vmem:[#allocation11 + $0x638] sm:$0xf0] }
 0x4b8   : > { %v5793_v44 = vadd.f32 %v5792_v1, %v5764_v27  ;;  %5994 = vmatmul.bf16.vlgmr.msrb.gmra.mxu0 %v16962_v57  ;;  %9089 = vmatpush.bf16.msra.mxu2 %v13872_v47  ;;  %v15676_v57 = vld [vmem:[#allocation11 + $0x168] sm:$0xf0]  ;;  %v13396_v27 = vor.u32 %v15669_v49, %v13395_v29 }
 0x4b9   : > { %6023 = vmatmul.bf16.vlgmr.msrb.gmra.mxu1 %v16965_v31  ;;  %v13424_v56 = vor.u32 %v15676_v57, %v13423_v16  ;;  %v15732_v31 = vld [vmem:[#allocation11 + $0x328] sm:$0xf0]  ;;  %9118 = vmatpush.bf16.msra.mxu3 %v14096_v8  ;;  %v13535_v8 = vld [vmem:[#allocation11 + $0x230] sm:$0xf] }
 0x4ba   : > { %v5722_v48 = vpop.f32.mrf.mxu2  ;;  %v13648_v36 = vor.u32 %v15732_v31, %v13647_v61  ;;  %v13339_v61 = vld [vmem:[#allocation11 + $0xa8] sm:$0xf]  ;;  %v13815_v31 = vld [vmem:[#allocation11 + $0x460] sm:$0xf] }
 0x4bb   : > { %v5723_v18 = vadd.f32 %v5722_v48, %v5694_v23  ;;  %v5751_v50 = vpop.f32.mrf.mxu3  ;;  %9031 = vmatpush.bf16.msra.mxu0 %v13424_v56  ;;  %v13563_v56 = vld [vmem:[#allocation11 + $0x268] sm:$0xf] }
 0x4bc   : > { %9060 = vmatpush.bf16.msra.mxu1 %v13648_v36  ;;  %9090 = vmatpush.bf16.msra.mxu2 %v13844_v28  ;;  %v15711_v36 = vld [vmem:[#allocation11 + $0x280] sm:$0xf0] }
 0x4bd   : > { %v17540_v6 = vadd.f32 %v5751_v50, %v5723_v18  ;;  %v5765_v54 = vpop.f32.mrf.mxu0  ;;  %v14067_v18 = vld [vmem:[#allocation11 + $0x658] sm:$0xf]  ;;  %v13592_v50 = vor.u32 %v15718_v35, %v13591_v7  ;;  %v13564_v49 = vor.u32 %v15711_v36, %v13563_v56  ;;  %v15823_v35 = vld [vmem:[#allocation11 + $0x600] sm:$0xf0]  ;;  %v15760_v56 = vld [vmem:[#allocation11 + $0x408] sm:$0xf0] }
 0x4be   : > { %v5766_v38 = vadd.f32 %v5765_v54, %v17510_v20  ;;  %v5794_v2 = vpop.f32.mrf.mxu1  ;;  %v15725_v20 = vld [vmem:[#allocation11 + $0x2f0] sm:$0xf0]  ;;  %v15655_v54 = vld [vmem:[#allocation11 + $0xc0] sm:$0xf0]  ;;  %v15816_v36 = vld [vmem:[#allocation11 + $0x5c8] sm:$0xf0] }
 0x4bf   : > { %6052 = vmatmul.bf16.vlgmr.msrb.gmra.mxu2 %v16972_v58  ;;  %9032 = vmatpush.bf16.msra.mxu0 %v13396_v27  ;;  %v13620_v58 = vor.u32 %v15725_v20, %v13619_v15  ;;  %v14039_v15 = vld [vmem:[#allocation11 + $0x620] sm:$0xf]  ;;  %v13311_v27 = vld [vmem:[#allocation11 + $0x70] sm:$0xf] }
 0x4c0   : > { %v5795_v23 = vadd.f32 %v5794_v2, %v5766_v38  ;;  %6081 = vmatmul.bf16.vlgmr.msrb.gmra.mxu3 %v16974_v59  ;;  %v15662_v59 = vld [vmem:[#allocation11 + $0xf8] sm:$0xf0]  ;;  %v13340_v2 = vor.u32 %v15655_v54, %v13339_v61  ;;  %v15697_v61 = vld [vmem:[#allocation11 + $0x210] sm:$0xf0] }
 0x4c1   : > { %9061 = vmatpush.bf16.msra.mxu1 %v13620_v58  ;;  %v13368_v3 = vor.u32 %v15662_v59, %v13367_v25  ;;  %v15774_v38 = vld [vmem:[#allocation11 + $0x478] sm:$0xf0]  ;;  %v13787_v25 = vld [vmem:[#allocation11 + $0x428] sm:$0xf]  ;;  %v15767_v59 = vld [vmem:[#allocation11 + $0x440] sm:$0xf0] }
 0x4c2   : > { %v5821_v1 = vpop.f32.mrf.mxu2  ;;  %v13816_v29 = vor.u32 %v15774_v38, %v13815_v31  ;;  %v13983_v31 = vld [vmem:[#allocation11 + $0x5b0] sm:$0xf] }
 0x4c3   : > { %v5822_v5 = vadd.f32 %v5821_v1, %v5793_v44  ;;  %v5850_v46 = vpop.f32.mrf.mxu3  ;;  %v15837_v44 = vld [vmem:[#allocation11 + $0x670] sm:$0xf0]  ;;  %9033 = vmatpush.bf16.msra.mxu0 %v13368_v3  ;;  %v15648_v1 = vld [vmem:[#allocation11 + $0x88] sm:$0xf0]  ;;  %v13788_v3 = vor.u32 %v15767_v59, %v13787_v25  ;;  %v15746_v25 = vld [vmem:[#allocation11 + $0x398] sm:$0xf0] }
 0x4c4   : > { %v14068_v16 = vor.u32 %v15837_v44, %v14067_v18  ;;  %9091 = vmatpush.bf16.msra.mxu2 %v13816_v29  ;;  %v13312_v20 = vor.u32 %v15648_v1, %v13311_v27  ;;  %v13283_v18 = vld [vmem:[#allocation11 + $0x38] sm:$0xf]  ;;  %v13255_v29 = vld [vmem:[#allocation11] sm:$0xf] }
 0x4c5   : > { %v17545_v32 = vadd.f32 %v5850_v46, %v5822_v5  ;;  %v5768_v10 = vpop.f32.mrf.mxu0  ;;  %9062 = vmatpush.bf16.msra.mxu1 %v13592_v50  ;;  %v15704_v5 = vld [vmem:[#allocation11 + $0x248] sm:$0xf0]  ;;  %v13507_v44 = vld [vmem:[#allocation11 + $0x1f8] sm:$0xf]  ;;  %v13927_v59 = vld [vmem:[#allocation11 + $0x540] sm:$0xf] }
 0x4c6   : > { %v5769_v48 = vadd.f32 %v5768_v10, %v17515_v33  ;;  %v5797_v47 = vpop.f32.mrf.mxu1  ;;  %9119 = vmatpush.bf16.msra.mxu3 %v14068_v16  ;;  %v13536_v58 = vor.u32 %v15704_v5, %v13535_v8  ;;  %v15809_v5 = vld [vmem:[#allocation11 + $0x590] sm:$0xf0] }
 0x4c7   : > { %9034 = vmatpush.bf16.msra.mxu0 %v13340_v2  ;;  %v6108_v7 = vmax.f32 %v17545_v32, 0.0  ;;  %v13508_v32 = vor.u32 %v15697_v61, %v13507_v44 }
 0x4c8   : > { %v5798_v57 = vadd.f32 %v5797_v47, %v5769_v48  ;;  %5999 = vmatmul.bf16.gmra.mxu0 %v16982_v39  ;;  %v14040_v39 = vor.u32 %v15830_v40, %v14039_v15  ;;  %9092 = vmatpush.bf16.msra.mxu2 %v13788_v3  ;;  %v13479_v15 = vld [vmem:[#allocation11 + $0x1c0] sm:$0xf]  ;;  %v15802_v3 = vld [vmem:[#allocation11 + $0x558] sm:$0xf0] }
 0x4c9   : > { %6028 = vmatmul.bf16.gmra.mxu1 %v16985_v43 }
 0x4ca   : > { %v5823_v33 = vpop.f32.mrf.mxu2  ;;  %9120 = vmatpush.bf16.msra.mxu3 %v14040_v39  ;;  %9063 = vmatpush.bf16.msra.mxu1 %v13564_v49  ;;  %v15634_v49 = vld [vmem:[#allocation11 + $0x18] sm:$0xf0] }
 0x4cb   : > { %v5824_v22 = vadd.f32 %v5823_v33, %v5795_v23  ;;  %v5852_v14 = vpop.f32.mrf.mxu3  ;;  %v14011_v23 = vld [vmem:[#allocation11 + $0x5e8] sm:$0xf]  ;;  %9035 = vmatpush.bf16.msra.mxu0 %v13312_v20  ;;  %v13984_v33 = vor.u32 %v15816_v36, %v13983_v31  ;;  %v15690_v39 = vld [vmem:[#allocation11 + $0x1d8] sm:$0xf0]  ;;  %v13955_v20 = vld [vmem:[#allocation11 + $0x578] sm:$0xf] }
 0x4cc   : > { %v14012_v47 = vor.u32 %v15823_v35, %v14011_v23  ;;  %v13480_v8 = vor.u32 %v15690_v39, %v13479_v15  ;;  %v13928_v35 = vor.u32 %v15802_v3, %v13927_v59  ;;  %v17573_v39 = vperm.slane %v17492_v4, 7  ;;  %v14767_v4 = vld [vmem:[#allocation11 + $0xbd0] sm:$0xf]  ;;  %v16012_v59 = vld [vmem:[#allocation11 + $0xbe8] sm:$0xf0] }
 0x4cd   : > { %v5853_v43 = vadd.f32 %v5852_v14, %v5824_v22  ;;  %v5770_v30 = vpop.f32.mrf.mxu0  ;;  %v13256_v14 = vor.u32 %v15634_v49, %v13255_v29 }
 0x4ce   : > { %v5771_v46 = vadd.f32 %v5770_v30, %v17520_v42  ;;  %v5799_v28 = vpop.f32.mrf.mxu1  ;;  %v15641_v42 = vld [vmem:[#allocation11 + $0x50] sm:$0xf0]  ;;  %9064 = vmatpush.bf16.msra.mxu1 %v13536_v58  ;;  %9121 = vmatpush.bf16.msra.mxu3 %v14012_v47 }
 0x4cf   : > { %v6116_v10 = vmax.f32 %v5853_v43, 0.0  ;;  %6057 = vmatmul.bf16.gmra.mxu2 %v16992_v9  ;;  %v13284_v16 = vor.u32 %v15641_v42, %v13283_v18  ;;  %v13759_v9 = vld [vmem:[#allocation11 + $0x3f0] sm:$0xf]  ;;  %v15753_v43 = vld [vmem:[#allocation11 + $0x3d0] sm:$0xf0] }
 0x4d0   : > { %v5800_v48 = vadd.f32 %v5799_v28, %v5771_v46  ;;  %6086 = vmatmul.bf16.gmra.mxu3 %v16994_v17  ;;  %v13760_v17 = vor.u32 %v15760_v56, %v13759_v9  ;;  %v13956_v28 = vor.u32 %v15809_v5, %v13955_v20  ;;  %v16075_v5 = vld [vmem:[#allocation11 + $0xde0] sm:$0xf0] }
 0x4d1   : > { %v17554_v50 = vpack.c.bf16 %v6116_v10, %v6108_v7  ;;  %9036 = vmatpush.bf16.msra.mxu0 %v13284_v16 }
 0x4d2   : > { %v5826_v54 = vpop.f32.mrf.mxu2  ;;  %9093 = vmatpush.bf16.msra.mxu2 %v13760_v17  ;;  %9065 = vmatpush.bf16.msra.mxu1 %v13508_v32 }
 0x4d3   : > { %19112 = vst [vmem:[#allocation42_spill] sm:$0xff] %v17554_v50  ;;  %v5827_v38 = vadd.f32 %v5826_v54, %v5798_v57  ;;  %v5855_v2 = vpop.f32.mrf.mxu3  ;;  %9122 = vmatpush.bf16.msra.mxu3 %v13984_v33  ;;  %v13731_v57 = vld [vmem:[#allocation11 + $0x3b8] sm:$0xf] }
 0x4d4   : > { %v13732_v30 = vor.u32 %v15753_v43, %v13731_v57  ;;  %v14347_v57 = vld [vmem:[#allocation11 + $0x888] sm:$0xf]  ;;  %v15907_v43 = vld [vmem:[#allocation11 + $0x8a0] sm:$0xf0] }
 0x4d5   : > { %v5856_v40 = vadd.f32 %v5855_v2, %v5827_v38  ;;  %v5773_v22 = vpop.f32.mrf.mxu0  ;;  %9037 = vmatpush.bf16.msra.mxu0 %v13256_v14  ;;  %v14348_v20 = vor.u32 %v15907_v43, %v14347_v57  ;;  %v16061_v57 = vld [vmem:[#allocation11 + $0xd70] sm:$0xf0] }
 0x4d6   : > { %v5774_v27 = vadd.f32 %v5773_v22, %v17525_v45  ;;  %v5802_v1 = vpop.f32.mrf.mxu1  ;;  %9094 = vmatpush.bf16.msra.mxu2 %v13732_v30  ;;  %9066 = vmatpush.bf16.msra.mxu1 %v13480_v8  ;;  %v13703_v45 = vld [vmem:[#allocation11 + $0x380] sm:$0xf]  ;;  %v16019_v22 = vld [vmem:[#allocation11 + $0xc20] sm:$0xf0] }
 0x4d7   : > { %9123 = vmatpush.bf16.msra.mxu3 %v13956_v28  ;;  %v13704_v10 = vor.u32 %v15746_v25, %v13703_v45  ;;  %v15963_v28 = vld [vmem:[#allocation11 + $0xa60] sm:$0xf0] }
 0x4d8   : > { %v5803_v46 = vadd.f32 %v5802_v1, %v5774_v27  ;;  %6004 = vmatmul.bf16.gmra.mxu0 %v17002_v11 }
 0x4d9   : > { %6033 = vmatmul.bf16.gmra.mxu1 %v17005_v21  ;;  %v6124_v21 = vmax.f32 %v5856_v40, 0.0  ;;  %9146 = vmatpush.bf16.msrb.mxu0 %v14348_v20 }
 0x4da   : > { %v5828_v58 = vpop.f32.mrf.mxu2  ;;  %9095 = vmatpush.bf16.msra.mxu2 %v13704_v10 }
 0x4db   : > { %v5829_v23 = vadd.f32 %v5828_v58, %v5800_v48  ;;  %v5857_v7 = vpop.f32.mrf.mxu3  ;;  %9124 = vmatpush.bf16.msra.mxu3 %v13928_v35  ;;  %v14319_v35 = vld [vmem:[#allocation11 + $0x850] sm:$0xf] }
 0x4dd   : > { %v5858_v47 = vadd.f32 %v5857_v7, %v5829_v23  ;;  %v5775_v18 = vpop.f32.mrf.mxu0  ;;  %v14768_v7 = vor.u32 %v16012_v59, %v14767_v4  ;;  %v19115_v4 = vld [vmem:[#allocation25_spill] sm:$0xff]  ;;  %v14711_v59 = vld [vmem:[#allocation11 + $0xb60] sm:$0xf] }
 0x4de   : > { %v5776_v11 = vadd.f32 %v5775_v18, %v17530_v53  ;;  %v5804_v42 = vpop.f32.mrf.mxu1  ;;  %v14543_v18 = vld [vmem:[#allocation11 + $0xa10] sm:$0xf] }
 0x4df   : > { %v6132_v44 = vmax.f32 %v5858_v47, 0.0  ;;  %6062 = vmatmul.bf16.gmra.mxu2 %v17012_v51  ;;  %v15900_v47 = vld [vmem:[#allocation11 + $0x868] sm:$0xf0] }
 0x4e0   : > { %v5805_v16 = vadd.f32 %v5804_v42, %v5776_v11  ;;  %6091 = vmatmul.bf16.gmra.mxu3 %v17014_v52 }
 0x4e1   : > { %v17562_v61 = vpack.c.bf16 %v6132_v44, %v6124_v21  ;;  %v14320_v21 = vor.u32 %v15900_v47, %v14319_v35  ;;  %v14991_v44 = vld [vmem:[#allocation11 + $0xd90] sm:$0xf] }
 0x4e2   : > { %v5831_v48 = vpop.f32.mrf.mxu2 }
 0x4e3   : > { %v5832_v54 = vadd.f32 %v5831_v48, %v5803_v46  ;;  %v5860_v32 = vpop.f32.mrf.mxu3  ;;  %v14571_v46 = vld [vmem:[#allocation11 + $0xa48] sm:$0xf]  ;;  %v15956_v48 = vld [vmem:[#allocation11 + $0xa28] sm:$0xf0]  ;;  %9147 = vmatpush.bf16.msrb.mxu0 %v14320_v21 }
 0x4e4   : > { %v14572_v45 = vor.u32 %v15963_v28, %v14571_v46  ;;  %v19114_v28 = vld [vmem:[#allocation21_spill] sm:$0xff]  ;;  %v15872_v21 = vld [vmem:[#allocation11 + $0x788] sm:$0xf0] }
 0x4e5   : > { %v5861_v9 = vadd.f32 %v5860_v32, %v5832_v54  ;;  %v5778_v56 = vpop.f32.mrf.mxu0 }
 0x4e6   : > { %v5779_v31 = vadd.f32 %v5778_v56, %v17535_v0  ;;  %v5807_v38 = vpop.f32.mrf.mxu1  ;;  %v14795_v0 = vld [vmem:[#allocation11 + $0xc08] sm:$0xf]  ;;  %9175 = vmatpush.bf16.msrb.mxu1 %v14572_v45  ;;  %v15879_v45 = vld [vmem:[#allocation11 + $0x7c0] sm:$0xf0] }
 0x4e7   : > { %v6140_v49 = vmax.f32 %v5861_v9, 0.0  ;;  %v14544_v9 = vor.u32 %v15956_v48, %v14543_v18  ;;  %v14935_v48 = vld [vmem:[#allocation11 + $0xd20] sm:$0xf] }
 0x4e8   : > { %v5808_v53 = vadd.f32 %v5807_v38, %v5779_v31  ;;  %6009 = vmatmul.bf16.gmra.mxu0 %v17022_v37  ;;  %v19113_v38 = vld [vmem:[#allocation32_spill] sm:$0xff] }
 0x4e9   : > { %6038 = vmatmul.bf16.gmra.mxu1 %v17025_v41  ;;  %v14796_v41 = vor.u32 %v16019_v22, %v14795_v0 }
 0x4ea   : > { %v5833_v2 = vpop.f32.mrf.mxu2  ;;  %9176 = vmatpush.bf16.msrb.mxu1 %v14544_v9 }
 0x4eb   : > { %v5834_v51 = vadd.f32 %v5833_v2, %v5805_v16  ;;  %v5862_v17 = vpop.f32.mrf.mxu3  ;;  %9204 = vmatpush.bf16.msrb.mxu2 %v14796_v41  ;;  %v16068_v16 = vld [vmem:[#allocation11 + $0xda8] sm:$0xf0]  ;;  %v16005_v2 = vld [vmem:[#allocation11 + $0xbb0] sm:$0xf0]  ;;  %v14263_v41 = vld [vmem:[#allocation11 + $0x7e0] sm:$0xf] }
 0x4ec   : > { %v14992_v32 = vor.u32 %v16068_v16, %v14991_v44  ;;  %v14431_v44 = vld [vmem:[#allocation11 + $0x930] sm:$0xf] }
 0x4ed   : > { %v5863_v36 = vadd.f32 %v5862_v17, %v5834_v51  ;;  %v5780_v52 = vpop.f32.mrf.mxu0  ;;  %v14291_v51 = vld [vmem:[#allocation11 + $0x818] sm:$0xf] }
 0x4ee   : > { %v5781_v33 = vadd.f32 %v5780_v52, %v17540_v6  ;;  %v5809_v29 = vpop.f32.mrf.mxu1  ;;  %v15893_v52 = vld [vmem:[#allocation11 + $0x830] sm:$0xf0] }
 0x4ef   : > { %v6148_v15 = vmax.f32 %v5863_v36, 0.0  ;;  %6067 = vmatmul.bf16.gmra.mxu2 %v17032_v19  ;;  %v15019_v19 = vld [vmem:[#allocation11 + $0xdc8] sm:$0xf] }
 0x4f0   : > { %v5810_v40 = vadd.f32 %v5809_v29, %v5781_v33  ;;  %6096 = vmatmul.bf16.gmra.mxu3 %v17034_v13  ;;  %v15020_v58 = vor.u32 %v16075_v5, %v15019_v19  ;;  %9205 = vmatpush.bf16.msrb.mxu2 %v14768_v7  ;;  %v14515_v33 = vld [vmem:[#allocation11 + $0x9d8] sm:$0xf]  ;;  %v15949_v29 = vld [vmem:[#allocation11 + $0x9f0] sm:$0xf0]  ;;  %v15942_v19 = vld [vmem:[#allocation11 + $0x9b8] sm:$0xf0] }
 0x4f1   : > { %v17570_v37 = vpack.c.bf16 %v6148_v15, %v6140_v49  ;;  %v14292_v15 = vor.u32 %v15893_v52, %v14291_v51  ;;  %v14683_v51 = vld [vmem:[#allocation11 + $0xb28] sm:$0xf]  ;;  %v19116_v52 = vld [vmem:[#allocation29_spill] sm:$0xff] }
 0x4f2   : > { %v5836_v14 = vpop.f32.mrf.mxu2  ;;  %9233 = vmatpush.bf16.msrb.mxu3 %v15020_v58  ;;  %v14235_v58 = vld [vmem:[#allocation11 + $0x7a8] sm:$0xf] }
 0x4f3   : > { %v5837_v27 = vadd.f32 %v5836_v14, %v5808_v53  ;;  %v5865_v1 = vpop.f32.mrf.mxu3  ;;  %v14739_v53 = vld [vmem:[#allocation11 + $0xb98] sm:$0xf]  ;;  %9148 = vmatpush.bf16.msrb.mxu0 %v14292_v15  ;;  %v15886_v14 = vld [vmem:[#allocation11 + $0x7f8] sm:$0xf0]  ;;  %v14236_v7 = vor.u32 %v15879_v45, %v14235_v58  ;;  %v15865_v15 = vld [vmem:[#allocation11 + $0x750] sm:$0xf0] }
 0x4f4   : > { %v14740_v36 = vor.u32 %v16005_v2, %v14739_v53  ;;  %v14264_v43 = vor.u32 %v15886_v14, %v14263_v41  ;;  %v14907_v58 = vld [vmem:[#allocation11 + $0xce8] sm:$0xf]  ;;  %v16047_v45 = vld [vmem:[#allocation11 + $0xd00] sm:$0xf0] }
 0x4f5   : > { %v5866_v6 = vadd.f32 %v5865_v1, %v5837_v27  ;;  %v5879_v8 = vpop.f32.mrf.mxu0  ;;  %v14487_v27 = vld [vmem:[#allocation11 + $0x9a0] sm:$0xf] }
 0x4f6   : > { %v5880_v30 = vadd.f32 %v5879_v8, %v17573_v39  ;;  %v5908_v13 = vpop.f32.mrf.mxu1  ;;  %9234 = vmatpush.bf16.msrb.mxu3 %v14992_v32  ;;  %9206 = vmatpush.bf16.msrb.mxu2 %v14740_v36  ;;  %v14963_v8 = vld [vmem:[#allocation11 + $0xd58] sm:$0xf]  ;;  %v14488_v5 = vor.u32 %v15942_v19, %v14487_v27  ;;  %v16054_v32 = vld [vmem:[#allocation11 + $0xd38] sm:$0xf0]  ;;  %v15991_v36 = vld [vmem:[#allocation11 + $0xb40] sm:$0xf0] }
 0x4f7   : > { %v6156_v56 = vmax.f32 %v5866_v6, 0.0  ;;  %v14964_v20 = vor.u32 %v16061_v57, %v14963_v8  ;;  %9149 = vmatpush.bf16.msrb.mxu0 %v14264_v43  ;;  %v14936_v53 = vor.u32 %v16054_v32, %v14935_v48  ;;  %v14655_v27 = vld [vmem:[#allocation11 + $0xaf0] sm:$0xf]  ;;  %v14151_v19 = vld [vmem:[#allocation11 + $0x700] sm:$0xf]  ;;  %v19119_v48 = vld [vmem:[#allocation26_spill] sm:$0xff] }
 0x4f8   : > { %v5909_v25 = vadd.f32 %v5908_v13, %v5880_v30  ;;  %9038 = vmatmul.bf16.vlgmr.msra.gmra.mxu0 %v17095_v55 }
 0x4f9   : > { %9067 = vmatmul.bf16.vlgmr.msra.gmra.mxu1 %v17170_v12 }
 0x4fa   : > { %v5838_v23 = vpop.f32.mrf.mxu2  ;;  %9235 = vmatpush.bf16.msrb.mxu3 %v14964_v20 }
 0x4fb   : > { %v5839_v10 = vadd.f32 %v5838_v23, %v5810_v40  ;;  %v5867_v3 = vpop.f32.mrf.mxu3  ;;  %v14516_v40 = vor.u32 %v15949_v29, %v14515_v33  ;;  %v15998_v23 = vld [vmem:[#allocation11 + $0xb78] sm:$0xf0]  ;;  %9150 = vmatpush.bf16.msrb.mxu0 %v14236_v7  ;;  %v14684_v33 = vor.u32 %v15991_v36, %v14683_v51  ;;  %v19117_v29 = vld [vmem:[#allocation33_spill] sm:$0xff] }
 0x4fc   : > { %v14712_v35 = vor.u32 %v15998_v23, %v14711_v59  ;;  %v15914_v59 = vld [vmem:[#allocation11 + $0x8d8] sm:$0xf0]  ;;  %v14879_v36 = vld [vmem:[#allocation11 + $0xcb0] sm:$0xf] }
 0x4fd   : > { %v5868_v11 = vadd.f32 %v5867_v3, %v5839_v10  ;;  %v17578_v42 = vpop.f32.mrf.mxu0  ;;  %9177 = vmatpush.bf16.msrb.mxu1 %v14516_v40  ;;  %v15935_v10 = vld [vmem:[#allocation11 + $0x980] sm:$0xf0]  ;;  %v14403_v40 = vld [vmem:[#allocation11 + $0x8f8] sm:$0xf] }
 0x4fe   : > { %v17580_v54 = vpop.f32.mrf.mxu1  ;;  %9207 = vmatpush.bf16.msrb.mxu2 %v14712_v35  ;;  %9236 = vmatpush.bf16.msrb.mxu3 %v14936_v53  ;;  %v14627_v35 = vld [vmem:[#allocation11 + $0xab8] sm:$0xf] }
 0x4ff   : > { %v6164_v31 = vmax.f32 %v5868_v11, 0.0  ;;  %9096 = vmatmul.bf16.vlgmr.msra.gmra.mxu2 %v17247_v60  ;;  %v14207_v11 = vld [vmem:[#allocation11 + $0x770] sm:$0xf] }
 0x500   : > { %9125 = vmatmul.bf16.vlgmr.msra.gmra.mxu3 %v19113_v38  ;;  %v14208_v9 = vor.u32 %v15872_v21, %v14207_v11 }
 0x501   : > { %v17584_v17 = vpack.c.bf16 %v6164_v31, %v6156_v56  ;;  %9178 = vmatpush.bf16.msrb.mxu1 %v14488_v5  ;;  %v15928_v56 = vld [vmem:[#allocation11 + $0x948] sm:$0xf0] }
 0x502   : > { %v5937_v49 = vpop.f32.mrf.mxu2  ;;  %v14432_v2 = vor.u32 %v15928_v56, %v14431_v44  ;;  %9151 = vmatpush.bf16.msrb.mxu0 %v14208_v9  ;;  %9208 = vmatpush.bf16.msrb.mxu2 %v14684_v33  ;;  %v19118_v44 = vld [vmem:[#allocation22_spill] sm:$0xff]  ;;  %v14599_v9 = vld [vmem:[#allocation11 + $0xa80] sm:$0xf]  ;;  %v16040_v33 = vld [vmem:[#allocation11 + $0xcc8] sm:$0xf0] }
 0x503   : > { %v5938_v0 = vadd.f32 %v5937_v49, %v5909_v25  ;;  %v5966_v22 = vpop.f32.mrf.mxu3  ;;  %v14459_v25 = vld [vmem:[#allocation11 + $0x968] sm:$0xf]  ;;  %v14179_v49 = vld [vmem:[#allocation11 + $0x738] sm:$0xf]  ;;  %v15970_v56 = vld [vmem:[#allocation11 + $0xa98] sm:$0xf0] }
 0x504   : > { %v14460_v47 = vor.u32 %v15935_v10, %v14459_v25  ;;  %v14908_v10 = vor.u32 %v16047_v45, %v14907_v58  ;;  %v19123_v58 = vld [vmem:[#allocation27_spill] sm:$0xff] }
 0x505   : > { %v17586_v1 = vadd.f32 %v5966_v22, %v5938_v0  ;;  %v5884_v6 = vpop.f32.mrf.mxu0  ;;  %v14180_v0 = vor.u32 %v15865_v15, %v14179_v49  ;;  %v15921_v22 = vld [vmem:[#allocation11 + $0x910] sm:$0xf0]  ;;  %v14880_v15 = vor.u32 %v16040_v33, %v14879_v36 }
 0x506   : > { %v5885_v30 = vadd.f32 %v5884_v6, %v17573_v39  ;;  %v5913_v13 = vpop.f32.mrf.mxu1  ;;  %9179 = vmatpush.bf16.msrb.mxu1 %v14460_v47  ;;  %v14404_v14 = vor.u32 %v15921_v22, %v14403_v40  ;;  %v15984_v6 = vld [vmem:[#allocation11 + $0xb08] sm:$0xf0]  ;;  %v15977_v47 = vld [vmem:[#allocation11 + $0xad0] sm:$0xf0]  ;;  %9237 = vmatpush.bf16.msrb.mxu3 %v14908_v10  ;;  %v19120_v40 = vld [vmem:[#allocation30_spill] sm:$0xff] }
 0x507   : > { %v14656_v43 = vor.u32 %v15984_v6, %v14655_v27  ;;  %9152 = vmatpush.bf16.msrb.mxu0 %v14180_v0  ;;  %v14628_v11 = vor.u32 %v15977_v47, %v14627_v35  ;;  %v19121_v0 = vld [vmem:[#allocation34_spill] sm:$0xff]  ;;  %v19125_v47 = vld [vmem:[#allocation35_spill] sm:$0xff] }
 0x508   : > { %v5914_v46 = vadd.f32 %v5913_v13, %v5885_v30  ;;  %9043 = vmatmul.bf16.gmra.mxu0 %v19114_v28  ;;  %v15858_v30 = vld [vmem:[#allocation11 + $0x718] sm:$0xf0]  ;;  %v14375_v13 = vld [vmem:[#allocation11 + $0x8c0] sm:$0xf] }
 0x509   : > { %9072 = vmatmul.bf16.gmra.mxu1 %v19115_v4  ;;  %v14152_v25 = vor.u32 %v15858_v30, %v14151_v19  ;;  %9209 = vmatpush.bf16.msrb.mxu2 %v14656_v43  ;;  %v14851_v43 = vld [vmem:[#allocation11 + $0xc78] sm:$0xf]  ;;  %v16033_v19 = vld [vmem:[#allocation11 + $0xc90] sm:$0xf0]  ;;  %v16026_v10 = vld [vmem:[#allocation11 + $0xc58] sm:$0xf0] }
 0x50a   : > { %v17591_v3 = vpop.f32.mrf.mxu2  ;;  %9180 = vmatpush.bf16.msrb.mxu1 %v14432_v2  ;;  %v14600_v2 = vor.u32 %v15970_v56, %v14599_v9  ;;  %9238 = vmatpush.bf16.msrb.mxu3 %v14880_v15 }
 0x50b   : > { %v17593_v18 = vpop.f32.mrf.mxu3  ;;  %9153 = vmatpush.bf16.msrb.mxu0 %v14152_v25 }
 0x50d   : > { %v17595_v16 = vpop.f32.mrf.mxu0  ;;  %9210 = vmatpush.bf16.msrb.mxu2 %v14628_v11  ;;  %v15792_v11 = vld [vmem:[#allocation11 + $0x50c] sm:$0xf] }
 0x50e   : > { %v17597_v31 = vpop.f32.mrf.mxu1  ;;  %9181 = vmatpush.bf16.msrb.mxu1 %v14404_v14 }
 0x50f   : > { %9101 = vmatmul.bf16.gmra.mxu2 %v19116_v52 }
 0x510   : > { %9130 = vmatmul.bf16.gmra.mxu3 %v19117_v29 }
 0x511   : > { %9211 = vmatpush.bf16.msrb.mxu2 %v14600_v2 }
 0x512   : > { %v5942_v41 = vpop.f32.mrf.mxu2 }
 0x513   : > { %v5943_v8 = vadd.f32 %v5942_v41, %v5914_v46  ;;  %v5971_v57 = vpop.f32.mrf.mxu3  ;;  %v14376_v46 = vor.u32 %v15914_v59, %v14375_v13  ;;  %v19122_v13 = vld [vmem:[#allocation23_spill] sm:$0xff] }
 0x515   : > { %v17601_v20 = vadd.f32 %v5971_v57, %v5943_v8  ;;  %v5889_v5 = vpop.f32.mrf.mxu0  ;;  %9182 = vmatpush.bf16.msrb.mxu1 %v14376_v46  ;;  %v19124_v46 = vld [vmem:[#allocation31_spill] sm:$0xff] }
 0x516   : > { %v5890_v23 = vadd.f32 %v5889_v5, %v17573_v39  ;;  %v5918_v7 = vpop.f32.mrf.mxu1  ;;  %v14852_v5 = vor.u32 %v16033_v19, %v14851_v43  ;;  %v15736_v43 = vld [vmem:[#allocation11 + $0x34c] sm:$0xf]  ;;  %v13677_v19 = vld [vmem:[#allocation11 + $0x364] sm:$0xf0] }
 0x518   : > { %v5919_v21 = vadd.f32 %v5918_v7, %v5890_v23  ;;  %9048 = vmatmul.bf16.gmra.mxu0 %v19118_v44  ;;  %9239 = vmatpush.bf16.msrb.mxu3 %v14852_v5  ;;  %v14823_v7 = vld [vmem:[#allocation11 + $0xc40] sm:$0xf]  ;;  %v5882_v5 = vadd.f32 %v17578_v42, %v17573_v39 }
 0x519   : > { %9077 = vmatmul.bf16.gmra.mxu1 %v19119_v48  ;;  %v14824_v35 = vor.u32 %v16026_v10, %v14823_v7  ;;  %v13680_v7 = vor.u32 %v15736_v43, %v13677_v19  ;;  %v15785_v10 = vld [vmem:[#allocation11 + $0x4d4] sm:$0xf] }
 0x51a   : > { %v17606_v32 = vpop.f32.mrf.mxu2  ;;  %v5911_v42 = vadd.f32 %v17580_v54, %v5882_v5 }
 0x51b   : > { %v17608_v53 = vpop.f32.mrf.mxu3  ;;  %9291 = vmatpush.bf16.msra.mxu1 %v13680_v7  ;;  %v15722_v7 = vld [vmem:[#allocation11 + $0x2dc] sm:$0xf] }
 0x51c   : > { %9240 = vmatpush.bf16.msrb.mxu3 %v14824_v35  ;;  %v13873_v35 = vld [vmem:[#allocation11 + $0x4ec] sm:$0xf0]  ;;  %v5940_v19 = vadd.f32 %v17591_v3, %v5911_v42 }
 0x51d   : > { %v17610_v51 = vpop.f32.mrf.mxu0 }
 0x51e   : > { %v17612_v49 = vpop.f32.mrf.mxu1 }
 0x51f   : > { %9106 = vmatmul.bf16.gmra.mxu2 %v19120_v40 }
 0x520   : > { %9135 = vmatmul.bf16.gmra.mxu3 %v19121_v0 }
 0x522   : > { %v5947_v22 = vpop.f32.mrf.mxu2 }
 0x523   : > { %v5948_v41 = vadd.f32 %v5947_v22, %v5919_v21  ;;  %v5976_v14 = vpop.f32.mrf.mxu3  ;;  %v13901_v21 = vld [vmem:[#allocation11 + $0x524] sm:$0xf0] }
 0x524   : > { %v13904_v56 = vor.u32 %v15792_v11, %v13901_v21  ;;  %v13876_v21 = vor.u32 %v15785_v10, %v13873_v35  ;;  %v15841_v35 = vld [vmem:[#allocation11 + $0x694] sm:$0xf] }
 0x525   : > { %v17616_v27 = vadd.f32 %v5976_v14, %v5948_v41  ;;  %v5894_v6 = vpop.f32.mrf.mxu0  ;;  %v15680_v41 = vld [vmem:[#allocation11 + $0x18c] sm:$0xf]  ;;  %v13453_v14 = vld [vmem:[#allocation11 + $0x1a4] sm:$0xf0] }
 0x526   : > { %v5895_v8 = vadd.f32 %v5894_v6, %v17573_v39  ;;  %v5923_v57 = vpop.f32.mrf.mxu1  ;;  %9320 = vmatpush.bf16.msra.mxu2 %v13904_v56  ;;  %v15848_v6 = vld [vmem:[#allocation11 + $0x6cc] sm:$0xf]  ;;  %v15673_v56 = vld [vmem:[#allocation11 + $0x154] sm:$0xf] }
 0x528   : > { %v5924_v30 = vadd.f32 %v5923_v57, %v5895_v8  ;;  %9053 = vmatmul.bf16.gmra.mxu0 %v19122_v13  ;;  %v13456_v8 = vor.u32 %v15680_v41, %v13453_v14  ;;  %v14125_v57 = vld [vmem:[#allocation11 + $0x6e4] sm:$0xf0] }
 0x529   : > { %9082 = vmatmul.bf16.gmra.mxu1 %v19123_v58 }
 0x52a   : > { %v17621_v45 = vpop.f32.mrf.mxu2  ;;  %9262 = vmatpush.bf16.msra.mxu0 %v13456_v8  ;;  %9321 = vmatpush.bf16.msra.mxu2 %v13876_v21  ;;  %v15666_v8 = vld [vmem:[#allocation11 + $0x11c] sm:$0xf]  ;;  %v14097_v21 = vld [vmem:[#allocation11 + $0x6ac] sm:$0xf0] }
 0x52b   : > { %v17623_v25 = vpop.f32.mrf.mxu3 }
 0x52d   : > { %v17625_v59 = vpop.f32.mrf.mxu0 }
 0x52e   : > { %v17627_v23 = vpop.f32.mrf.mxu1 }
 0x52f   : > { %9111 = vmatmul.bf16.gmra.mxu2 %v19124_v46 }
 0x530   : > { %9140 = vmatmul.bf16.gmra.mxu3 %v19125_v47  ;;  %v15778_v47 = vld [vmem:[#allocation11 + $0x49c] sm:$0xf] }
 0x532   : > { %v5952_v9 = vpop.f32.mrf.mxu2 }
 0x533   : > { %v5953_v2 = vadd.f32 %v5952_v9, %v5924_v30  ;;  %v5981_v36 = vpop.f32.mrf.mxu3  ;;  %v14128_v30 = vor.u32 %v15848_v6, %v14125_v57  ;;  %v13649_v6 = vld [vmem:[#allocation11 + $0x32c] sm:$0xf0] }
 0x535   : > { %v17631_v33 = vadd.f32 %v5981_v36, %v5953_v2  ;;  %v5995_v15 = vpop.f32.mrf.mxu0  ;;  %9349 = vmatpush.bf16.msra.mxu3 %v14128_v30  ;;  %v13425_v2 = vld [vmem:[#allocation11 + $0x16c] sm:$0xf0]  ;;  %v15729_v36 = vld [vmem:[#allocation11 + $0x314] sm:$0xf]  ;;  %v13397_v30 = vld [vmem:[#allocation11 + $0x134] sm:$0xf0] }
 0x536   : > { %v6024_v22 = vpop.f32.mrf.mxu1  ;;  %v13428_v14 = vor.u32 %v15673_v56, %v13425_v2  ;;  %v13652_v43 = vor.u32 %v15729_v36, %v13649_v6  ;;  %v5996_v10 = vadd.f32 %v5995_v15, %v17586_v1  ;;  %v13400_v54 = vor.u32 %v15666_v8, %v13397_v30  ;;  %v13845_v2 = vld [vmem:[#allocation11 + $0x4b4] sm:$0xf0]  ;;  %v15659_v6 = vld [vmem:[#allocation11 + $0xe4] sm:$0xf]  ;;  %v13593_v30 = vld [vmem:[#allocation11 + $0x2bc] sm:$0xf0] }
 0x537   : > { %v14100_v56 = vor.u32 %v15841_v35, %v14097_v21  ;;  %v5969_v36 = vadd.f32 %v17593_v18, %v5940_v19  ;;  %v13848_v42 = vor.u32 %v15778_v47, %v13845_v2  ;;  %v15834_v18 = vld [vmem:[#allocation11 + $0x65c] sm:$0xf]  ;;  %v14069_v19 = vld [vmem:[#allocation11 + $0x674] sm:$0xf0]  ;;  %v19126_v47 = vld [vmem:[#allocation37_spill] sm:$0xff] }
 0x538   : > { %9154 = vmatmul.bf16.vlgmr.msrb.gmra.mxu0 %v17399_v26  ;;  %9292 = vmatpush.bf16.msra.mxu1 %v13652_v43  ;;  %v13369_v43 = vld [vmem:[#allocation11 + $0xfc] sm:$0xf0]  ;;  %v6025_v26 = vadd.f32 %v6024_v22, %v5996_v10  ;;  %v5887_v22 = vadd.f32 %v17595_v16, %v17573_v39  ;;  %v15771_v10 = vld [vmem:[#allocation11 + $0x464] sm:$0xf]  ;;  %v15701_v16 = vld [vmem:[#allocation11 + $0x234] sm:$0xf] }
 0x539   : > { %9183 = vmatmul.bf16.vlgmr.msrb.gmra.mxu1 %v17474_v62  ;;  %9263 = vmatpush.bf16.msra.mxu0 %v13428_v14  ;;  %v13621_v62 = vld [vmem:[#allocation11 + $0x2f4] sm:$0xf0]  ;;  %v13372_v8 = vor.u32 %v15659_v6, %v13369_v43  ;;  %v13817_v2 = vld [vmem:[#allocation11 + $0x47c] sm:$0xf0] }
 0x53a   : > { %v17637_v11 = vpop.f32.mrf.mxu2  ;;  %v13624_v14 = vor.u32 %v15722_v7, %v13621_v62  ;;  %9350 = vmatpush.bf16.msra.mxu3 %v14100_v56  ;;  %9322 = vmatpush.bf16.msra.mxu2 %v13848_v42  ;;  %v14072_v62 = vor.u32 %v15834_v18, %v14069_v19  ;;  %v15652_v7 = vld [vmem:[#allocation11 + $0xac] sm:$0xf] }
 0x53b   : > { %v17639_v9 = vpop.f32.mrf.mxu3  ;;  %v15708_v56 = vld [vmem:[#allocation11 + $0x26c] sm:$0xf] }
 0x53c   : > { %9293 = vmatpush.bf16.msra.mxu1 %v13624_v14 }
 0x53d   : > { %v5997_v41 = vpop.f32.mrf.mxu0  ;;  %9264 = vmatpush.bf16.msra.mxu0 %v13400_v54  ;;  %v13341_v54 = vld [vmem:[#allocation11 + $0xc4] sm:$0xf0] }
 0x53e   : > { %v6026_v57 = vpop.f32.mrf.mxu1  ;;  %v5998_v1 = vadd.f32 %v5997_v41, %v5969_v36  ;;  %v13344_v36 = vor.u32 %v15652_v7, %v13341_v54  ;;  %9351 = vmatpush.bf16.msra.mxu3 %v14072_v62  ;;  %v13537_v7 = vld [vmem:[#allocation11 + $0x24c] sm:$0xf0] }
 0x53f   : > { %9212 = vmatmul.bf16.vlgmr.msrb.gmra.mxu2 %v17554_v50  ;;  %v15715_v50 = vld [vmem:[#allocation11 + $0x2a4] sm:$0xf]  ;;  %v13540_v62 = vor.u32 %v15701_v16, %v13537_v7 }
 0x540   : > { %v13596_v21 = vor.u32 %v15715_v50, %v13593_v30  ;;  %v6027_v41 = vadd.f32 %v6026_v57, %v5998_v1  ;;  %v13565_v50 = vld [vmem:[#allocation11 + $0x284] sm:$0xf0]  ;;  %v13313_v30 = vld [vmem:[#allocation11 + $0x8c] sm:$0xf0]  ;;  %v5916_v57 = vadd.f32 %v17597_v31, %v5887_v22  ;;  %v15694_v31 = vld [vmem:[#allocation11 + $0x1fc] sm:$0xf] }
 0x541   : > { %9265 = vmatpush.bf16.msra.mxu0 %v13372_v8  ;;  %v13568_v42 = vor.u32 %v15708_v56, %v13565_v50  ;;  %v15645_v8 = vld [vmem:[#allocation11 + $0x74] sm:$0xf] }
 0x542   : > { %v6053_v5 = vpop.f32.mrf.mxu2  ;;  %9294 = vmatpush.bf16.msra.mxu1 %v13596_v21  ;;  %v13316_v19 = vor.u32 %v15645_v8, %v13313_v30  ;;  %v15764_v21 = vld [vmem:[#allocation11 + $0x42c] sm:$0xf]  ;;  %v15757_v8 = vld [vmem:[#allocation11 + $0x3f4] sm:$0xf]  ;;  %v13761_v30 = vld [vmem:[#allocation11 + $0x40c] sm:$0xf0] }
 0x543   : > { %v6082_v3 = vpop.f32.mrf.mxu3  ;;  %v6054_v0 = vadd.f32 %v6053_v5, %v6025_v26  ;;  %v13820_v5 = vor.u32 %v15771_v10, %v13817_v2  ;;  %v13789_v10 = vld [vmem:[#allocation11 + $0x444] sm:$0xf0]  ;;  %v15638_v2 = vld [vmem:[#allocation11 + $0x3c] sm:$0xf] }
 0x545   : > { %v6000_v15 = vpop.f32.mrf.mxu0  ;;  %v6083_v14 = vadd.f32 %v6082_v3, %v6054_v0  ;;  %9266 = vmatpush.bf16.msra.mxu0 %v13344_v36  ;;  %9323 = vmatpush.bf16.msra.mxu2 %v13820_v5  ;;  %v5945_v0 = vadd.f32 %v17606_v32, %v5916_v57  ;;  %v13285_v36 = vld [vmem:[#allocation11 + $0x54] sm:$0xf0]  ;;  %v14041_v5 = vld [vmem:[#allocation11 + $0x63c] sm:$0xf0] }
 0x546   : > { %v17646_v35 = vpop.f32.mrf.mxu1  ;;  %9295 = vmatpush.bf16.msra.mxu1 %v13568_v42  ;;  %v6001_v22 = vadd.f32 %v6000_v15, %v17601_v20  ;;  %v13288_v42 = vor.u32 %v15638_v2, %v13285_v36  ;;  %v13764_v20 = vor.u32 %v15757_v8, %v13761_v30  ;;  %v15631_v15 = vld [vmem:[#allocation11 + $0x4] sm:$0xf]  ;;  %v15820_v36 = vld [vmem:[#allocation11 + $0x5ec] sm:$0xf] }
 0x547   : > { %v6109_v3 = vmax.f32 %v6083_v14, 0.0  ;;  %v5974_v16 = vadd.f32 %v17608_v53, %v5945_v0  ;;  %v15750_v53 = vld [vmem:[#allocation11 + $0x3bc] sm:$0xf]  ;;  %v13733_v0 = vld [vmem:[#allocation11 + $0x3d4] sm:$0xf0] }
 0x548   : > { %9159 = vmatmul.bf16.gmra.mxu0 %v19126_v47  ;;  %v6030_v7 = vadd.f32 %v17646_v35, %v6001_v22  ;;  %v5892_v35 = vadd.f32 %v17610_v51, %v17573_v39 }
 0x549   : > { %9188 = vmatmul.bf16.gmra.mxu1 %v17482_v24  ;;  %9267 = vmatpush.bf16.msra.mxu0 %v13316_v19  ;;  %v15687_v19 = vld [vmem:[#allocation11 + $0x1c4] sm:$0xf] }
 0x54a   : > { %v6055_v26 = vpop.f32.mrf.mxu2  ;;  %9296 = vmatpush.bf16.msra.mxu1 %v13540_v62 }
 0x54b   : > { %v6056_v6 = vadd.f32 %v6055_v26, %v6027_v41  ;;  %v6084_v43 = vpop.f32.mrf.mxu3  ;;  %v13792_v41 = vor.u32 %v15764_v21, %v13789_v10  ;;  %v15827_v26 = vld [vmem:[#allocation11 + $0x624] sm:$0xf] }
 0x54c   : > { %v14044_v32 = vor.u32 %v15827_v26, %v14041_v5  ;;  %v13736_v26 = vor.u32 %v15750_v53, %v13733_v0  ;;  %v19127_v5 = vld [vmem:[#allocation38_spill] sm:$0xff] }
 0x54d   : > { %v6085_v1 = vadd.f32 %v6084_v43, %v6056_v6  ;;  %v6002_v18 = vpop.f32.mrf.mxu0  ;;  %9324 = vmatpush.bf16.msra.mxu2 %v13792_v41  ;;  %v13509_v6 = vld [vmem:[#allocation11 + $0x214] sm:$0xf0]  ;;  %9268 = vmatpush.bf16.msra.mxu0 %v13288_v42 }
 0x54e   : > { %v6031_v54 = vpop.f32.mrf.mxu1  ;;  %v13512_v14 = vor.u32 %v15694_v31, %v13509_v6  ;;  %9352 = vmatpush.bf16.msra.mxu3 %v14044_v32  ;;  %v6003_v21 = vadd.f32 %v6002_v18, %v5974_v16  ;;  %v14013_v31 = vld [vmem:[#allocation11 + $0x604] sm:$0xf0]  ;;  %v15743_v6 = vld [vmem:[#allocation11 + $0x384] sm:$0xf]  ;;  %v13705_v32 = vld [vmem:[#allocation11 + $0x39c] sm:$0xf0]  ;;  %v5921_v16 = vadd.f32 %v17612_v49, %v5892_v35  ;;  %v5897_v35 = vadd.f32 %v17625_v59, %v17573_v39 }
 0x54f   : > { %v6117_v56 = vmax.f32 %v6085_v1, 0.0  ;;  %9217 = vmatmul.bf16.gmra.mxu2 %v17562_v61  ;;  %v13257_v1 = vld [vmem:[#allocation11 + $0x1c] sm:$0xf0]  ;;  %v14016_v42 = vor.u32 %v15820_v36, %v14013_v31  ;;  %v13708_v30 = vor.u32 %v15743_v6, %v13705_v32  ;;  %v15806_v36 = vld [vmem:[#allocation11 + $0x57c] sm:$0xf] }
 0x550   : > { %v13260_v62 = vor.u32 %v15631_v15, %v13257_v1  ;;  %9297 = vmatpush.bf16.msra.mxu1 %v13512_v14  ;;  %v6032_v18 = vadd.f32 %v6031_v54, %v6003_v21  ;;  %v5950_v51 = vadd.f32 %v17621_v45, %v5921_v16  ;;  %v13957_v31 = vld [vmem:[#allocation11 + $0x594] sm:$0xf0]  ;;  %v5926_v32 = vadd.f32 %v17627_v23, %v5897_v35  ;;  %v16016_v39 = vld [vmem:[#allocation11 + $0xc0c] sm:$0xf]  ;;  %v14797_v59 = vld [vmem:[#allocation11 + $0xc24] sm:$0xf0] }
 0x551   : > { %v17656_v50 = vpack.c.bf16 %v6117_v56, %v6109_v3  ;;  %9325 = vmatpush.bf16.msra.mxu2 %v13764_v20  ;;  %v13481_v3 = vld [vmem:[#allocation11 + $0x1dc] sm:$0xf0]  ;;  %v14800_v23 = vor.u32 %v16016_v39, %v14797_v59 }
 0x552   : > { %v6058_v43 = vpop.f32.mrf.mxu2  ;;  %v13484_v41 = vor.u32 %v15687_v19, %v13481_v3  ;;  %9269 = vmatpush.bf16.msra.mxu0 %v13260_v62  ;;  %9353 = vmatpush.bf16.msra.mxu3 %v14016_v42  ;;  %v13985_v62 = vld [vmem:[#allocation11 + $0x5cc] sm:$0xf0]  ;;  %v5979_v49 = vadd.f32 %v17623_v25, %v5950_v51  ;;  %v13960_v42 = vor.u32 %v15806_v36, %v13957_v31  ;;  %v15960_v36 = vld [vmem:[#allocation11 + $0xa4c] sm:$0xf]  ;;  %v14573_v31 = vld [vmem:[#allocation11 + $0xa64] sm:$0xf0] }
 0x553   : > { %v6087_v57 = vpop.f32.mrf.mxu3  ;;  %9241 = vmatmul.bf16.vlgmr.msrb.gmra.mxu3 %v17656_v50  ;;  %v6059_v2 = vadd.f32 %v6058_v43, %v6030_v7 }
 0x554   : > { %9298 = vmatpush.bf16.msra.mxu1 %v13484_v41 }
 0x555   : > { %v6005_v10 = vpop.f32.mrf.mxu0  ;;  %9326 = vmatpush.bf16.msra.mxu2 %v13736_v26  ;;  %v6088_v43 = vadd.f32 %v6087_v57, %v6059_v2  ;;  %v15813_v57 = vld [vmem:[#allocation11 + $0x5b4] sm:$0xf] }
 0x556   : > { %v6034_v56 = vpop.f32.mrf.mxu1  ;;  %v6006_v7 = vadd.f32 %v6005_v10, %v17616_v27  ;;  %v13988_v41 = vor.u32 %v15813_v57, %v13985_v62  ;;  %v19128_v10 = vld [vmem:[#allocation39_spill] sm:$0xff] }
 0x557   : > { %v6125_v54 = vmax.f32 %v6088_v43, 0.0 }
 0x558   : > { %9164 = vmatmul.bf16.gmra.mxu0 %v19127_v5  ;;  %9354 = vmatpush.bf16.msra.mxu3 %v13988_v41  ;;  %v6035_v0 = vadd.f32 %v6034_v56, %v6006_v7 }
 0x559   : > { %9193 = vmatmul.bf16.gmra.mxu1 %v17490_v63  ;;  %9327 = vmatpush.bf16.msra.mxu2 %v13708_v30  ;;  %v13929_v30 = vld [vmem:[#allocation11 + $0x55c] sm:$0xf0] }
 0x55a   : > { %v6060_v22 = vpop.f32.mrf.mxu2 }
 0x55b   : > { %v6061_v14 = vadd.f32 %v6060_v22, %v6032_v18  ;;  %v6089_v8 = vpop.f32.mrf.mxu3 }
 0x55c   : > { %9355 = vmatpush.bf16.msra.mxu3 %v13960_v42 }
 0x55d   : > { %v6090_v20 = vadd.f32 %v6089_v8, %v6061_v14  ;;  %v6007_v15 = vpop.f32.mrf.mxu0  ;;  %v15799_v8 = vld [vmem:[#allocation11 + $0x544] sm:$0xf]  ;;  %9436 = vmatpush.bf16.msrb.mxu2 %v14800_v23 }
 0x55e   : > { %v6036_v1 = vpop.f32.mrf.mxu1  ;;  %v6008_v45 = vadd.f32 %v6007_v15, %v5979_v49  ;;  %v5955_v15 = vadd.f32 %v17637_v11, %v5926_v32  ;;  %v15904_v49 = vld [vmem:[#allocation11 + $0x88c] sm:$0xf] }
 0x55f   : > { %v6133_v19 = vmax.f32 %v6090_v20, 0.0  ;;  %9222 = vmatmul.bf16.gmra.mxu2 %v17570_v37  ;;  %v13932_v20 = vor.u32 %v15799_v8, %v13929_v30  ;;  %v15953_v8 = vld [vmem:[#allocation11 + $0xa14] sm:$0xf] }
 0x560   : > { %v6037_v18 = vadd.f32 %v6036_v1, %v6008_v45  ;;  %v5984_v57 = vadd.f32 %v17639_v9, %v5955_v15  ;;  %v14576_v9 = vor.u32 %v15960_v36, %v14573_v31  ;;  %v16065_v15 = vld [vmem:[#allocation11 + $0xd94] sm:$0xf] }
 0x561   : > { %v17669_v21 = vpack.c.bf16 %v6133_v19, %v6125_v54  ;;  %9356 = vmatpush.bf16.msra.mxu3 %v13932_v20 }
 0x562   : > { %v6063_v3 = vpop.f32.mrf.mxu2  ;;  %9407 = vmatpush.bf16.msrb.mxu1 %v14576_v9  ;;  %v15939_v9 = vld [vmem:[#allocation11 + $0x9a4] sm:$0xf] }
 0x563   : > { %v6092_v53 = vpop.f32.mrf.mxu3  ;;  %9246 = vmatmul.bf16.gmra.mxu3 %v17669_v21  ;;  %v6064_v27 = vadd.f32 %v6063_v3, %v6035_v0  ;;  %v16072_v0 = vld [vmem:[#allocation11 + $0xdcc] sm:$0xf] }
 0x565   : > { %v6010_v2 = vpop.f32.mrf.mxu0  ;;  %v6093_v22 = vadd.f32 %v6092_v53, %v6064_v27  ;;  %v14349_v53 = vld [vmem:[#allocation11 + $0x8a4] sm:$0xf0] }
 0x566   : > { %v6039_v26 = vpop.f32.mrf.mxu1  ;;  %v6011_v1 = vadd.f32 %v6010_v2, %v17631_v33  ;;  %v14352_v33 = vor.u32 %v15904_v49, %v14349_v53  ;;  %v15021_v2 = vld [vmem:[#allocation11 + $0xde4] sm:$0xf0]  ;;  %v14293_v53 = vld [vmem:[#allocation11 + $0x834] sm:$0xf0] }
 0x567   : > { %v6141_v51 = vmax.f32 %v6093_v22, 0.0  ;;  %v15024_v27 = vor.u32 %v16072_v0, %v15021_v2  ;;  %v15946_v0 = vld [vmem:[#allocation11 + $0x9dc] sm:$0xf] }
 0x568   : > { %9169 = vmatmul.bf16.gmra.mxu0 %v19128_v10  ;;  %v6040_v11 = vadd.f32 %v6039_v26, %v6011_v1  ;;  %v16009_v26 = vld [vmem:[#allocation11 + $0xbd4] sm:$0xf] }
 0x569   : > { %9198 = vmatmul.bf16.gmra.mxu1 %v17503_v34  ;;  %9378 = vmatpush.bf16.msrb.mxu0 %v14352_v33  ;;  %v14517_v33 = vld [vmem:[#allocation11 + $0x9f4] sm:$0xf0] }
 0x56a   : > { %v6065_v25 = vpop.f32.mrf.mxu2  ;;  %9465 = vmatpush.bf16.msrb.mxu3 %v15024_v27  ;;  %v14520_v31 = vor.u32 %v15946_v0, %v14517_v33  ;;  %v14265_v27 = vld [vmem:[#allocation11 + $0x7fc] sm:$0xf0]  ;;  %v14433_v33 = vld [vmem:[#allocation11 + $0x94c] sm:$0xf0] }
 0x56b   : > { %v6066_v6 = vadd.f32 %v6065_v25, %v6037_v18  ;;  %v6094_v56 = vpop.f32.mrf.mxu3  ;;  %v14769_v18 = vld [vmem:[#allocation11 + $0xbec] sm:$0xf0] }
 0x56c   : > { %v14772_v22 = vor.u32 %v16009_v26, %v14769_v18  ;;  %v16058_v26 = vld [vmem:[#allocation11 + $0xd5c] sm:$0xf]  ;;  %v14965_v18 = vld [vmem:[#allocation11 + $0xd74] sm:$0xf0] }
 0x56d   : > { %v6095_v43 = vadd.f32 %v6094_v56, %v6066_v6  ;;  %v6012_v14 = vpop.f32.mrf.mxu0 }
 0x56e   : > { %v6041_v16 = vpop.f32.mrf.mxu1  ;;  %v6013_v3 = vadd.f32 %v6012_v14, %v5984_v57  ;;  %9437 = vmatpush.bf16.msrb.mxu2 %v14772_v22  ;;  %v14321_v14 = vld [vmem:[#allocation11 + $0x86c] sm:$0xf0]  ;;  %v16002_v57 = vld [vmem:[#allocation11 + $0xb9c] sm:$0xf]  ;;  %v14489_v22 = vld [vmem:[#allocation11 + $0x9bc] sm:$0xf0] }
 0x56f   : > { %v6149_v54 = vmax.f32 %v6095_v43, 0.0  ;;  %9227 = vmatmul.bf16.gmra.mxu2 %v17584_v17  ;;  %v15897_v43 = vld [vmem:[#allocation11 + $0x854] sm:$0xf] }
 0x570   : > { %v6042_v35 = vadd.f32 %v6041_v16, %v6013_v3  ;;  %v14324_v16 = vor.u32 %v15897_v43, %v14321_v14  ;;  %v15876_v14 = vld [vmem:[#allocation11 + $0x7ac] sm:$0xf] }
 0x571   : > { %v17681_v19 = vpack.c.bf16 %v6149_v54, %v6141_v51  ;;  %v14993_v51 = vld [vmem:[#allocation11 + $0xdac] sm:$0xf0] }
 0x572   : > { %v6068_v7 = vpop.f32.mrf.mxu2  ;;  %v14545_v54 = vld [vmem:[#allocation11 + $0xa2c] sm:$0xf0]  ;;  %v14996_v59 = vor.u32 %v16065_v15, %v14993_v51  ;;  %9379 = vmatpush.bf16.msrb.mxu0 %v14324_v16  ;;  %v15995_v16 = vld [vmem:[#allocation11 + $0xb64] sm:$0xf]  ;;  %v14713_v15 = vld [vmem:[#allocation11 + $0xb7c] sm:$0xf0] }
 0x573   : > { %v6097_v62 = vpop.f32.mrf.mxu3  ;;  %9251 = vmatmul.bf16.gmra.mxu3 %v17681_v19  ;;  %v6069_v42 = vadd.f32 %v6068_v7, %v6040_v11  ;;  %v14548_v1 = vor.u32 %v15953_v8, %v14545_v54  ;;  %v15890_v11 = vld [vmem:[#allocation11 + $0x81c] sm:$0xf]  ;;  %v14237_v8 = vld [vmem:[#allocation11 + $0x7c4] sm:$0xf0] }
 0x574   : > { %9466 = vmatpush.bf16.msrb.mxu3 %v14996_v59  ;;  %v14296_v36 = vor.u32 %v15890_v11, %v14293_v53  ;;  %v14240_v51 = vor.u32 %v15876_v14, %v14237_v8  ;;  %v14461_v54 = vld [vmem:[#allocation11 + $0x984] sm:$0xf0]  ;;  %v14937_v53 = vld [vmem:[#allocation11 + $0xd3c] sm:$0xf0] }
 0x575   : > { %v17685_v41 = vpop.f32.mrf.mxu0  ;;  %v6098_v6 = vadd.f32 %v6097_v62, %v6069_v42  ;;  %9408 = vmatpush.bf16.msrb.mxu1 %v14548_v1  ;;  %v14741_v62 = vld [vmem:[#allocation11 + $0xbb4] sm:$0xf0]  ;;  %v15883_v42 = vld [vmem:[#allocation11 + $0x7e4] sm:$0xf]  ;;  %v14716_v1 = vor.u32 %v15995_v16, %v14713_v15  ;;  %v15981_v16 = vld [vmem:[#allocation11 + $0xaf4] sm:$0xf] }
 0x576   : > { %v17687_v45 = vpop.f32.mrf.mxu1  ;;  %v14744_v49 = vor.u32 %v16002_v57, %v14741_v62  ;;  %9380 = vmatpush.bf16.msrb.mxu0 %v14296_v36  ;;  %v14209_v57 = vld [vmem:[#allocation11 + $0x78c] sm:$0xf0]  ;;  %v15925_v62 = vld [vmem:[#allocation11 + $0x934] sm:$0xf] }
 0x577   : > { %v6157_v23 = vmax.f32 %v6098_v6, 0.0  ;;  %v14657_v15 = vld [vmem:[#allocation11 + $0xb0c] sm:$0xf0] }
 0x578   : > { %9270 = vmatmul.bf16.vlgmr.msra.gmra.mxu0 %v17095_v55  ;;  %9438 = vmatpush.bf16.msrb.mxu2 %v14744_v49  ;;  %v16051_v49 = vld [vmem:[#allocation11 + $0xd24] sm:$0xf]  ;;  %v13571_v55 = vld [vmem:[#allocation11 + $0x270] sm:$0xf] }
 0x579   : > { %9299 = vmatmul.bf16.vlgmr.msra.gmra.mxu1 %v17170_v12 }
 0x57a   : > { %v6070_v25 = vpop.f32.mrf.mxu2  ;;  %9409 = vmatpush.bf16.msrb.mxu1 %v14520_v31  ;;  %v14940_v31 = vor.u32 %v16051_v49, %v14937_v53  ;;  %v14377_v53 = vld [vmem:[#allocation11 + $0x8dc] sm:$0xf0] }
 0x57b   : > { %v6071_v56 = vadd.f32 %v6070_v25, %v6042_v35  ;;  %v6099_v32 = vpop.f32.mrf.mxu3  ;;  %v14268_v25 = vor.u32 %v15883_v42, %v14265_v27  ;;  %v14436_v42 = vor.u32 %v15925_v62, %v14433_v33  ;;  %v15988_v27 = vld [vmem:[#allocation11 + $0xb2c] sm:$0xf]  ;;  %v14909_v62 = vld [vmem:[#allocation11 + $0xd04] sm:$0xf0] }
 0x57c   : > { %9439 = vmatpush.bf16.msrb.mxu2 %v14716_v1  ;;  %v14153_v1 = vld [vmem:[#allocation11 + $0x71c] sm:$0xf0] }
 0x57d   : > { %v6100_v30 = vadd.f32 %v6099_v32, %v6071_v56  ;;  %v17691_v20 = vpop.f32.mrf.mxu0  ;;  %v14968_v56 = vor.u32 %v16058_v26, %v14965_v18  ;;  %v14492_v32 = vor.u32 %v15939_v9, %v14489_v22  ;;  %9381 = vmatpush.bf16.msrb.mxu0 %v14268_v25  ;;  %v14685_v9 = vld [vmem:[#allocation11 + $0xb44] sm:$0xf0]  ;;  %v15862_v18 = vld [vmem:[#allocation11 + $0x73c] sm:$0xf]  ;;  %v14181_v25 = vld [vmem:[#allocation11 + $0x754] sm:$0xf0] }
 0x57e   : > { %v17693_v39 = vpop.f32.mrf.mxu1  ;;  %v14688_v26 = vor.u32 %v15988_v27, %v14685_v9  ;;  %v15918_v22 = vld [vmem:[#allocation11 + $0x8fc] sm:$0xf]  ;;  %v14629_v27 = vld [vmem:[#allocation11 + $0xad4] sm:$0xf0] }
 0x57f   : > { %v6165_v7 = vmax.f32 %v6100_v30, 0.0  ;;  %9328 = vmatmul.bf16.vlgmr.msra.gmra.mxu2 %v17247_v60  ;;  %9467 = vmatpush.bf16.msrb.mxu3 %v14968_v56  ;;  %v15932_v30 = vld [vmem:[#allocation11 + $0x96c] sm:$0xf]  ;;  %v14184_v56 = vor.u32 %v15862_v18, %v14181_v25  ;;  %v15967_v18 = vld [vmem:[#allocation11 + $0xa84] sm:$0xf] }
 0x580   : > { %9410 = vmatpush.bf16.msrb.mxu1 %v14492_v32  ;;  %9440 = vmatpush.bf16.msrb.mxu2 %v14688_v26  ;;  %v14405_v32 = vld [vmem:[#allocation11 + $0x914] sm:$0xf0]  ;;  %v14601_v25 = vld [vmem:[#allocation11 + $0xa9c] sm:$0xf0] }
 0x581   : > { %v17696_v3 = vpack.c.bf16 %v6165_v7, %v6157_v23  ;;  %v14464_v23 = vor.u32 %v15932_v30, %v14461_v54  ;;  %v15869_v7 = vld [vmem:[#allocation11 + $0x774] sm:$0xf]  ;;  %9382 = vmatpush.bf16.msrb.mxu0 %v14240_v51  ;;  %v14408_v30 = vor.u32 %v15918_v22, %v14405_v32  ;;  %v14660_v51 = vor.u32 %v15981_v16, %v14657_v15  ;;  %v15855_v54 = vld [vmem:[#allocation11 + $0x704] sm:$0xf]  ;;  %v14881_v16 = vld [vmem:[#allocation11 + $0xccc] sm:$0xf0] }
 0x582   : > { %v17698_v2 = vpop.f32.mrf.mxu2  ;;  %v14212_v0 = vor.u32 %v15869_v7, %v14209_v57  ;;  %v16044_v57 = vld [vmem:[#allocation11 + $0xcec] sm:$0xf]  ;;  %v14156_v49 = vor.u32 %v15855_v54, %v14153_v1  ;;  %v14604_v22 = vor.u32 %v15967_v18, %v14601_v25  ;;  %v16030_v1 = vld [vmem:[#allocation11 + $0xc7c] sm:$0xf] }
 0x583   : > { %19129 = vst [vmem:[#allocation38_spill] sm:$0xff] %v17696_v3  ;;  %9256 = vmatmul.bf16.gmra.mxu3 %v17696_v3  ;;  %v17705_v43 = vpop.f32.mrf.mxu3  ;;  %v14912_v33 = vor.u32 %v16044_v57, %v14909_v62  ;;  %v13403_v3 = vld [vmem:[#allocation11 + $0x120] sm:$0xf] }
 0x584   : > { %9411 = vmatpush.bf16.msrb.mxu1 %v14464_v23  ;;  %9468 = vmatpush.bf16.msrb.mxu3 %v14940_v31  ;;  %v15911_v23 = vld [vmem:[#allocation11 + $0x8c4] sm:$0xf] }
 0x585   : > { %v17701_v35 = vpop.f32.mrf.mxu0  ;;  %9383 = vmatpush.bf16.msrb.mxu0 %v14212_v0  ;;  %9441 = vmatpush.bf16.msrb.mxu2 %v14660_v51  ;;  %v14380_v31 = vor.u32 %v15911_v23, %v14377_v53  ;;  %v14853_v23 = vld [vmem:[#allocation11 + $0xc94] sm:$0xf0] }
 0x586   : > { %v17703_v6 = vpop.f32.mrf.mxu1  ;;  %v14856_v57 = vor.u32 %v16030_v1, %v14853_v23  ;;  %v19134_v1 = vld [vmem:[#allocation34_spill] sm:$0xff]  ;;  %v13459_v23 = vld [vmem:[#allocation11 + $0x190] sm:$0xf] }
 0x588   : > { %9275 = vmatmul.bf16.gmra.mxu0 %v19114_v28  ;;  %9412 = vmatpush.bf16.msrb.mxu1 %v14436_v42  ;;  %v15974_v42 = vld [vmem:[#allocation11 + $0xabc] sm:$0xf]  ;;  %v15845_v28 = vld [vmem:[#allocation11 + $0x6b0] sm:$0xf0] }
 0x589   : > { %9304 = vmatmul.bf16.gmra.mxu1 %v19115_v4  ;;  %9384 = vmatpush.bf16.msrb.mxu0 %v14184_v56  ;;  %v14632_v9 = vor.u32 %v15974_v42, %v14629_v27  ;;  %v14825_v42 = vld [vmem:[#allocation11 + $0xc5c] sm:$0xf0] }
 0x58a   : > { %v17709_v59 = vpop.f32.mrf.mxu2  ;;  %9469 = vmatpush.bf16.msrb.mxu3 %v14912_v33 }
 0x58b   : > { %v17716_v14 = vpop.f32.mrf.mxu3  ;;  %9442 = vmatpush.bf16.msrb.mxu2 %v14632_v9 }
 0x58c   : > { %9413 = vmatpush.bf16.msrb.mxu1 %v14408_v30  ;;  %v16037_v30 = vld [vmem:[#allocation11 + $0xcb4] sm:$0xf] }
 0x58d   : > { %v17711_v11 = vpop.f32.mrf.mxu0  ;;  %9385 = vmatpush.bf16.msrb.mxu0 %v14156_v49  ;;  %v14884_v51 = vor.u32 %v16037_v30, %v14881_v16  ;;  %v15796_v30 = vld [vmem:[#allocation11 + $0x528] sm:$0xf0] }
 0x58e   : > { %v17713_v36 = vpop.f32.mrf.mxu1 }
 0x58f   : > { %9333 = vmatmul.bf16.gmra.mxu2 %v19116_v52  ;;  %9470 = vmatpush.bf16.msrb.mxu3 %v14884_v51  ;;  %v14103_v52 = vld [vmem:[#allocation11 + $0x698] sm:$0xf] }
 0x590   : > { %9414 = vmatpush.bf16.msrb.mxu1 %v14380_v31  ;;  %9443 = vmatpush.bf16.msrb.mxu2 %v14604_v22  ;;  %v16023_v31 = vld [vmem:[#allocation11 + $0xc44] sm:$0xf]  ;;  %v13907_v22 = vld [vmem:[#allocation11 + $0x510] sm:$0xf] }
 0x591   : > { %v14828_v27 = vor.u32 %v16023_v31, %v14825_v42  ;;  %v13908_v16 = vor.u32 %v15796_v30, %v13907_v22  ;;  %v14131_v31 = vld [vmem:[#allocation11 + $0x6d0] sm:$0xf]  ;;  %v19135_v22 = vld [vmem:[#allocation36_spill] sm:$0xff] }
 0x592   : > { %v17718_v8 = vpop.f32.mrf.mxu2  ;;  %v19136_v30 = vld [vmem:[#allocation40_spill] sm:$0xff] }
 0x593   : > { %9357 = vmatmul.bf16.vlgmr.msra.gmra.mxu3 %v19113_v38  ;;  %v17729_v56 = vpop.f32.mrf.mxu3  ;;  %v13655_v38 = vld [vmem:[#allocation11 + $0x318] sm:$0xf] }
 0x594   : > { %9471 = vmatpush.bf16.msrb.mxu3 %v14856_v57  ;;  %9552 = vmatpush.bf16.msra.mxu2 %v13908_v16  ;;  %v15684_v57 = vld [vmem:[#allocation11 + $0x1a8] sm:$0xf0] }
 0x595   : > { %v17721_v7 = vpop.f32.mrf.mxu0  ;;  %v13460_v42 = vor.u32 %v15684_v57, %v13459_v23  ;;  %v17769_v23 = vld [vmem:[#allocation13] sm:$0xff]  ;;  %v13431_v57 = vld [vmem:[#allocation11 + $0x158] sm:$0xf] }
 0x596   : > { %v17723_v0 = vpop.f32.mrf.mxu1  ;;  %19138 = vst [vmem:[#allocation47_spill] sm:$0xff] %v17769_v23 }
 0x597   : > { %9494 = vmatpush.bf16.msra.mxu0 %v13460_v42  ;;  %v19139_v42 = vld [vmem:[#allocation42_spill] sm:$0xff] }
 0x598   : > { %9280 = vmatmul.bf16.gmra.mxu0 %v19118_v44  ;;  %9472 = vmatpush.bf16.msrb.mxu3 %v14828_v27  ;;  %v15677_v44 = vld [vmem:[#allocation11 + $0x170] sm:$0xf0] }
 0x599   : > { %9309 = vmatmul.bf16.gmra.mxu1 %v19119_v48 }
 0x59a   : > { %v17727_v26 = vpop.f32.mrf.mxu2 }
 0x59b   : > { %v17741_v49 = vpop.f32.mrf.mxu3 }
 0x59d   : > { %v17731_v32 = vpop.f32.mrf.mxu0 }
 0x59e   : > { %v17733_v15 = vpop.f32.mrf.mxu1 }
 0x59f   : > { %9338 = vmatmul.bf16.gmra.mxu2 %v19120_v40 }
 0x5a2   : > { %v17736_v54 = vpop.f32.mrf.mxu2 }
 0x5a3   : > { %9362 = vmatmul.bf16.gmra.mxu3 %v19117_v29  ;;  %v17754_v25 = vpop.f32.mrf.mxu3  ;;  %v15740_v29 = vld [vmem:[#allocation11 + $0x368] sm:$0xf0] }
 0x5a5   : > { %v17739_v62 = vpop.f32.mrf.mxu0 }
 0x5a6   : > { %v17743_v53 = vpop.f32.mrf.mxu1 }
 0x5a7   : > { %19130 = vst [vmem:[#allocation39_spill] sm:$0xff] %v17743_v53 }
 0x5a8   : > { %9285 = vmatmul.bf16.gmra.mxu0 %v19122_v13  ;;  %v13683_v13 = vld [vmem:[#allocation11 + $0x350] sm:$0xf] }
 0x5a9   : > { %9314 = vmatmul.bf16.gmra.mxu1 %v19123_v58  ;;  %v15852_v58 = vld [vmem:[#allocation11 + $0x6e8] sm:$0xf0]  ;;  %v13684_v40 = vor.u32 %v15740_v29, %v13683_v13  ;;  %v13432_v29 = vor.u32 %v15677_v44, %v13431_v57  ;;  %v15733_v13 = vld [vmem:[#allocation11 + $0x330] sm:$0xf0]  ;;  %v14104_v44 = vor.u32 %v15845_v28, %v14103_v52  ;;  %v15719_v28 = vld [vmem:[#allocation11 + $0x2c0] sm:$0xf0] }
 0x5aa   : > { %v17747_v33 = vpop.f32.mrf.mxu2 }
 0x5ab   : > { %9523 = vmatpush.bf16.msra.mxu1 %v13684_v40  ;;  %v17765_v16 = vpop.f32.mrf.mxu3  ;;  %v13656_v40 = vor.u32 %v15733_v13, %v13655_v38  ;;  %9495 = vmatpush.bf16.msra.mxu0 %v13432_v29  ;;  %v15726_v38 = vld [vmem:[#allocation11 + $0x2f8] sm:$0xf0] }
 0x5ad   : > { %v17749_v9 = vpop.f32.mrf.mxu0 }
 0x5ae   : > { %19131 = vst [vmem:[#allocation43_spill] sm:$0xff] %v17749_v9  ;;  %v17751_v18 = vpop.f32.mrf.mxu1 }
 0x5af   : > { %19132 = vst [vmem:[#allocation44_spill] sm:$0xff] %v17751_v18  ;;  %9343 = vmatmul.bf16.gmra.mxu2 %v19124_v46  ;;  %v14132_v46 = vor.u32 %v15852_v58, %v14131_v31  ;;  %9524 = vmatpush.bf16.msra.mxu1 %v13656_v40  ;;  %v13627_v18 = vld [vmem:[#allocation11 + $0x2e0] sm:$0xf]  ;;  %v13599_v40 = vld [vmem:[#allocation11 + $0x2a8] sm:$0xf] }
 0x5b0   : > { %v13628_v29 = vor.u32 %v15726_v38, %v13627_v18  ;;  %v13600_v12 = vor.u32 %v15719_v28, %v13599_v40  ;;  %v13347_v38 = vld [vmem:[#allocation11 + $0xb0] sm:$0xf]  ;;  %v13319_v28 = vld [vmem:[#allocation11 + $0x78] sm:$0xf] }
 0x5b1   : > { %9581 = vmatpush.bf16.msra.mxu3 %v14132_v46  ;;  %v17776_v46 = vperm.slane %v17769_v23, 0  ;;  %v19140_v23 = vld [vmem:[#allocation35_spill] sm:$0xff] }
 0x5b2   : > { %v17756_v51 = vpop.f32.mrf.mxu2 }
 0x5b3   : > { %19133 = vst [vmem:[#allocation45_spill] sm:$0xff] %v17756_v51  ;;  %9367 = vmatmul.bf16.gmra.mxu3 %v19134_v1  ;;  %v9040_v13 = vadd.f32 %v17685_v41, %v17776_v46  ;;  %9525 = vmatpush.bf16.msra.mxu1 %v13628_v29  ;;  %v15712_v51 = vld [vmem:[#allocation11 + $0x288] sm:$0xf0]  ;;  %v9042_v40 = vadd.f32 %v17691_v20, %v17776_v46  ;;  %v13795_v20 = vld [vmem:[#allocation11 + $0x430] sm:$0xf] }
 0x5b5   : > { %v17759_v27 = vpop.f32.mrf.mxu0  ;;  %9582 = vmatpush.bf16.msra.mxu3 %v14104_v44  ;;  %v14075_v44 = vld [vmem:[#allocation11 + $0x660] sm:$0xf] }
 0x5b6   : > { %v17761_v48 = vpop.f32.mrf.mxu1 }
 0x5b7   : > { %9526 = vmatpush.bf16.msra.mxu1 %v13600_v12 }
 0x5b8   : > { %9386 = vmatmul.bf16.vlgmr.msrb.gmra.mxu0 %v19135_v22  ;;  %v15789_v22 = vld [vmem:[#allocation11 + $0x4f0] sm:$0xf0] }
 0x5b9   : > { %9415 = vmatmul.bf16.vlgmr.msrb.gmra.mxu1 %v19136_v30  ;;  %v13879_v30 = vld [vmem:[#allocation11 + $0x4d8] sm:$0xf] }
 0x5ba   : > { %v17767_v1 = vpop.f32.mrf.mxu2  ;;  %v13880_v4 = vor.u32 %v15789_v22, %v13879_v30  ;;  %v13375_v22 = vld [vmem:[#allocation11 + $0xe8] sm:$0xf]  ;;  %v15663_v30 = vld [vmem:[#allocation11 + $0x100] sm:$0xf0] }
 0x5bb   : > { %19137 = vst [vmem:[#allocation46_spill] sm:$0xff] %v17767_v1  ;;  %v15670_v1 = vld [vmem:[#allocation11 + $0x138] sm:$0xf0]  ;;  %v13376_v41 = vor.u32 %v15663_v30, %v13375_v22  ;;  %v13572_v30 = vor.u32 %v15712_v51, %v13571_v55 }
 0x5bc   : > { %v13404_v57 = vor.u32 %v15670_v1, %v13403_v3  ;;  %9553 = vmatpush.bf16.msra.mxu2 %v13880_v4  ;;  %v13851_v3 = vld [vmem:[#allocation11 + $0x4a0] sm:$0xf]  ;;  %v15782_v1 = vld [vmem:[#allocation11 + $0x4b8] sm:$0xf0]  ;;  %v9069_v4 = vadd.f32 %v17687_v45, %v9040_v13  ;;  %v13823_v45 = vld [vmem:[#allocation11 + $0x468] sm:$0xf] }
 0x5bd   : > { %v17771_v58 = vpop.f32.mrf.mxu0  ;;  %v13852_v18 = vor.u32 %v15782_v1, %v13851_v3  ;;  %v15775_v13 = vld [vmem:[#allocation11 + $0x480] sm:$0xf0]  ;;  %v15649_v3 = vld [vmem:[#allocation11 + $0x90] sm:$0xf0]  ;;  %v13543_v1 = vld [vmem:[#allocation11 + $0x238] sm:$0xf]  ;;  %9527 = vmatpush.bf16.msra.mxu1 %v13572_v30 }
 0x5be   : > { %v17773_v31 = vpop.f32.mrf.mxu1  ;;  %9496 = vmatpush.bf16.msra.mxu0 %v13404_v57  ;;  %v15838_v57 = vld [vmem:[#allocation11 + $0x678] sm:$0xf0]  ;;  %v13320_v55 = vor.u32 %v15649_v3, %v13319_v28  ;;  %v13515_v30 = vld [vmem:[#allocation11 + $0x200] sm:$0xf] }
 0x5bf   : > { %9444 = vmatmul.bf16.vlgmr.msrb.gmra.mxu2 %v19139_v42  ;;  %v17784_v42 = vpop.f32.mrf.mxu3  ;;  %v14076_v29 = vor.u32 %v15838_v57, %v14075_v44  ;;  %v15705_v44 = vld [vmem:[#allocation11 + $0x250] sm:$0xf0]  ;;  %v9071_v57 = vadd.f32 %v17693_v39, %v9042_v40  ;;  %v15698_v28 = vld [vmem:[#allocation11 + $0x218] sm:$0xf0] }
 0x5c0   : > { %19141 = vst [vmem:[#allocation48_spill] sm:$0xff] %v17784_v42  ;;  %9554 = vmatpush.bf16.msra.mxu2 %v13852_v18  ;;  %v15656_v42 = vld [vmem:[#allocation11 + $0xc8] sm:$0xf0]  ;;  %v13544_v51 = vor.u32 %v15705_v44, %v13543_v1  ;;  %v13516_v40 = vor.u32 %v15698_v28, %v13515_v30  ;;  %v15761_v1 = vld [vmem:[#allocation11 + $0x410] sm:$0xf0] }
 0x5c1   : > { %v13348_v22 = vor.u32 %v15656_v42, %v13347_v38  ;;  %9583 = vmatpush.bf16.msra.mxu3 %v14076_v29  ;;  %v15768_v42 = vld [vmem:[#allocation11 + $0x448] sm:$0xf0]  ;;  %v15831_v29 = vld [vmem:[#allocation11 + $0x640] sm:$0xf0]  ;;  %v14019_v30 = vld [vmem:[#allocation11 + $0x5f0] sm:$0xf] }
 0x5c2   : > { %v17779_v60 = vpop.f32.mrf.mxu2  ;;  %9497 = vmatpush.bf16.msra.mxu0 %v13376_v41  ;;  %9528 = vmatpush.bf16.msra.mxu1 %v13544_v51  ;;  %v15824_v28 = vld [vmem:[#allocation11 + $0x608] sm:$0xf0] }
 0x5c3   : > { %9372 = vmatmul.bf16.gmra.mxu3 %v19140_v23  ;;  %v9098_v23 = vadd.f32 %v17698_v2, %v9069_v4  ;;  %v13824_v2 = vor.u32 %v15775_v13, %v13823_v45  ;;  %v13291_v45 = vld [vmem:[#allocation11 + $0x40] sm:$0xf]  ;;  %v9100_v13 = vadd.f32 %v17709_v59, %v9071_v57  ;;  %v13487_v57 = vld [vmem:[#allocation11 + $0x1c8] sm:$0xf] }
 0x5c5   : > { %v17786_v9 = vpop.f32.mrf.mxu0  ;;  %v9127_v4 = vadd.f32 %v17705_v43, %v9098_v23  ;;  %9555 = vmatpush.bf16.msra.mxu2 %v13824_v2  ;;  %v13796_v43 = vor.u32 %v15768_v42, %v13795_v20  ;;  %v14047_v23 = vld [vmem:[#allocation11 + $0x628] sm:$0xf]  ;;  %v15635_v42 = vld [vmem:[#allocation11 + $0x20] sm:$0xf0] }
 0x5c6   : > { %v17788_v52 = vpop.f32.mrf.mxu1  ;;  %9498 = vmatpush.bf16.msra.mxu0 %v13348_v22  ;;  %v14048_v2 = vor.u32 %v15831_v29, %v14047_v23  ;;  %v15642_v22 = vld [vmem:[#allocation11 + $0x58] sm:$0xf0]  ;;  %v13263_v20 = vld [vmem:[#allocation11 + $0x8] sm:$0xf]  ;;  %v15691_v23 = vld [vmem:[#allocation11 + $0x1e0] sm:$0xf0]  ;;  %9529 = vmatpush.bf16.msra.mxu1 %v13516_v40 }
 0x5c7   : > { %v17801_v41 = vpop.f32.mrf.mxu3  ;;  %v9156_v38 = vadd.f32 %v17759_v27, %v9127_v4  ;;  %v13292_v39 = vor.u32 %v15642_v22, %v13291_v45  ;;  %v13767_v27 = vld [vmem:[#allocation11 + $0x3f8] sm:$0xf]  ;;  %v9045_v4 = vadd.f32 %v17701_v35, %v17776_v46  ;;  %v13739_v45 = vld [vmem:[#allocation11 + $0x3c0] sm:$0xf] }
 0x5c8   : > { %9391 = vmatmul.bf16.gmra.mxu0 %v19126_v47  ;;  %v13768_v59 = vor.u32 %v15761_v1, %v13767_v27  ;;  %9584 = vmatpush.bf16.msra.mxu3 %v14048_v2  ;;  %v15754_v2 = vld [vmem:[#allocation11 + $0x3d8] sm:$0xf0]  ;;  %v15747_v1 = vld [vmem:[#allocation11 + $0x3a0] sm:$0xf0] }
 0x5c9   : > { %9420 = vmatmul.bf16.gmra.mxu1 %v17482_v24  ;;  %9556 = vmatpush.bf16.msra.mxu2 %v13796_v43  ;;  %v9185_v44 = vadd.f32 %v17761_v48, %v9156_v38  ;;  %v9129_v43 = vadd.f32 %v17716_v14, %v9100_v13  ;;  %v13264_v48 = vor.u32 %v15635_v42, %v13263_v20 }
 0x5ca   : > { %v17794_v53 = vpop.f32.mrf.mxu2  ;;  %9499 = vmatpush.bf16.msra.mxu0 %v13320_v55  ;;  %v13488_v38 = vor.u32 %v15691_v23, %v13487_v57  ;;  %v9074_v22 = vadd.f32 %v17703_v6, %v9045_v4  ;;  %v13711_v6 = vld [vmem:[#allocation11 + $0x388] sm:$0xf] }
 0x5cb   : > { %v9214_v55 = vadd.f32 %v17779_v60, %v9185_v44  ;;  %v9158_v14 = vadd.f32 %v17771_v58, %v9129_v43  ;;  %v13740_v60 = vor.u32 %v15754_v2, %v13739_v45  ;;  %v9047_v58 = vadd.f32 %v17711_v11, %v17776_v46 }
 0x5cc   : > { %v9103_v27 = vadd.f32 %v17718_v8, %v9074_v22  ;;  %9530 = vmatpush.bf16.msra.mxu1 %v13488_v38  ;;  %v13712_v44 = vor.u32 %v15747_v1, %v13711_v6 }
 0x5cd   : > { %v17799_v18 = vpop.f32.mrf.mxu0  ;;  %9557 = vmatpush.bf16.msra.mxu2 %v13768_v59  ;;  %v9187_v4 = vadd.f32 %v17773_v31, %v9158_v14 }
 0x5ce   : > { %v17803_v12 = vpop.f32.mrf.mxu1  ;;  %9500 = vmatpush.bf16.msra.mxu0 %v13292_v39  ;;  %v14020_v39 = vor.u32 %v15824_v28, %v14019_v30  ;;  %v9132_v8 = vadd.f32 %v17729_v56, %v9103_v27  ;;  %v13991_v56 = vld [vmem:[#allocation11 + $0x5b8] sm:$0xf]  ;;  %v15810_v30 = vld [vmem:[#allocation11 + $0x598] sm:$0xf0]  ;;  %v9052_v27 = vadd.f32 %v17731_v32, %v17776_v46 }
 0x5cf   : > { %9449 = vmatmul.bf16.gmra.mxu2 %v17562_v61  ;;  %v9216_v59 = vadd.f32 %v17794_v53, %v9187_v4  ;;  %v15817_v53 = vld [vmem:[#allocation11 + $0x5d0] sm:$0xf0]  ;;  %v15803_v4 = vld [vmem:[#allocation11 + $0x560] sm:$0xf0] }
 0x5d0   : > { %9585 = vmatpush.bf16.msra.mxu3 %v14020_v39  ;;  %v9161_v23 = vadd.f32 %v17786_v9, %v9132_v8  ;;  %v9081_v8 = vadd.f32 %v17733_v15, %v9052_v27 }
 0x5d1   : > { %9558 = vmatpush.bf16.msra.mxu2 %v13740_v60 }
 0x5d2   : > { %v17809_v3 = vpop.f32.mrf.mxu2  ;;  %9501 = vmatpush.bf16.msra.mxu0 %v13264_v48  ;;  %v9190_v9 = vadd.f32 %v17788_v52, %v9161_v23  ;;  %v13963_v52 = vld [vmem:[#allocation11 + $0x580] sm:$0xf] }
 0x5d3   : > { %9473 = vmatmul.bf16.vlgmr.msrb.gmra.mxu3 %v17656_v50  ;;  %v19142_v23 = vld [vmem:[#allocation39_spill] sm:$0xff] }
 0x5d4   : > { %v9219_v45 = vadd.f32 %v17809_v3, %v9190_v9  ;;  %v13964_v3 = vor.u32 %v15810_v30, %v13963_v52  ;;  %v14803_v9 = vld [vmem:[#allocation11 + $0xc10] sm:$0xf]  ;;  %v15964_v52 = vld [vmem:[#allocation11 + $0xa68] sm:$0xf0]  ;;  %v19146_v30 = vld [vmem:[#allocation43_spill] sm:$0xff] }
 0x5d5   : > { %v17817_v51 = vpop.f32.mrf.mxu0  ;;  %9559 = vmatpush.bf16.msra.mxu2 %v13712_v44 }
 0x5d6   : > { %v17819_v29 = vpop.f32.mrf.mxu1  ;;  %v9242_v35 = vpop.f32.mrf.mxu3 }
 0x5d7   : > { %v9243_v13 = vadd.f32 %v9242_v35, %v9214_v55  ;;  %v9076_v55 = vadd.f32 %v17713_v36, %v9047_v58  ;;  %v13992_v35 = vor.u32 %v15817_v53, %v13991_v56  ;;  %v9050_v36 = vadd.f32 %v17721_v7, %v17776_v46  ;;  %v13935_v58 = vld [vmem:[#allocation11 + $0x548] sm:$0xf] }
 0x5d8   : > { %9396 = vmatmul.bf16.gmra.mxu0 %v19127_v5 }
 0x5d9   : > { %16196 = vtanh.f32 %v9243_v13  ;;  %9425 = vmatmul.bf16.gmra.mxu1 %v17490_v63  ;;  %v9105_v31 = vadd.f32 %v17727_v26, %v9076_v55  ;;  %9586 = vmatpush.bf16.msra.mxu3 %v13992_v35  ;;  %v9079_v13 = vadd.f32 %v17723_v0, %v9050_v36  ;;  %v19143_v35 = vld [vmem:[#allocation45_spill] sm:$0xff] }
 0x5da   : > { %v9220_v40 = vpop.f32.mrf.mxu2 }
 0x5db   : > { %v9134_v38 = vadd.f32 %v17741_v49, %v9105_v31  ;;  %v9108_v49 = vadd.f32 %v17736_v54, %v9079_v13 }
 0x5dd   : > { %v17832_v20 = vpop.f32.mrf.mxu0  ;;  %v9163_v60 = vadd.f32 %v17799_v18, %v9134_v38  ;;  %9587 = vmatpush.bf16.msra.mxu3 %v13964_v3  ;;  %v9137_v18 = vadd.f32 %v17754_v25, %v9108_v49  ;;  %v9110_v25 = vadd.f32 %v17747_v33, %v9081_v8  ;;  %v16020_v38 = vld [vmem:[#allocation11 + $0xc28] sm:$0xf0]  ;;  %v9057_v49 = vadd.f32 %v19146_v30, %v17776_v46  ;;  %v15901_v8 = vld [vmem:[#allocation11 + $0x870] sm:$0xf0] }
 0x5de   : > { %v17834_v42 = vpop.f32.mrf.mxu1  ;;  %v9244_v57 = vpop.f32.mrf.mxu3 }
 0x5df   : > { %v16197_v43 = vpop.eup %16196  ;;  %v9245_v11 = vadd.f32 %v9244_v57, %v9216_v59  ;;  %9454 = vmatmul.bf16.gmra.mxu2 %v17570_v37  ;;  %v9192_v0 = vadd.f32 %v17803_v12, %v9163_v60  ;;  %v9166_v59 = vadd.f32 %v17817_v51, %v9137_v18  ;;  %v13936_v12 = vor.u32 %v15803_v4, %v13935_v58  ;;  %v14775_v18 = vld [vmem:[#allocation11 + $0xbd8] sm:$0xf]  ;;  %v19147_v58 = vld [vmem:[#allocation48_spill] sm:$0xff] }
 0x5e0   : > { %10710 = vst [vmem:[%s17839_s15] sm:$0xff] %v16197_v43  ;;  %v9139_v15 = vadd.f32 %v17765_v16, %v9110_v25  ;;  %v19145_v16 = vld [vmem:[#allocation24_spill] sm:$0xff] }
 0x5e1   : > { %16198 = vtanh.f32 %v9245_v11  ;;  %v9221_v39 = vadd.f32 %v9220_v40, %v9192_v0  ;;  %9588 = vmatpush.bf16.msra.mxu3 %v13936_v12  ;;  %v9055_v40 = vadd.f32 %v17739_v62, %v17776_v46  ;;  %v9195_v43 = vadd.f32 %v17819_v29, %v9166_v59  ;;  %v19144_v29 = vld [vmem:[#allocation20_spill] sm:$0xff]  ;;  %v14999_v59 = vld [vmem:[#allocation11 + $0xd98] sm:$0xf] }
 0x5e2   : > { %v9223_v48 = vpop.f32.mrf.mxu2  ;;  %v9168_v31 = vadd.f32 %v17832_v20, %v9139_v15  ;;  %v14579_v20 = vld [vmem:[#allocation11 + $0xa50] sm:$0xf] }
 0x5e3   : > { %9478 = vmatmul.bf16.gmra.mxu3 %v17669_v21  ;;  %v9224_v51 = vadd.f32 %v9223_v48, %v9195_v43  ;;  %v9084_v11 = vadd.f32 %v19142_v23, %v9055_v40  ;;  %v14804_v48 = vor.u32 %v16020_v38, %v14803_v9  ;;  %v14580_v0 = vor.u32 %v15964_v52, %v14579_v20  ;;  %v14551_v40 = vld [vmem:[#allocation11 + $0xa18] sm:$0xf]  ;;  %v15957_v43 = vld [vmem:[#allocation11 + $0xa30] sm:$0xf0] }
 0x5e4   : > { %v9197_v3 = vadd.f32 %v17834_v42, %v9168_v31  ;;  %v14552_v23 = vor.u32 %v15957_v43, %v14551_v40  ;;  %v19150_v9 = vld [vmem:[#allocation46_spill] sm:$0xff]  ;;  %v19152_v40 = vld [vmem:[#allocation21_spill] sm:$0xff]  ;;  %v15880_v43 = vld [vmem:[#allocation11 + $0x7c8] sm:$0xf0] }
 0x5e5   : > { %v17849_v2 = vpop.f32.mrf.mxu0  ;;  %v9113_v36 = vadd.f32 %v19143_v35, %v9084_v11  ;;  %9668 = vmatpush.bf16.msrb.mxu2 %v14804_v48  ;;  %9639 = vmatpush.bf16.msrb.mxu1 %v14580_v0  ;;  %v14747_v35 = vld [vmem:[#allocation11 + $0xba0] sm:$0xf]  ;;  %v19151_v52 = vld [vmem:[#allocation38_spill] sm:$0xff]  ;;  %v14271_v0 = vld [vmem:[#allocation11 + $0x7e8] sm:$0xf] }
 0x5e6   : > { %v17851_v22 = vpop.f32.mrf.mxu1  ;;  %v9247_v26 = vpop.f32.mrf.mxu3 }
 0x5e7   : > { %v16199_v14 = vpop.eup %16198  ;;  %v9248_v7 = vadd.f32 %v9247_v26, %v9219_v45  ;;  %v14355_v45 = vld [vmem:[#allocation11 + $0x890] sm:$0xf]  ;;  %v15908_v26 = vld [vmem:[#allocation11 + $0x8a8] sm:$0xf0]  ;;  %v9142_v4 = vadd.f32 %v19147_v58, %v9113_v36  ;;  %v16006_v36 = vld [vmem:[#allocation11 + $0xbb8] sm:$0xf0] }
 0x5e8   : > { %10717 = vst [vmem:[%s17839_s15 + $0x38] sm:$0xff] %v16199_v14  ;;  %9401 = vmatmul.bf16.gmra.mxu0 %v19128_v10  ;;  %v15027_v14 = vld [vmem:[#allocation11 + $0xdd0] sm:$0xf]  ;;  %v14356_v60 = vor.u32 %v15908_v26, %v14355_v45  ;;  %v14748_v48 = vor.u32 %v16006_v36, %v14747_v35  ;;  %v14299_v45 = vld [vmem:[#allocation11 + $0x820] sm:$0xf] }
 0x5e9   : > { %16200 = vtanh.f32 %v9248_v7  ;;  %9430 = vmatmul.bf16.gmra.mxu1 %v17503_v34  ;;  %v16076_v7 = vld [vmem:[#allocation11 + $0xde8] sm:$0xf0]  ;;  %v9171_v31 = vadd.f32 %v17849_v2, %v9142_v4  ;;  %v15894_v26 = vld [vmem:[#allocation11 + $0x838] sm:$0xf0]  ;;  %v14943_v36 = vld [vmem:[#allocation11 + $0xd28] sm:$0xf] }
 0x5ea   : > { %v17859_v28 = vpop.f32.mrf.mxu2  ;;  %v15028_v27 = vor.u32 %v16076_v7, %v15027_v14  ;;  %9610 = vmatpush.bf16.msrb.mxu0 %v14356_v60  ;;  %9640 = vmatpush.bf16.msrb.mxu1 %v14552_v23  ;;  %v14523_v14 = vld [vmem:[#allocation11 + $0x9e0] sm:$0xf]  ;;  %v14300_v2 = vor.u32 %v15894_v26, %v14299_v45  ;;  %v15950_v7 = vld [vmem:[#allocation11 + $0x9f8] sm:$0xf0]  ;;  %v15999_v23 = vld [vmem:[#allocation11 + $0xb80] sm:$0xf0] }
 0x5eb   : > { %v9226_v12 = vadd.f32 %v17859_v28, %v9197_v3  ;;  %v19149_v28 = vld [vmem:[#allocation28_spill] sm:$0xff]  ;;  %v9200_v20 = vadd.f32 %v17851_v22, %v9171_v31  ;;  %v14524_v30 = vor.u32 %v15950_v7, %v14523_v14  ;;  %v16062_v3 = vld [vmem:[#allocation11 + $0xd78] sm:$0xf0]  ;;  %v15873_v45 = vld [vmem:[#allocation11 + $0x790] sm:$0xf0] }
 0x5ec   : > { %9697 = vmatpush.bf16.msrb.mxu3 %v15028_v27  ;;  %v14439_v26 = vld [vmem:[#allocation11 + $0x938] sm:$0xf] }
 0x5ed   : > { %v17865_v6 = vpop.f32.mrf.mxu0 }
 0x5ee   : > { %v17867_v1 = vpop.f32.mrf.mxu1  ;;  %v9249_v54 = vpop.f32.mrf.mxu3  ;;  %9641 = vmatpush.bf16.msrb.mxu1 %v14524_v30 }
 0x5ef   : > { %v16201_v44 = vpop.eup %16200  ;;  %v9250_v32 = vadd.f32 %v9249_v54, %v9221_v39  ;;  %9459 = vmatmul.bf16.gmra.mxu2 %v17584_v17  ;;  %v16013_v39 = vld [vmem:[#allocation11 + $0xbf0] sm:$0xf0]  ;;  %v14327_v54 = vld [vmem:[#allocation11 + $0x858] sm:$0xf] }
 0x5f0   : > { %10724 = vst [vmem:[%s17839_s15 + $0x70] sm:$0xff] %v16201_v44  ;;  %v14776_v44 = vor.u32 %v16013_v39, %v14775_v18  ;;  %v14328_v46 = vor.u32 %v15901_v8, %v14327_v54  ;;  %v15887_v18 = vld [vmem:[#allocation11 + $0x800] sm:$0xf0]  ;;  %v14495_v39 = vld [vmem:[#allocation11 + $0x9a8] sm:$0xf] }
 0x5f1   : > { %16202 = vtanh.f32 %v9250_v32  ;;  %v16069_v32 = vld [vmem:[#allocation11 + $0xdb0] sm:$0xf0]  ;;  %v14272_v22 = vor.u32 %v15887_v18, %v14271_v0 }
 0x5f2   : > { %v17876_v57 = vpop.f32.mrf.mxu2  ;;  %v15000_v42 = vor.u32 %v16069_v32, %v14999_v59  ;;  %9669 = vmatpush.bf16.msrb.mxu2 %v14776_v44  ;;  %9611 = vmatpush.bf16.msrb.mxu0 %v14328_v46  ;;  %v15943_v44 = vld [vmem:[#allocation11 + $0x9c0] sm:$0xf0] }
 0x5f3   : > { %9483 = vmatmul.bf16.gmra.mxu3 %v17681_v19  ;;  %v9229_v58 = vadd.f32 %v17876_v57, %v9200_v20  ;;  %v14496_v32 = vor.u32 %v15943_v44, %v14495_v39  ;;  %v19153_v57 = vld [vmem:[#allocation25_spill] sm:$0xff]  ;;  %v14411_v44 = vld [vmem:[#allocation11 + $0x900] sm:$0xf] }
 0x5f4   : > { %9698 = vmatpush.bf16.msrb.mxu3 %v15000_v42  ;;  %v15929_v20 = vld [vmem:[#allocation11 + $0x950] sm:$0xf0] }
 0x5f5   : > { %v17881_v55 = vpop.f32.mrf.mxu0  ;;  %9642 = vmatpush.bf16.msrb.mxu1 %v14496_v32  ;;  %v19154_v39 = vld [vmem:[#allocation29_spill] sm:$0xff] }
 0x5f6   : > { %v9252_v33 = vpop.f32.mrf.mxu3  ;;  %v17884_v56 = vpop.f32.mrf.mxu1  ;;  %9670 = vmatpush.bf16.msrb.mxu2 %v14748_v48  ;;  %9612 = vmatpush.bf16.msrb.mxu0 %v14300_v2  ;;  %v14215_v48 = vld [vmem:[#allocation11 + $0x778] sm:$0xf] }
 0x5f7   : > { %v16203_v53 = vpop.eup %16202  ;;  %v9253_v62 = vadd.f32 %v9252_v33, %v9224_v51  ;;  %v19148_v33 = vld [vmem:[#allocation44_spill] sm:$0xff]  ;;  %v14216_v7 = vor.u32 %v15873_v45, %v14215_v48  ;;  %v14635_v45 = vld [vmem:[#allocation11 + $0xac0] sm:$0xf] }
 0x5f8   : > { %10731 = vst [vmem:[%s17839_s15 + $0xa8] sm:$0xff] %v16203_v53  ;;  %9502 = vmatmul.bf16.vlgmr.msra.gmra.mxu0 %v19144_v29  ;;  %v9086_v53 = vadd.f32 %v19148_v33, %v9057_v49  ;;  %v14971_v49 = vld [vmem:[#allocation11 + $0xd60] sm:$0xf]  ;;  %v14467_v33 = vld [vmem:[#allocation11 + $0x970] sm:$0xf] }
 0x5f9   : > { %16204 = vtanh.f32 %v9253_v62  ;;  %9531 = vmatmul.bf16.vlgmr.msra.gmra.mxu1 %v19145_v16  ;;  %v14972_v27 = vor.u32 %v16062_v3, %v14971_v49  ;;  %v14691_v3 = vld [vmem:[#allocation11 + $0xb30] sm:$0xf] }
 0x5fa   : > { %v17891_v13 = vpop.f32.mrf.mxu2  ;;  %v9115_v38 = vadd.f32 %v19150_v9, %v9086_v53  ;;  %9613 = vmatpush.bf16.msrb.mxu0 %v14272_v22  ;;  %v16055_v9 = vld [vmem:[#allocation11 + $0xd40] sm:$0xf0]  ;;  %v13573_v16 = vld [vmem:[#allocation11 + $0x28c] sm:$0xf0] }
 0x5fb   : > { %9699 = vmatpush.bf16.msrb.mxu3 %v14972_v27  ;;  %v15992_v27 = vld [vmem:[#allocation11 + $0xb48] sm:$0xf0] }
 0x5fc   : > { %v9144_v54 = vadd.f32 %v17801_v41, %v9115_v38  ;;  %v14243_v41 = vld [vmem:[#allocation11 + $0x7b0] sm:$0xf]  ;;  %v14944_v38 = vor.u32 %v16055_v9, %v14943_v36  ;;  %v15915_v36 = vld [vmem:[#allocation11 + $0x8e0] sm:$0xf0] }
 0x5fd   : > { %v17898_v25 = vpop.f32.mrf.mxu0 }
 0x5fe   : > { %v9254_v15 = vpop.f32.mrf.mxu3  ;;  %v17900_v51 = vpop.f32.mrf.mxu1  ;;  %v9173_v46 = vadd.f32 %v17865_v6, %v9144_v54  ;;  %v14692_v54 = vor.u32 %v15992_v27, %v14691_v3  ;;  %v14607_v3 = vld [vmem:[#allocation11 + $0xa88] sm:$0xf]  ;;  %v15971_v27 = vld [vmem:[#allocation11 + $0xaa0] sm:$0xf0] }
 0x5ff   : > { %v16205_v11 = vpop.eup %16204  ;;  %v9255_v62 = vadd.f32 %v9254_v15, %v9226_v12  ;;  %9560 = vmatmul.bf16.vlgmr.msra.gmra.mxu2 %v19149_v28  ;;  %v14719_v15 = vld [vmem:[#allocation11 + $0xb68] sm:$0xf]  ;;  %9700 = vmatpush.bf16.msrb.mxu3 %v14944_v38  ;;  %v15723_v28 = vld [vmem:[#allocation11 + $0x2e4] sm:$0xf] }
 0x600   : > { %10738 = vst [vmem:[%s17839_s15 + $0xe0] sm:$0xff] %v16205_v11  ;;  %v14244_v11 = vor.u32 %v15880_v43, %v14243_v41  ;;  %v14720_v31 = vor.u32 %v15999_v23, %v14719_v15  ;;  %v9202_v6 = vadd.f32 %v17867_v1, %v9173_v46  ;;  %v14440_v1 = vor.u32 %v15929_v20, %v14439_v26  ;;  %v14663_v46 = vld [vmem:[#allocation11 + $0xaf8] sm:$0xf]  ;;  %v19155_v41 = vld [vmem:[#allocation32_spill] sm:$0xff]  ;;  %v14915_v43 = vld [vmem:[#allocation11 + $0xcf0] sm:$0xf] }
 0x601   : > { %16206 = vtanh.f32 %v9255_v62  ;;  %v15936_v62 = vld [vmem:[#allocation11 + $0x988] sm:$0xf0]  ;;  %v15978_v26 = vld [vmem:[#allocation11 + $0xad8] sm:$0xf0] }
 0x602   : > { %v17907_v60 = vpop.f32.mrf.mxu2  ;;  %v14468_v35 = vor.u32 %v15936_v62, %v14467_v33  ;;  %9671 = vmatpush.bf16.msrb.mxu2 %v14720_v31  ;;  %v9231_v14 = vadd.f32 %v17891_v13, %v9202_v6  ;;  %9614 = vmatpush.bf16.msrb.mxu0 %v14244_v11  ;;  %v14187_v13 = vld [vmem:[#allocation11 + $0x740] sm:$0xf]  ;;  %v16048_v15 = vld [vmem:[#allocation11 + $0xd08] sm:$0xf0]  ;;  %v14159_v33 = vld [vmem:[#allocation11 + $0x708] sm:$0xf] }
 0x603   : > { %9488 = vmatmul.bf16.gmra.mxu3 %v19151_v52  ;;  %v14916_v11 = vor.u32 %v16048_v15, %v14915_v43  ;;  %v15859_v31 = vld [vmem:[#allocation11 + $0x720] sm:$0xf0]  ;;  %v14383_v62 = vld [vmem:[#allocation11 + $0x8c8] sm:$0xf]  ;;  %v19156_v20 = vld [vmem:[#allocation22_spill] sm:$0xff] }
 0x604   : > { %9643 = vmatpush.bf16.msrb.mxu1 %v14468_v35  ;;  %v14160_v35 = vor.u32 %v15859_v31, %v14159_v33  ;;  %v14384_v48 = vor.u32 %v15915_v36, %v14383_v62  ;;  %v16034_v43 = vld [vmem:[#allocation11 + $0xc98] sm:$0xf0]  ;;  %v19160_v31 = vld [vmem:[#allocation23_spill] sm:$0xff]  ;;  %v14831_v36 = vld [vmem:[#allocation11 + $0xc48] sm:$0xf] }
 0x605   : > { %v17913_v4 = vpop.f32.mrf.mxu0  ;;  %9701 = vmatpush.bf16.msrb.mxu3 %v14916_v11  ;;  %v19161_v62 = vld [vmem:[#allocation27_spill] sm:$0xff] }
 0x606   : > { %v9257_v8 = vpop.f32.mrf.mxu3  ;;  %v17915_v59 = vpop.f32.mrf.mxu1  ;;  %9615 = vmatpush.bf16.msrb.mxu0 %v14216_v7  ;;  %9672 = vmatpush.bf16.msrb.mxu2 %v14692_v54  ;;  %v14636_v7 = vor.u32 %v15978_v26, %v14635_v45  ;;  %v14608_v54 = vor.u32 %v15971_v27, %v14607_v3  ;;  %v19164_v3 = vld [vmem:[#allocation31_spill] sm:$0xff]  ;;  %v15793_v27 = vld [vmem:[#allocation11 + $0x514] sm:$0xf] }
 0x607   : > { %v16207_v12 = vpop.eup %16206  ;;  %v9258_v42 = vadd.f32 %v9257_v8, %v9229_v58  ;;  %v15866_v58 = vld [vmem:[#allocation11 + $0x758] sm:$0xf0]  ;;  %v15667_v52 = vld [vmem:[#allocation11 + $0x124] sm:$0xf] }
 0x608   : > { %10745 = vst [vmem:[%s17839_s15 + $0x118] sm:$0xff] %v16207_v12  ;;  %9507 = vmatmul.bf16.gmra.mxu0 %v19152_v40  ;;  %v14188_v22 = vor.u32 %v15866_v58, %v14187_v13  ;;  %v15922_v8 = vld [vmem:[#allocation11 + $0x918] sm:$0xf0]  ;;  %9644 = vmatpush.bf16.msrb.mxu1 %v14440_v1  ;;  %v14105_v40 = vld [vmem:[#allocation11 + $0x6b4] sm:$0xf0] }
 0x609   : > { %16208 = vtanh.f32 %v9258_v42  ;;  %9536 = vmatmul.bf16.gmra.mxu1 %v19153_v57  ;;  %v14412_v12 = vor.u32 %v15922_v8, %v14411_v44  ;;  %v15985_v42 = vld [vmem:[#allocation11 + $0xb10] sm:$0xf0]  ;;  %v19158_v8 = vld [vmem:[#allocation30_spill] sm:$0xff] }
 0x60a   : > { %v17921_v53 = vpop.f32.mrf.mxu2  ;;  %v14664_v23 = vor.u32 %v15985_v42, %v14663_v46  ;;  %9616 = vmatpush.bf16.msrb.mxu0 %v14188_v22  ;;  %v19159_v46 = vld [vmem:[#allocation33_spill] sm:$0xff]  ;;  %v14859_v42 = vld [vmem:[#allocation11 + $0xc80] sm:$0xf] }
 0x60b   : > { %v14860_v15 = vor.u32 %v16034_v43, %v14859_v42  ;;  %v15681_v42 = vld [vmem:[#allocation11 + $0x194] sm:$0xf]  ;;  %v13461_v43 = vld [vmem:[#allocation11 + $0x1ac] sm:$0xf0] }
 0x60c   : > { %9673 = vmatpush.bf16.msrb.mxu2 %v14664_v23  ;;  %9645 = vmatpush.bf16.msrb.mxu1 %v14412_v12 }
 0x60d   : > { %v17925_v2 = vpop.f32.mrf.mxu0 }
 0x60e   : > { %v9259_v30 = vpop.f32.mrf.mxu3  ;;  %v17927_v49 = vpop.f32.mrf.mxu1  ;;  %9617 = vmatpush.bf16.msrb.mxu0 %v14160_v35 }
 0x60f   : > { %v16209_v0 = vpop.eup %16208  ;;  %v9260_v18 = vadd.f32 %v9259_v30, %v9231_v14  ;;  %9565 = vmatmul.bf16.gmra.mxu2 %v19154_v39  ;;  %v19157_v30 = vld [vmem:[#allocation26_spill] sm:$0xff] }
 0x610   : > { %10752 = vst [vmem:[%s17839_s15 + $0x150] sm:$0xff] %v16209_v0  ;;  %9646 = vmatpush.bf16.msrb.mxu1 %v14384_v48  ;;  %9674 = vmatpush.bf16.msrb.mxu2 %v14636_v7  ;;  %v14887_v0 = vld [vmem:[#allocation11 + $0xcb8] sm:$0xf]  ;;  %v16027_v48 = vld [vmem:[#allocation11 + $0xc60] sm:$0xf0] }
 0x611   : > { %16210 = vtanh.f32 %v9260_v18  ;;  %v16041_v18 = vld [vmem:[#allocation11 + $0xcd0] sm:$0xf0]  ;;  %v14832_v45 = vor.u32 %v16027_v48, %v14831_v36  ;;  %v13464_v36 = vor.u32 %v15681_v42, %v13461_v43  ;;  %v14133_v48 = vld [vmem:[#allocation11 + $0x6ec] sm:$0xf0]  ;;  %v15674_v42 = vld [vmem:[#allocation11 + $0x15c] sm:$0xf] }
 0x612   : > { %v17931_v32 = vpop.f32.mrf.mxu2  ;;  %v14888_v13 = vor.u32 %v16041_v18, %v14887_v0  ;;  %v13909_v0 = vld [vmem:[#allocation11 + $0x52c] sm:$0xf0]  ;;  %v13433_v43 = vld [vmem:[#allocation11 + $0x174] sm:$0xf0]  ;;  %v15842_v39 = vld [vmem:[#allocation11 + $0x69c] sm:$0xf] }
 0x613   : > { %9589 = vmatmul.bf16.vlgmr.msra.gmra.mxu3 %v19155_v41  ;;  %v13912_v18 = vor.u32 %v15793_v27, %v13909_v0  ;;  %9726 = vmatpush.bf16.msra.mxu0 %v13464_v36  ;;  %v19167_v27 = vld [vmem:[#allocation36_spill] sm:$0xff]  ;;  %v13881_v41 = vld [vmem:[#allocation11 + $0x4f4] sm:$0xf0] }
 0x614   : > { %9702 = vmatpush.bf16.msrb.mxu3 %v14888_v13  ;;  %9675 = vmatpush.bf16.msrb.mxu2 %v14608_v54  ;;  %v19166_v13 = vld [vmem:[#allocation34_spill] sm:$0xff]  ;;  %v19168_v0 = vld [vmem:[#allocation40_spill] sm:$0xff] }
 0x615   : > { %v17934_v6 = vpop.f32.mrf.mxu0 }
 0x616   : > { %v17936_v9 = vpop.f32.mrf.mxu1  ;;  %v17938_v38 = vpop.f32.mrf.mxu3 }
 0x617   : > { %v16211_v14 = vpop.eup %16210 }
 0x618   : > { %10759 = vst [vmem:[%s17839_s15 + $0x188] sm:$0xff] %v16211_v14  ;;  %9512 = vmatmul.bf16.gmra.mxu0 %v19156_v20  ;;  %9703 = vmatpush.bf16.msrb.mxu3 %v14860_v15  ;;  %v15849_v15 = vld [vmem:[#allocation11 + $0x6d4] sm:$0xf] }
 0x619   : > { %9541 = vmatmul.bf16.gmra.mxu1 %v19157_v30  ;;  %9784 = vmatpush.bf16.msra.mxu2 %v13912_v18 }
 0x61a   : > { %v17943_v1 = vpop.f32.mrf.mxu2 }
 0x61c   : > { %9704 = vmatpush.bf16.msrb.mxu3 %v14832_v45  ;;  %v14136_v45 = vor.u32 %v15849_v15, %v14133_v48  ;;  %v13436_v15 = vor.u32 %v15674_v42, %v13433_v43  ;;  %v13405_v42 = vld [vmem:[#allocation11 + $0x13c] sm:$0xf0] }
 0x61d   : > { %v17945_v58 = vpop.f32.mrf.mxu0 }
 0x61e   : > { %v17947_v22 = vpop.f32.mrf.mxu1  ;;  %v17949_v44 = vpop.f32.mrf.mxu3  ;;  %9727 = vmatpush.bf16.msra.mxu0 %v13436_v15  ;;  %v15660_v15 = vld [vmem:[#allocation11 + $0xec] sm:$0xf] }
 0x61f   : > { %9570 = vmatmul.bf16.gmra.mxu2 %v19158_v8 }
 0x620   : > { %9813 = vmatpush.bf16.msra.mxu3 %v14136_v45  ;;  %v19170_v45 = vld [vmem:[#allocation47_spill] sm:$0xff] }
 0x622   : > { %v17952_v12 = vpop.f32.mrf.mxu2 }
 0x623   : > { %9594 = vmatmul.bf16.gmra.mxu3 %v19159_v46 }
 0x625   : > { %v17955_v23 = vpop.f32.mrf.mxu0 }
 0x626   : > { %v17957_v11 = vpop.f32.mrf.mxu1  ;;  %v17959_v33 = vpop.f32.mrf.mxu3 }
 0x628   : > { %9517 = vmatmul.bf16.gmra.mxu0 %v19160_v31  ;;  %v13685_v31 = vld [vmem:[#allocation11 + $0x36c] sm:$0xf0] }
 0x629   : > { %9546 = vmatmul.bf16.gmra.mxu1 %v19161_v62  ;;  %v15737_v62 = vld [vmem:[#allocation11 + $0x354] sm:$0xf] }
 0x62a   : > { %v17963_v35 = vpop.f32.mrf.mxu2  ;;  %v13688_v8 = vor.u32 %v15737_v62, %v13685_v31  ;;  %v13657_v31 = vld [vmem:[#allocation11 + $0x334] sm:$0xf0] }
 0x62c   : > { %9755 = vmatpush.bf16.msra.mxu1 %v13688_v8  ;;  %v17992_v8 = vperm.slane %v19170_v45, 1 }
 0x62d   : > { %v17965_v26 = vpop.f32.mrf.mxu0 }
 0x62e   : > { %19162 = vst [vmem:[#allocation39_spill] sm:$0xff] %v17965_v26  ;;  %v17967_v14 = vpop.f32.mrf.mxu1  ;;  %v17969_v7 = vpop.f32.mrf.mxu3  ;;  %v15716_v26 = vld [vmem:[#allocation11 + $0x2ac] sm:$0xf] }
 0x62f   : > { %19163 = vst [vmem:[#allocation45_spill] sm:$0xff] %v17967_v14  ;;  %9575 = vmatmul.bf16.gmra.mxu2 %v19164_v3  ;;  %v13408_v14 = vor.u32 %v15667_v52, %v13405_v42  ;;  %v13853_v42 = vld [vmem:[#allocation11 + $0x4bc] sm:$0xf0] }
 0x631   : > { %9728 = vmatpush.bf16.msra.mxu0 %v13408_v14  ;;  %v15835_v14 = vld [vmem:[#allocation11 + $0x664] sm:$0xf] }
 0x632   : > { %v17972_v54 = vpop.f32.mrf.mxu2 }
 0x633   : > { %19165 = vst [vmem:[#allocation43_spill] sm:$0xff] %v17972_v54  ;;  %9599 = vmatmul.bf16.gmra.mxu3 %v19166_v13  ;;  %v15730_v13 = vld [vmem:[#allocation11 + $0x31c] sm:$0xf]  ;;  %v13349_v54 = vld [vmem:[#allocation11 + $0xcc] sm:$0xf0] }
 0x634   : > { %v13660_v36 = vor.u32 %v15730_v13, %v13657_v31  ;;  %v13629_v13 = vld [vmem:[#allocation11 + $0x2fc] sm:$0xf0] }
 0x635   : > { %v17975_v46 = vpop.f32.mrf.mxu0  ;;  %v19172_v31 = vld [vmem:[#allocation35_spill] sm:$0xff]  ;;  %v13632_v45 = vor.u32 %v15723_v28, %v13629_v13 }
 0x636   : > { %v17977_v3 = vpop.f32.mrf.mxu3  ;;  %v17979_v30 = vpop.f32.mrf.mxu1  ;;  %9756 = vmatpush.bf16.msra.mxu1 %v13660_v36  ;;  %v13601_v36 = vld [vmem:[#allocation11 + $0x2c4] sm:$0xf0]  ;;  %v14077_v13 = vld [vmem:[#allocation11 + $0x67c] sm:$0xf0] }
 0x637   : > { %v13604_v28 = vor.u32 %v15716_v26, %v13601_v36  ;;  %v15772_v26 = vld [vmem:[#allocation11 + $0x46c] sm:$0xf] }
 0x638   : > { %9618 = vmatmul.bf16.vlgmr.msrb.gmra.mxu0 %v19167_v27  ;;  %v19171_v27 = vld [vmem:[#allocation42_spill] sm:$0xff] }
 0x639   : > { %9647 = vmatmul.bf16.vlgmr.msrb.gmra.mxu1 %v19168_v0  ;;  %v15786_v0 = vld [vmem:[#allocation11 + $0x4dc] sm:$0xf] }
 0x63a   : > { %v17983_v18 = vpop.f32.mrf.mxu2  ;;  %v13884_v57 = vor.u32 %v15786_v0, %v13881_v41  ;;  %v9272_v41 = vadd.f32 %v17881_v55, %v17992_v8  ;;  %9757 = vmatpush.bf16.msra.mxu1 %v13632_v45  ;;  %v14080_v45 = vor.u32 %v15835_v14, %v14077_v13 }
 0x63b   : > { %19169 = vst [vmem:[#allocation48_spill] sm:$0xff] %v17983_v18  ;;  %v14108_v18 = vor.u32 %v15842_v39, %v14105_v40  ;;  %v15779_v39 = vld [vmem:[#allocation11 + $0x4a4] sm:$0xf] }
 0x63c   : > { %9785 = vmatpush.bf16.msra.mxu2 %v13884_v57  ;;  %v9301_v55 = vadd.f32 %v17884_v56, %v9272_v41  ;;  %v15646_v56 = vld [vmem:[#allocation11 + $0x7c] sm:$0xf]  ;;  %v13321_v41 = vld [vmem:[#allocation11 + $0x94] sm:$0xf0] }
 0x63d   : > { %v17985_v20 = vpop.f32.mrf.mxu0  ;;  %9814 = vmatpush.bf16.msra.mxu3 %v14108_v18  ;;  %v13856_v18 = vor.u32 %v15779_v39, %v13853_v42 }
 0x63e   : > { %v17987_v62 = vpop.f32.mrf.mxu3  ;;  %v17989_v48 = vpop.f32.mrf.mxu1  ;;  %9758 = vmatpush.bf16.msra.mxu1 %v13604_v28  ;;  %v9330_v39 = vadd.f32 %v17907_v60, %v9301_v55 }
 0x63f   : > { %9676 = vmatmul.bf16.vlgmr.msrb.gmra.mxu2 %v19171_v27  ;;  %v13377_v27 = vld [vmem:[#allocation11 + $0x104] sm:$0xf0] }
 0x640   : > { %v13380_v57 = vor.u32 %v15660_v15, %v13377_v27  ;;  %9786 = vmatpush.bf16.msra.mxu2 %v13856_v18  ;;  %v13825_v27 = vld [vmem:[#allocation11 + $0x484] sm:$0xf0]  ;;  %v9274_v18 = vadd.f32 %v17898_v25, %v17992_v8  ;;  %v9359_v14 = vadd.f32 %v17938_v38, %v9330_v39  ;;  %v15828_v38 = vld [vmem:[#allocation11 + $0x62c] sm:$0xf] }
 0x641   : > { %9815 = vmatpush.bf16.msra.mxu3 %v14080_v45  ;;  %v13828_v42 = vor.u32 %v15772_v26, %v13825_v27  ;;  %v14049_v45 = vld [vmem:[#allocation11 + $0x644] sm:$0xf0]  ;;  %v15639_v26 = vld [vmem:[#allocation11 + $0x44] sm:$0xf] }
 0x642   : > { %v17995_v43 = vpop.f32.mrf.mxu2  ;;  %9729 = vmatpush.bf16.msra.mxu0 %v13380_v57  ;;  %v13545_v57 = vld [vmem:[#allocation11 + $0x254] sm:$0xf0]  ;;  %v9388_v55 = vadd.f32 %v17975_v46, %v9359_v14  ;;  %v9303_v27 = vadd.f32 %v17900_v51, %v9274_v18  ;;  %v14052_v39 = vor.u32 %v15828_v38, %v14049_v45  ;;  %v15758_v46 = vld [vmem:[#allocation11 + $0x3fc] sm:$0xf]  ;;  %v15632_v18 = vld [vmem:[#allocation11 + $0xc] sm:$0xf] }
 0x643   : > { %9604 = vmatmul.bf16.gmra.mxu3 %v19172_v31  ;;  %v15653_v31 = vld [vmem:[#allocation11 + $0xb4] sm:$0xf] }
 0x644   : > { %v13352_v15 = vor.u32 %v15653_v31, %v13349_v54  ;;  %9787 = vmatpush.bf16.msra.mxu2 %v13828_v42  ;;  %v15765_v31 = vld [vmem:[#allocation11 + $0x434] sm:$0xf]  ;;  %v13293_v42 = vld [vmem:[#allocation11 + $0x5c] sm:$0xf0]  ;;  %v9332_v14 = vadd.f32 %v17921_v53, %v9303_v27  ;;  %v13489_v53 = vld [vmem:[#allocation11 + $0x1e4] sm:$0xf0] }
 0x645   : > { %v18000_v0 = vpop.f32.mrf.mxu0  ;;  %9816 = vmatpush.bf16.msra.mxu3 %v14052_v39  ;;  %v13741_v27 = vld [vmem:[#allocation11 + $0x3dc] sm:$0xf0] }
 0x646   : > { %v18002_v40 = vpop.f32.mrf.mxu3  ;;  %v18004_v52 = vpop.f32.mrf.mxu1  ;;  %9730 = vmatpush.bf16.msra.mxu0 %v13352_v15  ;;  %v13517_v15 = vld [vmem:[#allocation11 + $0x21c] sm:$0xf0] }
 0x647   : > { %19173 = vst [vmem:[#allocation44_spill] sm:$0xff] %v18002_v40  ;;  %v15709_v40 = vld [vmem:[#allocation11 + $0x274] sm:$0xf] }
 0x648   : > { %9623 = vmatmul.bf16.gmra.mxu0 %v19126_v47  ;;  %v13576_v36 = vor.u32 %v15709_v40, %v13573_v16  ;;  %v13324_v16 = vor.u32 %v15646_v56, %v13321_v41  ;;  %v13797_v40 = vld [vmem:[#allocation11 + $0x44c] sm:$0xf0]  ;;  %v15695_v47 = vld [vmem:[#allocation11 + $0x204] sm:$0xf]  ;;  %v13769_v41 = vld [vmem:[#allocation11 + $0x414] sm:$0xf0] }
 0x649   : > { %9652 = vmatmul.bf16.gmra.mxu1 %v17482_v24  ;;  %v15702_v24 = vld [vmem:[#allocation11 + $0x23c] sm:$0xf]  ;;  %v13800_v25 = vor.u32 %v15765_v31, %v13797_v40  ;;  %v13520_v56 = vor.u32 %v15695_v47, %v13517_v15  ;;  %v13772_v51 = vor.u32 %v15758_v46, %v13769_v41  ;;  %v13265_v31 = vld [vmem:[#allocation11 + $0x24] sm:$0xf0]  ;;  %v15688_v40 = vld [vmem:[#allocation11 + $0x1cc] sm:$0xf] }
 0x64a   : > { %v18009_v29 = vpop.f32.mrf.mxu2  ;;  %9759 = vmatpush.bf16.msra.mxu1 %v13576_v36  ;;  %v13548_v60 = vor.u32 %v15702_v24, %v13545_v57  ;;  %9731 = vmatpush.bf16.msra.mxu0 %v13324_v16  ;;  %v13296_v24 = vor.u32 %v15639_v26, %v13293_v42  ;;  %v9417_v57 = vadd.f32 %v17979_v30, %v9388_v55  ;;  %v15751_v26 = vld [vmem:[#allocation11 + $0x3c4] sm:$0xf]  ;;  %v13713_v41 = vld [vmem:[#allocation11 + $0x3a4] sm:$0xf0] }
 0x64b   : > { %9788 = vmatpush.bf16.msra.mxu2 %v13800_v25  ;;  %v9277_v25 = vadd.f32 %v17913_v4, %v17992_v8  ;;  %v9361_v16 = vadd.f32 %v17949_v44, %v9332_v14  ;;  %v13268_v55 = vor.u32 %v15632_v18, %v13265_v31  ;;  %v13492_v45 = vor.u32 %v15688_v40, %v13489_v53  ;;  %v15821_v44 = vld [vmem:[#allocation11 + $0x5f4] sm:$0xf]  ;;  %v13993_v53 = vld [vmem:[#allocation11 + $0x5d4] sm:$0xf0] }
 0x64c   : > { %v9446_v47 = vadd.f32 %v17995_v43, %v9417_v57  ;;  %v13744_v42 = vor.u32 %v15751_v26, %v13741_v27  ;;  %v14021_v43 = vld [vmem:[#allocation11 + $0x60c] sm:$0xf0] }
 0x64d   : > { %v18015_v13 = vpop.f32.mrf.mxu0  ;;  %v9390_v39 = vadd.f32 %v17985_v20, %v9361_v16  ;;  %v9306_v15 = vadd.f32 %v17915_v59, %v9277_v25  ;;  %v14024_v46 = vor.u32 %v15821_v44, %v14021_v43  ;;  %v9279_v59 = vadd.f32 %v17925_v2, %v17992_v8  ;;  %v13965_v44 = vld [vmem:[#allocation11 + $0x59c] sm:$0xf0] }
 0x64e   : > { %v18017_v28 = vpop.f32.mrf.mxu3  ;;  %v18019_v54 = vpop.f32.mrf.mxu1  ;;  %9760 = vmatpush.bf16.msra.mxu1 %v13548_v60  ;;  %9732 = vmatpush.bf16.msra.mxu0 %v13296_v24 }
 0x64f   : > { %9681 = vmatmul.bf16.gmra.mxu2 %v17562_v61  ;;  %v9335_v20 = vadd.f32 %v17931_v32, %v9306_v15  ;;  %v9419_v14 = vadd.f32 %v17989_v48, %v9390_v39  ;;  %9817 = vmatpush.bf16.msra.mxu3 %v14024_v46  ;;  %v15814_v48 = vld [vmem:[#allocation11 + $0x5bc] sm:$0xf]  ;;  %v9308_v2 = vadd.f32 %v17927_v49, %v9279_v59 }
 0x650   : > { %9789 = vmatpush.bf16.msra.mxu2 %v13772_v51 }
 0x651   : > { %v9364_v51 = vadd.f32 %v17959_v33, %v9335_v20  ;;  %v9448_v18 = vadd.f32 %v18009_v29, %v9419_v14  ;;  %v13996_v29 = vor.u32 %v15814_v48, %v13993_v53  ;;  %v15800_v14 = vld [vmem:[#allocation11 + $0x54c] sm:$0xf] }
 0x652   : > { %v18024_v36 = vpop.f32.mrf.mxu2  ;;  %9761 = vmatpush.bf16.msra.mxu1 %v13520_v56  ;;  %9733 = vmatpush.bf16.msra.mxu0 %v13268_v55  ;;  %v15744_v56 = vld [vmem:[#allocation11 + $0x38c] sm:$0xf] }
 0x653   : > { %9705 = vmatmul.bf16.vlgmr.msrb.gmra.mxu3 %v17656_v50  ;;  %v13716_v57 = vor.u32 %v15744_v56, %v13713_v41  ;;  %v9393_v32 = vadd.f32 %v18000_v0, %v9364_v51  ;;  %v9282_v0 = vadd.f32 %v17934_v6, %v17992_v8 }
 0x654   : > { %9790 = vmatpush.bf16.msra.mxu2 %v13744_v42  ;;  %9818 = vmatpush.bf16.msra.mxu3 %v13996_v29  ;;  %v16017_v29 = vld [vmem:[#allocation11 + $0xc14] sm:$0xf] }
 0x655   : > { %v18033_v60 = vpop.f32.mrf.mxu0  ;;  %v9422_v55 = vadd.f32 %v18004_v52, %v9393_v32  ;;  %v15807_v52 = vld [vmem:[#allocation11 + $0x584] sm:$0xf]  ;;  %v9311_v6 = vadd.f32 %v17936_v9, %v9282_v0  ;;  %v16073_v0 = vld [vmem:[#allocation11 + $0xdd4] sm:$0xf] }
 0x656   : > { %v18035_v38 = vpop.f32.mrf.mxu1  ;;  %v9474_v30 = vpop.f32.mrf.mxu3  ;;  %9762 = vmatpush.bf16.msra.mxu1 %v13492_v45 }
 0x657   : > { %v9475_v4 = vadd.f32 %v9474_v30, %v9446_v47  ;;  %v9337_v30 = vadd.f32 %v17943_v1, %v9308_v2  ;;  %v9451_v26 = vadd.f32 %v18024_v36, %v9422_v55  ;;  %v9340_v43 = vadd.f32 %v17952_v12, %v9311_v6  ;;  %v14357_v55 = vld [vmem:[#allocation11 + $0x8ac] sm:$0xf0]  ;;  %v16010_v6 = vld [vmem:[#allocation11 + $0xbdc] sm:$0xf] }
 0x658   : > { %9628 = vmatmul.bf16.gmra.mxu0 %v19127_v5  ;;  %9791 = vmatpush.bf16.msra.mxu2 %v13716_v57  ;;  %v13937_v57 = vld [vmem:[#allocation11 + $0x564] sm:$0xf0] }
 0x659   : > { %16212 = vtanh.f32 %v9475_v4  ;;  %9657 = vmatmul.bf16.gmra.mxu1 %v17490_v63  ;;  %v9366_v45 = vadd.f32 %v17969_v7, %v9337_v30  ;;  %v13968_v7 = vor.u32 %v15807_v52, %v13965_v44  ;;  %v9369_v46 = vadd.f32 %v17977_v3, %v9340_v43  ;;  %v14805_v30 = vld [vmem:[#allocation11 + $0xc2c] sm:$0xf0]  ;;  %v15898_v43 = vld [vmem:[#allocation11 + $0x85c] sm:$0xf] }
 0x65a   : > { %v9452_v24 = vpop.f32.mrf.mxu2 }
 0x65b   : > { %v9395_v1 = vadd.f32 %v18015_v13, %v9366_v45  ;;  %9819 = vmatpush.bf16.msra.mxu3 %v13968_v7  ;;  %v9284_v13 = vadd.f32 %v17945_v58, %v17992_v8  ;;  %v9398_v12 = vadd.f32 %v18033_v60, %v9369_v46  ;;  %v9287_v60 = vadd.f32 %v17955_v23, %v17992_v8  ;;  %v19175_v23 = vld [vmem:[#allocation24_spill] sm:$0xff]  ;;  %v19176_v45 = vld [vmem:[#allocation43_spill] sm:$0xff]  ;;  %v14777_v7 = vld [vmem:[#allocation11 + $0xbf4] sm:$0xf0] }
 0x65c   : > { %v19178_v46 = vld [vmem:[#allocation44_spill] sm:$0xff] }
 0x65d   : > { %v18047_v31 = vpop.f32.mrf.mxu0  ;;  %v9424_v15 = vadd.f32 %v18019_v54, %v9395_v1  ;;  %v13940_v54 = vor.u32 %v15800_v14, %v13937_v57  ;;  %v9313_v58 = vadd.f32 %v17947_v22, %v9284_v13  ;;  %v15961_v1 = vld [vmem:[#allocation11 + $0xa54] sm:$0xf]  ;;  %v14329_v14 = vld [vmem:[#allocation11 + $0x874] sm:$0xf0]  ;;  %v16066_v57 = vld [vmem:[#allocation11 + $0xd9c] sm:$0xf] }
 0x65e   : > { %v18049_v40 = vpop.f32.mrf.mxu1  ;;  %v9476_v25 = vpop.f32.mrf.mxu3 }
 0x65f   : > { %v16213_v16 = vpop.eup %16212  ;;  %v9477_v47 = vadd.f32 %v9476_v25, %v9448_v18  ;;  %9686 = vmatmul.bf16.gmra.mxu2 %v17570_v37  ;;  %v9453_v56 = vadd.f32 %v9452_v24, %v9424_v15  ;;  %9820 = vmatpush.bf16.msra.mxu3 %v13940_v54  ;;  %v9342_v24 = vadd.f32 %v17963_v35, %v9313_v58  ;;  %v19177_v15 = vld [vmem:[#allocation39_spill] sm:$0xff]  ;;  %v15954_v58 = vld [vmem:[#allocation11 + $0xa1c] sm:$0xf] }
 0x660   : > { %10711 = vst [vmem:[%s17839_s15 + $0x8] sm:$0xff] %v16213_v16  ;;  %v9427_v18 = vadd.f32 %v18035_v38, %v9398_v12  ;;  %v9316_v35 = vadd.f32 %v17957_v11, %v9287_v60  ;;  %v19174_v38 = vld [vmem:[#allocation20_spill] sm:$0xff]  ;;  %v14581_v11 = vld [vmem:[#allocation11 + $0xa6c] sm:$0xf0]  ;;  %v9289_v13 = vadd.f32 %v19177_v15, %v17992_v8 }
 0x661   : > { %16214 = vtanh.f32 %v9477_v47  ;;  %v9371_v25 = vadd.f32 %v17987_v62, %v9342_v24  ;;  %v14808_v62 = vor.u32 %v16017_v29, %v14805_v30  ;;  %v14584_v44 = vor.u32 %v15961_v1, %v14581_v11  ;;  %v14553_v24 = vld [vmem:[#allocation11 + $0xa34] sm:$0xf0]  ;;  %v15891_v30 = vld [vmem:[#allocation11 + $0x824] sm:$0xf] }
 0x662   : > { %v9455_v33 = vpop.f32.mrf.mxu2  ;;  %v14556_v60 = vor.u32 %v15954_v58, %v14553_v24  ;;  %v16059_v11 = vld [vmem:[#allocation11 + $0xd64] sm:$0xf]  ;;  %v15996_v58 = vld [vmem:[#allocation11 + $0xb6c] sm:$0xf]  ;;  %v14721_v24 = vld [vmem:[#allocation11 + $0xb84] sm:$0xf0] }
 0x663   : > { %9710 = vmatmul.bf16.gmra.mxu3 %v17669_v21  ;;  %v9456_v16 = vadd.f32 %v9455_v33, %v9427_v18  ;;  %v9400_v53 = vadd.f32 %v18047_v31, %v9371_v25  ;;  %v15905_v33 = vld [vmem:[#allocation11 + $0x894] sm:$0xf]  ;;  %9900 = vmatpush.bf16.msrb.mxu2 %v14808_v62  ;;  %v14301_v62 = vld [vmem:[#allocation11 + $0x83c] sm:$0xf0] }
 0x664   : > { %v14360_v31 = vor.u32 %v15905_v33, %v14357_v55  ;;  %9871 = vmatpush.bf16.msrb.mxu1 %v14584_v44  ;;  %v15947_v33 = vld [vmem:[#allocation11 + $0x9e4] sm:$0xf]  ;;  %v15884_v44 = vld [vmem:[#allocation11 + $0x7ec] sm:$0xf] }
 0x665   : > { %v18062_v27 = vpop.f32.mrf.mxu0 }
 0x666   : > { %v18064_v49 = vpop.f32.mrf.mxu1  ;;  %v9479_v39 = vpop.f32.mrf.mxu3  ;;  %9842 = vmatpush.bf16.msrb.mxu0 %v14360_v31 }
 0x667   : > { %v16215_v4 = vpop.eup %16214  ;;  %v9480_v42 = vadd.f32 %v9479_v39, %v9451_v26  ;;  %v9345_v26 = vadd.f32 %v19176_v45, %v9316_v35  ;;  %v19181_v45 = vld [vmem:[#allocation48_spill] sm:$0xff] }
 0x668   : > { %10718 = vst [vmem:[%s17839_s15 + $0x40] sm:$0xff] %v16215_v4  ;;  %9633 = vmatmul.bf16.gmra.mxu0 %v19128_v10  ;;  %v15029_v4 = vld [vmem:[#allocation11 + $0xdec] sm:$0xf0]  ;;  %9872 = vmatpush.bf16.msrb.mxu1 %v14556_v60  ;;  %v15933_v60 = vld [vmem:[#allocation11 + $0x974] sm:$0xf] }
 0x669   : > { %16216 = vtanh.f32 %v9480_v42  ;;  %9662 = vmatmul.bf16.gmra.mxu1 %v17503_v34  ;;  %v9429_v42 = vadd.f32 %v18049_v40, %v9400_v53  ;;  %v15032_v52 = vor.u32 %v16073_v0, %v15029_v4  ;;  %v14749_v53 = vld [vmem:[#allocation11 + $0xbbc] sm:$0xf0]  ;;  %v19182_v4 = vld [vmem:[#allocation38_spill] sm:$0xff] }
 0x66a   : > { %v18071_v36 = vpop.f32.mrf.mxu2  ;;  %v14525_v0 = vld [vmem:[#allocation11 + $0x9fc] sm:$0xf0] }
 0x66b   : > { %v9458_v12 = vadd.f32 %v18071_v36, %v9429_v42  ;;  %9929 = vmatpush.bf16.msrb.mxu3 %v15032_v52  ;;  %v16003_v36 = vld [vmem:[#allocation11 + $0xba4] sm:$0xf]  ;;  %v14528_v1 = vor.u32 %v15947_v33, %v14525_v0  ;;  %v14973_v42 = vld [vmem:[#allocation11 + $0xd7c] sm:$0xf0] }
 0x66c   : > { %v14752_v29 = vor.u32 %v16003_v36, %v14749_v53  ;;  %v14976_v52 = vor.u32 %v16059_v11, %v14973_v42  ;;  %v16052_v53 = vld [vmem:[#allocation11 + $0xd2c] sm:$0xf]  ;;  %v14693_v11 = vld [vmem:[#allocation11 + $0xb4c] sm:$0xf0] }
 0x66d   : > { %v18078_v41 = vpop.f32.mrf.mxu0  ;;  %9873 = vmatpush.bf16.msrb.mxu1 %v14528_v1  ;;  %v15989_v1 = vld [vmem:[#allocation11 + $0xb34] sm:$0xf] }
 0x66e   : > { %v18080_v9 = vpop.f32.mrf.mxu1  ;;  %v9481_v20 = vpop.f32.mrf.mxu3 }
 0x66f   : > { %v16217_v59 = vpop.eup %16216  ;;  %v9482_v51 = vadd.f32 %v9481_v20, %v9453_v56  ;;  %9691 = vmatmul.bf16.gmra.mxu2 %v17584_v17  ;;  %v9374_v56 = vadd.f32 %v19178_v46, %v9345_v26  ;;  %v14780_v20 = vor.u32 %v16010_v6, %v14777_v7  ;;  %v14273_v6 = vld [vmem:[#allocation11 + $0x804] sm:$0xf0]  ;;  %v15940_v7 = vld [vmem:[#allocation11 + $0x9ac] sm:$0xf] }
 0x670   : > { %10725 = vst [vmem:[%s17839_s15 + $0x78] sm:$0xff] %v16217_v59  ;;  %v15001_v59 = vld [vmem:[#allocation11 + $0xdb4] sm:$0xf0]  ;;  %v14497_v46 = vld [vmem:[#allocation11 + $0x9c4] sm:$0xf0] }
 0x671   : > { %16218 = vtanh.f32 %v9482_v51  ;;  %v14332_v51 = vor.u32 %v15898_v43, %v14329_v14  ;;  %v15004_v54 = vor.u32 %v16066_v57, %v15001_v59  ;;  %9901 = vmatpush.bf16.msrb.mxu2 %v14780_v20  ;;  %v14500_v14 = vor.u32 %v15940_v7, %v14497_v46  ;;  %v14189_v7 = vld [vmem:[#allocation11 + $0x75c] sm:$0xf0] }
 0x672   : > { %v18086_v3 = vpop.f32.mrf.mxu2 }
 0x673   : > { %9715 = vmatmul.bf16.gmra.mxu3 %v17681_v19  ;;  %9843 = vmatpush.bf16.msrb.mxu0 %v14332_v51  ;;  %v19183_v51 = vld [vmem:[#allocation21_spill] sm:$0xff] }
 0x674   : > { %9930 = vmatpush.bf16.msrb.mxu3 %v15004_v54  ;;  %v14245_v54 = vld [vmem:[#allocation11 + $0x7cc] sm:$0xf0]  ;;  %9874 = vmatpush.bf16.msrb.mxu1 %v14500_v14  ;;  %v15982_v14 = vld [vmem:[#allocation11 + $0xafc] sm:$0xf] }
 0x675   : > { %v18094_v32 = vpop.f32.mrf.mxu0  ;;  %9902 = vmatpush.bf16.msrb.mxu2 %v14752_v29  ;;  %v15870_v29 = vld [vmem:[#allocation11 + $0x77c] sm:$0xf] }
 0x676   : > { %v9484_v22 = vpop.f32.mrf.mxu3  ;;  %v18096_v47 = vpop.f32.mrf.mxu1 }
 0x677   : > { %v16219_v48 = vpop.eup %16218  ;;  %v9485_v2 = vadd.f32 %v9484_v22, %v9456_v16  ;;  %v9403_v16 = vadd.f32 %v18062_v27, %v9374_v56  ;;  %v14304_v27 = vor.u32 %v15891_v30, %v14301_v62  ;;  %v14217_v30 = vld [vmem:[#allocation11 + $0x794] sm:$0xf0]  ;;  %v15926_v62 = vld [vmem:[#allocation11 + $0x93c] sm:$0xf] }
 0x678   : > { %10732 = vst [vmem:[%s17839_s15 + $0xb0] sm:$0xff] %v16219_v48  ;;  %9734 = vmatmul.bf16.vlgmr.msra.gmra.mxu0 %v19174_v38  ;;  %v19179_v48 = vld [vmem:[#allocation28_spill] sm:$0xff]  ;;  %9931 = vmatpush.bf16.msrb.mxu3 %v14976_v52  ;;  %v14220_v0 = vor.u32 %v15870_v29, %v14217_v30  ;;  %v14637_v29 = vld [vmem:[#allocation11 + $0xadc] sm:$0xf0] }
 0x679   : > { %16220 = vtanh.f32 %v9485_v2  ;;  %9763 = vmatmul.bf16.vlgmr.msra.gmra.mxu1 %v19175_v23  ;;  %v19180_v2 = vld [vmem:[#allocation45_spill] sm:$0xff]  ;;  %v9432_v31 = vadd.f32 %v18064_v49, %v9403_v16  ;;  %9844 = vmatpush.bf16.msrb.mxu0 %v14304_v27  ;;  %v14276_v49 = vor.u32 %v15884_v44, %v14273_v6  ;;  %v14724_v16 = vor.u32 %v15996_v58, %v14721_v24  ;;  %v15856_v24 = vld [vmem:[#allocation11 + $0x70c] sm:$0xf] }
 0x67a   : > { %v18104_v39 = vpop.f32.mrf.mxu2  ;;  %v9318_v35 = vadd.f32 %v19180_v2, %v9289_v13  ;;  %v14945_v2 = vld [vmem:[#allocation11 + $0xd44] sm:$0xf0]  ;;  %v19185_v44 = vld [vmem:[#allocation29_spill] sm:$0xff]  ;;  %v14696_v6 = vor.u32 %v15989_v1, %v14693_v11  ;;  %v16038_v1 = vld [vmem:[#allocation11 + $0xcbc] sm:$0xf] }
 0x67b   : > { %v9461_v15 = vadd.f32 %v18086_v3, %v9432_v31  ;;  %v19184_v3 = vld [vmem:[#allocation25_spill] sm:$0xff]  ;;  %9903 = vmatpush.bf16.msrb.mxu2 %v14724_v16  ;;  %v14889_v11 = vld [vmem:[#allocation11 + $0xcd4] sm:$0xf0] }
 0x67c   : > { %v9347_v26 = vadd.f32 %v19181_v45, %v9318_v35  ;;  %v14948_v35 = vor.u32 %v16052_v53, %v14945_v2  ;;  %v14441_v45 = vld [vmem:[#allocation11 + $0x954] sm:$0xf0]  ;;  %v15713_v23 = vld [vmem:[#allocation11 + $0x290] sm:$0xf0] }
 0x67d   : > { %v18111_v40 = vpop.f32.mrf.mxu0  ;;  %9845 = vmatpush.bf16.msrb.mxu0 %v14276_v49  ;;  %v14413_v49 = vld [vmem:[#allocation11 + $0x91c] sm:$0xf0] }
 0x67e   : > { %v9486_v18 = vpop.f32.mrf.mxu3  ;;  %v18113_v8 = vpop.f32.mrf.mxu1  ;;  %v9376_v43 = vadd.f32 %v18017_v28, %v9347_v26  ;;  %v15877_v28 = vld [vmem:[#allocation11 + $0x7b4] sm:$0xf]  ;;  %9932 = vmatpush.bf16.msrb.mxu3 %v14948_v35  ;;  %v15975_v35 = vld [vmem:[#allocation11 + $0xac4] sm:$0xf] }
 0x67f   : > { %v16221_v25 = vpop.eup %16220  ;;  %v9487_v22 = vadd.f32 %v9486_v18, %v9458_v12  ;;  %9792 = vmatmul.bf16.vlgmr.msra.gmra.mxu2 %v19179_v48  ;;  %v14248_v18 = vor.u32 %v15877_v28, %v14245_v54  ;;  %v14917_v28 = vld [vmem:[#allocation11 + $0xd0c] sm:$0xf0]  ;;  %v13355_v48 = vld [vmem:[#allocation11 + $0xb8] sm:$0xf] }
 0x680   : > { %10739 = vst [vmem:[%s17839_s15 + $0xe8] sm:$0xff] %v16221_v25  ;;  %v9405_v59 = vadd.f32 %v18078_v41, %v9376_v43  ;;  %9904 = vmatpush.bf16.msrb.mxu2 %v14696_v6 }
 0x681   : > { %16222 = vtanh.f32 %v9487_v22  ;;  %v14469_v22 = vld [vmem:[#allocation11 + $0x98c] sm:$0xf0]  ;;  %9846 = vmatpush.bf16.msrb.mxu0 %v14248_v18  ;;  %v14161_v18 = vld [vmem:[#allocation11 + $0x724] sm:$0xf0] }
 0x682   : > { %v18119_v55 = vpop.f32.mrf.mxu2  ;;  %v9434_v41 = vadd.f32 %v18080_v9, %v9405_v59  ;;  %v14472_v36 = vor.u32 %v15933_v60, %v14469_v22  ;;  %v14444_v9 = vor.u32 %v15926_v62, %v14441_v45  ;;  %v19186_v59 = vld [vmem:[#allocation32_spill] sm:$0xff]  ;;  %v14164_v22 = vor.u32 %v15856_v24, %v14161_v18  ;;  %v19192_v24 = vld [vmem:[#allocation27_spill] sm:$0xff] }
 0x683   : > { %9720 = vmatmul.bf16.gmra.mxu3 %v19182_v4  ;;  %v15912_v60 = vld [vmem:[#allocation11 + $0x8cc] sm:$0xf]  ;;  %v14640_v62 = vor.u32 %v15975_v35, %v14637_v29  ;;  %v15727_v4 = vld [vmem:[#allocation11 + $0x300] sm:$0xf0] }
 0x684   : > { %v9463_v33 = vadd.f32 %v18104_v39, %v9434_v41  ;;  %9875 = vmatpush.bf16.msrb.mxu1 %v14472_v36  ;;  %v15863_v39 = vld [vmem:[#allocation11 + $0x744] sm:$0xf]  ;;  %v14385_v41 = vld [vmem:[#allocation11 + $0x8e4] sm:$0xf0] }
 0x685   : > { %v18126_v13 = vpop.f32.mrf.mxu0  ;;  %9847 = vmatpush.bf16.msrb.mxu0 %v14220_v0  ;;  %v14192_v43 = vor.u32 %v15863_v39, %v14189_v7  ;;  %v14388_v2 = vor.u32 %v15912_v60, %v14385_v41  ;;  %v19188_v0 = vld [vmem:[#allocation26_spill] sm:$0xff]  ;;  %v16024_v60 = vld [vmem:[#allocation11 + $0xc4c] sm:$0xf] }
 0x686   : > { %v9489_v56 = vpop.f32.mrf.mxu3  ;;  %v18128_v20 = vpop.f32.mrf.mxu1 }
 0x687   : > { %v16223_v57 = vpop.eup %16222  ;;  %v9490_v12 = vadd.f32 %v9489_v56, %v9461_v15  ;;  %v15919_v15 = vld [vmem:[#allocation11 + $0x904] sm:$0xf] }
 0x688   : > { %10746 = vst [vmem:[%s17839_s15 + $0x120] sm:$0xff] %v16223_v57  ;;  %9739 = vmatmul.bf16.gmra.mxu0 %v19183_v51  ;;  %9876 = vmatpush.bf16.msrb.mxu1 %v14444_v9  ;;  %v14416_v56 = vor.u32 %v15919_v15, %v14413_v49  ;;  %v14665_v57 = vld [vmem:[#allocation11 + $0xb14] sm:$0xf0]  ;;  %v14609_v9 = vld [vmem:[#allocation11 + $0xaa4] sm:$0xf0]  ;;  %v19190_v49 = vld [vmem:[#allocation33_spill] sm:$0xff] }
 0x689   : > { %16224 = vtanh.f32 %v9490_v12  ;;  %9768 = vmatmul.bf16.gmra.mxu1 %v19184_v3  ;;  %v16045_v12 = vld [vmem:[#allocation11 + $0xcf4] sm:$0xf]  ;;  %v14668_v54 = vor.u32 %v15982_v14, %v14665_v57  ;;  %9848 = vmatpush.bf16.msrb.mxu0 %v14192_v43  ;;  %v19189_v43 = vld [vmem:[#allocation30_spill] sm:$0xff]  ;;  %v14861_v14 = vld [vmem:[#allocation11 + $0xc9c] sm:$0xf0] }
 0x68a   : > { %v18134_v25 = vpop.f32.mrf.mxu2  ;;  %v14920_v58 = vor.u32 %v16045_v12, %v14917_v28 }
 0x68b   : > { %9905 = vmatpush.bf16.msrb.mxu2 %v14668_v54 }
 0x68c   : > { %9877 = vmatpush.bf16.msrb.mxu1 %v14416_v56  ;;  %9933 = vmatpush.bf16.msrb.mxu3 %v14920_v58  ;;  %v16031_v56 = vld [vmem:[#allocation11 + $0xc84] sm:$0xf] }
 0x68d   : > { %v18138_v27 = vpop.f32.mrf.mxu0  ;;  %9849 = vmatpush.bf16.msrb.mxu0 %v14164_v22  ;;  %v14864_v57 = vor.u32 %v16031_v56, %v14861_v14  ;;  %v19191_v58 = vld [vmem:[#allocation23_spill] sm:$0xff]  ;;  %v14833_v22 = vld [vmem:[#allocation11 + $0xc64] sm:$0xf0]  ;;  %v14139_v56 = vld [vmem:[#allocation11 + $0x6d8] sm:$0xf] }
 0x68e   : > { %v9491_v26 = vpop.f32.mrf.mxu3  ;;  %v18140_v31 = vpop.f32.mrf.mxu1  ;;  %v14836_v41 = vor.u32 %v16024_v60, %v14833_v22  ;;  %v13691_v60 = vld [vmem:[#allocation11 + $0x358] sm:$0xf]  ;;  %v15741_v22 = vld [vmem:[#allocation11 + $0x370] sm:$0xf0] }
 0x68f   : > { %v16225_v42 = vpop.eup %16224  ;;  %v9492_v52 = vadd.f32 %v9491_v26, %v9463_v33  ;;  %9797 = vmatmul.bf16.gmra.mxu2 %v19185_v44  ;;  %v19187_v33 = vld [vmem:[#allocation22_spill] sm:$0xff]  ;;  %v15968_v26 = vld [vmem:[#allocation11 + $0xa8c] sm:$0xf]  ;;  %v15671_v44 = vld [vmem:[#allocation11 + $0x140] sm:$0xf0] }
 0x690   : > { %10753 = vst [vmem:[%s17839_s15 + $0x158] sm:$0xff] %v16225_v42  ;;  %9878 = vmatpush.bf16.msrb.mxu1 %v14388_v2  ;;  %9906 = vmatpush.bf16.msrb.mxu2 %v14640_v62  ;;  %v14612_v42 = vor.u32 %v15968_v26, %v14609_v9  ;;  %v13915_v62 = vld [vmem:[#allocation11 + $0x518] sm:$0xf]  ;;  %v15797_v26 = vld [vmem:[#allocation11 + $0x530] sm:$0xf0] }
 0x691   : > { %16226 = vtanh.f32 %v9492_v52  ;;  %v14892_v52 = vor.u32 %v16038_v1, %v14889_v11  ;;  %v13916_v9 = vor.u32 %v15797_v26, %v13915_v62  ;;  %v19197_v11 = vld [vmem:[#allocation34_spill] sm:$0xff]  ;;  %v19198_v62 = vld [vmem:[#allocation36_spill] sm:$0xff] }
 0x692   : > { %v18144_v46 = vpop.f32.mrf.mxu2  ;;  %v19199_v26 = vld [vmem:[#allocation40_spill] sm:$0xff] }
 0x693   : > { %9821 = vmatmul.bf16.vlgmr.msra.gmra.mxu3 %v19186_v59 }
 0x694   : > { %9934 = vmatpush.bf16.msrb.mxu3 %v14892_v52  ;;  %9907 = vmatpush.bf16.msrb.mxu2 %v14612_v42  ;;  %v13467_v42 = vld [vmem:[#allocation11 + $0x198] sm:$0xf]  ;;  %v15685_v52 = vld [vmem:[#allocation11 + $0x1b0] sm:$0xf0] }
 0x695   : > { %v18147_v16 = vpop.f32.mrf.mxu0  ;;  %v13468_v14 = vor.u32 %v15685_v52, %v13467_v42  ;;  %v13439_v42 = vld [vmem:[#allocation11 + $0x160] sm:$0xf]  ;;  %v15678_v52 = vld [vmem:[#allocation11 + $0x178] sm:$0xf0] }
 0x696   : > { %v18149_v36 = vpop.f32.mrf.mxu1  ;;  %v18151_v53 = vpop.f32.mrf.mxu3 }
 0x697   : > { %v16227_v30 = vpop.eup %16226  ;;  %9958 = vmatpush.bf16.msra.mxu0 %v13468_v14 }
 0x698   : > { %10760 = vst [vmem:[%s17839_s15 + $0x190] sm:$0xff] %v16227_v30  ;;  %9744 = vmatmul.bf16.gmra.mxu0 %v19187_v33  ;;  %9935 = vmatpush.bf16.msrb.mxu3 %v14864_v57  ;;  %v19195_v30 = vld [vmem:[#allocation31_spill] sm:$0xff]  ;;  %v15853_v57 = vld [vmem:[#allocation11 + $0x6f0] sm:$0xf0] }
 0x699   : > { %9773 = vmatmul.bf16.gmra.mxu1 %v19188_v0  ;;  %10016 = vmatpush.bf16.msra.mxu2 %v13916_v9  ;;  %v15790_v0 = vld [vmem:[#allocation11 + $0x4f8] sm:$0xf0]  ;;  %v14111_v33 = vld [vmem:[#allocation11 + $0x6a0] sm:$0xf] }
 0x69a   : > { %v18156_v45 = vpop.f32.mrf.mxu2 }
 0x69c   : > { %9936 = vmatpush.bf16.msrb.mxu3 %v14836_v41  ;;  %v14140_v41 = vor.u32 %v15853_v57, %v14139_v56  ;;  %v13440_v56 = vor.u32 %v15678_v52, %v13439_v42  ;;  %v15734_v57 = vld [vmem:[#allocation11 + $0x338] sm:$0xf0]  ;;  %v13411_v52 = vld [vmem:[#allocation11 + $0x128] sm:$0xf] }
 0x69d   : > { %v18158_v6 = vpop.f32.mrf.mxu0  ;;  %v15846_v42 = vld [vmem:[#allocation11 + $0x6b8] sm:$0xf0] }
 0x69e   : > { %v18160_v39 = vpop.f32.mrf.mxu1  ;;  %v18162_v7 = vpop.f32.mrf.mxu3  ;;  %9959 = vmatpush.bf16.msra.mxu0 %v13440_v56  ;;  %v14112_v51 = vor.u32 %v15846_v42, %v14111_v33  ;;  %v13383_v56 = vld [vmem:[#allocation11 + $0xf0] sm:$0xf]  ;;  %v13859_v42 = vld [vmem:[#allocation11 + $0x4a8] sm:$0xf] }
 0x69f   : > { %9802 = vmatmul.bf16.gmra.mxu2 %v19189_v43 }
 0x6a0   : > { %10045 = vmatpush.bf16.msra.mxu3 %v14140_v41  ;;  %v18204_v41 = vld [vmem:[#allocation13] sm:$0xff] }
 0x6a1   : > { %19201 = vst [vmem:[#allocation44_spill] sm:$0xff] %v18204_v41 }
 0x6a2   : > { %v18165_v15 = vpop.f32.mrf.mxu2 }
 0x6a3   : > { %9826 = vmatmul.bf16.gmra.mxu3 %v19190_v49 }
 0x6a4   : > { %10046 = vmatpush.bf16.msra.mxu3 %v14112_v51 }
 0x6a5   : > { %v18168_v12 = vpop.f32.mrf.mxu0 }
 0x6a6   : > { %v18170_v28 = vpop.f32.mrf.mxu1  ;;  %v18172_v54 = vpop.f32.mrf.mxu3 }
 0x6a8   : > { %9749 = vmatmul.bf16.gmra.mxu0 %v19191_v58  ;;  %v13692_v58 = vor.u32 %v15741_v22, %v13691_v60 }
 0x6a9   : > { %9778 = vmatmul.bf16.gmra.mxu1 %v19192_v24 }
 0x6aa   : > { %v18176_v18 = vpop.f32.mrf.mxu2  ;;  %9987 = vmatpush.bf16.msra.mxu1 %v13692_v58  ;;  %v18207_v58 = vperm.slane %v18204_v41, 2 }
 0x6ad   : > { %v18178_v2 = vpop.f32.mrf.mxu0 }
 0x6ae   : > { %19193 = vst [vmem:[#allocation46_spill] sm:$0xff] %v18178_v2  ;;  %v18180_v35 = vpop.f32.mrf.mxu1  ;;  %v18182_v29 = vpop.f32.mrf.mxu3  ;;  %v19206_v2 = vld [vmem:[#allocation41_spill] sm:$0xff] }
 0x6af   : > { %19194 = vst [vmem:[#allocation47_spill] sm:$0xff] %v18180_v35  ;;  %9807 = vmatmul.bf16.gmra.mxu2 %v19195_v30  ;;  %v13607_v35 = vld [vmem:[#allocation11 + $0x2b0] sm:$0xf] }
 0x6b2   : > { %v18185_v1 = vpop.f32.mrf.mxu2 }
 0x6b3   : > { %19196 = vst [vmem:[#allocation43_spill] sm:$0xff] %v18185_v1  ;;  %9831 = vmatmul.bf16.gmra.mxu3 %v19197_v11  ;;  %v13663_v11 = vld [vmem:[#allocation11 + $0x320] sm:$0xf]  ;;  %v15657_v1 = vld [vmem:[#allocation11 + $0xd0] sm:$0xf0] }
 0x6b4   : > { %v13664_v14 = vor.u32 %v15734_v57, %v13663_v11  ;;  %v13412_v11 = vor.u32 %v15671_v44, %v13411_v52  ;;  %v13635_v57 = vld [vmem:[#allocation11 + $0x2e8] sm:$0xf]  ;;  %v15783_v52 = vld [vmem:[#allocation11 + $0x4c0] sm:$0xf0] }
 0x6b5   : > { %v18188_v24 = vpop.f32.mrf.mxu0  ;;  %v13636_v41 = vor.u32 %v15727_v4, %v13635_v57  ;;  %v13860_v51 = vor.u32 %v15783_v52, %v13859_v42  ;;  %v14083_v57 = vld [vmem:[#allocation11 + $0x668] sm:$0xf] }
 0x6b6   : > { %v18190_v30 = vpop.f32.mrf.mxu3  ;;  %v18192_v49 = vpop.f32.mrf.mxu1  ;;  %9988 = vmatpush.bf16.msra.mxu1 %v13664_v14  ;;  %9960 = vmatpush.bf16.msra.mxu0 %v13412_v11  ;;  %v15720_v14 = vld [vmem:[#allocation11 + $0x2c8] sm:$0xf0]  ;;  %v19205_v11 = vld [vmem:[#allocation37_spill] sm:$0xff] }
 0x6b7   : > { %v13608_v4 = vor.u32 %v15720_v14, %v13607_v35  ;;  %v13831_v35 = vld [vmem:[#allocation11 + $0x470] sm:$0xf] }
 0x6b8   : > { %9850 = vmatmul.bf16.vlgmr.msrb.gmra.mxu0 %v19198_v62  ;;  %v13887_v62 = vld [vmem:[#allocation11 + $0x4e0] sm:$0xf] }
 0x6b9   : > { %9879 = vmatmul.bf16.vlgmr.msrb.gmra.mxu1 %v19199_v26  ;;  %v19202_v26 = vld [vmem:[#allocation42_spill] sm:$0xff]  ;;  %v13888_v59 = vor.u32 %v15790_v0, %v13887_v62  ;;  %v9504_v0 = vadd.f32 %v18094_v32, %v18207_v58 }
 0x6ba   : > { %v18196_v9 = vpop.f32.mrf.mxu2  ;;  %9989 = vmatpush.bf16.msra.mxu1 %v13636_v41 }
 0x6bb   : > { %19200 = vst [vmem:[#allocation39_spill] sm:$0xff] %v18196_v9  ;;  %v19203_v9 = vld [vmem:[#allocation35_spill] sm:$0xff]  ;;  %10017 = vmatpush.bf16.msra.mxu2 %v13888_v59  ;;  %v9533_v32 = vadd.f32 %v18096_v47, %v9504_v0  ;;  %v15650_v0 = vld [vmem:[#allocation11 + $0x98] sm:$0xf0] }
 0x6bc   : > { %v13327_v47 = vld [vmem:[#allocation11 + $0x80] sm:$0xf] }
 0x6bd   : > { %v18198_v43 = vpop.f32.mrf.mxu0  ;;  %v9562_v42 = vadd.f32 %v18119_v55, %v9533_v32 }
 0x6be   : > { %v18200_v60 = vpop.f32.mrf.mxu3  ;;  %v18202_v22 = vpop.f32.mrf.mxu1  ;;  %9990 = vmatpush.bf16.msra.mxu1 %v13608_v4 }
 0x6bf   : > { %9908 = vmatmul.bf16.vlgmr.msrb.gmra.mxu2 %v19202_v26  ;;  %v15664_v26 = vld [vmem:[#allocation11 + $0x108] sm:$0xf0] }
 0x6c0   : > { %v13384_v59 = vor.u32 %v15664_v26, %v13383_v56  ;;  %10018 = vmatpush.bf16.msra.mxu2 %v13860_v51  ;;  %v15776_v26 = vld [vmem:[#allocation11 + $0x488] sm:$0xf0]  ;;  %v13356_v56 = vor.u32 %v15657_v1, %v13355_v48  ;;  %v9591_v51 = vadd.f32 %v18151_v53, %v9562_v42  ;;  %v13803_v1 = vld [vmem:[#allocation11 + $0x438] sm:$0xf]  ;;  %v14055_v53 = vld [vmem:[#allocation11 + $0x630] sm:$0xf] }
 0x6c1   : > { %v13832_v52 = vor.u32 %v15776_v26, %v13831_v35  ;;  %v13299_v35 = vld [vmem:[#allocation11 + $0x48] sm:$0xf] }
 0x6c2   : > { %v18210_v3 = vpop.f32.mrf.mxu2  ;;  %9961 = vmatpush.bf16.msra.mxu0 %v13384_v59  ;;  %v15706_v59 = vld [vmem:[#allocation11 + $0x258] sm:$0xf0]  ;;  %v9620_v32 = vadd.f32 %v18188_v24, %v9591_v51  ;;  %v13775_v24 = vld [vmem:[#allocation11 + $0x400] sm:$0xf] }
 0x6c3   : > { %9836 = vmatmul.bf16.gmra.mxu3 %v19203_v9  ;;  %v15839_v9 = vld [vmem:[#allocation11 + $0x680] sm:$0xf0] }
 0x6c4   : > { %v14084_v41 = vor.u32 %v15839_v9, %v14083_v57  ;;  %v9506_v9 = vadd.f32 %v18111_v40, %v18207_v58  ;;  %10019 = vmatpush.bf16.msra.mxu2 %v13832_v52  ;;  %v15643_v52 = vld [vmem:[#allocation11 + $0x60] sm:$0xf0] }
 0x6c5   : > { %v18215_v62 = vpop.f32.mrf.mxu0 }
 0x6c6   : > { %v18217_v33 = vpop.f32.mrf.mxu3  ;;  %v18219_v44 = vpop.f32.mrf.mxu1  ;;  %10047 = vmatpush.bf16.msra.mxu3 %v14084_v41  ;;  %9962 = vmatpush.bf16.msra.mxu0 %v13356_v56  ;;  %v15832_v41 = vld [vmem:[#allocation11 + $0x648] sm:$0xf0]  ;;  %v9535_v26 = vadd.f32 %v18113_v8, %v9506_v9  ;;  %v15699_v56 = vld [vmem:[#allocation11 + $0x220] sm:$0xf0]  ;;  %v13271_v9 = vld [vmem:[#allocation11 + $0x10] sm:$0xf] }
 0x6c7   : > { %19204 = vst [vmem:[#allocation45_spill] sm:$0xff] %v18217_v33  ;;  %v13579_v33 = vld [vmem:[#allocation11 + $0x278] sm:$0xf]  ;;  %v14056_v42 = vor.u32 %v15832_v41, %v14055_v53 }
 0x6c8   : > { %9855 = vmatmul.bf16.gmra.mxu0 %v19205_v11  ;;  %v13580_v14 = vor.u32 %v15713_v23, %v13579_v33  ;;  %v13328_v23 = vor.u32 %v15650_v0, %v13327_v47  ;;  %v15769_v33 = vld [vmem:[#allocation11 + $0x450] sm:$0xf0]  ;;  %v13523_v11 = vld [vmem:[#allocation11 + $0x208] sm:$0xf]  ;;  %v15762_v0 = vld [vmem:[#allocation11 + $0x418] sm:$0xf0]  ;;  %v9564_v51 = vadd.f32 %v18134_v25, %v9535_v26 }
 0x6c9   : > { %9884 = vmatmul.bf16.gmra.mxu1 %v19206_v2  ;;  %v13551_v2 = vld [vmem:[#allocation11 + $0x240] sm:$0xf]  ;;  %v13804_v40 = vor.u32 %v15769_v33, %v13803_v1  ;;  %v13524_v47 = vor.u32 %v15699_v56, %v13523_v11  ;;  %v13776_v8 = vor.u32 %v15762_v0, %v13775_v24  ;;  %v15636_v1 = vld [vmem:[#allocation11 + $0x28] sm:$0xf0]  ;;  %v13495_v33 = vld [vmem:[#allocation11 + $0x1d0] sm:$0xf] }
 0x6ca   : > { %v18224_v38 = vpop.f32.mrf.mxu2  ;;  %9991 = vmatpush.bf16.msra.mxu1 %v13580_v14  ;;  %v13552_v55 = vor.u32 %v15706_v59, %v13551_v2  ;;  %9963 = vmatpush.bf16.msra.mxu0 %v13328_v23  ;;  %v13300_v2 = vor.u32 %v15643_v52, %v13299_v35  ;;  %v9649_v59 = vadd.f32 %v18192_v49, %v9620_v32  ;;  %v15692_v25 = vld [vmem:[#allocation11 + $0x1e8] sm:$0xf0]  ;;  %v13747_v35 = vld [vmem:[#allocation11 + $0x3c8] sm:$0xf]  ;;  %v15755_v26 = vld [vmem:[#allocation11 + $0x3e0] sm:$0xf0] }
 0x6cb   : > { %10020 = vmatpush.bf16.msra.mxu2 %v13804_v40  ;;  %10048 = vmatpush.bf16.msra.mxu3 %v14056_v42  ;;  %v9509_v40 = vadd.f32 %v18126_v13, %v18207_v58  ;;  %v9593_v23 = vadd.f32 %v18162_v7, %v9564_v51  ;;  %v13272_v32 = vor.u32 %v15636_v1, %v13271_v9  ;;  %v15825_v7 = vld [vmem:[#allocation11 + $0x610] sm:$0xf0]  ;;  %v15748_v0 = vld [vmem:[#allocation11 + $0x3a8] sm:$0xf0] }
 0x6cc   : > { %v9678_v11 = vadd.f32 %v18210_v3, %v9649_v59  ;;  %v13496_v41 = vor.u32 %v15692_v25, %v13495_v33  ;;  %v13748_v52 = vor.u32 %v15755_v26, %v13747_v35  ;;  %v14027_v3 = vld [vmem:[#allocation11 + $0x5f8] sm:$0xf]  ;;  %v15818_v25 = vld [vmem:[#allocation11 + $0x5d8] sm:$0xf0] }
 0x6cd   : > { %v18230_v57 = vpop.f32.mrf.mxu0  ;;  %v9622_v42 = vadd.f32 %v18198_v43, %v9593_v23  ;;  %v9538_v56 = vadd.f32 %v18128_v20, %v9509_v40  ;;  %v14028_v24 = vor.u32 %v15825_v7, %v14027_v3  ;;  %v9511_v20 = vadd.f32 %v18138_v27, %v18207_v58  ;;  %v15811_v3 = vld [vmem:[#allocation11 + $0x5a0] sm:$0xf0] }
 0x6ce   : > { %v18232_v4 = vpop.f32.mrf.mxu3  ;;  %v18234_v48 = vpop.f32.mrf.mxu1  ;;  %9992 = vmatpush.bf16.msra.mxu1 %v13552_v55  ;;  %9964 = vmatpush.bf16.msra.mxu0 %v13300_v2 }
 0x6cf   : > { %9913 = vmatmul.bf16.gmra.mxu2 %v17562_v61  ;;  %v9567_v43 = vadd.f32 %v18144_v46, %v9538_v56  ;;  %v9651_v51 = vadd.f32 %v18202_v22, %v9622_v42  ;;  %10049 = vmatpush.bf16.msra.mxu3 %v14028_v24  ;;  %v13999_v22 = vld [vmem:[#allocation11 + $0x5c0] sm:$0xf]  ;;  %v9540_v27 = vadd.f32 %v18140_v31, %v9511_v20 }
 0x6d0   : > { %10021 = vmatpush.bf16.msra.mxu2 %v13776_v8 }
 0x6d1   : > { %v9596_v8 = vadd.f32 %v18172_v54, %v9567_v43  ;;  %v9680_v9 = vadd.f32 %v18224_v38, %v9651_v51  ;;  %v14000_v38 = vor.u32 %v15818_v25, %v13999_v22  ;;  %v13943_v51 = vld [vmem:[#allocation11 + $0x550] sm:$0xf] }
 0x6d2   : > { %v18239_v14 = vpop.f32.mrf.mxu2  ;;  %9993 = vmatpush.bf16.msra.mxu1 %v13524_v47  ;;  %9965 = vmatpush.bf16.msra.mxu0 %v13272_v32  ;;  %v13719_v47 = vld [vmem:[#allocation11 + $0x390] sm:$0xf] }
 0x6d3   : > { %9937 = vmatmul.bf16.vlgmr.msrb.gmra.mxu3 %v17656_v50  ;;  %v13720_v59 = vor.u32 %v15748_v0, %v13719_v47  ;;  %v9625_v46 = vadd.f32 %v18215_v62, %v9596_v8  ;;  %v9514_v62 = vadd.f32 %v18147_v16, %v18207_v58 }
 0x6d4   : > { %10022 = vmatpush.bf16.msra.mxu2 %v13748_v52  ;;  %10050 = vmatpush.bf16.msra.mxu3 %v14000_v38  ;;  %v14811_v38 = vld [vmem:[#allocation11 + $0xc18] sm:$0xf] }
 0x6d5   : > { %v18248_v55 = vpop.f32.mrf.mxu0  ;;  %v9654_v32 = vadd.f32 %v18219_v44, %v9625_v46  ;;  %v13971_v44 = vld [vmem:[#allocation11 + $0x588] sm:$0xf]  ;;  %v9543_v16 = vadd.f32 %v18149_v36, %v9514_v62  ;;  %v15035_v62 = vld [vmem:[#allocation11 + $0xdd8] sm:$0xf] }
 0x6d6   : > { %v18250_v53 = vpop.f32.mrf.mxu1  ;;  %v9706_v49 = vpop.f32.mrf.mxu3  ;;  %9994 = vmatpush.bf16.msra.mxu1 %v13496_v41 }
 0x6d7   : > { %v9707_v13 = vadd.f32 %v9706_v49, %v9678_v11  ;;  %v9569_v49 = vadd.f32 %v18156_v45, %v9540_v27  ;;  %v9683_v35 = vadd.f32 %v18239_v14, %v9654_v32  ;;  %v9572_v7 = vadd.f32 %v18165_v15, %v9543_v16  ;;  %v15909_v32 = vld [vmem:[#allocation11 + $0x8b0] sm:$0xf0]  ;;  %v14783_v16 = vld [vmem:[#allocation11 + $0xbe0] sm:$0xf] }
 0x6d8   : > { %9860 = vmatmul.bf16.gmra.mxu0 %v19127_v5  ;;  %10023 = vmatpush.bf16.msra.mxu2 %v13720_v59  ;;  %v15804_v59 = vld [vmem:[#allocation11 + $0x568] sm:$0xf0] }
 0x6d9   : > { %16228 = vtanh.f32 %v9707_v13  ;;  %9889 = vmatmul.bf16.gmra.mxu1 %v17490_v63  ;;  %v9598_v41 = vadd.f32 %v18182_v29, %v9569_v49  ;;  %v13972_v29 = vor.u32 %v15811_v3, %v13971_v44  ;;  %v9601_v24 = vadd.f32 %v18190_v30, %v9572_v7  ;;  %v16021_v49 = vld [vmem:[#allocation11 + $0xc30] sm:$0xf0]  ;;  %v14335_v7 = vld [vmem:[#allocation11 + $0x860] sm:$0xf] }
 0x6da   : > { %v9684_v2 = vpop.f32.mrf.mxu2 }
 0x6db   : > { %v9627_v45 = vadd.f32 %v18230_v57, %v9598_v41  ;;  %10051 = vmatpush.bf16.msra.mxu3 %v13972_v29  ;;  %v9516_v57 = vadd.f32 %v18158_v6, %v18207_v58  ;;  %v9630_v15 = vadd.f32 %v18248_v55, %v9601_v24  ;;  %v9519_v55 = vadd.f32 %v18168_v12, %v18207_v58  ;;  %v19208_v12 = vld [vmem:[#allocation24_spill] sm:$0xff]  ;;  %v19209_v41 = vld [vmem:[#allocation43_spill] sm:$0xff]  ;;  %v16014_v29 = vld [vmem:[#allocation11 + $0xbf8] sm:$0xf0] }
 0x6dc   : > { %v19211_v24 = vld [vmem:[#allocation45_spill] sm:$0xff] }
 0x6dd   : > { %v18262_v1 = vpop.f32.mrf.mxu0  ;;  %v9656_v56 = vadd.f32 %v18234_v48, %v9627_v45  ;;  %v13944_v48 = vor.u32 %v15804_v59, %v13943_v51  ;;  %v9545_v6 = vadd.f32 %v18160_v39, %v9516_v57  ;;  %v14587_v45 = vld [vmem:[#allocation11 + $0xa58] sm:$0xf]  ;;  %v15902_v51 = vld [vmem:[#allocation11 + $0x878] sm:$0xf0]  ;;  %v15007_v59 = vld [vmem:[#allocation11 + $0xda0] sm:$0xf] }
 0x6de   : > { %v18264_v33 = vpop.f32.mrf.mxu1  ;;  %v9708_v40 = vpop.f32.mrf.mxu3 }
 0x6df   : > { %v16229_v23 = vpop.eup %16228  ;;  %v9709_v11 = vadd.f32 %v9708_v40, %v9680_v9  ;;  %9918 = vmatmul.bf16.gmra.mxu2 %v17570_v37  ;;  %v9685_v47 = vadd.f32 %v9684_v2, %v9656_v56  ;;  %10052 = vmatpush.bf16.msra.mxu3 %v13944_v48  ;;  %v9574_v2 = vadd.f32 %v18176_v18, %v9545_v6  ;;  %v19210_v56 = vld [vmem:[#allocation46_spill] sm:$0xff]  ;;  %v14559_v6 = vld [vmem:[#allocation11 + $0xa20] sm:$0xf] }
 0x6e0   : > { %10712 = vst [vmem:[%s17839_s15 + $0x10] sm:$0xff] %v16229_v23  ;;  %v9659_v9 = vadd.f32 %v18250_v53, %v9630_v15  ;;  %v9548_v18 = vadd.f32 %v18170_v28, %v9519_v55  ;;  %v19207_v53 = vld [vmem:[#allocation20_spill] sm:$0xff]  ;;  %v15965_v28 = vld [vmem:[#allocation11 + $0xa70] sm:$0xf0]  ;;  %v9521_v57 = vadd.f32 %v19210_v56, %v18207_v58 }
 0x6e1   : > { %16230 = vtanh.f32 %v9709_v11  ;;  %v9603_v40 = vadd.f32 %v18200_v60, %v9574_v2  ;;  %v14812_v60 = vor.u32 %v16021_v49, %v14811_v38  ;;  %v14588_v3 = vor.u32 %v15965_v28, %v14587_v45  ;;  %v15958_v2 = vld [vmem:[#allocation11 + $0xa38] sm:$0xf0]  ;;  %v14307_v49 = vld [vmem:[#allocation11 + $0x828] sm:$0xf] }
 0x6e2   : > { %v9687_v54 = vpop.f32.mrf.mxu2  ;;  %v14560_v55 = vor.u32 %v15958_v2, %v14559_v6  ;;  %v14979_v28 = vld [vmem:[#allocation11 + $0xd68] sm:$0xf]  ;;  %v14727_v6 = vld [vmem:[#allocation11 + $0xb70] sm:$0xf]  ;;  %v16000_v2 = vld [vmem:[#allocation11 + $0xb88] sm:$0xf0] }
 0x6e3   : > { %9942 = vmatmul.bf16.gmra.mxu3 %v17669_v21  ;;  %v9688_v23 = vadd.f32 %v9687_v54, %v9659_v9  ;;  %v9632_v25 = vadd.f32 %v18262_v1, %v9603_v40  ;;  %v14363_v54 = vld [vmem:[#allocation11 + $0x898] sm:$0xf]  ;;  %10132 = vmatpush.bf16.msrb.mxu2 %v14812_v60  ;;  %v15895_v60 = vld [vmem:[#allocation11 + $0x840] sm:$0xf0] }
 0x6e4   : > { %v14364_v1 = vor.u32 %v15909_v32, %v14363_v54  ;;  %10103 = vmatpush.bf16.msrb.mxu1 %v14588_v3  ;;  %v14531_v54 = vld [vmem:[#allocation11 + $0x9e8] sm:$0xf]  ;;  %v14279_v3 = vld [vmem:[#allocation11 + $0x7f0] sm:$0xf] }
 0x6e5   : > { %v18277_v26 = vpop.f32.mrf.mxu0 }
 0x6e6   : > { %v18279_v31 = vpop.f32.mrf.mxu1  ;;  %v9711_v42 = vpop.f32.mrf.mxu3  ;;  %10074 = vmatpush.bf16.msrb.mxu0 %v14364_v1 }
 0x6e7   : > { %v16231_v13 = vpop.eup %16230  ;;  %v9712_v52 = vadd.f32 %v9711_v42, %v9683_v35  ;;  %v9577_v35 = vadd.f32 %v19209_v41, %v9548_v18  ;;  %v19214_v41 = vld [vmem:[#allocation39_spill] sm:$0xff] }
 0x6e8   : > { %10719 = vst [vmem:[%s17839_s15 + $0x48] sm:$0xff] %v16231_v13  ;;  %9865 = vmatmul.bf16.gmra.mxu0 %v19128_v10  ;;  %v16077_v13 = vld [vmem:[#allocation11 + $0xdf0] sm:$0xf0]  ;;  %10104 = vmatpush.bf16.msrb.mxu1 %v14560_v55  ;;  %v14475_v55 = vld [vmem:[#allocation11 + $0x978] sm:$0xf] }
 0x6e9   : > { %16232 = vtanh.f32 %v9712_v52  ;;  %9894 = vmatmul.bf16.gmra.mxu1 %v17503_v34  ;;  %v9661_v52 = vadd.f32 %v18264_v33, %v9632_v25  ;;  %v15036_v44 = vor.u32 %v16077_v13, %v15035_v62  ;;  %v16007_v25 = vld [vmem:[#allocation11 + $0xbc0] sm:$0xf0]  ;;  %v19215_v13 = vld [vmem:[#allocation38_spill] sm:$0xff] }
 0x6ea   : > { %v18286_v14 = vpop.f32.mrf.mxu2  ;;  %v15951_v62 = vld [vmem:[#allocation11 + $0xa00] sm:$0xf0] }
 0x6eb   : > { %v9690_v15 = vadd.f32 %v18286_v14, %v9661_v52  ;;  %10161 = vmatpush.bf16.msrb.mxu3 %v15036_v44  ;;  %v14755_v14 = vld [vmem:[#allocation11 + $0xba8] sm:$0xf]  ;;  %v14532_v45 = vor.u32 %v15951_v62, %v14531_v54  ;;  %v16063_v52 = vld [vmem:[#allocation11 + $0xd80] sm:$0xf0] }
 0x6ec   : > { %v14756_v38 = vor.u32 %v16007_v25, %v14755_v14  ;;  %v14980_v44 = vor.u32 %v16063_v52, %v14979_v28  ;;  %v14951_v25 = vld [vmem:[#allocation11 + $0xd30] sm:$0xf]  ;;  %v15993_v28 = vld [vmem:[#allocation11 + $0xb50] sm:$0xf0] }
 0x6ed   : > { %v18293_v0 = vpop.f32.mrf.mxu0  ;;  %10105 = vmatpush.bf16.msrb.mxu1 %v14532_v45  ;;  %v14699_v45 = vld [vmem:[#allocation11 + $0xb38] sm:$0xf] }
 0x6ee   : > { %v18295_v36 = vpop.f32.mrf.mxu1  ;;  %v9713_v43 = vpop.f32.mrf.mxu3 }
 0x6ef   : > { %v16233_v20 = vpop.eup %16232  ;;  %v9714_v8 = vadd.f32 %v9713_v43, %v9685_v47  ;;  %9923 = vmatmul.bf16.gmra.mxu2 %v17584_v17  ;;  %v9606_v47 = vadd.f32 %v19211_v24, %v9577_v35  ;;  %v14784_v43 = vor.u32 %v16014_v29, %v14783_v16  ;;  %v15888_v16 = vld [vmem:[#allocation11 + $0x808] sm:$0xf0]  ;;  %v14503_v29 = vld [vmem:[#allocation11 + $0x9b0] sm:$0xf] }
 0x6f0   : > { %10726 = vst [vmem:[%s17839_s15 + $0x80] sm:$0xff] %v16233_v20  ;;  %v16070_v20 = vld [vmem:[#allocation11 + $0xdb8] sm:$0xf0]  ;;  %v15944_v24 = vld [vmem:[#allocation11 + $0x9c8] sm:$0xf0] }
 0x6f1   : > { %16234 = vtanh.f32 %v9714_v8  ;;  %v14336_v8 = vor.u32 %v15902_v51, %v14335_v7  ;;  %v15008_v48 = vor.u32 %v16070_v20, %v15007_v59  ;;  %10133 = vmatpush.bf16.msrb.mxu2 %v14784_v43  ;;  %v14504_v51 = vor.u32 %v15944_v24, %v14503_v29  ;;  %v15867_v29 = vld [vmem:[#allocation11 + $0x760] sm:$0xf0] }
 0x6f2   : > { %v18301_v30 = vpop.f32.mrf.mxu2 }
 0x6f3   : > { %9947 = vmatmul.bf16.gmra.mxu3 %v17681_v19  ;;  %10075 = vmatpush.bf16.msrb.mxu0 %v14336_v8  ;;  %v19216_v8 = vld [vmem:[#allocation21_spill] sm:$0xff] }
 0x6f4   : > { %10162 = vmatpush.bf16.msrb.mxu3 %v15008_v48  ;;  %v15881_v48 = vld [vmem:[#allocation11 + $0x7d0] sm:$0xf0]  ;;  %10106 = vmatpush.bf16.msrb.mxu1 %v14504_v51  ;;  %v14671_v51 = vld [vmem:[#allocation11 + $0xb00] sm:$0xf] }
 0x6f5   : > { %v18309_v46 = vpop.f32.mrf.mxu0  ;;  %10134 = vmatpush.bf16.msrb.mxu2 %v14756_v38  ;;  %v14223_v38 = vld [vmem:[#allocation11 + $0x780] sm:$0xf] }
 0x6f6   : > { %v9716_v39 = vpop.f32.mrf.mxu3  ;;  %v18311_v11 = vpop.f32.mrf.mxu1 }
 0x6f7   : > { %v16235_v22 = vpop.eup %16234  ;;  %v9717_v27 = vadd.f32 %v9716_v39, %v9688_v23  ;;  %v9635_v23 = vadd.f32 %v18277_v26, %v9606_v47  ;;  %v14308_v26 = vor.u32 %v15895_v60, %v14307_v49  ;;  %v15874_v49 = vld [vmem:[#allocation11 + $0x798] sm:$0xf0]  ;;  %v14447_v60 = vld [vmem:[#allocation11 + $0x940] sm:$0xf] }
 0x6f8   : > { %10733 = vst [vmem:[%s17839_s15 + $0xb8] sm:$0xff] %v16235_v22  ;;  %9966 = vmatmul.bf16.vlgmr.msra.gmra.mxu0 %v19207_v53  ;;  %v19212_v22 = vld [vmem:[#allocation28_spill] sm:$0xff]  ;;  %10163 = vmatpush.bf16.msrb.mxu3 %v14980_v44  ;;  %v14224_v62 = vor.u32 %v15874_v49, %v14223_v38  ;;  %v15979_v38 = vld [vmem:[#allocation11 + $0xae0] sm:$0xf0] }
 0x6f9   : > { %16236 = vtanh.f32 %v9717_v27  ;;  %9995 = vmatmul.bf16.vlgmr.msra.gmra.mxu1 %v19208_v12  ;;  %v19213_v27 = vld [vmem:[#allocation47_spill] sm:$0xff]  ;;  %v9664_v1 = vadd.f32 %v18279_v31, %v9635_v23  ;;  %10076 = vmatpush.bf16.msrb.mxu0 %v14308_v26  ;;  %v14280_v31 = vor.u32 %v15888_v16, %v14279_v3  ;;  %v14728_v23 = vor.u32 %v16000_v2, %v14727_v6  ;;  %v19218_v3 = vld [vmem:[#allocation29_spill] sm:$0xff]  ;;  %v13581_v12 = vld [vmem:[#allocation11 + $0x294] sm:$0xf0] }
 0x6fa   : > { %v18319_v42 = vpop.f32.mrf.mxu2  ;;  %v9550_v18 = vadd.f32 %v19213_v27, %v9521_v57  ;;  %v16056_v27 = vld [vmem:[#allocation11 + $0xd48] sm:$0xf0]  ;;  %v14700_v16 = vor.u32 %v15993_v28, %v14699_v45  ;;  %v14167_v2 = vld [vmem:[#allocation11 + $0x710] sm:$0xf]  ;;  %v14895_v45 = vld [vmem:[#allocation11 + $0xcc0] sm:$0xf] }
 0x6fb   : > { %v9693_v56 = vadd.f32 %v18301_v30, %v9664_v1  ;;  %v19217_v30 = vld [vmem:[#allocation25_spill] sm:$0xff]  ;;  %10135 = vmatpush.bf16.msrb.mxu2 %v14728_v23  ;;  %v16042_v28 = vld [vmem:[#allocation11 + $0xcd8] sm:$0xf0] }
 0x6fc   : > { %v9579_v35 = vadd.f32 %v19214_v41, %v9550_v18  ;;  %v14952_v18 = vor.u32 %v16056_v27, %v14951_v25  ;;  %v15930_v41 = vld [vmem:[#allocation11 + $0x958] sm:$0xf0] }
 0x6fd   : > { %v18326_v33 = vpop.f32.mrf.mxu0  ;;  %10077 = vmatpush.bf16.msrb.mxu0 %v14280_v31  ;;  %v15923_v31 = vld [vmem:[#allocation11 + $0x920] sm:$0xf0] }
 0x6fe   : > { %v9718_v9 = vpop.f32.mrf.mxu3  ;;  %v18328_v58 = vpop.f32.mrf.mxu1  ;;  %v9608_v7 = vadd.f32 %v18232_v4, %v9579_v35  ;;  %v14251_v4 = vld [vmem:[#allocation11 + $0x7b8] sm:$0xf]  ;;  %10164 = vmatpush.bf16.msrb.mxu3 %v14952_v18  ;;  %v14643_v18 = vld [vmem:[#allocation11 + $0xac8] sm:$0xf] }
 0x6ff   : > { %v16237_v40 = vpop.eup %16236  ;;  %v9719_v39 = vadd.f32 %v9718_v9, %v9690_v15  ;;  %10024 = vmatmul.bf16.vlgmr.msra.gmra.mxu2 %v19212_v22  ;;  %v14252_v9 = vor.u32 %v15881_v48, %v14251_v4  ;;  %v16049_v4 = vld [vmem:[#allocation11 + $0xd10] sm:$0xf0]  ;;  %v15654_v22 = vld [vmem:[#allocation11 + $0xbc] sm:$0xf] }
 0x700   : > { %10740 = vst [vmem:[%s17839_s15 + $0xf0] sm:$0xff] %v16237_v40  ;;  %v9637_v20 = vadd.f32 %v18293_v0, %v9608_v7  ;;  %10136 = vmatpush.bf16.msrb.mxu2 %v14700_v16 }
 0x701   : > { %16238 = vtanh.f32 %v9719_v39  ;;  %v15937_v39 = vld [vmem:[#allocation11 + $0x990] sm:$0xf0]  ;;  %10078 = vmatpush.bf16.msrb.mxu0 %v14252_v9  ;;  %v15860_v9 = vld [vmem:[#allocation11 + $0x728] sm:$0xf0] }
 0x702   : > { %v18334_v32 = vpop.f32.mrf.mxu2  ;;  %v9666_v0 = vadd.f32 %v18295_v36, %v9637_v20  ;;  %v14476_v14 = vor.u32 %v15937_v39, %v14475_v55  ;;  %v14448_v36 = vor.u32 %v15930_v41, %v14447_v60  ;;  %v19219_v20 = vld [vmem:[#allocation32_spill] sm:$0xff]  ;;  %v14391_v55 = vld [vmem:[#allocation11 + $0x8d0] sm:$0xf]  ;;  %v14168_v39 = vor.u32 %v15860_v9, %v14167_v2  ;;  %v19225_v2 = vld [vmem:[#allocation27_spill] sm:$0xff] }
 0x703   : > { %9952 = vmatmul.bf16.gmra.mxu3 %v19215_v13  ;;  %v14644_v60 = vor.u32 %v15979_v38, %v14643_v18 }
 0x704   : > { %v9695_v54 = vadd.f32 %v18319_v42, %v9666_v0  ;;  %10107 = vmatpush.bf16.msrb.mxu1 %v14476_v14  ;;  %v14195_v42 = vld [vmem:[#allocation11 + $0x748] sm:$0xf]  ;;  %v15916_v0 = vld [vmem:[#allocation11 + $0x8e8] sm:$0xf0] }
 0x705   : > { %v18341_v57 = vpop.f32.mrf.mxu0  ;;  %10079 = vmatpush.bf16.msrb.mxu0 %v14224_v62  ;;  %v14196_v7 = vor.u32 %v15867_v29, %v14195_v42  ;;  %v14392_v27 = vor.u32 %v15916_v0, %v14391_v55  ;;  %v19221_v62 = vld [vmem:[#allocation26_spill] sm:$0xff]  ;;  %v14839_v55 = vld [vmem:[#allocation11 + $0xc50] sm:$0xf] }
 0x706   : > { %v9721_v47 = vpop.f32.mrf.mxu3  ;;  %v18343_v43 = vpop.f32.mrf.mxu1 }
 0x707   : > { %v16239_v59 = vpop.eup %16238  ;;  %v9722_v15 = vadd.f32 %v9721_v47, %v9693_v56  ;;  %v14419_v56 = vld [vmem:[#allocation11 + $0x908] sm:$0xf] }
 0x708   : > { %10747 = vst [vmem:[%s17839_s15 + $0x128] sm:$0xff] %v16239_v59  ;;  %9971 = vmatmul.bf16.gmra.mxu0 %v19216_v8  ;;  %10108 = vmatpush.bf16.msrb.mxu1 %v14448_v36  ;;  %v14420_v47 = vor.u32 %v15923_v31, %v14419_v56  ;;  %v15986_v59 = vld [vmem:[#allocation11 + $0xb18] sm:$0xf0]  ;;  %v15972_v36 = vld [vmem:[#allocation11 + $0xaa8] sm:$0xf0]  ;;  %v19223_v31 = vld [vmem:[#allocation33_spill] sm:$0xff] }
 0x709   : > { %16240 = vtanh.f32 %v9722_v15  ;;  %10000 = vmatmul.bf16.gmra.mxu1 %v19217_v30  ;;  %v14923_v15 = vld [vmem:[#allocation11 + $0xcf8] sm:$0xf]  ;;  %v14672_v48 = vor.u32 %v15986_v59, %v14671_v51  ;;  %10080 = vmatpush.bf16.msrb.mxu0 %v14196_v7  ;;  %v16035_v51 = vld [vmem:[#allocation11 + $0xca0] sm:$0xf0]  ;;  %v15668_v30 = vld [vmem:[#allocation11 + $0x12c] sm:$0xf] }
 0x70a   : > { %v18349_v40 = vpop.f32.mrf.mxu2  ;;  %v14924_v6 = vor.u32 %v16049_v4, %v14923_v15  ;;  %v19222_v7 = vld [vmem:[#allocation30_spill] sm:$0xff] }
 0x70b   : > { %10137 = vmatpush.bf16.msrb.mxu2 %v14672_v48 }
 0x70c   : > { %10109 = vmatpush.bf16.msrb.mxu1 %v14420_v47  ;;  %10165 = vmatpush.bf16.msrb.mxu3 %v14924_v6  ;;  %v14867_v47 = vld [vmem:[#allocation11 + $0xc88] sm:$0xf]  ;;  %v19224_v6 = vld [vmem:[#allocation23_spill] sm:$0xff] }
 0x70d   : > { %v18353_v26 = vpop.f32.mrf.mxu0  ;;  %10081 = vmatpush.bf16.msrb.mxu0 %v14168_v39  ;;  %v14868_v59 = vor.u32 %v16035_v51, %v14867_v47  ;;  %v16028_v39 = vld [vmem:[#allocation11 + $0xc68] sm:$0xf0]  ;;  %v15850_v47 = vld [vmem:[#allocation11 + $0x6dc] sm:$0xf] }
 0x70e   : > { %v9723_v35 = vpop.f32.mrf.mxu3  ;;  %v18355_v1 = vpop.f32.mrf.mxu1  ;;  %v14840_v0 = vor.u32 %v16028_v39, %v14839_v55  ;;  %v15738_v55 = vld [vmem:[#allocation11 + $0x35c] sm:$0xf]  ;;  %v13693_v39 = vld [vmem:[#allocation11 + $0x374] sm:$0xf0] }
 0x70f   : > { %v16241_v52 = vpop.eup %16240  ;;  %v9724_v44 = vadd.f32 %v9723_v35, %v9695_v54  ;;  %10029 = vmatmul.bf16.gmra.mxu2 %v19218_v3  ;;  %v19220_v54 = vld [vmem:[#allocation22_spill] sm:$0xff]  ;;  %v14615_v35 = vld [vmem:[#allocation11 + $0xa90] sm:$0xf]  ;;  %v14113_v3 = vld [vmem:[#allocation11 + $0x6bc] sm:$0xf0] }
 0x710   : > { %10754 = vst [vmem:[%s17839_s15 + $0x160] sm:$0xff] %v16241_v52  ;;  %10110 = vmatpush.bf16.msrb.mxu1 %v14392_v27  ;;  %10138 = vmatpush.bf16.msrb.mxu2 %v14644_v60  ;;  %v14616_v52 = vor.u32 %v15972_v36, %v14615_v35  ;;  %v15794_v60 = vld [vmem:[#allocation11 + $0x51c] sm:$0xf]  ;;  %v13917_v35 = vld [vmem:[#allocation11 + $0x534] sm:$0xf0] }
 0x711   : > { %16242 = vtanh.f32 %v9724_v44  ;;  %v14896_v44 = vor.u32 %v16042_v28, %v14895_v45  ;;  %v13920_v36 = vor.u32 %v15794_v60, %v13917_v35  ;;  %v19230_v28 = vld [vmem:[#allocation34_spill] sm:$0xff]  ;;  %v19231_v60 = vld [vmem:[#allocation36_spill] sm:$0xff] }
 0x712   : > { %v18359_v24 = vpop.f32.mrf.mxu2  ;;  %v19232_v35 = vld [vmem:[#allocation40_spill] sm:$0xff] }
 0x713   : > { %10053 = vmatmul.bf16.vlgmr.msra.gmra.mxu3 %v19219_v20 }
 0x714   : > { %10166 = vmatpush.bf16.msrb.mxu3 %v14896_v44  ;;  %10139 = vmatpush.bf16.msrb.mxu2 %v14616_v52  ;;  %v15682_v52 = vld [vmem:[#allocation11 + $0x19c] sm:$0xf]  ;;  %v13469_v44 = vld [vmem:[#allocation11 + $0x1b4] sm:$0xf0] }
 0x715   : > { %v18362_v23 = vpop.f32.mrf.mxu0  ;;  %v13472_v51 = vor.u32 %v15682_v52, %v13469_v44  ;;  %v15675_v52 = vld [vmem:[#allocation11 + $0x164] sm:$0xf]  ;;  %v13441_v44 = vld [vmem:[#allocation11 + $0x17c] sm:$0xf0] }
 0x716   : > { %v18364_v14 = vpop.f32.mrf.mxu1  ;;  %v18366_v25 = vpop.f32.mrf.mxu3 }
 0x717   : > { %v16243_v49 = vpop.eup %16242  ;;  %10190 = vmatpush.bf16.msra.mxu0 %v13472_v51 }
 0x718   : > { %10761 = vst [vmem:[%s17839_s15 + $0x198] sm:$0xff] %v16243_v49  ;;  %9976 = vmatmul.bf16.gmra.mxu0 %v19220_v54  ;;  %10167 = vmatpush.bf16.msrb.mxu3 %v14868_v59  ;;  %v19228_v49 = vld [vmem:[#allocation31_spill] sm:$0xff]  ;;  %v14141_v59 = vld [vmem:[#allocation11 + $0x6f4] sm:$0xf0] }
 0x719   : > { %10005 = vmatmul.bf16.gmra.mxu1 %v19221_v62  ;;  %10248 = vmatpush.bf16.msra.mxu2 %v13920_v36  ;;  %v13889_v62 = vld [vmem:[#allocation11 + $0x4fc] sm:$0xf0]  ;;  %v15843_v54 = vld [vmem:[#allocation11 + $0x6a4] sm:$0xf] }
 0x71a   : > { %v18371_v41 = vpop.f32.mrf.mxu2  ;;  %v14116_v8 = vor.u32 %v15843_v54, %v14113_v3  ;;  %v15780_v54 = vld [vmem:[#allocation11 + $0x4ac] sm:$0xf] }
 0x71c   : > { %10168 = vmatpush.bf16.msrb.mxu3 %v14840_v0  ;;  %v14144_v0 = vor.u32 %v15850_v47, %v14141_v59  ;;  %v13444_v47 = vor.u32 %v15675_v52, %v13441_v44  ;;  %v13665_v59 = vld [vmem:[#allocation11 + $0x33c] sm:$0xf0]  ;;  %v13413_v52 = vld [vmem:[#allocation11 + $0x144] sm:$0xf0] }
 0x71d   : > { %v18373_v16 = vpop.f32.mrf.mxu0  ;;  %v13416_v13 = vor.u32 %v15668_v30, %v13413_v52  ;;  %v13861_v52 = vld [vmem:[#allocation11 + $0x4c4] sm:$0xf0] }
 0x71e   : > { %v18375_v42 = vpop.f32.mrf.mxu1  ;;  %v18377_v29 = vpop.f32.mrf.mxu3  ;;  %10191 = vmatpush.bf16.msra.mxu0 %v13444_v47  ;;  %v15661_v47 = vld [vmem:[#allocation11 + $0xf4] sm:$0xf] }
 0x71f   : > { %10034 = vmatmul.bf16.gmra.mxu2 %v19222_v7 }
 0x720   : > { %10277 = vmatpush.bf16.msra.mxu3 %v14144_v0  ;;  %v19234_v0 = vld [vmem:[#allocation44_spill] sm:$0xff] }
 0x722   : > { %v18380_v56 = vpop.f32.mrf.mxu2  ;;  %10192 = vmatpush.bf16.msra.mxu0 %v13416_v13  ;;  %v19238_v13 = vld [vmem:[#allocation37_spill] sm:$0xff] }
 0x723   : > { %10058 = vmatmul.bf16.gmra.mxu3 %v19223_v31 }
 0x724   : > { %10278 = vmatpush.bf16.msra.mxu3 %v14116_v8  ;;  %v13864_v8 = vor.u32 %v15780_v54, %v13861_v52 }
 0x725   : > { %v18383_v15 = vpop.f32.mrf.mxu0 }
 0x726   : > { %v18385_v4 = vpop.f32.mrf.mxu1  ;;  %v18387_v48 = vpop.f32.mrf.mxu3 }
 0x728   : > { %9981 = vmatmul.bf16.gmra.mxu0 %v19224_v6  ;;  %v13696_v6 = vor.u32 %v15738_v55, %v13693_v39 }
 0x729   : > { %10010 = vmatmul.bf16.gmra.mxu1 %v19225_v2 }
 0x72a   : > { %v18391_v9 = vpop.f32.mrf.mxu2  ;;  %10219 = vmatpush.bf16.msra.mxu1 %v13696_v6  ;;  %v18420_v6 = vperm.slane %v19234_v0, 3 }
 0x72d   : > { %v18393_v27 = vpop.f32.mrf.mxu0 }
 0x72e   : > { %19226 = vst [vmem:[#allocation48_spill] sm:$0xff] %v18393_v27  ;;  %v18395_v18 = vpop.f32.mrf.mxu1  ;;  %v18397_v38 = vpop.f32.mrf.mxu3  ;;  %v19239_v27 = vld [vmem:[#allocation41_spill] sm:$0xff] }
 0x72f   : > { %19227 = vst [vmem:[#allocation43_spill] sm:$0xff] %v18395_v18  ;;  %10039 = vmatmul.bf16.gmra.mxu2 %v19228_v49  ;;  %v15717_v18 = vld [vmem:[#allocation11 + $0x2b4] sm:$0xf] }
 0x732   : > { %v18400_v45 = vpop.f32.mrf.mxu2 }
 0x733   : > { %19229 = vst [vmem:[#allocation46_spill] sm:$0xff] %v18400_v45  ;;  %10063 = vmatmul.bf16.gmra.mxu3 %v19230_v28  ;;  %v15731_v28 = vld [vmem:[#allocation11 + $0x324] sm:$0xf]  ;;  %v13357_v45 = vld [vmem:[#allocation11 + $0xd4] sm:$0xf0] }
 0x734   : > { %v13668_v51 = vor.u32 %v15731_v28, %v13665_v59  ;;  %v13637_v28 = vld [vmem:[#allocation11 + $0x304] sm:$0xf0]  ;;  %v19236_v59 = vld [vmem:[#allocation35_spill] sm:$0xff] }
 0x735   : > { %v18403_v2 = vpop.f32.mrf.mxu0 }
 0x736   : > { %v18405_v49 = vpop.f32.mrf.mxu3  ;;  %v18407_v31 = vpop.f32.mrf.mxu1  ;;  %10220 = vmatpush.bf16.msra.mxu1 %v13668_v51  ;;  %v13609_v51 = vld [vmem:[#allocation11 + $0x2cc] sm:$0xf0] }
 0x738   : > { %10082 = vmatmul.bf16.vlgmr.msrb.gmra.mxu0 %v19231_v60  ;;  %v19235_v60 = vld [vmem:[#allocation42_spill] sm:$0xff] }
 0x739   : > { %10111 = vmatmul.bf16.vlgmr.msrb.gmra.mxu1 %v19232_v35  ;;  %v15787_v35 = vld [vmem:[#allocation11 + $0x4e4] sm:$0xf] }
 0x73a   : > { %v18411_v36 = vpop.f32.mrf.mxu2  ;;  %v13892_v20 = vor.u32 %v15787_v35, %v13889_v62  ;;  %v9736_v62 = vadd.f32 %v18309_v46, %v18420_v6 }
 0x73b   : > { %19233 = vst [vmem:[#allocation45_spill] sm:$0xff] %v18411_v36  ;;  %v15724_v36 = vld [vmem:[#allocation11 + $0x2ec] sm:$0xf] }
 0x73c   : > { %10249 = vmatpush.bf16.msra.mxu2 %v13892_v20  ;;  %v13640_v0 = vor.u32 %v15724_v36, %v13637_v28  ;;  %v13612_v36 = vor.u32 %v15717_v18, %v13609_v51  ;;  %v15836_v28 = vld [vmem:[#allocation11 + $0x66c] sm:$0xf]  ;;  %v9765_v46 = vadd.f32 %v18311_v11, %v9736_v62  ;;  %v15773_v18 = vld [vmem:[#allocation11 + $0x474] sm:$0xf]  ;;  %v15647_v11 = vld [vmem:[#allocation11 + $0x84] sm:$0xf] }
 0x73d   : > { %v18413_v7 = vpop.f32.mrf.mxu0  ;;  %v13329_v62 = vld [vmem:[#allocation11 + $0x9c] sm:$0xf0] }
 0x73e   : > { %v18415_v55 = vpop.f32.mrf.mxu3  ;;  %v18417_v39 = vpop.f32.mrf.mxu1  ;;  %10221 = vmatpush.bf16.msra.mxu1 %v13640_v0  ;;  %v9794_v54 = vadd.f32 %v18334_v32, %v9765_v46 }
 0x73f   : > { %10140 = vmatmul.bf16.vlgmr.msrb.gmra.mxu2 %v19235_v60  ;;  %v13385_v60 = vld [vmem:[#allocation11 + $0x10c] sm:$0xf0] }
 0x740   : > { %v13388_v20 = vor.u32 %v15661_v47, %v13385_v60  ;;  %10250 = vmatpush.bf16.msra.mxu2 %v13864_v8  ;;  %v13833_v60 = vld [vmem:[#allocation11 + $0x48c] sm:$0xf0]  ;;  %v13360_v47 = vor.u32 %v15654_v22, %v13357_v45  ;;  %v9823_v8 = vadd.f32 %v18366_v25, %v9794_v54  ;;  %v15766_v45 = vld [vmem:[#allocation11 + $0x43c] sm:$0xf]  ;;  %v15829_v25 = vld [vmem:[#allocation11 + $0x634] sm:$0xf] }
 0x741   : > { %v13836_v52 = vor.u32 %v15773_v18, %v13833_v60  ;;  %v15640_v18 = vld [vmem:[#allocation11 + $0x4c] sm:$0xf] }
 0x742   : > { %v18423_v44 = vpop.f32.mrf.mxu2  ;;  %10193 = vmatpush.bf16.msra.mxu0 %v13388_v20  ;;  %10222 = vmatpush.bf16.msra.mxu1 %v13612_v36  ;;  %v13553_v20 = vld [vmem:[#allocation11 + $0x25c] sm:$0xf0]  ;;  %v9852_v46 = vadd.f32 %v18403_v2, %v9823_v8  ;;  %v15759_v2 = vld [vmem:[#allocation11 + $0x404] sm:$0xf] }
 0x743   : > { %10068 = vmatmul.bf16.gmra.mxu3 %v19236_v59  ;;  %v14085_v59 = vld [vmem:[#allocation11 + $0x684] sm:$0xf0] }
 0x744   : > { %v14088_v0 = vor.u32 %v15836_v28, %v14085_v59  ;;  %v9738_v59 = vadd.f32 %v18326_v33, %v18420_v6  ;;  %10251 = vmatpush.bf16.msra.mxu2 %v13836_v52  ;;  %v13301_v52 = vld [vmem:[#allocation11 + $0x64] sm:$0xf0] }
 0x745   : > { %v18428_v35 = vpop.f32.mrf.mxu0 }
 0x746   : > { %v18430_v3 = vpop.f32.mrf.mxu3  ;;  %v18432_v30 = vpop.f32.mrf.mxu1  ;;  %10279 = vmatpush.bf16.msra.mxu3 %v14088_v0  ;;  %10194 = vmatpush.bf16.msra.mxu0 %v13360_v47  ;;  %v14057_v0 = vld [vmem:[#allocation11 + $0x64c] sm:$0xf0]  ;;  %v9767_v60 = vadd.f32 %v18328_v58, %v9738_v59  ;;  %v13525_v47 = vld [vmem:[#allocation11 + $0x224] sm:$0xf0]  ;;  %v15633_v59 = vld [vmem:[#allocation11 + $0x14] sm:$0xf] }
 0x747   : > { %19237 = vst [vmem:[#allocation47_spill] sm:$0xff] %v18430_v3  ;;  %v15710_v3 = vld [vmem:[#allocation11 + $0x27c] sm:$0xf]  ;;  %v14060_v54 = vor.u32 %v15829_v25, %v14057_v0 }
 0x748   : > { %10087 = vmatmul.bf16.gmra.mxu0 %v19238_v13  ;;  %v13584_v51 = vor.u32 %v15710_v3, %v13581_v12  ;;  %v13332_v12 = vor.u32 %v15647_v11, %v13329_v62  ;;  %v13805_v3 = vld [vmem:[#allocation11 + $0x454] sm:$0xf0]  ;;  %v15696_v13 = vld [vmem:[#allocation11 + $0x20c] sm:$0xf]  ;;  %v13777_v62 = vld [vmem:[#allocation11 + $0x41c] sm:$0xf0]  ;;  %v9796_v8 = vadd.f32 %v18349_v40, %v9767_v60 }
 0x749   : > { %10116 = vmatmul.bf16.gmra.mxu1 %v19239_v27  ;;  %v15703_v27 = vld [vmem:[#allocation11 + $0x244] sm:$0xf]  ;;  %v13808_v33 = vor.u32 %v15766_v45, %v13805_v3  ;;  %v13528_v11 = vor.u32 %v15696_v13, %v13525_v47  ;;  %v13780_v58 = vor.u32 %v15759_v2, %v13777_v62  ;;  %v13273_v45 = vld [vmem:[#allocation11 + $0x2c] sm:$0xf0]  ;;  %v15689_v3 = vld [vmem:[#allocation11 + $0x1d4] sm:$0xf] }
 0x74a   : > { %v18437_v53 = vpop.f32.mrf.mxu2  ;;  %10223 = vmatpush.bf16.msra.mxu1 %v13584_v51  ;;  %v13556_v32 = vor.u32 %v15703_v27, %v13553_v20  ;;  %10195 = vmatpush.bf16.msra.mxu0 %v13332_v12  ;;  %v13304_v27 = vor.u32 %v15640_v18, %v13301_v52  ;;  %v9881_v20 = vadd.f32 %v18407_v31, %v9852_v46  ;;  %v13497_v40 = vld [vmem:[#allocation11 + $0x1ec] sm:$0xf0]  ;;  %v15752_v18 = vld [vmem:[#allocation11 + $0x3cc] sm:$0xf]  ;;  %v13749_v60 = vld [vmem:[#allocation11 + $0x3e4] sm:$0xf0] }
 0x74b   : > { %10252 = vmatpush.bf16.msra.mxu2 %v13808_v33  ;;  %10280 = vmatpush.bf16.msra.mxu3 %v14060_v54  ;;  %v9741_v33 = vadd.f32 %v18341_v57, %v18420_v6  ;;  %v9825_v12 = vadd.f32 %v18377_v29, %v9796_v8  ;;  %v13276_v46 = vor.u32 %v15633_v59, %v13273_v45  ;;  %v15822_v29 = vld [vmem:[#allocation11 + $0x5fc] sm:$0xf]  ;;  %v13721_v62 = vld [vmem:[#allocation11 + $0x3ac] sm:$0xf0] }
 0x74c   : > { %v9910_v13 = vadd.f32 %v18423_v44, %v9881_v20  ;;  %v13500_v0 = vor.u32 %v15689_v3, %v13497_v40  ;;  %v13752_v52 = vor.u32 %v15752_v18, %v13749_v60  ;;  %v14029_v44 = vld [vmem:[#allocation11 + $0x614] sm:$0xf0]  ;;  %v14001_v40 = vld [vmem:[#allocation11 + $0x5dc] sm:$0xf0] }
 0x74d   : > { %v18443_v28 = vpop.f32.mrf.mxu0  ;;  %v9854_v54 = vadd.f32 %v18413_v7, %v9825_v12  ;;  %v9770_v47 = vadd.f32 %v18343_v43, %v9741_v33  ;;  %v14032_v2 = vor.u32 %v15822_v29, %v14029_v44  ;;  %v9743_v43 = vadd.f32 %v18353_v26, %v18420_v6  ;;  %v13973_v29 = vld [vmem:[#allocation11 + $0x5a4] sm:$0xf0] }
 0x74e   : > { %v18445_v36 = vpop.f32.mrf.mxu3  ;;  %v18447_v22 = vpop.f32.mrf.mxu1  ;;  %10224 = vmatpush.bf16.msra.mxu1 %v13556_v32  ;;  %10196 = vmatpush.bf16.msra.mxu0 %v13304_v27 }
 0x74f   : > { %10145 = vmatmul.bf16.gmra.mxu2 %v17562_v61  ;;  %v9799_v7 = vadd.f32 %v18359_v24, %v9770_v47  ;;  %v9883_v8 = vadd.f32 %v18417_v39, %v9854_v54  ;;  %10281 = vmatpush.bf16.msra.mxu3 %v14032_v2  ;;  %v15815_v39 = vld [vmem:[#allocation11 + $0x5c4] sm:$0xf]  ;;  %v9772_v26 = vadd.f32 %v18355_v1, %v9743_v43 }
 0x750   : > { %10253 = vmatpush.bf16.msra.mxu2 %v13780_v58 }
 0x751   : > { %v9828_v58 = vadd.f32 %v18387_v48, %v9799_v7  ;;  %v9912_v59 = vadd.f32 %v18437_v53, %v9883_v8  ;;  %v14004_v53 = vor.u32 %v15815_v39, %v14001_v40  ;;  %v15801_v8 = vld [vmem:[#allocation11 + $0x554] sm:$0xf] }
 0x752   : > { %v18452_v51 = vpop.f32.mrf.mxu2  ;;  %10225 = vmatpush.bf16.msra.mxu1 %v13528_v11  ;;  %10197 = vmatpush.bf16.msra.mxu0 %v13276_v46  ;;  %v15745_v11 = vld [vmem:[#allocation11 + $0x394] sm:$0xf] }
 0x753   : > { %10169 = vmatmul.bf16.vlgmr.msrb.gmra.mxu3 %v17656_v50  ;;  %v13724_v20 = vor.u32 %v15745_v11, %v13721_v62  ;;  %v9857_v24 = vadd.f32 %v18428_v35, %v9828_v58  ;;  %v9746_v35 = vadd.f32 %v18362_v23, %v18420_v6 }
 0x754   : > { %10254 = vmatpush.bf16.msra.mxu2 %v13752_v52  ;;  %10282 = vmatpush.bf16.msra.mxu3 %v14004_v53  ;;  %v16018_v53 = vld [vmem:[#allocation11 + $0xc1c] sm:$0xf] }
 0x755   : > { %v18461_v32 = vpop.f32.mrf.mxu0  ;;  %v9886_v46 = vadd.f32 %v18432_v30, %v9857_v24  ;;  %v15808_v30 = vld [vmem:[#allocation11 + $0x58c] sm:$0xf]  ;;  %v9775_v23 = vadd.f32 %v18364_v14, %v9746_v35  ;;  %v16074_v35 = vld [vmem:[#allocation11 + $0xddc] sm:$0xf] }
 0x756   : > { %v18463_v25 = vpop.f32.mrf.mxu1  ;;  %v9938_v31 = vpop.f32.mrf.mxu3  ;;  %10226 = vmatpush.bf16.msra.mxu1 %v13500_v0 }
 0x757   : > { %v9939_v57 = vadd.f32 %v9938_v31, %v9910_v13  ;;  %v9801_v31 = vadd.f32 %v18371_v41, %v9772_v26  ;;  %v9915_v18 = vadd.f32 %v18452_v51, %v9886_v46  ;;  %v9804_v44 = vadd.f32 %v18380_v56, %v9775_v23  ;;  %v14365_v46 = vld [vmem:[#allocation11 + $0x8b4] sm:$0xf0]  ;;  %v16011_v23 = vld [vmem:[#allocation11 + $0xbe4] sm:$0xf] }
 0x758   : > { %10092 = vmatmul.bf16.gmra.mxu0 %v19127_v5  ;;  %10255 = vmatpush.bf16.msra.mxu2 %v13724_v20  ;;  %v13945_v20 = vld [vmem:[#allocation11 + $0x56c] sm:$0xf0] }
 0x759   : > { %16244 = vtanh.f32 %v9939_v57  ;;  %10121 = vmatmul.bf16.gmra.mxu1 %v17490_v63  ;;  %v9830_v0 = vadd.f32 %v18397_v38, %v9801_v31  ;;  %v13976_v38 = vor.u32 %v15808_v30, %v13973_v29  ;;  %v9833_v2 = vadd.f32 %v18405_v49, %v9804_v44  ;;  %v14813_v31 = vld [vmem:[#allocation11 + $0xc34] sm:$0xf0]  ;;  %v15899_v44 = vld [vmem:[#allocation11 + $0x864] sm:$0xf] }
 0x75a   : > { %v9916_v27 = vpop.f32.mrf.mxu2 }
 0x75b   : > { %v9859_v41 = vadd.f32 %v18443_v28, %v9830_v0  ;;  %10283 = vmatpush.bf16.msra.mxu3 %v13976_v38  ;;  %v9748_v28 = vadd.f32 %v18373_v16, %v18420_v6  ;;  %v9862_v56 = vadd.f32 %v18461_v32, %v9833_v2  ;;  %v9751_v32 = vadd.f32 %v18383_v15, %v18420_v6  ;;  %v19241_v15 = vld [vmem:[#allocation24_spill] sm:$0xff]  ;;  %v19242_v0 = vld [vmem:[#allocation46_spill] sm:$0xff]  ;;  %v14785_v38 = vld [vmem:[#allocation11 + $0xbfc] sm:$0xf0] }
 0x75c   : > { %v19244_v2 = vld [vmem:[#allocation47_spill] sm:$0xff] }
 0x75d   : > { %v18475_v45 = vpop.f32.mrf.mxu0  ;;  %v9888_v47 = vadd.f32 %v18447_v22, %v9859_v41  ;;  %v13948_v22 = vor.u32 %v15801_v8, %v13945_v20  ;;  %v9777_v16 = vadd.f32 %v18375_v42, %v9748_v28  ;;  %v15962_v41 = vld [vmem:[#allocation11 + $0xa5c] sm:$0xf]  ;;  %v14337_v8 = vld [vmem:[#allocation11 + $0x87c] sm:$0xf0]  ;;  %v16067_v20 = vld [vmem:[#allocation11 + $0xda4] sm:$0xf] }
 0x75e   : > { %v18477_v3 = vpop.f32.mrf.mxu1  ;;  %v9940_v33 = vpop.f32.mrf.mxu3 }
 0x75f   : > { %v16245_v12 = vpop.eup %16244  ;;  %v9941_v13 = vadd.f32 %v9940_v33, %v9912_v59  ;;  %10150 = vmatmul.bf16.gmra.mxu2 %v17570_v37  ;;  %v9917_v11 = vadd.f32 %v9916_v27, %v9888_v47  ;;  %10284 = vmatpush.bf16.msra.mxu3 %v13948_v22  ;;  %v9806_v27 = vadd.f32 %v18391_v9, %v9777_v16  ;;  %v19243_v47 = vld [vmem:[#allocation48_spill] sm:$0xff]  ;;  %v15955_v16 = vld [vmem:[#allocation11 + $0xa24] sm:$0xf] }
 0x760   : > { %10713 = vst [vmem:[%s17839_s15 + $0x18] sm:$0xff] %v16245_v12  ;;  %v9891_v59 = vadd.f32 %v18463_v25, %v9862_v56  ;;  %v9780_v9 = vadd.f32 %v18385_v4, %v9751_v32  ;;  %v19240_v25 = vld [vmem:[#allocation20_spill] sm:$0xff]  ;;  %v14589_v4 = vld [vmem:[#allocation11 + $0xa74] sm:$0xf0]  ;;  %v9753_v28 = vadd.f32 %v19243_v47, %v18420_v6 }
 0x761   : > { %16246 = vtanh.f32 %v9941_v13  ;;  %v9835_v33 = vadd.f32 %v18415_v55, %v9806_v27  ;;  %v14816_v55 = vor.u32 %v16018_v53, %v14813_v31  ;;  %v14592_v29 = vor.u32 %v15962_v41, %v14589_v4  ;;  %v14561_v27 = vld [vmem:[#allocation11 + $0xa3c] sm:$0xf0]  ;;  %v15892_v31 = vld [vmem:[#allocation11 + $0x82c] sm:$0xf] }
 0x762   : > { %v9919_v48 = vpop.f32.mrf.mxu2  ;;  %v14564_v32 = vor.u32 %v15955_v16, %v14561_v27  ;;  %v16060_v4 = vld [vmem:[#allocation11 + $0xd6c] sm:$0xf]  ;;  %v15997_v16 = vld [vmem:[#allocation11 + $0xb74] sm:$0xf]  ;;  %v14729_v27 = vld [vmem:[#allocation11 + $0xb8c] sm:$0xf0] }
 0x763   : > { %10174 = vmatmul.bf16.gmra.mxu3 %v17669_v21  ;;  %v9920_v12 = vadd.f32 %v9919_v48, %v9891_v59  ;;  %v9864_v40 = vadd.f32 %v18475_v45, %v9835_v33  ;;  %v15906_v48 = vld [vmem:[#allocation11 + $0x89c] sm:$0xf]  ;;  %10364 = vmatpush.bf16.msrb.mxu2 %v14816_v55  ;;  %v14309_v55 = vld [vmem:[#allocation11 + $0x844] sm:$0xf0] }
 0x764   : > { %v14368_v45 = vor.u32 %v15906_v48, %v14365_v46  ;;  %10335 = vmatpush.bf16.msrb.mxu1 %v14592_v29  ;;  %v15948_v48 = vld [vmem:[#allocation11 + $0x9ec] sm:$0xf]  ;;  %v15885_v29 = vld [vmem:[#allocation11 + $0x7f4] sm:$0xf] }
 0x765   : > { %v18490_v60 = vpop.f32.mrf.mxu0 }
 0x766   : > { %v18492_v1 = vpop.f32.mrf.mxu1  ;;  %v9943_v54 = vpop.f32.mrf.mxu3  ;;  %10306 = vmatpush.bf16.msrb.mxu0 %v14368_v45 }
 0x767   : > { %v16247_v57 = vpop.eup %16246  ;;  %v9944_v52 = vadd.f32 %v9943_v54, %v9915_v18  ;;  %v9809_v18 = vadd.f32 %v19242_v0, %v9780_v9  ;;  %v19247_v0 = vld [vmem:[#allocation45_spill] sm:$0xff] }
 0x768   : > { %10720 = vst [vmem:[%s17839_s15 + $0x50] sm:$0xff] %v16247_v57  ;;  %10097 = vmatmul.bf16.gmra.mxu0 %v19128_v10  ;;  %v15037_v57 = vld [vmem:[#allocation11 + $0xdf4] sm:$0xf0]  ;;  %10336 = vmatpush.bf16.msrb.mxu1 %v14564_v32  ;;  %v15934_v32 = vld [vmem:[#allocation11 + $0x97c] sm:$0xf] }
 0x769   : > { %16248 = vtanh.f32 %v9944_v52  ;;  %10126 = vmatmul.bf16.gmra.mxu1 %v17503_v34  ;;  %v9893_v52 = vadd.f32 %v18477_v3, %v9864_v40  ;;  %v15040_v30 = vor.u32 %v16074_v35, %v15037_v57  ;;  %v14757_v40 = vld [vmem:[#allocation11 + $0xbc4] sm:$0xf0]  ;;  %v19248_v57 = vld [vmem:[#allocation38_spill] sm:$0xff] }
 0x76a   : > { %v18499_v51 = vpop.f32.mrf.mxu2  ;;  %v14533_v35 = vld [vmem:[#allocation11 + $0xa04] sm:$0xf0] }
 0x76b   : > { %v9922_v56 = vadd.f32 %v18499_v51, %v9893_v52  ;;  %10393 = vmatpush.bf16.msrb.mxu3 %v15040_v30  ;;  %v16004_v51 = vld [vmem:[#allocation11 + $0xbac] sm:$0xf]  ;;  %v14536_v41 = vor.u32 %v15948_v48, %v14533_v35  ;;  %v14981_v52 = vld [vmem:[#allocation11 + $0xd84] sm:$0xf0] }
 0x76c   : > { %v14760_v53 = vor.u32 %v16004_v51, %v14757_v40  ;;  %v14984_v30 = vor.u32 %v16060_v4, %v14981_v52  ;;  %v16053_v40 = vld [vmem:[#allocation11 + $0xd34] sm:$0xf]  ;;  %v14701_v4 = vld [vmem:[#allocation11 + $0xb54] sm:$0xf0] }
 0x76d   : > { %v18506_v62 = vpop.f32.mrf.mxu0  ;;  %10337 = vmatpush.bf16.msrb.mxu1 %v14536_v41  ;;  %v15990_v41 = vld [vmem:[#allocation11 + $0xb3c] sm:$0xf] }
 0x76e   : > { %v18508_v14 = vpop.f32.mrf.mxu1  ;;  %v9945_v7 = vpop.f32.mrf.mxu3 }
 0x76f   : > { %v16249_v43 = vpop.eup %16248  ;;  %v9946_v58 = vadd.f32 %v9945_v7, %v9917_v11  ;;  %10155 = vmatmul.bf16.gmra.mxu2 %v17584_v17  ;;  %v9838_v11 = vadd.f32 %v19244_v2, %v9809_v18  ;;  %v14788_v7 = vor.u32 %v16011_v23, %v14785_v38  ;;  %v14281_v23 = vld [vmem:[#allocation11 + $0x80c] sm:$0xf0]  ;;  %v15941_v38 = vld [vmem:[#allocation11 + $0x9b4] sm:$0xf] }
 0x770   : > { %10727 = vst [vmem:[%s17839_s15 + $0x88] sm:$0xff] %v16249_v43  ;;  %v15009_v43 = vld [vmem:[#allocation11 + $0xdbc] sm:$0xf0]  ;;  %v14505_v2 = vld [vmem:[#allocation11 + $0x9cc] sm:$0xf0] }
 0x771   : > { %16250 = vtanh.f32 %v9946_v58  ;;  %v14340_v58 = vor.u32 %v15899_v44, %v14337_v8  ;;  %v15012_v22 = vor.u32 %v16067_v20, %v15009_v43  ;;  %10365 = vmatpush.bf16.msrb.mxu2 %v14788_v7  ;;  %v14508_v8 = vor.u32 %v15941_v38, %v14505_v2  ;;  %v14197_v38 = vld [vmem:[#allocation11 + $0x764] sm:$0xf0] }
 0x772   : > { %v18514_v49 = vpop.f32.mrf.mxu2 }
 0x773   : > { %10179 = vmatmul.bf16.gmra.mxu3 %v17681_v19  ;;  %10307 = vmatpush.bf16.msrb.mxu0 %v14340_v58  ;;  %v19249_v58 = vld [vmem:[#allocation21_spill] sm:$0xff] }
 0x774   : > { %10394 = vmatpush.bf16.msrb.mxu3 %v15012_v22  ;;  %v14253_v22 = vld [vmem:[#allocation11 + $0x7d4] sm:$0xf0]  ;;  %10338 = vmatpush.bf16.msrb.mxu1 %v14508_v8  ;;  %v15983_v8 = vld [vmem:[#allocation11 + $0xb04] sm:$0xf] }
 0x775   : > { %v18522_v24 = vpop.f32.mrf.mxu0  ;;  %10366 = vmatpush.bf16.msrb.mxu2 %v14760_v53  ;;  %v15871_v53 = vld [vmem:[#allocation11 + $0x784] sm:$0xf] }
 0x776   : > { %v9948_v42 = vpop.f32.mrf.mxu3  ;;  %v18524_v13 = vpop.f32.mrf.mxu1 }
 0x777   : > { %v16251_v39 = vpop.eup %16250  ;;  %v9949_v26 = vadd.f32 %v9948_v42, %v9920_v12  ;;  %v9867_v12 = vadd.f32 %v18490_v60, %v9838_v11  ;;  %v14312_v60 = vor.u32 %v15892_v31, %v14309_v55  ;;  %v14225_v31 = vld [vmem:[#allocation11 + $0x79c] sm:$0xf0]  ;;  %v15927_v55 = vld [vmem:[#allocation11 + $0x944] sm:$0xf] }
 0x778   : > { %10734 = vst [vmem:[%s17839_s15 + $0xc0] sm:$0xff] %v16251_v39  ;;  %10198 = vmatmul.bf16.vlgmr.msra.gmra.mxu0 %v19240_v25  ;;  %v19245_v39 = vld [vmem:[#allocation28_spill] sm:$0xff]  ;;  %10395 = vmatpush.bf16.msrb.mxu3 %v14984_v30  ;;  %v14228_v35 = vor.u32 %v15871_v53, %v14225_v31 }
 0x779   : > { %16252 = vtanh.f32 %v9949_v26  ;;  %10227 = vmatmul.bf16.vlgmr.msra.gmra.mxu1 %v19241_v15  ;;  %v19246_v26 = vld [vmem:[#allocation43_spill] sm:$0xff]  ;;  %v9896_v45 = vadd.f32 %v18492_v1, %v9867_v12  ;;  %10308 = vmatpush.bf16.msrb.mxu0 %v14312_v60  ;;  %v14284_v1 = vor.u32 %v15885_v29, %v14281_v23  ;;  %v14732_v12 = vor.u32 %v15997_v16, %v14729_v27  ;;  %v19251_v29 = vld [vmem:[#allocation29_spill] sm:$0xff]  ;;  %v14645_v53 = vld [vmem:[#allocation11 + $0xae4] sm:$0xf0] }
 0x77a   : > { %v18532_v54 = vpop.f32.mrf.mxu2  ;;  %v9782_v9 = vadd.f32 %v19246_v26, %v9753_v28  ;;  %v14953_v26 = vld [vmem:[#allocation11 + $0xd4c] sm:$0xf0]  ;;  %v14704_v23 = vor.u32 %v15990_v41, %v14701_v4  ;;  %v15857_v27 = vld [vmem:[#allocation11 + $0x714] sm:$0xf]  ;;  %v16039_v41 = vld [vmem:[#allocation11 + $0xcc4] sm:$0xf] }
 0x77b   : > { %v9925_v47 = vadd.f32 %v18514_v49, %v9896_v45  ;;  %v19250_v49 = vld [vmem:[#allocation25_spill] sm:$0xff]  ;;  %10367 = vmatpush.bf16.msrb.mxu2 %v14732_v12  ;;  %v14897_v4 = vld [vmem:[#allocation11 + $0xcdc] sm:$0xf0]  ;;  %v15714_v15 = vld [vmem:[#allocation11 + $0x298] sm:$0xf0] }
 0x77c   : > { %v9811_v18 = vadd.f32 %v19247_v0, %v9782_v9  ;;  %v14956_v9 = vor.u32 %v16053_v40, %v14953_v26  ;;  %v14449_v0 = vld [vmem:[#allocation11 + $0x95c] sm:$0xf0] }
 0x77d   : > { %v18539_v3 = vpop.f32.mrf.mxu0  ;;  %10309 = vmatpush.bf16.msrb.mxu0 %v14284_v1  ;;  %v14421_v1 = vld [vmem:[#allocation11 + $0x924] sm:$0xf0] }
 0x77e   : > { %v9950_v59 = vpop.f32.mrf.mxu3  ;;  %v18541_v6 = vpop.f32.mrf.mxu1  ;;  %v9840_v44 = vadd.f32 %v18445_v36, %v9811_v18  ;;  %v15878_v36 = vld [vmem:[#allocation11 + $0x7bc] sm:$0xf]  ;;  %10396 = vmatpush.bf16.msrb.mxu3 %v14956_v9  ;;  %v15976_v9 = vld [vmem:[#allocation11 + $0xacc] sm:$0xf] }
 0x77f   : > { %v16253_v33 = vpop.eup %16252  ;;  %v9951_v42 = vadd.f32 %v9950_v59, %v9922_v56  ;;  %10256 = vmatmul.bf16.vlgmr.msra.gmra.mxu2 %v19245_v39  ;;  %v14256_v59 = vor.u32 %v15878_v36, %v14253_v22  ;;  %v14925_v36 = vld [vmem:[#allocation11 + $0xd14] sm:$0xf0]  ;;  %v13363_v39 = vld [vmem:[#allocation11 + $0xc0] sm:$0xf] }
 0x780   : > { %10741 = vst [vmem:[%s17839_s15 + $0xf8] sm:$0xff] %v16253_v33  ;;  %v9869_v43 = vadd.f32 %v18506_v62, %v9840_v44  ;;  %10368 = vmatpush.bf16.msrb.mxu2 %v14704_v23 }
 0x781   : > { %16254 = vtanh.f32 %v9951_v42  ;;  %v14477_v42 = vld [vmem:[#allocation11 + $0x994] sm:$0xf0]  ;;  %10310 = vmatpush.bf16.msrb.mxu0 %v14256_v59  ;;  %v14169_v59 = vld [vmem:[#allocation11 + $0x72c] sm:$0xf0] }
 0x782   : > { %v18547_v46 = vpop.f32.mrf.mxu2  ;;  %v9898_v62 = vadd.f32 %v18508_v14, %v9869_v43  ;;  %v14480_v51 = vor.u32 %v15934_v32, %v14477_v42  ;;  %v14452_v14 = vor.u32 %v15927_v55, %v14449_v0  ;;  %v19252_v43 = vld [vmem:[#allocation32_spill] sm:$0xff]  ;;  %v15913_v32 = vld [vmem:[#allocation11 + $0x8d4] sm:$0xf]  ;;  %v14172_v42 = vor.u32 %v15857_v27, %v14169_v59  ;;  %v19258_v27 = vld [vmem:[#allocation27_spill] sm:$0xff] }
 0x783   : > { %10184 = vmatmul.bf16.gmra.mxu3 %v19248_v57  ;;  %v14648_v55 = vor.u32 %v15976_v9, %v14645_v53  ;;  %v15728_v57 = vld [vmem:[#allocation11 + $0x308] sm:$0xf0] }
 0x784   : > { %v9927_v48 = vadd.f32 %v18532_v54, %v9898_v62  ;;  %10339 = vmatpush.bf16.msrb.mxu1 %v14480_v51  ;;  %v15864_v54 = vld [vmem:[#allocation11 + $0x74c] sm:$0xf]  ;;  %v14393_v62 = vld [vmem:[#allocation11 + $0x8ec] sm:$0xf0] }
 0x785   : > { %v18554_v28 = vpop.f32.mrf.mxu0  ;;  %10311 = vmatpush.bf16.msrb.mxu0 %v14228_v35  ;;  %v14200_v44 = vor.u32 %v15864_v54, %v14197_v38  ;;  %v14396_v26 = vor.u32 %v15913_v32, %v14393_v62  ;;  %v19254_v35 = vld [vmem:[#allocation26_spill] sm:$0xff]  ;;  %v16025_v32 = vld [vmem:[#allocation11 + $0xc54] sm:$0xf] }
 0x786   : > { %v9953_v11 = vpop.f32.mrf.mxu3  ;;  %v18556_v7 = vpop.f32.mrf.mxu1 }
 0x787   : > { %v16255_v20 = vpop.eup %16254  ;;  %v9954_v56 = vadd.f32 %v9953_v11, %v9925_v47  ;;  %v15920_v47 = vld [vmem:[#allocation11 + $0x90c] sm:$0xf] }
 0x788   : > { %10748 = vst [vmem:[%s17839_s15 + $0x130] sm:$0xff] %v16255_v20  ;;  %10203 = vmatmul.bf16.gmra.mxu0 %v19249_v58  ;;  %10340 = vmatpush.bf16.msrb.mxu1 %v14452_v14  ;;  %v14424_v11 = vor.u32 %v15920_v47, %v14421_v1  ;;  %v14673_v20 = vld [vmem:[#allocation11 + $0xb1c] sm:$0xf0]  ;;  %v14617_v14 = vld [vmem:[#allocation11 + $0xaac] sm:$0xf0] }
 0x789   : > { %16256 = vtanh.f32 %v9954_v56  ;;  %10232 = vmatmul.bf16.gmra.mxu1 %v19250_v49  ;;  %v16046_v56 = vld [vmem:[#allocation11 + $0xcfc] sm:$0xf]  ;;  %v14676_v22 = vor.u32 %v15983_v8, %v14673_v20  ;;  %10312 = vmatpush.bf16.msrb.mxu0 %v14200_v44  ;;  %v19256_v1 = vld [vmem:[#allocation33_spill] sm:$0xff]  ;;  %v14869_v8 = vld [vmem:[#allocation11 + $0xca4] sm:$0xf0] }
 0x78a   : > { %v18562_v33 = vpop.f32.mrf.mxu2  ;;  %v14928_v16 = vor.u32 %v16046_v56, %v14925_v36  ;;  %v19255_v44 = vld [vmem:[#allocation30_spill] sm:$0xff] }
 0x78b   : > { %10369 = vmatpush.bf16.msrb.mxu2 %v14676_v22 }
 0x78c   : > { %10341 = vmatpush.bf16.msrb.mxu1 %v14424_v11  ;;  %10397 = vmatpush.bf16.msrb.mxu3 %v14928_v16  ;;  %v16032_v11 = vld [vmem:[#allocation11 + $0xc8c] sm:$0xf]  ;;  %v19257_v16 = vld [vmem:[#allocation23_spill] sm:$0xff] }
 0x78d   : > { %v18566_v60 = vpop.f32.mrf.mxu0  ;;  %10313 = vmatpush.bf16.msrb.mxu0 %v14172_v42  ;;  %v14872_v20 = vor.u32 %v16032_v11, %v14869_v8  ;;  %v14841_v42 = vld [vmem:[#allocation11 + $0xc6c] sm:$0xf0]  ;;  %v14147_v11 = vld [vmem:[#allocation11 + $0x6e0] sm:$0xf] }
 0x78e   : > { %v9955_v18 = vpop.f32.mrf.mxu3  ;;  %v18568_v45 = vpop.f32.mrf.mxu1  ;;  %v14844_v62 = vor.u32 %v16025_v32, %v14841_v42  ;;  %v13699_v32 = vld [vmem:[#allocation11 + $0x360] sm:$0xf]  ;;  %v15742_v42 = vld [vmem:[#allocation11 + $0x378] sm:$0xf0] }
 0x78f   : > { %v16257_v52 = vpop.eup %16256  ;;  %v9956_v30 = vadd.f32 %v9955_v18, %v9927_v48  ;;  %10261 = vmatmul.bf16.gmra.mxu2 %v19251_v29  ;;  %v19253_v48 = vld [vmem:[#allocation22_spill] sm:$0xff]  ;;  %v15969_v18 = vld [vmem:[#allocation11 + $0xa94] sm:$0xf]  ;;  %v15672_v29 = vld [vmem:[#allocation11 + $0x148] sm:$0xf0] }
 0x790   : > { %10755 = vst [vmem:[%s17839_s15 + $0x168] sm:$0xff] %v16257_v52  ;;  %10342 = vmatpush.bf16.msrb.mxu1 %v14396_v26  ;;  %10370 = vmatpush.bf16.msrb.mxu2 %v14648_v55  ;;  %v14620_v52 = vor.u32 %v15969_v18, %v14617_v14  ;;  %v13923_v55 = vld [vmem:[#allocation11 + $0x520] sm:$0xf]  ;;  %v15798_v18 = vld [vmem:[#allocation11 + $0x538] sm:$0xf0] }
 0x791   : > { %16258 = vtanh.f32 %v9956_v30  ;;  %v14900_v30 = vor.u32 %v16039_v41, %v14897_v4  ;;  %v13924_v14 = vor.u32 %v15798_v18, %v13923_v55  ;;  %v19263_v4 = vld [vmem:[#allocation34_spill] sm:$0xff]  ;;  %v19264_v55 = vld [vmem:[#allocation36_spill] sm:$0xff] }
 0x792   : > { %v18572_v2 = vpop.f32.mrf.mxu2  ;;  %v19265_v18 = vld [vmem:[#allocation40_spill] sm:$0xff] }
 0x793   : > { %10285 = vmatmul.bf16.vlgmr.msra.gmra.mxu3 %v19252_v43 }
 0x794   : > { %10398 = vmatpush.bf16.msrb.mxu3 %v14900_v30  ;;  %10371 = vmatpush.bf16.msrb.mxu2 %v14620_v52  ;;  %v13475_v52 = vld [vmem:[#allocation11 + $0x1a0] sm:$0xf]  ;;  %v15686_v30 = vld [vmem:[#allocation11 + $0x1b8] sm:$0xf0] }
 0x795   : > { %v18575_v12 = vpop.f32.mrf.mxu0  ;;  %v13476_v8 = vor.u32 %v15686_v30, %v13475_v52  ;;  %v13447_v52 = vld [vmem:[#allocation11 + $0x168] sm:$0xf]  ;;  %v15679_v30 = vld [vmem:[#allocation11 + $0x180] sm:$0xf0] }
 0x796   : > { %v18577_v51 = vpop.f32.mrf.mxu1  ;;  %v18579_v40 = vpop.f32.mrf.mxu3 }
 0x797   : > { %v16259_v31 = vpop.eup %16258  ;;  %10422 = vmatpush.bf16.msra.mxu0 %v13476_v8 }
 0x798   : > { %10762 = vst [vmem:[%s17839_s15 + $0x1a0] sm:$0xff] %v16259_v31  ;;  %10208 = vmatmul.bf16.gmra.mxu0 %v19253_v48  ;;  %10399 = vmatpush.bf16.msrb.mxu3 %v14872_v20  ;;  %v19261_v31 = vld [vmem:[#allocation31_spill] sm:$0xff]  ;;  %v15854_v20 = vld [vmem:[#allocation11 + $0x6f8] sm:$0xf0]  ;;  %v14119_v48 = vld [vmem:[#allocation11 + $0x6a8] sm:$0xf] }
 0x799   : > { %10237 = vmatmul.bf16.gmra.mxu1 %v19254_v35  ;;  %10480 = vmatpush.bf16.msra.mxu2 %v13924_v14  ;;  %v15791_v35 = vld [vmem:[#allocation11 + $0x500] sm:$0xf0] }
 0x79a   : > { %v18584_v0 = vpop.f32.mrf.mxu2 }
 0x79c   : > { %10400 = vmatpush.bf16.msrb.mxu3 %v14844_v62  ;;  %v14148_v62 = vor.u32 %v15854_v20, %v14147_v11  ;;  %v13448_v11 = vor.u32 %v15679_v30, %v13447_v52  ;;  %v15735_v20 = vld [vmem:[#allocation11 + $0x340] sm:$0xf0]  ;;  %v13419_v30 = vld [vmem:[#allocation11 + $0x130] sm:$0xf] }
 0x79d   : > { %v18586_v23 = vpop.f32.mrf.mxu0  ;;  %v15847_v52 = vld [vmem:[#allocation11 + $0x6c0] sm:$0xf0] }
 0x79e   : > { %v18588_v54 = vpop.f32.mrf.mxu1  ;;  %v18590_v38 = vpop.f32.mrf.mxu3  ;;  %10423 = vmatpush.bf16.msra.mxu0 %v13448_v11  ;;  %v14120_v58 = vor.u32 %v15847_v52, %v14119_v48  ;;  %v13391_v11 = vld [vmem:[#allocation11 + $0xf8] sm:$0xf]  ;;  %v13867_v52 = vld [vmem:[#allocation11 + $0x4b0] sm:$0xf] }
 0x79f   : > { %10266 = vmatmul.bf16.gmra.mxu2 %v19255_v44 }
 0x7a0   : > { %10509 = vmatpush.bf16.msra.mxu3 %v14148_v62  ;;  %v18632_v62 = vld [vmem:[#allocation13] sm:$0xff] }
 0x7a1   : > { %19267 = vst [vmem:[#allocation47_spill] sm:$0xff] %v18632_v62 }
 0x7a2   : > { %v18593_v47 = vpop.f32.mrf.mxu2 }
 0x7a3   : > { %10290 = vmatmul.bf16.gmra.mxu3 %v19256_v1 }
 0x7a4   : > { %10510 = vmatpush.bf16.msra.mxu3 %v14120_v58 }
 0x7a5   : > { %v18596_v56 = vpop.f32.mrf.mxu0 }
 0x7a6   : > { %v18598_v36 = vpop.f32.mrf.mxu1  ;;  %v18600_v22 = vpop.f32.mrf.mxu3 }
 0x7a8   : > { %10213 = vmatmul.bf16.gmra.mxu0 %v19257_v16  ;;  %v13700_v16 = vor.u32 %v15742_v42, %v13699_v32 }
 0x7a9   : > { %10242 = vmatmul.bf16.gmra.mxu1 %v19258_v27 }
 0x7aa   : > { %v18604_v59 = vpop.f32.mrf.mxu2  ;;  %10451 = vmatpush.bf16.msra.mxu1 %v13700_v16  ;;  %v18635_v16 = vperm.slane %v18632_v62, 4 }
 0x7ad   : > { %v18606_v26 = vpop.f32.mrf.mxu0 }
 0x7ae   : > { %19259 = vst [vmem:[#allocation39_spill] sm:$0xff] %v18606_v26  ;;  %v18608_v9 = vpop.f32.mrf.mxu1  ;;  %v18610_v53 = vpop.f32.mrf.mxu3  ;;  %v19272_v26 = vld [vmem:[#allocation41_spill] sm:$0xff] }
 0x7af   : > { %19260 = vst [vmem:[#allocation44_spill] sm:$0xff] %v18608_v9  ;;  %10271 = vmatmul.bf16.gmra.mxu2 %v19261_v31  ;;  %v13615_v9 = vld [vmem:[#allocation11 + $0x2b8] sm:$0xf] }
 0x7b2   : > { %v18613_v41 = vpop.f32.mrf.mxu2 }
 0x7b3   : > { %19262 = vst [vmem:[#allocation46_spill] sm:$0xff] %v18613_v41  ;;  %10295 = vmatmul.bf16.gmra.mxu3 %v19263_v4  ;;  %v13671_v4 = vld [vmem:[#allocation11 + $0x328] sm:$0xf]  ;;  %v15658_v41 = vld [vmem:[#allocation11 + $0xd8] sm:$0xf0] }
 0x7b4   : > { %v13672_v8 = vor.u32 %v15735_v20, %v13671_v4  ;;  %v13420_v4 = vor.u32 %v15672_v29, %v13419_v30  ;;  %v13643_v20 = vld [vmem:[#allocation11 + $0x2f0] sm:$0xf]  ;;  %v15784_v30 = vld [vmem:[#allocation11 + $0x4c8] sm:$0xf0] }
 0x7b5   : > { %v18616_v27 = vpop.f32.mrf.mxu0  ;;  %v13644_v62 = vor.u32 %v15728_v57, %v13643_v20  ;;  %v13868_v58 = vor.u32 %v15784_v30, %v13867_v52  ;;  %v14091_v20 = vld [vmem:[#allocation11 + $0x670] sm:$0xf] }
 0x7b6   : > { %v18618_v31 = vpop.f32.mrf.mxu3  ;;  %v18620_v1 = vpop.f32.mrf.mxu1  ;;  %10452 = vmatpush.bf16.msra.mxu1 %v13672_v8  ;;  %10424 = vmatpush.bf16.msra.mxu0 %v13420_v4  ;;  %v15721_v8 = vld [vmem:[#allocation11 + $0x2d0] sm:$0xf0] }
 0x7b7   : > { %v13616_v57 = vor.u32 %v15721_v8, %v13615_v9  ;;  %v19271_v4 = vld [vmem:[#allocation37_spill] sm:$0xff]  ;;  %v13839_v9 = vld [vmem:[#allocation11 + $0x478] sm:$0xf] }
 0x7b8   : > { %10314 = vmatmul.bf16.vlgmr.msrb.gmra.mxu0 %v19264_v55  ;;  %v13895_v55 = vld [vmem:[#allocation11 + $0x4e8] sm:$0xf] }
 0x7b9   : > { %10343 = vmatmul.bf16.vlgmr.msrb.gmra.mxu1 %v19265_v18  ;;  %v19268_v18 = vld [vmem:[#allocation42_spill] sm:$0xff]  ;;  %v13896_v43 = vor.u32 %v15791_v35, %v13895_v55  ;;  %v9968_v35 = vadd.f32 %v18522_v24, %v18635_v16 }
 0x7ba   : > { %v18624_v14 = vpop.f32.mrf.mxu2  ;;  %10453 = vmatpush.bf16.msra.mxu1 %v13644_v62 }
 0x7bb   : > { %19266 = vst [vmem:[#allocation48_spill] sm:$0xff] %v18624_v14  ;;  %v19269_v14 = vld [vmem:[#allocation35_spill] sm:$0xff]  ;;  %10481 = vmatpush.bf16.msra.mxu2 %v13896_v43  ;;  %v9997_v24 = vadd.f32 %v18524_v13, %v9968_v35  ;;  %v13335_v13 = vld [vmem:[#allocation11 + $0x88] sm:$0xf] }
 0x7bc   : > { %v15651_v35 = vld [vmem:[#allocation11 + $0xa0] sm:$0xf0] }
 0x7bd   : > { %v18626_v44 = vpop.f32.mrf.mxu0  ;;  %v10026_v52 = vadd.f32 %v18547_v46, %v9997_v24 }
 0x7be   : > { %v18628_v32 = vpop.f32.mrf.mxu3  ;;  %v18630_v42 = vpop.f32.mrf.mxu1  ;;  %10454 = vmatpush.bf16.msra.mxu1 %v13616_v57 }
 0x7bf   : > { %10372 = vmatmul.bf16.vlgmr.msrb.gmra.mxu2 %v19268_v18  ;;  %v15665_v18 = vld [vmem:[#allocation11 + $0x110] sm:$0xf0] }
 0x7c0   : > { %v13392_v43 = vor.u32 %v15665_v18, %v13391_v11  ;;  %10482 = vmatpush.bf16.msra.mxu2 %v13868_v58  ;;  %v15777_v18 = vld [vmem:[#allocation11 + $0x490] sm:$0xf0]  ;;  %v13364_v11 = vor.u32 %v15658_v41, %v13363_v39  ;;  %v10055_v58 = vadd.f32 %v18579_v40, %v10026_v52  ;;  %v13811_v41 = vld [vmem:[#allocation11 + $0x440] sm:$0xf]  ;;  %v14063_v40 = vld [vmem:[#allocation11 + $0x638] sm:$0xf] }
 0x7c1   : > { %v13840_v30 = vor.u32 %v15777_v18, %v13839_v9  ;;  %v13307_v9 = vld [vmem:[#allocation11 + $0x50] sm:$0xf] }
 0x7c2   : > { %v18638_v49 = vpop.f32.mrf.mxu2  ;;  %10425 = vmatpush.bf16.msra.mxu0 %v13392_v43  ;;  %v15707_v43 = vld [vmem:[#allocation11 + $0x260] sm:$0xf0]  ;;  %v10084_v24 = vadd.f32 %v18616_v27, %v10055_v58  ;;  %v13783_v27 = vld [vmem:[#allocation11 + $0x408] sm:$0xf] }
 0x7c3   : > { %10300 = vmatmul.bf16.gmra.mxu3 %v19269_v14  ;;  %v15840_v14 = vld [vmem:[#allocation11 + $0x688] sm:$0xf0] }
 0x7c4   : > { %v14092_v62 = vor.u32 %v15840_v14, %v14091_v20  ;;  %v9970_v14 = vadd.f32 %v18539_v3, %v18635_v16  ;;  %10483 = vmatpush.bf16.msra.mxu2 %v13840_v30  ;;  %v15644_v30 = vld [vmem:[#allocation11 + $0x68] sm:$0xf0] }
 0x7c5   : > { %v18643_v55 = vpop.f32.mrf.mxu0 }
 0x7c6   : > { %v18645_v48 = vpop.f32.mrf.mxu3  ;;  %v18647_v29 = vpop.f32.mrf.mxu1  ;;  %10511 = vmatpush.bf16.msra.mxu3 %v14092_v62  ;;  %10426 = vmatpush.bf16.msra.mxu0 %v13364_v11  ;;  %v15833_v62 = vld [vmem:[#allocation11 + $0x650] sm:$0xf0]  ;;  %v9999_v18 = vadd.f32 %v18541_v6, %v9970_v14  ;;  %v15700_v11 = vld [vmem:[#allocation11 + $0x228] sm:$0xf0]  ;;  %v13279_v14 = vld [vmem:[#allocation11 + $0x18] sm:$0xf] }
 0x7c7   : > { %19270 = vst [vmem:[#allocation43_spill] sm:$0xff] %v18645_v48  ;;  %v13587_v48 = vld [vmem:[#allocation11 + $0x280] sm:$0xf]  ;;  %v14064_v52 = vor.u32 %v15833_v62, %v14063_v40 }
 0x7c8   : > { %10319 = vmatmul.bf16.gmra.mxu0 %v19271_v4  ;;  %v13588_v8 = vor.u32 %v15714_v15, %v13587_v48  ;;  %v13336_v15 = vor.u32 %v15651_v35, %v13335_v13  ;;  %v15770_v48 = vld [vmem:[#allocation11 + $0x458] sm:$0xf0]  ;;  %v13531_v4 = vld [vmem:[#allocation11 + $0x210] sm:$0xf]  ;;  %v15763_v35 = vld [vmem:[#allocation11 + $0x420] sm:$0xf0]  ;;  %v10028_v58 = vadd.f32 %v18562_v33, %v9999_v18 }
 0x7c9   : > { %10348 = vmatmul.bf16.gmra.mxu1 %v19272_v26  ;;  %v13559_v26 = vld [vmem:[#allocation11 + $0x248] sm:$0xf]  ;;  %v13812_v3 = vor.u32 %v15770_v48, %v13811_v41  ;;  %v13532_v13 = vor.u32 %v15700_v11, %v13531_v4  ;;  %v13784_v6 = vor.u32 %v15763_v35, %v13783_v27  ;;  %v15637_v41 = vld [vmem:[#allocation11 + $0x30] sm:$0xf0]  ;;  %v13503_v48 = vld [vmem:[#allocation11 + $0x1d8] sm:$0xf] }
 0x7ca   : > { %v18652_v25 = vpop.f32.mrf.mxu2  ;;  %10455 = vmatpush.bf16.msra.mxu1 %v13588_v8  ;;  %v13560_v46 = vor.u32 %v15707_v43, %v13559_v26  ;;  %10427 = vmatpush.bf16.msra.mxu0 %v13336_v15  ;;  %v13308_v26 = vor.u32 %v15644_v30, %v13307_v9  ;;  %v10113_v43 = vadd.f32 %v18620_v1, %v10084_v24  ;;  %v15693_v33 = vld [vmem:[#allocation11 + $0x1f0] sm:$0xf0]  ;;  %v13755_v9 = vld [vmem:[#allocation11 + $0x3d0] sm:$0xf]  ;;  %v15756_v18 = vld [vmem:[#allocation11 + $0x3e8] sm:$0xf0] }
 0x7cb   : > { %10484 = vmatpush.bf16.msra.mxu2 %v13812_v3  ;;  %10512 = vmatpush.bf16.msra.mxu3 %v14064_v52  ;;  %v9973_v3 = vadd.f32 %v18554_v28, %v18635_v16  ;;  %v10057_v15 = vadd.f32 %v18590_v38, %v10028_v58  ;;  %v13280_v24 = vor.u32 %v15637_v41, %v13279_v14  ;;  %v15826_v38 = vld [vmem:[#allocation11 + $0x618] sm:$0xf0]  ;;  %v15749_v35 = vld [vmem:[#allocation11 + $0x3b0] sm:$0xf0] }
 0x7cc   : > { %v10142_v4 = vadd.f32 %v18638_v49, %v10113_v43  ;;  %v13504_v62 = vor.u32 %v15693_v33, %v13503_v48  ;;  %v13756_v30 = vor.u32 %v15756_v18, %v13755_v9  ;;  %v14035_v49 = vld [vmem:[#allocation11 + $0x600] sm:$0xf]  ;;  %v15819_v33 = vld [vmem:[#allocation11 + $0x5e0] sm:$0xf0] }
 0x7cd   : > { %v18658_v20 = vpop.f32.mrf.mxu0  ;;  %v10086_v52 = vadd.f32 %v18626_v44, %v10057_v15  ;;  %v10002_v11 = vadd.f32 %v18556_v7, %v9973_v3  ;;  %v14036_v27 = vor.u32 %v15826_v38, %v14035_v49  ;;  %v9975_v7 = vadd.f32 %v18566_v60, %v18635_v16  ;;  %v15812_v49 = vld [vmem:[#allocation11 + $0x5a8] sm:$0xf0] }
 0x7ce   : > { %v18660_v57 = vpop.f32.mrf.mxu3  ;;  %v18662_v39 = vpop.f32.mrf.mxu1  ;;  %10456 = vmatpush.bf16.msra.mxu1 %v13560_v46  ;;  %10428 = vmatpush.bf16.msra.mxu0 %v13308_v26 }
 0x7cf   : > { %10377 = vmatmul.bf16.gmra.mxu2 %v17562_v61  ;;  %v10031_v44 = vadd.f32 %v18572_v2, %v10002_v11  ;;  %v10115_v58 = vadd.f32 %v18630_v42, %v10086_v52  ;;  %10513 = vmatpush.bf16.msra.mxu3 %v14036_v27  ;;  %v14007_v42 = vld [vmem:[#allocation11 + $0x5c8] sm:$0xf]  ;;  %v10004_v60 = vadd.f32 %v18568_v45, %v9975_v7 }
 0x7d0   : > { %10485 = vmatpush.bf16.msra.mxu2 %v13784_v6 }
 0x7d1   : > { %v10060_v6 = vadd.f32 %v18600_v22, %v10031_v44  ;;  %v10144_v14 = vadd.f32 %v18652_v25, %v10115_v58  ;;  %v14008_v25 = vor.u32 %v15819_v33, %v14007_v42  ;;  %v13951_v58 = vld [vmem:[#allocation11 + $0x558] sm:$0xf] }
 0x7d2   : > { %v18667_v8 = vpop.f32.mrf.mxu2  ;;  %10457 = vmatpush.bf16.msra.mxu1 %v13532_v13  ;;  %10429 = vmatpush.bf16.msra.mxu0 %v13280_v24  ;;  %v13727_v13 = vld [vmem:[#allocation11 + $0x398] sm:$0xf] }
 0x7d3   : > { %10401 = vmatmul.bf16.vlgmr.msrb.gmra.mxu3 %v17656_v50  ;;  %v13728_v43 = vor.u32 %v15749_v35, %v13727_v13  ;;  %v10089_v2 = vadd.f32 %v18643_v55, %v10060_v6  ;;  %v9978_v55 = vadd.f32 %v18575_v12, %v18635_v16 }
 0x7d4   : > { %10486 = vmatpush.bf16.msra.mxu2 %v13756_v30  ;;  %10514 = vmatpush.bf16.msra.mxu3 %v14008_v25  ;;  %v14819_v25 = vld [vmem:[#allocation11 + $0xc20] sm:$0xf] }
 0x7d5   : > { %v18676_v46 = vpop.f32.mrf.mxu0  ;;  %v10118_v24 = vadd.f32 %v18647_v29, %v10089_v2  ;;  %v13979_v29 = vld [vmem:[#allocation11 + $0x590] sm:$0xf]  ;;  %v10007_v12 = vadd.f32 %v18577_v51, %v9978_v55  ;;  %v15043_v55 = vld [vmem:[#allocation11 + $0xde0] sm:$0xf] }
 0x7d6   : > { %v18678_v40 = vpop.f32.mrf.mxu1  ;;  %v10170_v1 = vpop.f32.mrf.mxu3  ;;  %10458 = vmatpush.bf16.msra.mxu1 %v13504_v62 }
 0x7d7   : > { %v10171_v28 = vadd.f32 %v10170_v1, %v10142_v4  ;;  %v10033_v1 = vadd.f32 %v18584_v0, %v10004_v60  ;;  %v10147_v9 = vadd.f32 %v18667_v8, %v10118_v24  ;;  %v10036_v38 = vadd.f32 %v18593_v47, %v10007_v12  ;;  %v15910_v24 = vld [vmem:[#allocation11 + $0x8b8] sm:$0xf0]  ;;  %v14791_v12 = vld [vmem:[#allocation11 + $0xbe8] sm:$0xf] }
 0x7d8   : > { %10324 = vmatmul.bf16.gmra.mxu0 %v19127_v5  ;;  %10487 = vmatpush.bf16.msra.mxu2 %v13728_v43  ;;  %v15805_v43 = vld [vmem:[#allocation11 + $0x570] sm:$0xf0] }
 0x7d9   : > { %16260 = vtanh.f32 %v10171_v28  ;;  %10353 = vmatmul.bf16.gmra.mxu1 %v17490_v63  ;;  %v10062_v62 = vadd.f32 %v18610_v53, %v10033_v1  ;;  %v13980_v53 = vor.u32 %v15812_v49, %v13979_v29  ;;  %v10065_v27 = vadd.f32 %v18618_v31, %v10036_v38  ;;  %v16022_v1 = vld [vmem:[#allocation11 + $0xc38] sm:$0xf0]  ;;  %v14343_v38 = vld [vmem:[#allocation11 + $0x868] sm:$0xf] }
 0x7da   : > { %v10148_v26 = vpop.f32.mrf.mxu2 }
 0x7db   : > { %v10091_v0 = vadd.f32 %v18658_v20, %v10062_v62  ;;  %10515 = vmatpush.bf16.msra.mxu3 %v13980_v53  ;;  %v9980_v20 = vadd.f32 %v18586_v23, %v18635_v16  ;;  %v10094_v47 = vadd.f32 %v18676_v46, %v10065_v27  ;;  %v9983_v46 = vadd.f32 %v18596_v56, %v18635_v16  ;;  %v19274_v56 = vld [vmem:[#allocation24_spill] sm:$0xff]  ;;  %v19275_v62 = vld [vmem:[#allocation46_spill] sm:$0xff]  ;;  %v16015_v53 = vld [vmem:[#allocation11 + $0xc00] sm:$0xf0] }
 0x7dc   : > { %v19277_v27 = vld [vmem:[#allocation43_spill] sm:$0xff] }
 0x7dd   : > { %v18690_v41 = vpop.f32.mrf.mxu0  ;;  %v10120_v11 = vadd.f32 %v18662_v39, %v10091_v0  ;;  %v13952_v39 = vor.u32 %v15805_v43, %v13951_v58  ;;  %v10009_v23 = vadd.f32 %v18588_v54, %v9980_v20  ;;  %v14595_v0 = vld [vmem:[#allocation11 + $0xa60] sm:$0xf]  ;;  %v15903_v58 = vld [vmem:[#allocation11 + $0x880] sm:$0xf0]  ;;  %v15015_v43 = vld [vmem:[#allocation11 + $0xda8] sm:$0xf] }
 0x7de   : > { %v18692_v48 = vpop.f32.mrf.mxu1  ;;  %v10172_v3 = vpop.f32.mrf.mxu3 }
 0x7df   : > { %v16261_v15 = vpop.eup %16260  ;;  %v10173_v4 = vadd.f32 %v10172_v3, %v10144_v14  ;;  %10382 = vmatmul.bf16.gmra.mxu2 %v17570_v37  ;;  %v10149_v13 = vadd.f32 %v10148_v26, %v10120_v11  ;;  %10516 = vmatpush.bf16.msra.mxu3 %v13952_v39  ;;  %v10038_v26 = vadd.f32 %v18604_v59, %v10009_v23  ;;  %v19276_v11 = vld [vmem:[#allocation39_spill] sm:$0xff]  ;;  %v14567_v23 = vld [vmem:[#allocation11 + $0xa28] sm:$0xf] }
 0x7e0   : > { %10714 = vst [vmem:[%s17839_s15 + $0x20] sm:$0xff] %v16261_v15  ;;  %v10123_v14 = vadd.f32 %v18678_v40, %v10094_v47  ;;  %v10012_v59 = vadd.f32 %v18598_v36, %v9983_v46  ;;  %v19273_v40 = vld [vmem:[#allocation20_spill] sm:$0xff]  ;;  %v15966_v36 = vld [vmem:[#allocation11 + $0xa78] sm:$0xf0]  ;;  %v9985_v20 = vadd.f32 %v19276_v11, %v18635_v16  ;;  %v15945_v11 = vld [vmem:[#allocation11 + $0x9d0] sm:$0xf0] }
 0x7e1   : > { %16262 = vtanh.f32 %v10173_v4  ;;  %v10067_v3 = vadd.f32 %v18628_v32, %v10038_v26  ;;  %v14820_v32 = vor.u32 %v16022_v1, %v14819_v25  ;;  %v14596_v49 = vor.u32 %v15966_v36, %v14595_v0  ;;  %v15959_v26 = vld [vmem:[#allocation11 + $0xa40] sm:$0xf0]  ;;  %v14315_v25 = vld [vmem:[#allocation11 + $0x830] sm:$0xf]  ;;  %v15896_v1 = vld [vmem:[#allocation11 + $0x848] sm:$0xf0] }
 0x7e2   : > { %v10151_v22 = vpop.f32.mrf.mxu2  ;;  %v14568_v46 = vor.u32 %v15959_v26, %v14567_v23  ;;  %v16064_v0 = vld [vmem:[#allocation11 + $0xd88] sm:$0xf0]  ;;  %v14483_v26 = vld [vmem:[#allocation11 + $0x980] sm:$0xf] }
 0x7e3   : > { %10406 = vmatmul.bf16.gmra.mxu3 %v17669_v21  ;;  %v10152_v15 = vadd.f32 %v10151_v22, %v10123_v14  ;;  %v10096_v33 = vadd.f32 %v18690_v41, %v10067_v3  ;;  %v14371_v22 = vld [vmem:[#allocation11 + $0x8a0] sm:$0xf]  ;;  %10596 = vmatpush.bf16.msrb.mxu2 %v14820_v32 }
 0x7e4   : > { %v14372_v41 = vor.u32 %v15910_v24, %v14371_v22  ;;  %10567 = vmatpush.bf16.msrb.mxu1 %v14596_v49  ;;  %v15952_v22 = vld [vmem:[#allocation11 + $0xa08] sm:$0xf0]  ;;  %v14511_v49 = vld [vmem:[#allocation11 + $0x9b8] sm:$0xf] }
 0x7e5   : > { %v18705_v18 = vpop.f32.mrf.mxu0  ;;  %v19280_v24 = vld [vmem:[#allocation48_spill] sm:$0xff] }
 0x7e6   : > { %v18707_v45 = vpop.f32.mrf.mxu1  ;;  %v10175_v52 = vpop.f32.mrf.mxu3  ;;  %10538 = vmatpush.bf16.msrb.mxu0 %v14372_v41 }
 0x7e7   : > { %v16263_v28 = vpop.eup %16262  ;;  %v10176_v30 = vadd.f32 %v10175_v52, %v10147_v9  ;;  %v10041_v9 = vadd.f32 %v19275_v62, %v10012_v59 }
 0x7e8   : > { %10721 = vst [vmem:[%s17839_s15 + $0x58] sm:$0xff] %v16263_v28  ;;  %10329 = vmatmul.bf16.gmra.mxu0 %v19128_v10  ;;  %v16078_v28 = vld [vmem:[#allocation11 + $0xdf8] sm:$0xf0]  ;;  %10568 = vmatpush.bf16.msrb.mxu1 %v14568_v46 }
 0x7e9   : > { %16264 = vtanh.f32 %v10176_v30  ;;  %10358 = vmatmul.bf16.gmra.mxu1 %v17503_v34  ;;  %v10125_v30 = vadd.f32 %v18692_v48, %v10096_v33  ;;  %v15044_v29 = vor.u32 %v16078_v28, %v15043_v55  ;;  %v16008_v33 = vld [vmem:[#allocation11 + $0xbc8] sm:$0xf0]  ;;  %v14987_v28 = vld [vmem:[#allocation11 + $0xd70] sm:$0xf] }
 0x7ea   : > { %v18714_v8 = vpop.f32.mrf.mxu2  ;;  %v14988_v36 = vor.u32 %v16064_v0, %v14987_v28  ;;  %v19284_v28 = vld [vmem:[#allocation29_spill] sm:$0xff] }
 0x7eb   : > { %v10154_v47 = vadd.f32 %v18714_v8, %v10125_v30  ;;  %10625 = vmatpush.bf16.msrb.mxu3 %v15044_v29  ;;  %v14763_v8 = vld [vmem:[#allocation11 + $0xbb0] sm:$0xf]  ;;  %v14287_v30 = vld [vmem:[#allocation11 + $0x7f8] sm:$0xf]  ;;  %v15889_v29 = vld [vmem:[#allocation11 + $0x810] sm:$0xf0] }
 0x7ed   : > { %v18721_v35 = vpop.f32.mrf.mxu0 }
 0x7ee   : > { %v18723_v51 = vpop.f32.mrf.mxu1  ;;  %v10177_v44 = vpop.f32.mrf.mxu3 }
 0x7ef   : > { %v16265_v7 = vpop.eup %16264  ;;  %v10178_v6 = vadd.f32 %v10177_v44, %v10149_v13  ;;  %10387 = vmatmul.bf16.gmra.mxu2 %v17584_v17  ;;  %v10070_v13 = vadd.f32 %v19277_v27, %v10041_v9  ;;  %v14792_v44 = vor.u32 %v16015_v53, %v14791_v12  ;;  %v19281_v9 = vld [vmem:[#allocation38_spill] sm:$0xff] }
 0x7f0   : > { %10728 = vst [vmem:[%s17839_s15 + $0x90] sm:$0xff] %v16265_v7  ;;  %v16071_v7 = vld [vmem:[#allocation11 + $0xdc0] sm:$0xf0] }
 0x7f1   : > { %16266 = vtanh.f32 %v10178_v6  ;;  %v14344_v6 = vor.u32 %v15903_v58, %v14343_v38  ;;  %v15016_v39 = vor.u32 %v16071_v7, %v15015_v43  ;;  %10597 = vmatpush.bf16.msrb.mxu2 %v14792_v44  ;;  %v19282_v7 = vld [vmem:[#allocation21_spill] sm:$0xff] }
 0x7f2   : > { %v18729_v31 = vpop.f32.mrf.mxu2 }
 0x7f3   : > { %10411 = vmatmul.bf16.gmra.mxu3 %v17681_v19  ;;  %10539 = vmatpush.bf16.msrb.mxu0 %v14344_v6  ;;  %v14735_v6 = vld [vmem:[#allocation11 + $0xb78] sm:$0xf] }
 0x7f4   : > { %10626 = vmatpush.bf16.msrb.mxu3 %v15016_v39  ;;  %v16001_v39 = vld [vmem:[#allocation11 + $0xb90] sm:$0xf0] }
 0x7f5   : > { %v18737_v2 = vpop.f32.mrf.mxu0  ;;  %v14736_v46 = vor.u32 %v16001_v39, %v14735_v6  ;;  %v15917_v39 = vld [vmem:[#allocation11 + $0x8f0] sm:$0xf0] }
 0x7f6   : > { %v10180_v54 = vpop.f32.mrf.mxu3  ;;  %v18739_v4 = vpop.f32.mrf.mxu1 }
 0x7f7   : > { %v16267_v42 = vpop.eup %16266  ;;  %v10181_v60 = vadd.f32 %v10180_v54, %v10152_v15  ;;  %v10099_v15 = vadd.f32 %v18705_v18, %v10070_v13  ;;  %v14316_v18 = vor.u32 %v15896_v1, %v14315_v25  ;;  %v14512_v13 = vor.u32 %v15945_v11, %v14511_v49  ;;  %v15924_v49 = vld [vmem:[#allocation11 + $0x928] sm:$0xf0]  ;;  %v15987_v11 = vld [vmem:[#allocation11 + $0xb20] sm:$0xf0] }
 0x7f8   : > { %10735 = vst [vmem:[%s17839_s15 + $0xc8] sm:$0xff] %v16267_v42  ;;  %10430 = vmatmul.bf16.vlgmr.msra.gmra.mxu0 %v19273_v40  ;;  %v19278_v42 = vld [vmem:[#allocation28_spill] sm:$0xff]  ;;  %v14764_v40 = vor.u32 %v16008_v33, %v14763_v8  ;;  %10627 = vmatpush.bf16.msrb.mxu3 %v14988_v36 }
 0x7f9   : > { %16268 = vtanh.f32 %v10181_v60  ;;  %10459 = vmatmul.bf16.vlgmr.msra.gmra.mxu1 %v19274_v56  ;;  %v19279_v60 = vld [vmem:[#allocation44_spill] sm:$0xff]  ;;  %v14539_v56 = vld [vmem:[#allocation11 + $0x9f0] sm:$0xf]  ;;  %v10128_v62 = vadd.f32 %v18707_v45, %v10099_v15  ;;  %10540 = vmatpush.bf16.msrb.mxu0 %v14316_v18  ;;  %v14288_v45 = vor.u32 %v15889_v29, %v14287_v30 }
 0x7fa   : > { %v18747_v52 = vpop.f32.mrf.mxu2  ;;  %v10014_v59 = vadd.f32 %v19279_v60, %v9985_v20  ;;  %v14540_v41 = vor.u32 %v15952_v22, %v14539_v56  ;;  %10598 = vmatpush.bf16.msrb.mxu2 %v14764_v40  ;;  %v14231_v33 = vld [vmem:[#allocation11 + $0x788] sm:$0xf]  ;;  %v15875_v60 = vld [vmem:[#allocation11 + $0x7a0] sm:$0xf0]  ;;  %v15868_v36 = vld [vmem:[#allocation11 + $0x768] sm:$0xf0] }
 0x7fb   : > { %v10157_v53 = vadd.f32 %v18729_v31, %v10128_v62  ;;  %v19283_v31 = vld [vmem:[#allocation25_spill] sm:$0xff]  ;;  %v14232_v1 = vor.u32 %v15875_v60, %v14231_v33  ;;  %v15931_v56 = vld [vmem:[#allocation11 + $0x960] sm:$0xf0]  ;;  %v14623_v60 = vld [vmem:[#allocation11 + $0xa98] sm:$0xf] }
 0x7fc   : > { %v10043_v55 = vadd.f32 %v19280_v24, %v10014_v59  ;;  %10569 = vmatpush.bf16.msrb.mxu1 %v14540_v41  ;;  %v14455_v59 = vld [vmem:[#allocation11 + $0x948] sm:$0xf]  ;;  %v14707_v24 = vld [vmem:[#allocation11 + $0xb40] sm:$0xf]  ;;  %v14427_v29 = vld [vmem:[#allocation11 + $0x910] sm:$0xf] }
 0x7fd   : > { %v18754_v48 = vpop.f32.mrf.mxu0  ;;  %10541 = vmatpush.bf16.msrb.mxu0 %v14288_v45  ;;  %v14679_v45 = vld [vmem:[#allocation11 + $0xb08] sm:$0xf] }
 0x7fe   : > { %v10182_v14 = vpop.f32.mrf.mxu3  ;;  %v18756_v16 = vpop.f32.mrf.mxu1  ;;  %v10072_v12 = vadd.f32 %v18660_v57, %v10043_v55  ;;  %v14259_v57 = vld [vmem:[#allocation11 + $0x7c0] sm:$0xf]  ;;  %10599 = vmatpush.bf16.msrb.mxu2 %v14736_v46  ;;  %v15994_v55 = vld [vmem:[#allocation11 + $0xb58] sm:$0xf0] }
 0x7ff   : > { %v16269_v3 = vpop.eup %16268  ;;  %v10183_v54 = vadd.f32 %v10182_v14, %v10154_v47  ;;  %10488 = vmatmul.bf16.vlgmr.msra.gmra.mxu2 %v19278_v42  ;;  %v15882_v47 = vld [vmem:[#allocation11 + $0x7d8] sm:$0xf0]  ;;  %v16057_v42 = vld [vmem:[#allocation11 + $0xd50] sm:$0xf0]  ;;  %v14708_v0 = vor.u32 %v15994_v55, %v14707_v24 }
 0x800   : > { %10742 = vst [vmem:[%s17839_s15 + $0x100] sm:$0xff] %v16269_v3  ;;  %v10101_v58 = vadd.f32 %v18721_v35, %v10072_v12  ;;  %v14260_v23 = vor.u32 %v15882_v47, %v14259_v57  ;;  %10570 = vmatpush.bf16.msrb.mxu1 %v14512_v13  ;;  %v15938_v3 = vld [vmem:[#allocation11 + $0x998] sm:$0xf0]  ;;  %v14931_v13 = vld [vmem:[#allocation11 + $0xd00] sm:$0xf] }
 0x801   : > { %16270 = vtanh.f32 %v10183_v54  ;;  %v14484_v15 = vor.u32 %v15938_v3, %v14483_v26  ;;  %v14959_v54 = vld [vmem:[#allocation11 + $0xd38] sm:$0xf]  ;;  %v15861_v57 = vld [vmem:[#allocation11 + $0x730] sm:$0xf0]  ;;  %v14651_v3 = vld [vmem:[#allocation11 + $0xad0] sm:$0xf] }
 0x802   : > { %v18762_v32 = vpop.f32.mrf.mxu2  ;;  %v10130_v35 = vadd.f32 %v18723_v51, %v10101_v58  ;;  %v14960_v8 = vor.u32 %v16057_v42, %v14959_v54  ;;  %10542 = vmatpush.bf16.msrb.mxu0 %v14260_v23  ;;  %v14456_v51 = vor.u32 %v15931_v56, %v14455_v59  ;;  %10600 = vmatpush.bf16.msrb.mxu2 %v14708_v0  ;;  %v14399_v47 = vld [vmem:[#allocation11 + $0x8d8] sm:$0xf]  ;;  %v15973_v59 = vld [vmem:[#allocation11 + $0xab0] sm:$0xf0]  ;;  %v14875_v0 = vld [vmem:[#allocation11 + $0xc90] sm:$0xf] }
 0x803   : > { %10416 = vmatmul.bf16.gmra.mxu3 %v19281_v9  ;;  %v14680_v58 = vor.u32 %v15987_v11, %v14679_v45  ;;  %v14400_v46 = vor.u32 %v15917_v39, %v14399_v47  ;;  %v19286_v42 = vld [vmem:[#allocation22_spill] sm:$0xff]  ;;  %v14624_v56 = vor.u32 %v15973_v59, %v14623_v60  ;;  %v19291_v45 = vld [vmem:[#allocation27_spill] sm:$0xff] }
 0x804   : > { %v10159_v40 = vadd.f32 %v18747_v52, %v10130_v35  ;;  %10571 = vmatpush.bf16.msrb.mxu1 %v14484_v15  ;;  %10628 = vmatpush.bf16.msrb.mxu3 %v14960_v8  ;;  %v14203_v52 = vld [vmem:[#allocation11 + $0x750] sm:$0xf]  ;;  %v15980_v35 = vld [vmem:[#allocation11 + $0xae8] sm:$0xf0]  ;;  %v19287_v8 = vld [vmem:[#allocation26_spill] sm:$0xff] }
 0x805   : > { %v18769_v38 = vpop.f32.mrf.mxu0  ;;  %v14204_v30 = vor.u32 %v15868_v36, %v14203_v52  ;;  %v14652_v54 = vor.u32 %v15980_v35, %v14651_v3  ;;  %v16036_v52 = vld [vmem:[#allocation11 + $0xca8] sm:$0xf0]  ;;  %v19296_v59 = vld [vmem:[#allocation42_spill] sm:$0xff] }
 0x806   : > { %v10185_v20 = vpop.f32.mrf.mxu3  ;;  %v18771_v27 = vpop.f32.mrf.mxu1  ;;  %10543 = vmatpush.bf16.msrb.mxu0 %v14232_v1  ;;  %10601 = vmatpush.bf16.msrb.mxu2 %v14680_v58  ;;  %v16043_v1 = vld [vmem:[#allocation11 + $0xce0] sm:$0xf0]  ;;  %v14876_v36 = vor.u32 %v16036_v52, %v14875_v0  ;;  %v19294_v35 = vld [vmem:[#allocation36_spill] sm:$0xff] }
 0x807   : > { %v16271_v44 = vpop.eup %16270  ;;  %v10186_v43 = vadd.f32 %v10185_v20, %v10157_v53  ;;  %v14428_v53 = vor.u32 %v15924_v49, %v14427_v29  ;;  %v19285_v20 = vld [vmem:[#allocation32_spill] sm:$0xff] }
 0x808   : > { %10749 = vst [vmem:[%s17839_s15 + $0x138] sm:$0xff] %v16271_v44  ;;  %10435 = vmatmul.bf16.gmra.mxu0 %v19282_v7  ;;  %10572 = vmatpush.bf16.msrb.mxu1 %v14456_v51  ;;  %v16050_v44 = vld [vmem:[#allocation11 + $0xd18] sm:$0xf0]  ;;  %v14175_v7 = vld [vmem:[#allocation11 + $0x718] sm:$0xf] }
 0x809   : > { %16272 = vtanh.f32 %v10186_v43  ;;  %10464 = vmatmul.bf16.gmra.mxu1 %v19283_v31  ;;  %v14932_v43 = vor.u32 %v16050_v44, %v14931_v13  ;;  %v14176_v6 = vor.u32 %v15861_v57, %v14175_v7  ;;  %v16029_v13 = vld [vmem:[#allocation11 + $0xc70] sm:$0xf0]  ;;  %v19292_v57 = vld [vmem:[#allocation31_spill] sm:$0xff] }
 0x80a   : > { %v18777_v14 = vpop.f32.mrf.mxu2  ;;  %10544 = vmatpush.bf16.msrb.mxu0 %v14204_v30  ;;  %10602 = vmatpush.bf16.msrb.mxu2 %v14652_v54 }
 0x80b   : > { %10629 = vmatpush.bf16.msrb.mxu3 %v14932_v43 }
 0x80c   : > { %10573 = vmatpush.bf16.msrb.mxu1 %v14428_v53  ;;  %v19290_v53 = vld [vmem:[#allocation23_spill] sm:$0xff] }
 0x80d   : > { %v18781_v25 = vpop.f32.mrf.mxu0 }
 0x80e   : > { %v10187_v18 = vpop.f32.mrf.mxu3  ;;  %v18783_v22 = vpop.f32.mrf.mxu1  ;;  %10545 = vmatpush.bf16.msrb.mxu0 %v14176_v6  ;;  %10603 = vmatpush.bf16.msrb.mxu2 %v14624_v56  ;;  %v19293_v6 = vld [vmem:[#allocation34_spill] sm:$0xff] }
 0x80f   : > { %v16273_v62 = vpop.eup %16272  ;;  %v10188_v41 = vadd.f32 %v10187_v18, %v10159_v40  ;;  %10493 = vmatmul.bf16.gmra.mxu2 %v19284_v28  ;;  %v14903_v40 = vld [vmem:[#allocation11 + $0xcc8] sm:$0xf]  ;;  %v19289_v28 = vld [vmem:[#allocation33_spill] sm:$0xff] }
 0x810   : > { %10756 = vst [vmem:[%s17839_s15 + $0x170] sm:$0xff] %v16273_v62  ;;  %10574 = vmatpush.bf16.msrb.mxu1 %v14400_v46  ;;  %v14904_v18 = vor.u32 %v16043_v1, %v14903_v40  ;;  %v19288_v62 = vld [vmem:[#allocation30_spill] sm:$0xff]  ;;  %v19297_v40 = vld [vmem:[#allocation47_spill] sm:$0xff] }
 0x811   : > { %16274 = vtanh.f32 %v10188_v41  ;;  %v18839_v1 = vperm.slane %v19297_v40, 5 }
 0x812   : > { %v18787_v12 = vpop.f32.mrf.mxu2  ;;  %10630 = vmatpush.bf16.msrb.mxu3 %v14904_v18  ;;  %v19298_v18 = vld [vmem:[#allocation35_spill] sm:$0xff] }
 0x813   : > { %10517 = vmatmul.bf16.vlgmr.msra.gmra.mxu3 %v19285_v20  ;;  %v14847_v20 = vld [vmem:[#allocation11 + $0xc58] sm:$0xf] }
 0x814   : > { %v14848_v44 = vor.u32 %v16029_v13, %v14847_v20 }
 0x815   : > { %v18790_v31 = vpop.f32.mrf.mxu0 }
 0x816   : > { %v18792_v23 = vpop.f32.mrf.mxu1  ;;  %v18794_v26 = vpop.f32.mrf.mxu3  ;;  %10631 = vmatpush.bf16.msrb.mxu3 %v14876_v36  ;;  %v19299_v36 = vld [vmem:[#allocation37_spill] sm:$0xff] }
 0x817   : > { %v16275_v15 = vpop.eup %16274 }
 0x818   : > { %10763 = vst [vmem:[%s17839_s15 + $0x1a8] sm:$0xff] %v16275_v15  ;;  %10440 = vmatmul.bf16.gmra.mxu0 %v19286_v42  ;;  %v19295_v15 = vld [vmem:[#allocation40_spill] sm:$0xff] }
 0x819   : > { %10469 = vmatmul.bf16.gmra.mxu1 %v19287_v8 }
 0x81a   : > { %v18799_v33 = vpop.f32.mrf.mxu2  ;;  %10632 = vmatpush.bf16.msrb.mxu3 %v14848_v44  ;;  %v10202_v44 = vadd.f32 %v18754_v48, %v18839_v1  ;;  %v10205_v48 = vadd.f32 %v18769_v38, %v18839_v1  ;;  %v10207_v38 = vadd.f32 %v18781_v25, %v18839_v1 }
 0x81d   : > { %v18801_v51 = vpop.f32.mrf.mxu0 }
 0x81e   : > { %v18803_v24 = vpop.f32.mrf.mxu1  ;;  %v10288_v55 = vpop.f32.mrf.mxu3 }
 0x81f   : > { %10498 = vmatmul.bf16.gmra.mxu2 %v19288_v62  ;;  %v10200_v62 = vadd.f32 %v18737_v2, %v18839_v1 }
 0x822   : > { %v18806_v41 = vpop.f32.mrf.mxu2 }
 0x823   : > { %10522 = vmatmul.bf16.gmra.mxu3 %v19289_v28 }
 0x825   : > { %v18809_v30 = vpop.f32.mrf.mxu0 }
 0x826   : > { %v18811_v29 = vpop.f32.mrf.mxu1  ;;  %v18813_v49 = vpop.f32.mrf.mxu3 }
 0x828   : > { %10445 = vmatmul.bf16.gmra.mxu0 %v19290_v53  ;;  %v10229_v53 = vadd.f32 %v18739_v4, %v10200_v62 }
 0x829   : > { %10474 = vmatmul.bf16.gmra.mxu1 %v19291_v45  ;;  %v19300_v45 = vld [vmem:[#allocation41_spill] sm:$0xff] }
 0x82a   : > { %v18817_v11 = vpop.f32.mrf.mxu2  ;;  %v10258_v13 = vadd.f32 %v18762_v32, %v10229_v53 }
 0x82d   : > { %v18819_v58 = vpop.f32.mrf.mxu0 }
 0x82e   : > { %v18821_v43 = vpop.f32.mrf.mxu1  ;;  %v18823_v7 = vpop.f32.mrf.mxu3 }
 0x82f   : > { %10503 = vmatmul.bf16.gmra.mxu2 %v19292_v57  ;;  %v10287_v57 = vadd.f32 %v18794_v26, %v10258_v13 }
 0x832   : > { %v18826_v47 = vpop.f32.mrf.mxu2 }
 0x833   : > { %10527 = vmatmul.bf16.gmra.mxu3 %v19293_v6 }
 0x835   : > { %v10315_v39 = vpop.f32.mrf.mxu0 }
 0x836   : > { %v18829_v46 = vpop.f32.mrf.mxu3  ;;  %v10344_v3 = vpop.f32.mrf.mxu1 }
 0x838   : > { %10546 = vmatmul.bf16.vlgmr.msrb.gmra.mxu0 %v19294_v35 }
 0x839   : > { %10575 = vmatmul.bf16.vlgmr.msrb.gmra.mxu1 %v19295_v15  ;;  %v10316_v15 = vadd.f32 %v10315_v39, %v10287_v57 }
 0x83a   : > { %v18833_v54 = vpop.f32.mrf.mxu2 }
 0x83d   : > { %v10317_v42 = vpop.f32.mrf.mxu0 }
 0x83e   : > { %v18835_v8 = vpop.f32.mrf.mxu3  ;;  %v10346_v60 = vpop.f32.mrf.mxu1 }
 0x83f   : > { %10604 = vmatmul.bf16.vlgmr.msrb.gmra.mxu2 %v19296_v59  ;;  %v10231_v59 = vadd.f32 %v18756_v16, %v10202_v44 }
 0x841   : > { %v10260_v40 = vadd.f32 %v18777_v14, %v10231_v59 }
 0x842   : > { %v10373_v56 = vpop.f32.mrf.mxu2 }
 0x843   : > { %10532 = vmatmul.bf16.gmra.mxu3 %v19298_v18  ;;  %v10345_v18 = vadd.f32 %v10344_v3, %v10316_v15  ;;  %v10289_v32 = vadd.f32 %v10288_v55, %v10260_v40 }
 0x845   : > { %v10320_v28 = vpop.f32.mrf.mxu0  ;;  %v10374_v26 = vadd.f32 %v10373_v56, %v10345_v18 }
 0x846   : > { %v18844_v0 = vpop.f32.mrf.mxu3  ;;  %v10349_v52 = vpop.f32.mrf.mxu1 }
 0x848   : > { %10551 = vmatmul.bf16.gmra.mxu0 %v19299_v36 }
 0x849   : > { %10580 = vmatmul.bf16.gmra.mxu1 %v19300_v45  ;;  %v10318_v45 = vadd.f32 %v10317_v42, %v10289_v32 }
 0x84a   : > { %v10375_v20 = vpop.f32.mrf.mxu2 }
 0x84b   : > { %v10347_v14 = vadd.f32 %v10346_v60, %v10318_v45 }
 0x84d   : > { %v10322_v6 = vpop.f32.mrf.mxu0  ;;  %v10376_v3 = vadd.f32 %v10375_v20, %v10347_v14 }
 0x84e   : > { %v18853_v2 = vpop.f32.mrf.mxu3  ;;  %v10351_v35 = vpop.f32.mrf.mxu1 }
 0x84f   : > { %10609 = vmatmul.bf16.gmra.mxu2 %v17562_v61  ;;  %v10234_v61 = vadd.f32 %v18771_v27, %v10205_v48 }
 0x852   : > { %v10378_v4 = vpop.f32.mrf.mxu2 }
 0x853   : > { %10633 = vmatmul.bf16.vlgmr.msrb.gmra.mxu3 %v17656_v50  ;;  %v10263_v50 = vadd.f32 %v18787_v12, %v10234_v61 }
 0x855   : > { %v10325_v62 = vpop.f32.mrf.mxu0  ;;  %v10292_v55 = vadd.f32 %v18813_v49, %v10263_v50  ;;  %v10210_v49 = vadd.f32 %v18790_v31, %v18839_v1 }
 0x856   : > { %v10354_v36 = vpop.f32.mrf.mxu1  ;;  %v10402_v53 = vpop.f32.mrf.mxu3 }
 0x857   : > { %v10403_v39 = vadd.f32 %v10402_v53, %v10374_v26  ;;  %v10321_v44 = vadd.f32 %v10320_v28, %v10292_v55 }
 0x858   : > { %10556 = vmatmul.bf16.gmra.mxu0 %v19127_v5 }
 0x859   : > { %16276 = vtanh.f32 %v10403_v39  ;;  %10585 = vmatmul.bf16.gmra.mxu1 %v17490_v63  ;;  %v10236_v63 = vadd.f32 %v18783_v22, %v10207_v38  ;;  %v10350_v25 = vadd.f32 %v10349_v52, %v10321_v44  ;;  %v10239_v22 = vadd.f32 %v18792_v23, %v10210_v49 }
 0x85a   : > { %v10380_v16 = vpop.f32.mrf.mxu2 }
 0x85b   : > { %v10265_v60 = vadd.f32 %v18799_v33, %v10236_v63  ;;  %v10379_v28 = vadd.f32 %v10378_v4, %v10350_v25  ;;  %v10268_v31 = vadd.f32 %v18806_v41, %v10239_v22 }
 0x85d   : > { %v10327_v42 = vpop.f32.mrf.mxu0  ;;  %v10294_v20 = vadd.f32 %v18823_v7, %v10265_v60  ;;  %v10212_v7 = vadd.f32 %v18801_v51, %v18839_v1  ;;  %v10297_v52 = vadd.f32 %v18829_v46, %v10268_v31  ;;  %v10215_v46 = vadd.f32 %v18809_v30, %v18839_v1 }
 0x85e   : > { %v10356_v56 = vpop.f32.mrf.mxu1  ;;  %v10404_v13 = vpop.f32.mrf.mxu3 }
 0x85f   : > { %v16277_v5 = vpop.eup %16276  ;;  %v10405_v27 = vadd.f32 %v10404_v13, %v10376_v3  ;;  %10614 = vmatmul.bf16.gmra.mxu2 %v17570_v37  ;;  %v10323_v40 = vadd.f32 %v10322_v6, %v10294_v20  ;;  %v10326_v26 = vadd.f32 %v10325_v62, %v10297_v52 }
 0x860   : > { %10715 = vst [vmem:[%s17839_s15 + $0x28] sm:$0xff] %v16277_v5 }
 0x861   : > { %16278 = vtanh.f32 %v10405_v27  ;;  %v10352_v33 = vadd.f32 %v10351_v35, %v10323_v40  ;;  %v10355_v51 = vadd.f32 %v10354_v36, %v10326_v26 }
 0x862   : > { %v10383_v12 = vpop.f32.mrf.mxu2 }
 0x863   : > { %10638 = vmatmul.bf16.gmra.mxu3 %v17669_v21  ;;  %v10381_v6 = vadd.f32 %v10380_v16, %v10352_v33  ;;  %v10384_v62 = vadd.f32 %v10383_v12, %v10355_v51 }
 0x865   : > { %v10330_v57 = vpop.f32.mrf.mxu0 }
 0x866   : > { %v10359_v15 = vpop.f32.mrf.mxu1  ;;  %v10407_v37 = vpop.f32.mrf.mxu3 }
 0x867   : > { %v16279_v59 = vpop.eup %16278  ;;  %v10408_v18 = vadd.f32 %v10407_v37, %v10379_v28 }
 0x868   : > { %10722 = vst [vmem:[%s17839_s15 + $0x60] sm:$0xff] %v16279_v59  ;;  %10561 = vmatmul.bf16.gmra.mxu0 %v19128_v10 }
 0x869   : > { %16280 = vtanh.f32 %v10408_v18  ;;  %10590 = vmatmul.bf16.gmra.mxu1 %v17503_v34  ;;  %v10241_v34 = vadd.f32 %v18803_v24, %v10212_v7 }
 0x86a   : > { %v10385_v21 = vpop.f32.mrf.mxu2 }
 0x86b   : > { %v10270_v35 = vadd.f32 %v18817_v11, %v10241_v34  ;;  %v10244_v11 = vadd.f32 %v18811_v29, %v10215_v46  ;;  %v16313_v46 = vld [vmem:[#allocation13] sm:$0xff] }
 0x86d   : > { %v10332_v4 = vpop.f32.mrf.mxu0  ;;  %v10299_v53 = vadd.f32 %v18835_v8, %v10270_v35  ;;  %v10273_v36 = vadd.f32 %v18826_v47, %v10244_v11  ;;  %v10217_v8 = vadd.f32 %v18819_v58, %v18839_v1 }
 0x86e   : > { %v10361_v48 = vpop.f32.mrf.mxu1  ;;  %v10409_v32 = vpop.f32.mrf.mxu3 }
 0x86f   : > { %v16281_v10 = vpop.eup %16280  ;;  %v10410_v23 = vadd.f32 %v10409_v32, %v10381_v6  ;;  %10619 = vmatmul.bf16.gmra.mxu2 %v17584_v17  ;;  %v10328_v24 = vadd.f32 %v10327_v42, %v10299_v53  ;;  %v10302_v50 = vadd.f32 %v18844_v0, %v10273_v36  ;;  %v10246_v29 = vadd.f32 %v18821_v43, %v10217_v8 }
 0x870   : > { %10729 = vst [vmem:[%s17839_s15 + $0x98] sm:$0xff] %v16281_v10  ;;  %v18946_v53 = vperm.slane %v16313_v46, 6 }
 0x871   : > { %16282 = vtanh.f32 %v10410_v23  ;;  %v10357_v30 = vadd.f32 %v10356_v56, %v10328_v24  ;;  %v10331_v13 = vadd.f32 %v10330_v57, %v10302_v50  ;;  %v10275_v56 = vadd.f32 %v18833_v54, %v10246_v29 }
 0x872   : > { %v10388_v41 = vpop.f32.mrf.mxu2 }
 0x873   : > { %10643 = vmatmul.bf16.gmra.mxu3 %v17681_v19  ;;  %v10386_v14 = vadd.f32 %v10385_v21, %v10357_v30  ;;  %v10360_v58 = vadd.f32 %v10359_v15, %v10331_v13  ;;  %v10304_v1 = vadd.f32 %v18853_v2, %v10275_v56 }
 0x875   : > { %v18892_v45 = vpop.f32.mrf.mxu0  ;;  %v10389_v0 = vadd.f32 %v10388_v41, %v10360_v58  ;;  %v10333_v12 = vadd.f32 %v10332_v4, %v10304_v1 }
 0x876   : > { %v10412_v17 = vpop.f32.mrf.mxu3  ;;  %v18894_v39 = vpop.f32.mrf.mxu1 }
 0x877   : > { %v16283_v61 = vpop.eup %16282  ;;  %v10413_v16 = vadd.f32 %v10412_v17, %v10384_v62  ;;  %v10362_v49 = vadd.f32 %v10361_v48, %v10333_v12 }
 0x878   : > { %10736 = vst [vmem:[%s17839_s15 + $0xd0] sm:$0xff] %v16283_v61  ;;  %v10432_v61 = vadd.f32 %v18892_v45, %v18946_v53 }
 0x879   : > { %16284 = vtanh.f32 %v10413_v16 }
 0x87a   : > { %v10390_v19 = vpop.f32.mrf.mxu2  ;;  %v10461_v11 = vadd.f32 %v18894_v39, %v10432_v61 }
 0x87b   : > { %v10391_v54 = vadd.f32 %v10390_v19, %v10362_v49 }
 0x87d   : > { %v18902_v38 = vpop.f32.mrf.mxu0 }
 0x87e   : > { %v10414_v55 = vpop.f32.mrf.mxu3  ;;  %v18904_v3 = vpop.f32.mrf.mxu1  ;;  %v10434_v36 = vadd.f32 %v18902_v38, %v18946_v53 }
 0x87f   : > { %v16285_v42 = vpop.eup %16284  ;;  %v10415_v5 = vadd.f32 %v10414_v55, %v10386_v14 }
 0x880   : > { %10743 = vst [vmem:[%s17839_s15 + $0x108] sm:$0xff] %v16285_v42  ;;  %v10463_v42 = vadd.f32 %v18904_v3, %v10434_v36 }
 0x881   : > { %16286 = vtanh.f32 %v10415_v5 }
 0x882   : > { %v10489_v47 = vpop.f32.mrf.mxu2 }
 0x883   : > { %10648 = vmatmul.bf16.gmra.mxu3 %v19281_v9  ;;  %v10490_v19 = vadd.f32 %v10489_v47, %v10461_v11 }
 0x885   : > { %v10436_v44 = vpop.f32.mrf.mxu0 }
 0x886   : > { %v10417_v27 = vpop.f32.mrf.mxu3  ;;  %v18911_v25 = vpop.f32.mrf.mxu1  ;;  %v10437_v29 = vadd.f32 %v10436_v44, %v18946_v53 }
 0x887   : > { %v16287_v63 = vpop.eup %16286  ;;  %v10418_v60 = vadd.f32 %v10417_v27, %v10389_v0 }
 0x888   : > { %10750 = vst [vmem:[%s17839_s15 + $0x140] sm:$0xff] %v16287_v63  ;;  %v10466_v27 = vadd.f32 %v18911_v25, %v10437_v29 }
 0x889   : > { %16288 = vtanh.f32 %v10418_v60 }
 0x88a   : > { %v10491_v43 = vpop.f32.mrf.mxu2 }
 0x88b   : > { %v10492_v5 = vadd.f32 %v10491_v43, %v10463_v42 }
 0x88d   : > { %v10438_v20 = vpop.f32.mrf.mxu0 }
 0x88e   : > { %v10419_v28 = vpop.f32.mrf.mxu3  ;;  %v18915_v2 = vpop.f32.mrf.mxu1  ;;  %v10439_v3 = vadd.f32 %v10438_v20, %v18946_v53 }
 0x88f   : > { %v16289_v9 = vpop.eup %16288  ;;  %v10420_v57 = vadd.f32 %v10419_v28, %v10391_v54 }
 0x890   : > { %10757 = vst [vmem:[%s17839_s15 + $0x178] sm:$0xff] %v16289_v9 }
 0x891   : > { %16290 = vtanh.f32 %v10420_v57  ;;  %v10468_v57 = vadd.f32 %v18915_v2, %v10439_v3 }
 0x892   : > { %v10494_v15 = vpop.f32.mrf.mxu2 }
 0x893   : > { %v10495_v63 = vadd.f32 %v10494_v15, %v10466_v27 }
 0x895   : > { %v18917_v37 = vpop.f32.mrf.mxu0 }
 0x896   : > { %v10518_v59 = vpop.f32.mrf.mxu3  ;;  %v18920_v22 = vpop.f32.mrf.mxu1  ;;  %v10442_v15 = vadd.f32 %v18917_v37, %v18946_v53 }
 0x897   : > { %v16291_v40 = vpop.eup %16290  ;;  %v10519_v30 = vadd.f32 %v10518_v59, %v10490_v19 }
 0x898   : > { %10764 = vst [vmem:[%s17839_s15 + $0x1b0] sm:$0xff] %v16291_v40 }
 0x89a   : > { %v10496_v18 = vpop.f32.mrf.mxu2 }
 0x89b   : > { %v10497_v25 = vadd.f32 %v10496_v18, %v10468_v57 }
 0x89d   : > { %v18922_v31 = vpop.f32.mrf.mxu0 }
 0x89e   : > { %v10520_v21 = vpop.f32.mrf.mxu3  ;;  %v18926_v7 = vpop.f32.mrf.mxu1  ;;  %v10444_v37 = vadd.f32 %v18922_v31, %v18946_v53 }
 0x89f   : > { %v10521_v56 = vadd.f32 %v10520_v21, %v10492_v5 }
 0x8a2   : > { %v18924_v33 = vpop.f32.mrf.mxu2 }
 0x8a5   : > { %v18928_v6 = vpop.f32.mrf.mxu0 }
 0x8a6   : > { %v10523_v52 = vpop.f32.mrf.mxu3  ;;  %v18932_v32 = vpop.f32.mrf.mxu1  ;;  %v10447_v5 = vadd.f32 %v18928_v6, %v18946_v53 }
 0x8a7   : > { %v10524_v43 = vadd.f32 %v10523_v52, %v10495_v63 }
 0x8aa   : > { %v18930_v4 = vpop.f32.mrf.mxu2 }
 0x8ad   : > { %v18936_v26 = vpop.f32.mrf.mxu0 }
 0x8ae   : > { %v10525_v48 = vpop.f32.mrf.mxu3  ;;  %v18940_v34 = vpop.f32.mrf.mxu1  ;;  %v10449_v6 = vadd.f32 %v18936_v26, %v18946_v53 }
 0x8b2   : > { %v18934_v10 = vpop.f32.mrf.mxu2 }
 0x8b5   : > { %v10547_v35 = vpop.f32.mrf.mxu0 }
 0x8b6   : > { %v18938_v23 = vpop.f32.mrf.mxu3  ;;  %v10576_v62 = vpop.f32.mrf.mxu1  ;;  %v10548_v55 = vadd.f32 %v10547_v35, %v10519_v30  ;;  %v10526_v35 = vadd.f32 %v10525_v48, %v10497_v25 }
 0x8b8   : > { %v10577_v45 = vadd.f32 %v10576_v62, %v10548_v55 }
 0x8ba   : > { %v18942_v41 = vpop.f32.mrf.mxu2 }
 0x8bd   : > { %v10549_v16 = vpop.f32.mrf.mxu0 }
 0x8be   : > { %v18944_v51 = vpop.f32.mrf.mxu3  ;;  %v10578_v8 = vpop.f32.mrf.mxu1  ;;  %v10550_v47 = vadd.f32 %v10549_v16, %v10521_v56  ;;  %v10471_v16 = vadd.f32 %v18920_v22, %v10442_v15  ;;  %v10473_v22 = vadd.f32 %v18926_v7, %v10444_v37  ;;  %v10476_v7 = vadd.f32 %v18932_v32, %v10447_v5 }
 0x8bf   : > { %v10478_v32 = vadd.f32 %v18940_v34, %v10449_v6 }
 0x8c0   : > { %v10579_v12 = vadd.f32 %v10578_v8, %v10550_v47  ;;  %v10500_v2 = vadd.f32 %v18924_v33, %v10471_v16  ;;  %v10502_v33 = vadd.f32 %v18930_v4, %v10473_v22  ;;  %v10505_v4 = vadd.f32 %v18934_v10, %v10476_v7 }
 0x8c1   : > { %v10507_v10 = vadd.f32 %v18942_v41, %v10478_v32 }
 0x8c2   : > { %v10605_v17 = vpop.f32.mrf.mxu2  ;;  %v10529_v48 = vadd.f32 %v18938_v23, %v10500_v2  ;;  %v10531_v31 = vadd.f32 %v18944_v51, %v10502_v33 }
 0x8c3   : > { %v10606_v58 = vadd.f32 %v10605_v17, %v10577_v45 }
 0x8c5   : > { %v10552_v13 = vpop.f32.mrf.mxu0 }
 0x8c6   : > { %v18950_v24 = vpop.f32.mrf.mxu3  ;;  %v10581_v1 = vpop.f32.mrf.mxu1  ;;  %v10553_v28 = vadd.f32 %v10552_v13, %v10524_v43 }
 0x8c7   : > { %v10534_v51 = vadd.f32 %v18950_v24, %v10505_v4 }
 0x8c8   : > { %v10582_v21 = vadd.f32 %v10581_v1, %v10553_v28 }
 0x8ca   : > { %v10607_v50 = vpop.f32.mrf.mxu2 }
 0x8cb   : > { %v10608_v49 = vadd.f32 %v10607_v50, %v10579_v12 }
 0x8cd   : > { %v10554_v60 = vpop.f32.mrf.mxu0 }
 0x8ce   : > { %v18955_v14 = vpop.f32.mrf.mxu3  ;;  %v10583_v59 = vpop.f32.mrf.mxu1  ;;  %v10555_v17 = vadd.f32 %v10554_v60, %v10526_v35 }
 0x8cf   : > { %v10536_v26 = vadd.f32 %v18955_v14, %v10507_v10 }
 0x8d0   : > { %v10584_v11 = vadd.f32 %v10583_v59, %v10555_v17 }
 0x8d2   : > { %v10610_v0 = vpop.f32.mrf.mxu2 }
 0x8d3   : > { %v10611_v20 = vadd.f32 %v10610_v0, %v10582_v21 }
 0x8d5   : > { %v10557_v52 = vpop.f32.mrf.mxu0 }
 0x8d6   : > { %v10634_v39 = vpop.f32.mrf.mxu3  ;;  %v10586_v18 = vpop.f32.mrf.mxu1  ;;  %v10558_v50 = vadd.f32 %v10557_v52, %v10529_v48 }
 0x8d7   : > { %v10635_v38 = vadd.f32 %v10634_v39, %v10606_v58 }
 0x8d8   : > { %v10587_v13 = vadd.f32 %v10586_v18, %v10558_v50 }
 0x8d9   : > { %16292 = vtanh.f32 %v10635_v38 }
 0x8da   : > { %v10612_v40 = vpop.f32.mrf.mxu2 }
 0x8db   : > { %v10613_v36 = vadd.f32 %v10612_v40, %v10584_v11 }
 0x8dd   : > { %v10559_v42 = vpop.f32.mrf.mxu0 }
 0x8de   : > { %v10636_v54 = vpop.f32.mrf.mxu3  ;;  %v10588_v23 = vpop.f32.mrf.mxu1  ;;  %v10560_v39 = vadd.f32 %v10559_v42, %v10531_v31 }
 0x8df   : > { %v16293_v44 = vpop.eup %16292  ;;  %v10637_v9 = vadd.f32 %v10636_v54, %v10608_v49 }
 0x8e0   : > { %10716 = vst [vmem:[%s17839_s15 + $0x30] sm:$0xff] %v16293_v44  ;;  %v10589_v38 = vadd.f32 %v10588_v23, %v10560_v39 }
 0x8e1   : > { %16294 = vtanh.f32 %v10637_v9 }
 0x8e2   : > { %v10615_v19 = vpop.f32.mrf.mxu2 }
 0x8e3   : > { %v10616_v45 = vadd.f32 %v10615_v19, %v10587_v13 }
 0x8e5   : > { %v10562_v1 = vpop.f32.mrf.mxu0 }
 0x8e6   : > { %v10639_v46 = vpop.f32.mrf.mxu3  ;;  %v10563_v12 = vadd.f32 %v10562_v1, %v10534_v51  ;;  %v10591_v3 = vpop.f32.mrf.mxu1 }
 0x8e7   : > { %v16295_v62 = vpop.eup %16294  ;;  %v10640_v61 = vadd.f32 %v10639_v46, %v10611_v20 }
 0x8e8   : > { %10723 = vst [vmem:[%s17839_s15 + $0x68] sm:$0xff] %v16295_v62  ;;  %v10592_v49 = vadd.f32 %v10591_v3, %v10563_v12 }
 0x8e9   : > { %16296 = vtanh.f32 %v10640_v61 }
 0x8ea   : > { %v10617_v29 = vpop.f32.mrf.mxu2 }
 0x8eb   : > { %v10618_v0 = vadd.f32 %v10617_v29, %v10589_v38 }
 0x8ed   : > { %v10564_v54 = vpop.f32.mrf.mxu0 }
 0x8ee   : > { %v10641_v30 = vpop.f32.mrf.mxu3  ;;  %v10565_v28 = vadd.f32 %v10564_v54, %v10536_v26  ;;  %v10593_v57 = vpop.f32.mrf.mxu1 }
 0x8ef   : > { %v16297_v8 = vpop.eup %16296  ;;  %v10642_v55 = vadd.f32 %v10641_v30, %v10613_v36 }
 0x8f0   : > { %10730 = vst [vmem:[%s17839_s15 + $0xa0] sm:$0xff] %v16297_v8  ;;  %v10594_v59 = vadd.f32 %v10593_v57, %v10565_v28 }
 0x8f1   : > { %16298 = vtanh.f32 %v10642_v55 }
 0x8f2   : > { %v10620_v43 = vpop.f32.mrf.mxu2 }
 0x8f3   : > { %v10621_v53 = vadd.f32 %v10620_v43, %v10592_v49 }
 0x8f6   : > { %v10644_v56 = vpop.f32.mrf.mxu3 }
 0x8f7   : > { %v16299_v58 = vpop.eup %16298  ;;  %v10645_v47 = vadd.f32 %v10644_v56, %v10616_v45 }
 0x8f8   : > { %10737 = vst [vmem:[%s17839_s15 + $0xd8] sm:$0xff] %v16299_v58 }
 0x8f9   : > { %16300 = vtanh.f32 %v10645_v47 }
 0x8fa   : > { %v10622_v34 = vpop.f32.mrf.mxu2 }
 0x8fb   : > { %v10623_v41 = vadd.f32 %v10622_v34, %v10594_v59 }
 0x8fe   : > { %v10646_v27 = vpop.f32.mrf.mxu3 }
 0x8ff   : > { %v16301_v63 = vpop.eup %16300  ;;  %v10647_v60 = vadd.f32 %v10646_v27, %v10618_v0 }
 0x900   : > { %10744 = vst [vmem:[%s17839_s15 + $0x110] sm:$0xff] %v16301_v63 }
 0x901   : > { %16302 = vtanh.f32 %v10647_v60 }
 0x906   : > { %v10649_v24 = vpop.f32.mrf.mxu3 }
 0x907   : > { %v16303_v44 = vpop.eup %16302  ;;  %v10650_v9 = vadd.f32 %v10649_v24, %v10621_v53 }
 0x908   : > { %10751 = vst [vmem:[%s17839_s15 + $0x148] sm:$0xff] %v16303_v44 }
 0x909   : > { %16304 = vtanh.f32 %v10650_v9 }
 0x90e   : > { %v10651_v40 = vpop.f32.mrf.mxu3 }
 0x90f   : > { %v16305_v25 = vpop.eup %16304  ;;  %v10652_v14 = vadd.f32 %v10651_v40, %v10623_v41 }
 0x910   : > { %10758 = vst [vmem:[%s17839_s15 + $0x180] sm:$0xff] %v16305_v25 }
 0x911   : > { %16306 = vtanh.f32 %v10652_v14 }
 0x917   : > { %v16307_v21 = vpop.eup %16306 }
 0x918   : > { %10765 = vst [vmem:[%s17839_s15 + $0x1b8] sm:$0xff] %v16307_v21 }
 0x919   : > { %16551 = shalt.err (!%p16548_p9)
}
 0x91a   : > { %s16616_s28 = smov 896   ;;  %s16617_s9 = smov 56  }
 0x91b   : > { %16107 = dma.vmem_to_hbm [thread:$0]  (%p16755_p4), %s10781_s21, 7168, %s10783_s18, %s10767_s22, %s16616_s28, %s16616_s28, %s16617_s9  }
 0x91c PF: > { %s10797_s15 = sand.u32 1, %s16590_s24   ;;  %p19301_p10 = scmp.ge.s32.totalorder %s16602_s27, 2 }
 0x91d   : > { %s10798_s29 = scalar_lea.sflag [#allocation4], %s10797_s15 }
 0x91e   : > { %p16133_p13 = pnand %p19301_p10, %p16759_p6 }
 0x920   : > { %p16134_p11 = pneg %p16133_p13 }
 0x922   : > { %16585 = dma.done.wait (%p16134_p11), %s10798_s29, 7168  }
 0x923   : > { %16587 = vsyncadd (%p16134_p11), %s10798_s29, 4294960128  ;;  %p23_p0 = scmp.ge.s32.totalorder %s16729_s12, 4   ;;  %s19302_s24 = smov %s16594_s25 }
 0x924   : > { %s19303_s25 = smov %s16598_s26  ;;  %s19304_s26 = smov %s16740_s30 }
 0x925   : > { %s19305_s27 = smov %s16729_s12  ;;  %25 = sbr.rel (!%p23_p0) target bundleno = 11 (0xb), region = 117 }
 0x92a   :  { %10804 = vsyncpa [#allocation3], 1 }
 0x92b   :  { %10806 = vsyncpa [#allocation3 + $0x1], 1 }
 0x92c   :  { %10807 = vsyncpa [#allocation6], 1 }
 0x92d   :  { %10808 = vsyncpa [#allocation9], 1 }
 0x92e   :  { %10809 = vsyncpa [#allocation12], 1 }
 0x92f   :  { %10810 = vsyncpa [#allocation4], 1 }
 0x930   :  { %10812 = vsyncpa [#allocation4 + $0x1], 1 }

</bundles_post_ra>
